<compile_context>
chip_gen: v7x
topology: tpu7x:2x2x1
jax: 0.10.0
libtpu: 0.0.40
codegen_flags: <defaults>
</compile_context>

<pallas_src>
import numpy as np
import jax
import jax.numpy as jnp
from jax.experimental import pallas as pl
from jax.experimental.pallas import tpu as pltpu


# ------------------------------ fused kernel --------------------------------

def _net_kernel(x_ref,
                g1_ref, bh1_ref,
                g2_hbm_ref, bh2_ref,
                g3_hbm_ref, bh3_ref,
                v1_ref, fb1_ref, w2_ref, fb2_ref,
                out_ref,
                a1_ref, a2_ref, a3_ref,
                acc1_ref, acc2_ref, acc3_ref,
                g2_vmem, g3_vmem, dma_sem):
    f32 = jnp.float32
    bf16 = jnp.bfloat16
    B = x_ref.shape[0]

    # Prefetch the stage-2/3 weight matrices HBM->VMEM so the DMA overlaps
    # stage-1 compute (they are waited on just before their stage runs).
    cp2 = pltpu.make_async_copy(g2_hbm_ref, g2_vmem, dma_sem.at[0])
    cp3 = pltpu.make_async_copy(g3_hbm_ref, g3_vmem, dma_sem.at[1])
    cp2.start()
    cp3.start()

    def conv_pool(a_ref, acc_ref, src, H, L_in, g, bh_ref, W, Cout):
        # src: (B, H, L_in) activation, lanes ordered (w*Cin + c).
        # a_ref: (B, H+4, L_in) f32 scratch; only the 4 halo rows are zeroed,
        # the interior is fully overwritten by src.
        a_ref[:, 0:2, :] = jnp.zeros((B, 2, L_in), f32)
        a_ref[:, H + 2:H + 4, :] = jnp.zeros((B, 2, L_in), f32)
        a_ref[:, 2:2 + H, :] = src

        # 5x5 conv = sum over ky of one lane-dense bf16 MXU matmul with the
        # banded weight-scatter matrix G_ky (absorbs kx taps, W padding and the
        # channel contraction).  Accumulate into an f32 VMEM scratch so the
        # (B*H, W*Cout) accumulator never lives in the vreg file.
        for ky in range(5):
            lhs = a_ref[:, ky:ky + H, :].reshape(B * H, L_in).astype(bf16)
            part = jnp.dot(lhs, g[ky], preferred_element_type=f32)
            if ky == 0:
                acc_ref[...] = part
            else:
                acc_ref[...] += part

        # MaxPool 2x2.  Bias is per output channel only, so it commutes with
        # the max and is added once on the pooled (4x smaller) result.
        #  - W direction: columns ordered (w%2, w//2, cout) -> max of two
        #    128-aligned lane halves read straight from the accumulator ref.
        #  - H direction: even/odd sublane split + elementwise max.
        half = (W // 2) * Cout
        zw = jnp.maximum(acc_ref[:, :half], acc_ref[:, half:])    # (B*H, half)
        zp = jnp.max(zw.reshape(B * (H // 2), 2, half), axis=1)   # (B*H/2, half)
        return zp + bh_ref[...]

    # stage 1: 32x32x3 -> 16x16x32
    p1 = conv_pool(a1_ref, acc1_ref, x_ref[...], 32, 96,
                   g1_ref, bh1_ref, 32, 32)                       # (B*16, 512)
    cp2.wait()
    # stage 2: 16x16x32 -> 8x8x32
    p2 = conv_pool(a2_ref, acc2_ref, p1.reshape(B, 16, 512), 16, 512,
                   g2_vmem, bh2_ref, 16, 32)                      # (B*8, 256)
    cp3.wait()
    # stage 3: 8x8x32 -> 4x4x64
    p3 = conv_pool(a3_ref, acc3_ref, p2.reshape(B, 8, 256), 8, 256,
                   g3_vmem, bh3_ref, 8, 64)                       # (B*4, 256)

    # fc1 as ONE K=1024 matmul: p3 rows are (b, ho); move ho into lanes with a
    # 128-aligned concatenate (fc1 weights pre-permuted to this layout).
    p3b = p3.reshape(B, 4, 256)
    flat = jnp.concatenate([p3b[:, ho, :] for ho in range(4)], axis=-1)  # (B,1024)
    y = jnp.dot(flat.astype(bf16), v1_ref[...],
                preferred_element_type=f32) + fb1_ref[...]               # (B, 64)

    # fc2
    out_ref[...] = jnp.dot(y.astype(bf16), w2_ref[...],
                           preferred_element_type=f32) + fb2_ref[...]


def net_forward_fused(x_nchw, packed):
    (G1, bh1, G2, bh2, G3, bh3, V1, fb1, W2, fb2) = packed
    B = x_nchw.shape[0]
    # NCHW -> (B, H, W*C): lane index = w*Cin + c  (matches G row ordering)
    xp = jnp.transpose(x_nchw, (0, 2, 3, 1)).reshape(B, 32, 32 * 3)
    vmem = pl.BlockSpec(memory_space=pltpu.MemorySpace.VMEM)
    hbm = pl.BlockSpec(memory_space=pl.ANY)
    return pl.pallas_call(
        _net_kernel,
        out_shape=jax.ShapeDtypeStruct((B, 10), jnp.float32),
        in_specs=[vmem,              # x
                  vmem, vmem,        # G1, bias1
                  hbm, vmem,         # G2 (manual prefetch), bias2
                  hbm, vmem,         # G3 (manual prefetch), bias3
                  vmem, vmem,        # fc1 weights, bias
                  vmem, vmem],       # fc2 weights, bias
        out_specs=vmem,
        scratch_shapes=[
            pltpu.VMEM((B, 36, 96), jnp.float32),     # stage-1 H-padded input
            pltpu.VMEM((B, 20, 512), jnp.float32),    # stage-2 H-padded input
            pltpu.VMEM((B, 12, 256), jnp.float32),    # stage-3 H-padded input
            pltpu.VMEM((B * 32, 1024), jnp.float32),  # stage-1 conv accumulator
            pltpu.VMEM((B * 16, 512), jnp.float32),   # stage-2 conv accumulator
            pltpu.VMEM((B * 8, 512), jnp.float32),    # stage-3 conv accumulator
            pltpu.VMEM((5, 512, 512), jnp.bfloat16),  # G2 prefetch buffer
            pltpu.VMEM((5, 256, 512), jnp.bfloat16),  # G3 prefetch buffer
            pltpu.SemaphoreType.DMA((2,)),
        ],
        compiler_params=pltpu.CompilerParams(
            vmem_limit_bytes=32 * 1024 * 1024),
    )(xp, G1, bh1, G2, bh2, G3, bh3, V1, fb1, W2, fb2)


net_forward = jax.jit(net_forward_fused)


# --------------------------- parameter packing -------------------------------

def init_params(key):
    """PyTorch-style init (uniform +-1/sqrt(fan_in)), PyTorch layouts."""
    ks = jax.random.split(key, 10)

    def u(k, shape, fan_in):
        bound = 1.0 / float(np.sqrt(fan_in))
        return jax.random.uniform(k, shape, jnp.float32, -bound, bound)

    return {
        "w1": u(ks[0], (32, 3, 5, 5), 3 * 25),   "b1": u(ks[1], (32,), 3 * 25),
        "w2": u(ks[2], (32, 32, 5, 5), 32 * 25), "b2": u(ks[3], (32,), 32 * 25),
        "w3": u(ks[4], (64, 32, 5, 5), 32 * 25), "b3": u(ks[5], (64,), 32 * 25),
        "fc1_w": u(ks[6], (64, 1024), 1024),     "fc1_b": u(ks[7], (64,), 1024),
        "fc2_w": u(ks[8], (10, 64), 64),         "fc2_b": u(ks[9], (10,), 64),
    }


def pack_params(params):
    """One-time host-side re-layout of the PyTorch params for the fused kernel."""

    def conv_G(w, b, W_in):
        w = np.asarray(w, np.float32)            # (Cout, Cin, 5, 5)
        b = np.asarray(b, np.float32)
        Cout, Cin, K, _ = w.shape
        Wh = W_in // 2
        # G[ky, w_in*Cin + c, col(w_out, o)] = w[o, c, ky, w_in - w_out + 2]
        # output column ordering: col = (w_out%2)*Wh*Cout + (w_out//2)*Cout + o
        G = np.zeros((K, W_in * Cin, W_in * Cout), np.float32)
        for ky in range(K):
            for w_out in range(W_in):
                col0 = (w_out % 2) * Wh * Cout + (w_out // 2) * Cout
                for kx in range(K):
                    w_in = w_out + kx - 2
                    if 0 <= w_in < W_in:
                        G[ky, w_in * Cin:(w_in + 1) * Cin,
                          col0:col0 + Cout] = w[:, :, ky, kx].T
        # bias depends only on the output channel -> add once after pooling,
        # on the (W/2)*Cout pooled lane layout (wo*Cout + o).
        bhalf = np.tile(b, Wh).reshape(1, Wh * Cout).astype(np.float32)
        return G, bhalf

    G1, bh1 = conv_G(params["w1"], params["b1"], 32)
    G2, bh2 = conv_G(params["w2"], params["b2"], 16)
    G3, bh3 = conv_G(params["w3"], params["b3"], 8)

    # fc1 as a single (1024, 64) matrix whose row index matches the kernel's
    # flat lane order ho*256 + wo*64 + c (PyTorch flatten index = c*16 + ho*4 + wo).
    w_fc1 = np.asarray(params["fc1_w"], np.float32)            # (64, 1024)
    V1 = w_fc1.reshape(64, 64, 4, 4).transpose(2, 3, 1, 0).reshape(1024, 64)
    fb1 = np.asarray(params["fc1_b"], np.float32).reshape(1, 64)
    W2 = np.asarray(params["fc2_w"], np.float32).T.copy()      # (64, 10)
    fb2 = np.asarray(params["fc2_b"], np.float32).reshape(1, 10)

    def bf(a):
        return jnp.asarray(a, jnp.bfloat16)

    def f4(a):
        return jnp.asarray(a, jnp.float32)

    return (bf(G1), f4(bh1), bf(G2), f4(bh2), bf(G3), f4(bh3),
            bf(V1), f4(fb1), bf(W2), f4(fb2))


# ---------------------------- pure-JAX reference ------------------------------

@jax.jit
def net_reference(x, params):
    dn = ("NCHW", "OIHW", "NCHW")
    hi = jax.lax.Precision.HIGHEST

    def conv(x, w, b):
        y = jax.lax.conv_general_dilated(x, w, (1, 1), ((2, 2), (2, 2)),
                                         dimension_numbers=dn, precision=hi)
        return y + b[None, :, None, None]

    def pool(x):
        return jax.lax.reduce_window(x, -jnp.inf, jax.lax.max,
                                     (1, 1, 2, 2), (1, 1, 2, 2), "VALID")

    x = pool(conv(x, params["w1"], params["b1"]))
    x = pool(conv(x, params["w2"], params["b2"]))
    x = pool(conv(x, params["w3"], params["b3"]))
    x = x.reshape(x.shape[0], -1)                      # NCHW flatten order
    x = jnp.dot(x, params["fc1_w"].T, precision=hi) + params["fc1_b"]
    x = jnp.dot(x, params["fc2_w"].T, precision=hi) + params["fc2_b"]
    return x


# ------------------------------------ main ------------------------------------

if __name__ == "__main__":
    key = jax.random.PRNGKey(0)
    k_in, k_par = jax.random.split(key)
    # Spatial size 32x32 is forced by Linear(1024, 64) (64*4*4 = 1024).
    x = jax.random.normal(k_in, (2, 3, 32, 32), jnp.float32)
    params = init_params(k_par)
    packed = pack_params(params)

    out = jax.block_until_ready(net_forward(x, packed))

    assert out.shape == (2, 10), out.shape
    assert bool(jnp.all(jnp.isfinite(out)))

    # semantic check against the plain-JAX reference of the PyTorch module
    # (bf16 weights/activations with f32 accumulation -> loose-ish tolerance)
    ref = jax.block_until_ready(net_reference(x, params))
    err = float(jnp.max(jnp.abs(out - ref)))
    assert err < 5e-2, f"mismatch vs reference: max abs err {err}"

    print("KERNEL_OK")
</pallas_src>

<mosaic_0001>
module attributes {stable_mosaic.version = 11 : i64} {
  func.func @_net_kernel(%arg0: memref<2x32x96xf32, #tpu.memory_space<vmem>>, %arg1: memref<5x96x1024xbf16, #tpu.memory_space<vmem>>, %arg2: memref<1x512xf32, #tpu.memory_space<vmem>>, %arg3: memref<5x512x512xbf16, #tpu.memory_space<any>>, %arg4: memref<1x256xf32, #tpu.memory_space<vmem>>, %arg5: memref<5x256x512xbf16, #tpu.memory_space<any>>, %arg6: memref<1x256xf32, #tpu.memory_space<vmem>>, %arg7: memref<1024x64xbf16, #tpu.memory_space<vmem>>, %arg8: memref<1x64xf32, #tpu.memory_space<vmem>>, %arg9: memref<64x10xbf16, #tpu.memory_space<vmem>>, %arg10: memref<1x10xf32, #tpu.memory_space<vmem>>, %arg11: memref<2x10xf32, #tpu.memory_space<vmem>>, %arg12: memref<2x36x96xf32, #tpu.memory_space<vmem>>, %arg13: memref<2x20x512xf32, #tpu.memory_space<vmem>>, %arg14: memref<2x12x256xf32, #tpu.memory_space<vmem>>, %arg15: memref<64x1024xf32, #tpu.memory_space<vmem>>, %arg16: memref<32x512xf32, #tpu.memory_space<vmem>>, %arg17: memref<16x512xf32, #tpu.memory_space<vmem>>, %arg18: memref<5x512x512xbf16, #tpu.memory_space<vmem>>, %arg19: memref<5x256x512xbf16, #tpu.memory_space<vmem>>, %arg20: memref<2x!tpu.dma_semaphore, #tpu.memory_space<semaphore_mem>>) attributes {dimension_semantics = [], scalar_prefetch = 0 : i64, scratch_operands = 9 : i64, tpu.core_type = #tpu.core_type<tc>} {
    %c0_i32 = arith.constant 0 : i32
    %0 = tpu.memref_slice %arg20[%c0_i32] : memref<2x!tpu.dma_semaphore, #tpu.memory_space<semaphore_mem>> -> memref<1x!tpu.dma_semaphore, #tpu.memory_space<semaphore_mem>>
    %1 = tpu.memref_squeeze %0 : memref<1x!tpu.dma_semaphore, #tpu.memory_space<semaphore_mem>> -> memref<!tpu.dma_semaphore, #tpu.memory_space<semaphore_mem>>
    tpu.enqueue_dma source(%arg3 : memref<5x512x512xbf16, #tpu.memory_space<any>>) target(%arg18 : memref<5x512x512xbf16, #tpu.memory_space<vmem>>) target_semaphore(%1 : memref<!tpu.dma_semaphore, #tpu.memory_space<semaphore_mem>>)
    %c1_i32 = arith.constant 1 : i32
    %2 = tpu.memref_slice %arg20[%c1_i32] : memref<2x!tpu.dma_semaphore, #tpu.memory_space<semaphore_mem>> -> memref<1x!tpu.dma_semaphore, #tpu.memory_space<semaphore_mem>>
    %3 = tpu.memref_squeeze %2 : memref<1x!tpu.dma_semaphore, #tpu.memory_space<semaphore_mem>> -> memref<!tpu.dma_semaphore, #tpu.memory_space<semaphore_mem>>
    tpu.enqueue_dma source(%arg5 : memref<5x256x512xbf16, #tpu.memory_space<any>>) target(%arg19 : memref<5x256x512xbf16, #tpu.memory_space<vmem>>) target_semaphore(%3 : memref<!tpu.dma_semaphore, #tpu.memory_space<semaphore_mem>>)
    %c0 = arith.constant 0 : index
    %c0_0 = arith.constant 0 : index
    %c0_1 = arith.constant 0 : index
    %4 = vector.load %arg0[%c0, %c0_0, %c0_1] : memref<2x32x96xf32, #tpu.memory_space<vmem>>, vector<2x32x96xf32>
    %cst = arith.constant 0.000000e+00 : f32
    %5 = vector.broadcast %cst : f32 to vector<2x2x96xf32>
    %c0_2 = arith.constant 0 : index
    %c0_3 = arith.constant 0 : index
    %c0_4 = arith.constant 0 : index
    %6 = vector.load %arg12[%c0_2, %c0_3, %c0_4] : memref<2x36x96xf32, #tpu.memory_space<vmem>>, vector<2x2x96xf32>
    tpu.vector_store %arg12[%c0_2, %c0_3, %c0_4], %5 {strides = array<i32>} : memref<2x36x96xf32, #tpu.memory_space<vmem>>, vector<2x2x96xf32>,
    %cst_5 = arith.constant 0.000000e+00 : f32
    %7 = vector.broadcast %cst_5 : f32 to vector<2x2x96xf32>
    %c0_6 = arith.constant 0 : index
    %c34 = arith.constant 34 : index
    %c0_7 = arith.constant 0 : index
    %8 = vector.load %arg12[%c0_6, %c34, %c0_7] : memref<2x36x96xf32, #tpu.memory_space<vmem>>, vector<2x2x96xf32>
    tpu.vector_store %arg12[%c0_6, %c34, %c0_7], %7 {strides = array<i32>} : memref<2x36x96xf32, #tpu.memory_space<vmem>>, vector<2x2x96xf32>,
    %c0_8 = arith.constant 0 : index
    %c2 = arith.constant 2 : index
    %c0_9 = arith.constant 0 : index
    %9 = vector.load %arg12[%c0_8, %c2, %c0_9] : memref<2x36x96xf32, #tpu.memory_space<vmem>>, vector<2x32x96xf32>
    tpu.vector_store %arg12[%c0_8, %c2, %c0_9], %4 {strides = array<i32>} : memref<2x36x96xf32, #tpu.memory_space<vmem>>, vector<2x32x96xf32>,
    %c0_10 = arith.constant 0 : index
    %c0_11 = arith.constant 0 : index
    %c0_12 = arith.constant 0 : index
    %10 = vector.load %arg12[%c0_10, %c0_11, %c0_12] : memref<2x36x96xf32, #tpu.memory_space<vmem>>, vector<2x32x96xf32>
    %11 = vector.shape_cast %10 : vector<2x32x96xf32> to vector<64x96xf32>
    %12 = arith.truncf %11 : vector<64x96xf32> to vector<64x96xbf16>
    %c0_13 = arith.constant 0 : index
    %c0_14 = arith.constant 0 : index
    %c0_15 = arith.constant 0 : index
    %13 = vector.load %arg1[%c0_13, %c0_14, %c0_15] : memref<5x96x1024xbf16, #tpu.memory_space<vmem>>, vector<1x96x1024xbf16>
    %14 = vector.shape_cast %13 : vector<1x96x1024xbf16> to vector<96x1024xbf16>
    %cst_16 = arith.constant dense<0.000000e+00> : vector<64x1024xf32>
    %15 = tpu.matmul %12, %14, %cst_16 {dimension_numbers = #tpu.dot_dimension_numbers<[1], [0], [0], [1], [0, 0, 1, 1], [], []>} : vector<64x96xbf16>, vector<96x1024xbf16>, vector<64x1024xf32> -> vector<64x1024xf32>
    %c0_17 = arith.constant 0 : index
    %c0_18 = arith.constant 0 : index
    %16 = vector.load %arg15[%c0_17, %c0_18] : memref<64x1024xf32, #tpu.memory_space<vmem>>, vector<64x1024xf32>
    tpu.vector_store %arg15[%c0_17, %c0_18], %15 {strides = array<i32>} : memref<64x1024xf32, #tpu.memory_space<vmem>>, vector<64x1024xf32>,
    %c0_19 = arith.constant 0 : index
    %c1 = arith.constant 1 : index
    %c0_20 = arith.constant 0 : index
    %17 = vector.load %arg12[%c0_19, %c1, %c0_20] : memref<2x36x96xf32, #tpu.memory_space<vmem>>, vector<2x32x96xf32>
    %18 = vector.shape_cast %17 : vector<2x32x96xf32> to vector<64x96xf32>
    %19 = arith.truncf %18 : vector<64x96xf32> to vector<64x96xbf16>
    %c1_21 = arith.constant 1 : index
    %c0_22 = arith.constant 0 : index
    %c0_23 = arith.constant 0 : index
    %20 = vector.load %arg1[%c1_21, %c0_22, %c0_23] : memref<5x96x1024xbf16, #tpu.memory_space<vmem>>, vector<1x96x1024xbf16>
    %21 = vector.shape_cast %20 : vector<1x96x1024xbf16> to vector<96x1024xbf16>
    %cst_24 = arith.constant dense<0.000000e+00> : vector<64x1024xf32>
    %22 = tpu.matmul %19, %21, %cst_24 {dimension_numbers = #tpu.dot_dimension_numbers<[1], [0], [0], [1], [0, 0, 1, 1], [], []>} : vector<64x96xbf16>, vector<96x1024xbf16>, vector<64x1024xf32> -> vector<64x1024xf32>
    %c0_25 = arith.constant 0 : index
    %c0_26 = arith.constant 0 : index
    %23 = vector.load %arg15[%c0_25, %c0_26] : memref<64x1024xf32, #tpu.memory_space<vmem>>, vector<64x1024xf32>
    %24 = arith.addf %23, %22 : vector<64x1024xf32>
    %c0_27 = arith.constant 0 : index
    %c0_28 = arith.constant 0 : index
    %25 = vector.load %arg15[%c0_27, %c0_28] : memref<64x1024xf32, #tpu.memory_space<vmem>>, vector<64x1024xf32>
    tpu.vector_store %arg15[%c0_27, %c0_28], %24 {strides = array<i32>} : memref<64x1024xf32, #tpu.memory_space<vmem>>, vector<64x1024xf32>,
    %c0_29 = arith.constant 0 : index
    %c2_30 = arith.constant 2 : index
    %c0_31 = arith.constant 0 : index
    %26 = vector.load %arg12[%c0_29, %c2_30, %c0_31] : memref<2x36x96xf32, #tpu.memory_space<vmem>>, vector<2x32x96xf32>
    %27 = vector.shape_cast %26 : vector<2x32x96xf32> to vector<64x96xf32>
    %28 = arith.truncf %27 : vector<64x96xf32> to vector<64x96xbf16>
    %c2_32 = arith.constant 2 : index
    %c0_33 = arith.constant 0 : index
    %c0_34 = arith.constant 0 : index
    %29 = vector.load %arg1[%c2_32, %c0_33, %c0_34] : memref<5x96x1024xbf16, #tpu.memory_space<vmem>>, vector<1x96x1024xbf16>
    %30 = vector.shape_cast %29 : vector<1x96x1024xbf16> to vector<96x1024xbf16>
    %cst_35 = arith.constant dense<0.000000e+00> : vector<64x1024xf32>
    %31 = tpu.matmul %28, %30, %cst_35 {dimension_numbers = #tpu.dot_dimension_numbers<[1], [0], [0], [1], [0, 0, 1, 1], [], []>} : vector<64x96xbf16>, vector<96x1024xbf16>, vector<64x1024xf32> -> vector<64x1024xf32>
    %c0_36 = arith.constant 0 : index
    %c0_37 = arith.constant 0 : index
    %32 = vector.load %arg15[%c0_36, %c0_37] : memref<64x1024xf32, #tpu.memory_space<vmem>>, vector<64x1024xf32>
    %33 = arith.addf %32, %31 : vector<64x1024xf32>
    %c0_38 = arith.constant 0 : index
    %c0_39 = arith.constant 0 : index
    %34 = vector.load %arg15[%c0_38, %c0_39] : memref<64x1024xf32, #tpu.memory_space<vmem>>, vector<64x1024xf32>
    tpu.vector_store %arg15[%c0_38, %c0_39], %33 {strides = array<i32>} : memref<64x1024xf32, #tpu.memory_space<vmem>>, vector<64x1024xf32>,
    %c0_40 = arith.constant 0 : index
    %c3 = arith.constant 3 : index
    %c0_41 = arith.constant 0 : index
    %35 = vector.load %arg12[%c0_40, %c3, %c0_41] : memref<2x36x96xf32, #tpu.memory_space<vmem>>, vector<2x32x96xf32>
    %36 = vector.shape_cast %35 : vector<2x32x96xf32> to vector<64x96xf32>
    %37 = arith.truncf %36 : vector<64x96xf32> to vector<64x96xbf16>
    %c3_42 = arith.constant 3 : index
    %c0_43 = arith.constant 0 : index
    %c0_44 = arith.constant 0 : index
    %38 = vector.load %arg1[%c3_42, %c0_43, %c0_44] : memref<5x96x1024xbf16, #tpu.memory_space<vmem>>, vector<1x96x1024xbf16>
    %39 = vector.shape_cast %38 : vector<1x96x1024xbf16> to vector<96x1024xbf16>
    %cst_45 = arith.constant dense<0.000000e+00> : vector<64x1024xf32>
    %40 = tpu.matmul %37, %39, %cst_45 {dimension_numbers = #tpu.dot_dimension_numbers<[1], [0], [0], [1], [0, 0, 1, 1], [], []>} : vector<64x96xbf16>, vector<96x1024xbf16>, vector<64x1024xf32> -> vector<64x1024xf32>
    %c0_46 = arith.constant 0 : index
    %c0_47 = arith.constant 0 : index
    %41 = vector.load %arg15[%c0_46, %c0_47] : memref<64x1024xf32, #tpu.memory_space<vmem>>, vector<64x1024xf32>
    %42 = arith.addf %41, %40 : vector<64x1024xf32>
    %c0_48 = arith.constant 0 : index
    %c0_49 = arith.constant 0 : index
    %43 = vector.load %arg15[%c0_48, %c0_49] : memref<64x1024xf32, #tpu.memory_space<vmem>>, vector<64x1024xf32>
    tpu.vector_store %arg15[%c0_48, %c0_49], %42 {strides = array<i32>} : memref<64x1024xf32, #tpu.memory_space<vmem>>, vector<64x1024xf32>,
    %c0_50 = arith.constant 0 : index
    %c4 = arith.constant 4 : index
    %c0_51 = arith.constant 0 : index
    %44 = vector.load %arg12[%c0_50, %c4, %c0_51] : memref<2x36x96xf32, #tpu.memory_space<vmem>>, vector<2x32x96xf32>
    %45 = vector.shape_cast %44 : vector<2x32x96xf32> to vector<64x96xf32>
    %46 = arith.truncf %45 : vector<64x96xf32> to vector<64x96xbf16>
    %c4_52 = arith.constant 4 : index
    %c0_53 = arith.constant 0 : index
    %c0_54 = arith.constant 0 : index
    %47 = vector.load %arg1[%c4_52, %c0_53, %c0_54] : memref<5x96x1024xbf16, #tpu.memory_space<vmem>>, vector<1x96x1024xbf16>
    %48 = vector.shape_cast %47 : vector<1x96x1024xbf16> to vector<96x1024xbf16>
    %cst_55 = arith.constant dense<0.000000e+00> : vector<64x1024xf32>
    %49 = tpu.matmul %46, %48, %cst_55 {dimension_numbers = #tpu.dot_dimension_numbers<[1], [0], [0], [1], [0, 0, 1, 1], [], []>} : vector<64x96xbf16>, vector<96x1024xbf16>, vector<64x1024xf32> -> vector<64x1024xf32>
    %c0_56 = arith.constant 0 : index
    %c0_57 = arith.constant 0 : index
    %50 = vector.load %arg15[%c0_56, %c0_57] : memref<64x1024xf32, #tpu.memory_space<vmem>>, vector<64x1024xf32>
    %51 = arith.addf %50, %49 : vector<64x1024xf32>
    %c0_58 = arith.constant 0 : index
    %c0_59 = arith.constant 0 : index
    %52 = vector.load %arg15[%c0_58, %c0_59] : memref<64x1024xf32, #tpu.memory_space<vmem>>, vector<64x1024xf32>
    tpu.vector_store %arg15[%c0_58, %c0_59], %51 {strides = array<i32>} : memref<64x1024xf32, #tpu.memory_space<vmem>>, vector<64x1024xf32>,
    %c0_60 = arith.constant 0 : index
    %c0_61 = arith.constant 0 : index
    %53 = vector.load %arg15[%c0_60, %c0_61] : memref<64x1024xf32, #tpu.memory_space<vmem>>, vector<64x512xf32>
    %c0_62 = arith.constant 0 : index
    %c512 = arith.constant 512 : index
    %54 = vector.load %arg15[%c0_62, %c512] : memref<64x1024xf32, #tpu.memory_space<vmem>>, vector<64x512xf32>
    %55 = arith.maximumf %53, %54 : vector<64x512xf32>
    %56 = vector.shape_cast %55 : vector<64x512xf32> to vector<32x2x512xf32>
    %cst_63 = arith.constant dense<0xFF800000> : vector<32x512xf32>
    %57 = vector.multi_reduction <maximumf>, %56, %cst_63 [1] : vector<32x2x512xf32> to vector<32x512xf32>
    %c0_64 = arith.constant 0 : index
    %c0_65 = arith.constant 0 : index
    %58 = vector.load %arg2[%c0_64, %c0_65] : memref<1x512xf32, #tpu.memory_space<vmem>>, vector<1x512xf32>
    %59 = vector.broadcast %58 : vector<1x512xf32> to vector<32x512xf32>
    %60 = arith.addf %57, %59 : vector<32x512xf32>
    %c0_i32_66 = arith.constant 0 : i32
    %61 = tpu.memref_slice %arg20[%c0_i32_66] : memref<2x!tpu.dma_semaphore, #tpu.memory_space<semaphore_mem>> -> memref<1x!tpu.dma_semaphore, #tpu.memory_space<semaphore_mem>>
    %62 = tpu.memref_squeeze %61 : memref<1x!tpu.dma_semaphore, #tpu.memory_space<semaphore_mem>> -> memref<!tpu.dma_semaphore, #tpu.memory_space<semaphore_mem>>
    tpu.wait_dma2 semaphore(%62 : memref<!tpu.dma_semaphore, #tpu.memory_space<semaphore_mem>>) src(%arg3 : memref<5x512x512xbf16, #tpu.memory_space<any>>) dst(%arg18 : memref<5x512x512xbf16, #tpu.memory_space<vmem>>)
    %63 = vector.shape_cast %60 : vector<32x512xf32> to vector<2x16x512xf32>
    %cst_67 = arith.constant 0.000000e+00 : f32
    %64 = vector.broadcast %cst_67 : f32 to vector<2x2x512xf32>
    %c0_68 = arith.constant 0 : index
    %c0_69 = arith.constant 0 : index
    %c0_70 = arith.constant 0 : index
    %65 = vector.load %arg13[%c0_68, %c0_69, %c0_70] : memref<2x20x512xf32, #tpu.memory_space<vmem>>, vector<2x2x512xf32>
    tpu.vector_store %arg13[%c0_68, %c0_69, %c0_70], %64 {strides = array<i32>} : memref<2x20x512xf32, #tpu.memory_space<vmem>>, vector<2x2x512xf32>,
    %cst_71 = arith.constant 0.000000e+00 : f32
    %66 = vector.broadcast %cst_71 : f32 to vector<2x2x512xf32>
    %c0_72 = arith.constant 0 : index
    %c18 = arith.constant 18 : index
    %c0_73 = arith.constant 0 : index
    %67 = vector.load %arg13[%c0_72, %c18, %c0_73] : memref<2x20x512xf32, #tpu.memory_space<vmem>>, vector<2x2x512xf32>
    tpu.vector_store %arg13[%c0_72, %c18, %c0_73], %66 {strides = array<i32>} : memref<2x20x512xf32, #tpu.memory_space<vmem>>, vector<2x2x512xf32>,
    %c0_74 = arith.constant 0 : index
    %c2_75 = arith.constant 2 : index
    %c0_76 = arith.constant 0 : index
    %68 = vector.load %arg13[%c0_74, %c2_75, %c0_76] : memref<2x20x512xf32, #tpu.memory_space<vmem>>, vector<2x16x512xf32>
    tpu.vector_store %arg13[%c0_74, %c2_75, %c0_76], %63 {strides = array<i32>} : memref<2x20x512xf32, #tpu.memory_space<vmem>>, vector<2x16x512xf32>,
    %c0_77 = arith.constant 0 : index
    %c0_78 = arith.constant 0 : index
    %c0_79 = arith.constant 0 : index
    %69 = vector.load %arg13[%c0_77, %c0_78, %c0_79] : memref<2x20x512xf32, #tpu.memory_space<vmem>>, vector<2x16x512xf32>
    %70 = vector.shape_cast %69 : vector<2x16x512xf32> to vector<32x512xf32>
    %71 = arith.truncf %70 : vector<32x512xf32> to vector<32x512xbf16>
    %c0_80 = arith.constant 0 : index
    %c0_81 = arith.constant 0 : index
    %c0_82 = arith.constant 0 : index
    %72 = vector.load %arg18[%c0_80, %c0_81, %c0_82] : memref<5x512x512xbf16, #tpu.memory_space<vmem>>, vector<1x512x512xbf16>
    %73 = vector.shape_cast %72 : vector<1x512x512xbf16> to vector<512x512xbf16>
    %cst_83 = arith.constant dense<0.000000e+00> : vector<32x512xf32>
    %74 = tpu.matmul %71, %73, %cst_83 {dimension_numbers = #tpu.dot_dimension_numbers<[1], [0], [0], [1], [0, 0, 1, 1], [], []>} : vector<32x512xbf16>, vector<512x512xbf16>, vector<32x512xf32> -> vector<32x512xf32>
    %c0_84 = arith.constant 0 : index
    %c0_85 = arith.constant 0 : index
    %75 = vector.load %arg16[%c0_84, %c0_85] : memref<32x512xf32, #tpu.memory_space<vmem>>, vector<32x512xf32>
    tpu.vector_store %arg16[%c0_84, %c0_85], %74 {strides = array<i32>} : memref<32x512xf32, #tpu.memory_space<vmem>>, vector<32x512xf32>,
    %c0_86 = arith.constant 0 : index
    %c1_87 = arith.constant 1 : index
    %c0_88 = arith.constant 0 : index
    %76 = vector.load %arg13[%c0_86, %c1_87, %c0_88] : memref<2x20x512xf32, #tpu.memory_space<vmem>>, vector<2x16x512xf32>
    %77 = vector.shape_cast %76 : vector<2x16x512xf32> to vector<32x512xf32>
    %78 = arith.truncf %77 : vector<32x512xf32> to vector<32x512xbf16>
    %c1_89 = arith.constant 1 : index
    %c0_90 = arith.constant 0 : index
    %c0_91 = arith.constant 0 : index
    %79 = vector.load %arg18[%c1_89, %c0_90, %c0_91] : memref<5x512x512xbf16, #tpu.memory_space<vmem>>, vector<1x512x512xbf16>
    %80 = vector.shape_cast %79 : vector<1x512x512xbf16> to vector<512x512xbf16>
    %cst_92 = arith.constant dense<0.000000e+00> : vector<32x512xf32>
    %81 = tpu.matmul %78, %80, %cst_92 {dimension_numbers = #tpu.dot_dimension_numbers<[1], [0], [0], [1], [0, 0, 1, 1], [], []>} : vector<32x512xbf16>, vector<512x512xbf16>, vector<32x512xf32> -> vector<32x512xf32>
    %c0_93 = arith.constant 0 : index
    %c0_94 = arith.constant 0 : index
    %82 = vector.load %arg16[%c0_93, %c0_94] : memref<32x512xf32, #tpu.memory_space<vmem>>, vector<32x512xf32>
    %83 = arith.addf %82, %81 : vector<32x512xf32>
    %c0_95 = arith.constant 0 : index
    %c0_96 = arith.constant 0 : index
    %84 = vector.load %arg16[%c0_95, %c0_96] : memref<32x512xf32, #tpu.memory_space<vmem>>, vector<32x512xf32>
    tpu.vector_store %arg16[%c0_95, %c0_96], %83 {strides = array<i32>} : memref<32x512xf32, #tpu.memory_space<vmem>>, vector<32x512xf32>,
    %c0_97 = arith.constant 0 : index
    %c2_98 = arith.constant 2 : index
    %c0_99 = arith.constant 0 : index
    %85 = vector.load %arg13[%c0_97, %c2_98, %c0_99] : memref<2x20x512xf32, #tpu.memory_space<vmem>>, vector<2x16x512xf32>
    %86 = vector.shape_cast %85 : vector<2x16x512xf32> to vector<32x512xf32>
    %87 = arith.truncf %86 : vector<32x512xf32> to vector<32x512xbf16>
    %c2_100 = arith.constant 2 : index
    %c0_101 = arith.constant 0 : index
    %c0_102 = arith.constant 0 : index
    %88 = vector.load %arg18[%c2_100, %c0_101, %c0_102] : memref<5x512x512xbf16, #tpu.memory_space<vmem>>, vector<1x512x512xbf16>
    %89 = vector.shape_cast %88 : vector<1x512x512xbf16> to vector<512x512xbf16>
    %cst_103 = arith.constant dense<0.000000e+00> : vector<32x512xf32>
    %90 = tpu.matmul %87, %89, %cst_103 {dimension_numbers = #tpu.dot_dimension_numbers<[1], [0], [0], [1], [0, 0, 1, 1], [], []>} : vector<32x512xbf16>, vector<512x512xbf16>, vector<32x512xf32> -> vector<32x512xf32>
    %c0_104 = arith.constant 0 : index
    %c0_105 = arith.constant 0 : index
    %91 = vector.load %arg16[%c0_104, %c0_105] : memref<32x512xf32, #tpu.memory_space<vmem>>, vector<32x512xf32>
    %92 = arith.addf %91, %90 : vector<32x512xf32>
    %c0_106 = arith.constant 0 : index
    %c0_107 = arith.constant 0 : index
    %93 = vector.load %arg16[%c0_106, %c0_107] : memref<32x512xf32, #tpu.memory_space<vmem>>, vector<32x512xf32>
    tpu.vector_store %arg16[%c0_106, %c0_107], %92 {strides = array<i32>} : memref<32x512xf32, #tpu.memory_space<vmem>>, vector<32x512xf32>,
    %c0_108 = arith.constant 0 : index
    %c3_109 = arith.constant 3 : index
    %c0_110 = arith.constant 0 : index
    %94 = vector.load %arg13[%c0_108, %c3_109, %c0_110] : memref<2x20x512xf32, #tpu.memory_space<vmem>>, vector<2x16x512xf32>
    %95 = vector.shape_cast %94 : vector<2x16x512xf32> to vector<32x512xf32>
    %96 = arith.truncf %95 : vector<32x512xf32> to vector<32x512xbf16>
    %c3_111 = arith.constant 3 : index
    %c0_112 = arith.constant 0 : index
    %c0_113 = arith.constant 0 : index
    %97 = vector.load %arg18[%c3_111, %c0_112, %c0_113] : memref<5x512x512xbf16, #tpu.memory_space<vmem>>, vector<1x512x512xbf16>
    %98 = vector.shape_cast %97 : vector<1x512x512xbf16> to vector<512x512xbf16>
    %cst_114 = arith.constant dense<0.000000e+00> : vector<32x512xf32>
    %99 = tpu.matmul %96, %98, %cst_114 {dimension_numbers = #tpu.dot_dimension_numbers<[1], [0], [0], [1], [0, 0, 1, 1], [], []>} : vector<32x512xbf16>, vector<512x512xbf16>, vector<32x512xf32> -> vector<32x512xf32>
    %c0_115 = arith.constant 0 : index
    %c0_116 = arith.constant 0 : index
    %100 = vector.load %arg16[%c0_115, %c0_116] : memref<32x512xf32, #tpu.memory_space<vmem>>, vector<32x512xf32>
    %101 = arith.addf %100, %99 : vector<32x512xf32>
    %c0_117 = arith.constant 0 : index
    %c0_118 = arith.constant 0 : index
    %102 = vector.load %arg16[%c0_117, %c0_118] : memref<32x512xf32, #tpu.memory_space<vmem>>, vector<32x512xf32>
    tpu.vector_store %arg16[%c0_117, %c0_118], %101 {strides = array<i32>} : memref<32x512xf32, #tpu.memory_space<vmem>>, vector<32x512xf32>,
    %c0_119 = arith.constant 0 : index
    %c4_120 = arith.constant 4 : index
    %c0_121 = arith.constant 0 : index
    %103 = vector.load %arg13[%c0_119, %c4_120, %c0_121] : memref<2x20x512xf32, #tpu.memory_space<vmem>>, vector<2x16x512xf32>
    %104 = vector.shape_cast %103 : vector<2x16x512xf32> to vector<32x512xf32>
    %105 = arith.truncf %104 : vector<32x512xf32> to vector<32x512xbf16>
    %c4_122 = arith.constant 4 : index
    %c0_123 = arith.constant 0 : index
    %c0_124 = arith.constant 0 : index
    %106 = vector.load %arg18[%c4_122, %c0_123, %c0_124] : memref<5x512x512xbf16, #tpu.memory_space<vmem>>, vector<1x512x512xbf16>
    %107 = vector.shape_cast %106 : vector<1x512x512xbf16> to vector<512x512xbf16>
    %cst_125 = arith.constant dense<0.000000e+00> : vector<32x512xf32>
    %108 = tpu.matmul %105, %107, %cst_125 {dimension_numbers = #tpu.dot_dimension_numbers<[1], [0], [0], [1], [0, 0, 1, 1], [], []>} : vector<32x512xbf16>, vector<512x512xbf16>, vector<32x512xf32> -> vector<32x512xf32>
    %c0_126 = arith.constant 0 : index
    %c0_127 = arith.constant 0 : index
    %109 = vector.load %arg16[%c0_126, %c0_127] : memref<32x512xf32, #tpu.memory_space<vmem>>, vector<32x512xf32>
    %110 = arith.addf %109, %108 : vector<32x512xf32>
    %c0_128 = arith.constant 0 : index
    %c0_129 = arith.constant 0 : index
    %111 = vector.load %arg16[%c0_128, %c0_129] : memref<32x512xf32, #tpu.memory_space<vmem>>, vector<32x512xf32>
    tpu.vector_store %arg16[%c0_128, %c0_129], %110 {strides = array<i32>} : memref<32x512xf32, #tpu.memory_space<vmem>>, vector<32x512xf32>,
    %c0_130 = arith.constant 0 : index
    %c0_131 = arith.constant 0 : index
    %112 = vector.load %arg16[%c0_130, %c0_131] : memref<32x512xf32, #tpu.memory_space<vmem>>, vector<32x256xf32>
    %c0_132 = arith.constant 0 : index
    %c256 = arith.constant 256 : index
    %113 = vector.load %arg16[%c0_132, %c256] : memref<32x512xf32, #tpu.memory_space<vmem>>, vector<32x256xf32>
    %114 = arith.maximumf %112, %113 : vector<32x256xf32>
    %115 = vector.shape_cast %114 : vector<32x256xf32> to vector<16x2x256xf32>
    %cst_133 = arith.constant dense<0xFF800000> : vector<16x256xf32>
    %116 = vector.multi_reduction <maximumf>, %115, %cst_133 [1] : vector<16x2x256xf32> to vector<16x256xf32>
    %c0_134 = arith.constant 0 : index
    %c0_135 = arith.constant 0 : index
    %117 = vector.load %arg4[%c0_134, %c0_135] : memref<1x256xf32, #tpu.memory_space<vmem>>, vector<1x256xf32>
    %118 = vector.broadcast %117 : vector<1x256xf32> to vector<16x256xf32>
    %119 = arith.addf %116, %118 : vector<16x256xf32>
    %c1_i32_136 = arith.constant 1 : i32
    %120 = tpu.memref_slice %arg20[%c1_i32_136] : memref<2x!tpu.dma_semaphore, #tpu.memory_space<semaphore_mem>> -> memref<1x!tpu.dma_semaphore, #tpu.memory_space<semaphore_mem>>
    %121 = tpu.memref_squeeze %120 : memref<1x!tpu.dma_semaphore, #tpu.memory_space<semaphore_mem>> -> memref<!tpu.dma_semaphore, #tpu.memory_space<semaphore_mem>>
    tpu.wait_dma2 semaphore(%121 : memref<!tpu.dma_semaphore, #tpu.memory_space<semaphore_mem>>) src(%arg5 : memref<5x256x512xbf16, #tpu.memory_space<any>>) dst(%arg19 : memref<5x256x512xbf16, #tpu.memory_space<vmem>>)
    %122 = vector.shape_cast %119 : vector<16x256xf32> to vector<2x8x256xf32>
    %cst_137 = arith.constant 0.000000e+00 : f32
    %123 = vector.broadcast %cst_137 : f32 to vector<2x2x256xf32>
    %c0_138 = arith.constant 0 : index
    %c0_139 = arith.constant 0 : index
    %c0_140 = arith.constant 0 : index
    %124 = vector.load %arg14[%c0_138, %c0_139, %c0_140] : memref<2x12x256xf32, #tpu.memory_space<vmem>>, vector<2x2x256xf32>
    tpu.vector_store %arg14[%c0_138, %c0_139, %c0_140], %123 {strides = array<i32>} : memref<2x12x256xf32, #tpu.memory_space<vmem>>, vector<2x2x256xf32>,
    %cst_141 = arith.constant 0.000000e+00 : f32
    %125 = vector.broadcast %cst_141 : f32 to vector<2x2x256xf32>
    %c0_142 = arith.constant 0 : index
    %c10 = arith.constant 10 : index
    %c0_143 = arith.constant 0 : index
    %126 = vector.load %arg14[%c0_142, %c10, %c0_143] : memref<2x12x256xf32, #tpu.memory_space<vmem>>, vector<2x2x256xf32>
    tpu.vector_store %arg14[%c0_142, %c10, %c0_143], %125 {strides = array<i32>} : memref<2x12x256xf32, #tpu.memory_space<vmem>>, vector<2x2x256xf32>,
    %c0_144 = arith.constant 0 : index
    %c2_145 = arith.constant 2 : index
    %c0_146 = arith.constant 0 : index
    %127 = vector.load %arg14[%c0_144, %c2_145, %c0_146] : memref<2x12x256xf32, #tpu.memory_space<vmem>>, vector<2x8x256xf32>
    tpu.vector_store %arg14[%c0_144, %c2_145, %c0_146], %122 {strides = array<i32>} : memref<2x12x256xf32, #tpu.memory_space<vmem>>, vector<2x8x256xf32>,
    %c0_147 = arith.constant 0 : index
    %c0_148 = arith.constant 0 : index
    %c0_149 = arith.constant 0 : index
    %128 = vector.load %arg14[%c0_147, %c0_148, %c0_149] : memref<2x12x256xf32, #tpu.memory_space<vmem>>, vector<2x8x256xf32>
    %129 = vector.shape_cast %128 : vector<2x8x256xf32> to vector<16x256xf32>
    %130 = arith.truncf %129 : vector<16x256xf32> to vector<16x256xbf16>
    %c0_150 = arith.constant 0 : index
    %c0_151 = arith.constant 0 : index
    %c0_152 = arith.constant 0 : index
    %131 = vector.load %arg19[%c0_150, %c0_151, %c0_152] : memref<5x256x512xbf16, #tpu.memory_space<vmem>>, vector<1x256x512xbf16>
    %132 = vector.shape_cast %131 : vector<1x256x512xbf16> to vector<256x512xbf16>
    %cst_153 = arith.constant dense<0.000000e+00> : vector<16x512xf32>
    %133 = tpu.matmul %130, %132, %cst_153 {dimension_numbers = #tpu.dot_dimension_numbers<[1], [0], [0], [1], [0, 0, 1, 1], [], []>} : vector<16x256xbf16>, vector<256x512xbf16>, vector<16x512xf32> -> vector<16x512xf32>
    %c0_154 = arith.constant 0 : index
    %c0_155 = arith.constant 0 : index
    %134 = vector.load %arg17[%c0_154, %c0_155] : memref<16x512xf32, #tpu.memory_space<vmem>>, vector<16x512xf32>
    tpu.vector_store %arg17[%c0_154, %c0_155], %133 {strides = array<i32>} : memref<16x512xf32, #tpu.memory_space<vmem>>, vector<16x512xf32>,
    %c0_156 = arith.constant 0 : index
    %c1_157 = arith.constant 1 : index
    %c0_158 = arith.constant 0 : index
    %135 = vector.load %arg14[%c0_156, %c1_157, %c0_158] : memref<2x12x256xf32, #tpu.memory_space<vmem>>, vector<2x8x256xf32>
    %136 = vector.shape_cast %135 : vector<2x8x256xf32> to vector<16x256xf32>
    %137 = arith.truncf %136 : vector<16x256xf32> to vector<16x256xbf16>
    %c1_159 = arith.constant 1 : index
    %c0_160 = arith.constant 0 : index
    %c0_161 = arith.constant 0 : index
    %138 = vector.load %arg19[%c1_159, %c0_160, %c0_161] : memref<5x256x512xbf16, #tpu.memory_space<vmem>>, vector<1x256x512xbf16>
    %139 = vector.shape_cast %138 : vector<1x256x512xbf16> to vector<256x512xbf16>
    %cst_162 = arith.constant dense<0.000000e+00> : vector<16x512xf32>
    %140 = tpu.matmul %137, %139, %cst_162 {dimension_numbers = #tpu.dot_dimension_numbers<[1], [0], [0], [1], [0, 0, 1, 1], [], []>} : vector<16x256xbf16>, vector<256x512xbf16>, vector<16x512xf32> -> vector<16x512xf32>
    %c0_163 = arith.constant 0 : index
    %c0_164 = arith.constant 0 : index
    %141 = vector.load %arg17[%c0_163, %c0_164] : memref<16x512xf32, #tpu.memory_space<vmem>>, vector<16x512xf32>
    %142 = arith.addf %141, %140 : vector<16x512xf32>
    %c0_165 = arith.constant 0 : index
    %c0_166 = arith.constant 0 : index
    %143 = vector.load %arg17[%c0_165, %c0_166] : memref<16x512xf32, #tpu.memory_space<vmem>>, vector<16x512xf32>
    tpu.vector_store %arg17[%c0_165, %c0_166], %142 {strides = array<i32>} : memref<16x512xf32, #tpu.memory_space<vmem>>, vector<16x512xf32>,
    %c0_167 = arith.constant 0 : index
    %c2_168 = arith.constant 2 : index
    %c0_169 = arith.constant 0 : index
    %144 = vector.load %arg14[%c0_167, %c2_168, %c0_169] : memref<2x12x256xf32, #tpu.memory_space<vmem>>, vector<2x8x256xf32>
    %145 = vector.shape_cast %144 : vector<2x8x256xf32> to vector<16x256xf32>
    %146 = arith.truncf %145 : vector<16x256xf32> to vector<16x256xbf16>
    %c2_170 = arith.constant 2 : index
    %c0_171 = arith.constant 0 : index
    %c0_172 = arith.constant 0 : index
    %147 = vector.load %arg19[%c2_170, %c0_171, %c0_172] : memref<5x256x512xbf16, #tpu.memory_space<vmem>>, vector<1x256x512xbf16>
    %148 = vector.shape_cast %147 : vector<1x256x512xbf16> to vector<256x512xbf16>
    %cst_173 = arith.constant dense<0.000000e+00> : vector<16x512xf32>
    %149 = tpu.matmul %146, %148, %cst_173 {dimension_numbers = #tpu.dot_dimension_numbers<[1], [0], [0], [1], [0, 0, 1, 1], [], []>} : vector<16x256xbf16>, vector<256x512xbf16>, vector<16x512xf32> -> vector<16x512xf32>
    %c0_174 = arith.constant 0 : index
    %c0_175 = arith.constant 0 : index
    %150 = vector.load %arg17[%c0_174, %c0_175] : memref<16x512xf32, #tpu.memory_space<vmem>>, vector<16x512xf32>
    %151 = arith.addf %150, %149 : vector<16x512xf32>
    %c0_176 = arith.constant 0 : index
    %c0_177 = arith.constant 0 : index
    %152 = vector.load %arg17[%c0_176, %c0_177] : memref<16x512xf32, #tpu.memory_space<vmem>>, vector<16x512xf32>
    tpu.vector_store %arg17[%c0_176, %c0_177], %151 {strides = array<i32>} : memref<16x512xf32, #tpu.memory_space<vmem>>, vector<16x512xf32>,
    %c0_178 = arith.constant 0 : index
    %c3_179 = arith.constant 3 : index
    %c0_180 = arith.constant 0 : index
    %153 = vector.load %arg14[%c0_178, %c3_179, %c0_180] : memref<2x12x256xf32, #tpu.memory_space<vmem>>, vector<2x8x256xf32>
    %154 = vector.shape_cast %153 : vector<2x8x256xf32> to vector<16x256xf32>
    %155 = arith.truncf %154 : vector<16x256xf32> to vector<16x256xbf16>
    %c3_181 = arith.constant 3 : index
    %c0_182 = arith.constant 0 : index
    %c0_183 = arith.constant 0 : index
    %156 = vector.load %arg19[%c3_181, %c0_182, %c0_183] : memref<5x256x512xbf16, #tpu.memory_space<vmem>>, vector<1x256x512xbf16>
    %157 = vector.shape_cast %156 : vector<1x256x512xbf16> to vector<256x512xbf16>
    %cst_184 = arith.constant dense<0.000000e+00> : vector<16x512xf32>
    %158 = tpu.matmul %155, %157, %cst_184 {dimension_numbers = #tpu.dot_dimension_numbers<[1], [0], [0], [1], [0, 0, 1, 1], [], []>} : vector<16x256xbf16>, vector<256x512xbf16>, vector<16x512xf32> -> vector<16x512xf32>
    %c0_185 = arith.constant 0 : index
    %c0_186 = arith.constant 0 : index
    %159 = vector.load %arg17[%c0_185, %c0_186] : memref<16x512xf32, #tpu.memory_space<vmem>>, vector<16x512xf32>
    %160 = arith.addf %159, %158 : vector<16x512xf32>
    %c0_187 = arith.constant 0 : index
    %c0_188 = arith.constant 0 : index
    %161 = vector.load %arg17[%c0_187, %c0_188] : memref<16x512xf32, #tpu.memory_space<vmem>>, vector<16x512xf32>
    tpu.vector_store %arg17[%c0_187, %c0_188], %160 {strides = array<i32>} : memref<16x512xf32, #tpu.memory_space<vmem>>, vector<16x512xf32>,
    %c0_189 = arith.constant 0 : index
    %c4_190 = arith.constant 4 : index
    %c0_191 = arith.constant 0 : index
    %162 = vector.load %arg14[%c0_189, %c4_190, %c0_191] : memref<2x12x256xf32, #tpu.memory_space<vmem>>, vector<2x8x256xf32>
    %163 = vector.shape_cast %162 : vector<2x8x256xf32> to vector<16x256xf32>
    %164 = arith.truncf %163 : vector<16x256xf32> to vector<16x256xbf16>
    %c4_192 = arith.constant 4 : index
    %c0_193 = arith.constant 0 : index
    %c0_194 = arith.constant 0 : index
    %165 = vector.load %arg19[%c4_192, %c0_193, %c0_194] : memref<5x256x512xbf16, #tpu.memory_space<vmem>>, vector<1x256x512xbf16>
    %166 = vector.shape_cast %165 : vector<1x256x512xbf16> to vector<256x512xbf16>
    %cst_195 = arith.constant dense<0.000000e+00> : vector<16x512xf32>
    %167 = tpu.matmul %164, %166, %cst_195 {dimension_numbers = #tpu.dot_dimension_numbers<[1], [0], [0], [1], [0, 0, 1, 1], [], []>} : vector<16x256xbf16>, vector<256x512xbf16>, vector<16x512xf32> -> vector<16x512xf32>
    %c0_196 = arith.constant 0 : index
    %c0_197 = arith.constant 0 : index
    %168 = vector.load %arg17[%c0_196, %c0_197] : memref<16x512xf32, #tpu.memory_space<vmem>>, vector<16x512xf32>
    %169 = arith.addf %168, %167 : vector<16x512xf32>
    %c0_198 = arith.constant 0 : index
    %c0_199 = arith.constant 0 : index
    %170 = vector.load %arg17[%c0_198, %c0_199] : memref<16x512xf32, #tpu.memory_space<vmem>>, vector<16x512xf32>
    tpu.vector_store %arg17[%c0_198, %c0_199], %169 {strides = array<i32>} : memref<16x512xf32, #tpu.memory_space<vmem>>, vector<16x512xf32>,
    %c0_200 = arith.constant 0 : index
    %c0_201 = arith.constant 0 : index
    %171 = vector.load %arg17[%c0_200, %c0_201] : memref<16x512xf32, #tpu.memory_space<vmem>>, vector<16x256xf32>
    %c0_202 = arith.constant 0 : index
    %c256_203 = arith.constant 256 : index
    %172 = vector.load %arg17[%c0_202, %c256_203] : memref<16x512xf32, #tpu.memory_space<vmem>>, vector<16x256xf32>
    %173 = arith.maximumf %171, %172 : vector<16x256xf32>
    %174 = vector.shape_cast %173 : vector<16x256xf32> to vector<8x2x256xf32>
    %cst_204 = arith.constant dense<0xFF800000> : vector<8x256xf32>
    %175 = vector.multi_reduction <maximumf>, %174, %cst_204 [1] : vector<8x2x256xf32> to vector<8x256xf32>
    %c0_205 = arith.constant 0 : index
    %c0_206 = arith.constant 0 : index
    %176 = vector.load %arg6[%c0_205, %c0_206] : memref<1x256xf32, #tpu.memory_space<vmem>>, vector<1x256xf32>
    %177 = vector.broadcast %176 : vector<1x256xf32> to vector<8x256xf32>
    %178 = arith.addf %175, %177 : vector<8x256xf32>
    %179 = vector.shape_cast %178 : vector<8x256xf32> to vector<2x4x256xf32>
    %180 = vector.extract_strided_slice %179 {offsets = [0, 0, 0], sizes = [2, 1, 256], strides = [1, 1, 1]} : vector<2x4x256xf32> to vector<2x1x256xf32>
    %181 = vector.shape_cast %180 : vector<2x1x256xf32> to vector<2x256xf32>
    %182 = vector.extract_strided_slice %179 {offsets = [0, 1, 0], sizes = [2, 1, 256], strides = [1, 1, 1]} : vector<2x4x256xf32> to vector<2x1x256xf32>
    %183 = vector.shape_cast %182 : vector<2x1x256xf32> to vector<2x256xf32>
    %184 = vector.extract_strided_slice %179 {offsets = [0, 2, 0], sizes = [2, 1, 256], strides = [1, 1, 1]} : vector<2x4x256xf32> to vector<2x1x256xf32>
    %185 = vector.shape_cast %184 : vector<2x1x256xf32> to vector<2x256xf32>
    %186 = vector.extract_strided_slice %179 {offsets = [0, 3, 0], sizes = [2, 1, 256], strides = [1, 1, 1]} : vector<2x4x256xf32> to vector<2x1x256xf32>
    %187 = vector.shape_cast %186 : vector<2x1x256xf32> to vector<2x256xf32>
    %188 = tpu.concatenate %181, %183, %185, %187 in 1 : vector<2x256xf32>, vector<2x256xf32>, vector<2x256xf32>, vector<2x256xf32> -> vector<2x1024xf32>
    %189 = arith.truncf %188 : vector<2x1024xf32> to vector<2x1024xbf16>
    %c0_207 = arith.constant 0 : index
    %c0_208 = arith.constant 0 : index
    %190 = vector.load %arg7[%c0_207, %c0_208] : memref<1024x64xbf16, #tpu.memory_space<vmem>>, vector<1024x64xbf16>
    %cst_209 = arith.constant dense<0.000000e+00> : vector<2x64xf32>
    %191 = tpu.matmul %189, %190, %cst_209 {dimension_numbers = #tpu.dot_dimension_numbers<[1], [0], [0], [1], [0, 0, 1, 1], [], []>} : vector<2x1024xbf16>, vector<1024x64xbf16>, vector<2x64xf32> -> vector<2x64xf32>
    %c0_210 = arith.constant 0 : index
    %c0_211 = arith.constant 0 : index
    %192 = vector.load %arg8[%c0_210, %c0_211] : memref<1x64xf32, #tpu.memory_space<vmem>>, vector<1x64xf32>
    %193 = vector.broadcast %192 : vector<1x64xf32> to vector<2x64xf32>
    %194 = arith.addf %191, %193 : vector<2x64xf32>
    %195 = arith.truncf %194 : vector<2x64xf32> to vector<2x64xbf16>
    %c0_212 = arith.constant 0 : index
    %c0_213 = arith.constant 0 : index
    %196 = vector.load %arg9[%c0_212, %c0_213] : memref<64x10xbf16, #tpu.memory_space<vmem>>, vector<64x10xbf16>
    %cst_214 = arith.constant dense<0.000000e+00> : vector<2x10xf32>
    %197 = tpu.matmul %195, %196, %cst_214 {dimension_numbers = #tpu.dot_dimension_numbers<[1], [0], [0], [1], [0, 0, 1, 1], [], []>} : vector<2x64xbf16>, vector<64x10xbf16>, vector<2x10xf32> -> vector<2x10xf32>
    %c0_215 = arith.constant 0 : index
    %c0_216 = arith.constant 0 : index
    %198 = vector.load %arg10[%c0_215, %c0_216] : memref<1x10xf32, #tpu.memory_space<vmem>>, vector<1x10xf32>
    %199 = vector.broadcast %198 : vector<1x10xf32> to vector<2x10xf32>
    %200 = arith.addf %197, %199 : vector<2x10xf32>
    %c0_217 = arith.constant 0 : index
    %c0_218 = arith.constant 0 : index
    %201 = vector.load %arg11[%c0_217, %c0_218] : memref<2x10xf32, #tpu.memory_space<vmem>>, vector<2x10xf32>
    tpu.vector_store %arg11[%c0_217, %c0_218], %200 {strides = array<i32>} : memref<2x10xf32, #tpu.memory_space<vmem>>, vector<2x10xf32>,
    return
  }
}

</mosaic_0001>

<bundles_post_ra>
// kernel: net_forward_fused.1
= control target key start
LH: loop header
LB: loop body
LE: loop exit
PB: predicated region body
PF: predicated region fallthrough
CT: control target
= control target key end

     0   :  { %16 = vsyncpa [#allocation12], 0  ;;  %s15691_s0 = inlined_call_operand.vmem [shape: f32[2,32,96], index: 0, kind: input, shape index: {}]   ;;  %s15692_s1 = inlined_call_operand.hbm [shape: bf16[5,96,1024], index: 1, kind: input, shape index: {}]   ;;  %s15693_s2 = inlined_call_operand.hbm [shape: f32[1,512], index: 2, kind: input, shape index: {}]   ;;  %s15694_s3 = inlined_call_operand.hbm [shape: bf16[5,512,512], index: 3, kind: input, shape index: {}]   ;;  %s15695_s4 = inlined_call_operand.hbm [shape: f32[1,256], index: 4, kind: input, shape index: {}]   ;;  %s15696_s5 = inlined_call_operand.hbm [shape: bf16[5,256,512], index: 5, kind: input, shape index: {}]   ;;  %s15697_s6 = inlined_call_operand.hbm [shape: f32[1,256], index: 6, kind: input, shape index: {}]   ;;  %s15698_s7 = inlined_call_operand.vmem [shape: bf16[1024,64], index: 7, kind: input, shape index: {}]   ;;  %s15699_s8 = inlined_call_operand.hbm [shape: f32[1,64], index: 8, kind: input, shape index: {}]   ;;  %s15700_s9 = inlined_call_operand.vmem [shape: bf16[64,10], index: 9, kind: input, shape index: {}]   ;;  %s15701_s10 = inlined_call_operand.hbm [shape: f32[1,10], index: 10, kind: input, shape index: {}]   ;;  %s15702_s11 = inlined_call_operand.hbm [shape: f32[2,10], index: 11, kind: output, shape index: {}]  }
   0x1   :  { %17 = vsyncpa [#allocation15], 0 }
   0x2   :  { %18 = vsyncpa [#allocation18], 0 }
   0x3   :  { %19 = vsyncpa [#allocation21], 0 }
   0x4   :  { %20 = vsyncpa [#allocation13], 0  ;;  %s12989_s17 = smov [#allocation14]   ;;  %s12990_s19 = smov [#allocation17]  }
   0x5   :  { %s41_s18 = sshll.u32 %s12989_s17, 4  ;;  %s61_s20 = sshll.u32 %s12990_s19, 4  ;;  %s42_s18 = int_to_ptr.vmem [resolvable:$true] %s41_s18  ;;  %s62_s20 = int_to_ptr.vmem [resolvable:$true] %s61_s20 }
   0x6   :  { %s12821_s23 = scalar_lea.hbm %s15693_s2, 64 }
   0x7   :  { %p12822_p0 = scmp.ne.s32.totalorder %s15693_s2, %s12821_s23  ;;  %p12825_p1 = scmp.lt.u32.totalorder %s12821_s23, %s15693_s2 }
   0x9   :  { %p12827_p2 = pnand %p12825_p1, %p12822_p0 }
   0xb   :  { %12830 = shalt.err (!%p12827_p2)
}
   0xc   :  { %s12831_s28 = scalar_lea.vmem %s42_s18, 64  ;;  %p12836_p4 = scmp.lt.s32.totalorder %s42_s18, %s42_s18 }
   0xd   :  { %p12832_p3 = scmp.ne.s32.totalorder %s42_s18, %s12831_s28  ;;  %p12837_p5 = scmp.lt.s32.totalorder %s12831_s28, %s12831_s28 }
   0xf   :  { %p12838_p6 = por %p12837_p5, %p12836_p4 }
  0x11   :  { %p12839_p7 = pnand %p12838_p6, %p12832_p3 }
  0x13   :  { %12842 = shalt.err (!%p12839_p7)
}
  0x14   :  { %44 = dma.hbm_to_vmem [thread:$0]  %s15693_s2, 64, %s42_s18, [#allocation15]  }
  0x15   :  { %s12843_s14 = scalar_lea.hbm %s15697_s6, 32 }
  0x16   :  { %p12844_p8 = scmp.ne.s32.totalorder %s15697_s6, %s12843_s14  ;;  %p12847_p9 = scmp.lt.u32.totalorder %s12843_s14, %s15697_s6 }
  0x18   :  { %p12849_p10 = pnand %p12847_p9, %p12844_p8 }
  0x1a   :  { %12852 = shalt.err (!%p12849_p10)
}
  0x1b   :  { %s12853_s21 = scalar_lea.vmem %s62_s20, 32  ;;  %p12858_p12 = scmp.lt.s32.totalorder %s62_s20, %s62_s20 }
  0x1c   :  { %p12854_p11 = scmp.ne.s32.totalorder %s62_s20, %s12853_s21  ;;  %p12859_p13 = scmp.lt.s32.totalorder %s12853_s21, %s12853_s21 }
  0x1e   :  { %p12860_p0 = por %p12859_p13, %p12858_p12 }
  0x20   :  { %p12861_p1 = pnand %p12860_p0, %p12854_p11 }
  0x22   :  { %12864 = shalt.err (!%p12861_p1)
}
  0x23   :  { %64 = dma.hbm_to_vmem [thread:$0]  %s15697_s6, 32, %s62_s20, [#allocation18]  }
  0x24   :  { %s12991_s22 = smov [#allocation11]   ;;  %s12865_s26 = scalar_lea.hbm %s15692_s1, 30720 }
  0x25   :  { %s28_s23 = sshll.u32 %s12991_s22, 4  ;;  %p12866_p2 = scmp.ne.s32.totalorder %s15692_s1, %s12865_s26  ;;  %s29_s23 = int_to_ptr.vmem [resolvable:$true] %s28_s23 }
  0x26   :  { %p12869_p3 = scmp.lt.u32.totalorder %s12865_s26, %s15692_s1 }
  0x28   :  { %p12871_p4 = pnand %p12869_p3, %p12866_p2 }
  0x2a   :  { %12874 = shalt.err (!%p12871_p4)
}
  0x2b   :  { %s12875_s12 = scalar_lea.vmem %s29_s23, 30720  ;;  %p12880_p6 = scmp.lt.s32.totalorder %s29_s23, %s29_s23 }
  0x2c   :  { %p12876_p5 = scmp.ne.s32.totalorder %s29_s23, %s12875_s12  ;;  %p12881_p7 = scmp.lt.s32.totalorder %s12875_s12, %s12875_s12 }
  0x2e   :  { %p12882_p8 = por %p12881_p7, %p12880_p6 }
  0x30   :  { %p12883_p9 = pnand %p12882_p8, %p12876_p5 }
  0x32   :  { %12886 = shalt.err (!%p12883_p9)
}
  0x33   :  { %s12992_s6 = smov 512   ;;  %s12993_s20 = smov 32  }
  0x34   :  { %34 = dma.hbm_to_vmem [thread:$0]  %s15692_s1, 30720, %s29_s23, [#allocation12], %s12992_s6, %s12992_s6, %s12993_s20  }
  0x35   :  { %s12994_s15 = smov [#allocation16]   ;;  %s12995_s17 = smov [#allocation19]  }
  0x36   :  { %s51_s16 = sshll.u32 %s12994_s15, 4  ;;  %s73_s19 = sshll.u32 %s12995_s17, 4  ;;  %s52_s16 = int_to_ptr.vmem [resolvable:$true] %s51_s16  ;;  %s74_s19 = int_to_ptr.vmem [resolvable:$true] %s73_s19 }
  0x37   :  { %s12887_s18 = scalar_lea.hbm %s15695_s4, 32 }
  0x38   :  { %p12888_p10 = scmp.ne.s32.totalorder %s15695_s4, %s12887_s18  ;;  %p12891_p11 = scmp.lt.u32.totalorder %s12887_s18, %s15695_s4 }
  0x3a   :  { %p12893_p12 = pnand %p12891_p11, %p12888_p10 }
  0x3c   :  { %12896 = shalt.err (!%p12893_p12)
}
  0x3d   :  { %s12897_s1 = scalar_lea.vmem %s52_s16, 32  ;;  %p12902_p0 = scmp.lt.s32.totalorder %s52_s16, %s52_s16 }
  0x3e   :  { %p12898_p13 = scmp.ne.s32.totalorder %s52_s16, %s12897_s1  ;;  %p12903_p1 = scmp.lt.s32.totalorder %s12897_s1, %s12897_s1 }
  0x40   :  { %p12904_p2 = por %p12903_p1, %p12902_p0 }
  0x42   :  { %p12905_p3 = pnand %p12904_p2, %p12898_p13 }
  0x44   :  { %12908 = shalt.err (!%p12905_p3)
}
  0x45   :  { %54 = dma.hbm_to_vmem [thread:$0]  %s15695_s4, 32, %s52_s16, [#allocation15]  }
  0x46   :  { %s12909_s30 = scalar_lea.hbm %s15699_s8, 16 }
  0x47   :  { %p12910_p4 = scmp.ne.s32.totalorder %s15699_s8, %s12909_s30  ;;  %p12913_p5 = scmp.lt.u32.totalorder %s12909_s30, %s15699_s8 }
  0x49   :  { %p12915_p6 = pnand %p12913_p5, %p12910_p4 }
  0x4b   :  { %12918 = shalt.err (!%p12915_p6)
}
  0x4c   :  { %s12919_s15 = scalar_lea.vmem %s74_s19, 16  ;;  %s12923_s17 = scalar_lea.vmem %s74_s19, 32 }
  0x4d   :  { %p12920_p7 = scmp.ne.s32.totalorder %s74_s19, %s12919_s15  ;;  %p12924_p8 = scmp.lt.s32.totalorder %s74_s19, %s74_s19 }
  0x4e   :  { %p12925_p9 = scmp.lt.s32.totalorder %s12923_s17, %s12919_s15 }
  0x50   :  { %p12926_p10 = por %p12925_p9, %p12924_p8 }
  0x52   :  { %p12927_p11 = pnand %p12926_p10, %p12920_p7 }
  0x54   :  { %12930 = shalt.err (!%p12927_p11)
}
  0x55   :  { %76 = dma.hbm_to_vmem [thread:$0]  %s15699_s8, 16, %s74_s19, [#allocation18]  }
  0x56   :  { %s12996_s21 = smov [#allocation20]   ;;  %s12931_s24 = scalar_lea.hbm %s15701_s10, 16 }
  0x57   :  { %s85_s2 = sshll.u32 %s12996_s21, 4  ;;  %p12932_p12 = scmp.ne.s32.totalorder %s15701_s10, %s12931_s24  ;;  %s86_s2 = int_to_ptr.vmem [resolvable:$true] %s85_s2 }
  0x58   :  { %p12935_p13 = scmp.lt.u32.totalorder %s12931_s24, %s15701_s10 }
  0x5a   :  { %p12937_p0 = pnand %p12935_p13, %p12932_p12 }
  0x5c   :  { %12940 = shalt.err (!%p12937_p0)
}
  0x5d   :  { %s12941_s27 = scalar_lea.vmem %s86_s2, 16  ;;  %s12945_s8 = scalar_lea.vmem %s86_s2, 32 }
  0x5e   :  { %p12942_p1 = scmp.ne.s32.totalorder %s86_s2, %s12941_s27  ;;  %p12946_p2 = scmp.lt.s32.totalorder %s86_s2, %s86_s2 }
  0x5f   :  { %p12947_p3 = scmp.lt.s32.totalorder %s12945_s8, %s12941_s27 }
  0x61   :  { %p12948_p4 = por %p12947_p3, %p12946_p2 }
  0x63   :  { %p12949_p5 = pnand %p12948_p4, %p12942_p1 }
  0x65   :  { %12952 = shalt.err (!%p12949_p5)
}
  0x66   :  { %88 = dma.hbm_to_vmem [thread:$0]  %s15701_s10, 16, %s86_s2, [#allocation21]  }
  0x67   :  { %12975 = dma.done.wait [#allocation12], 30720  }
  0x68   :  { %12976 = vsyncadd [#allocation12], 4294936576 }
  0x69   :  { %12977 = dma.done.wait [#allocation15], 96  }
  0x6a   :  { %12978 = vsyncadd [#allocation15], 4294967200 }
  0x6b   :  { %12979 = dma.done.wait [#allocation18], 48  }
  0x6c   :  { %12980 = vsyncadd [#allocation18], 4294967248 }
  0x6d   :  { %12981 = dma.done.wait [#allocation21], 16  }
  0x6e   :  { %12982 = vsyncadd [#allocation21], 4294967280  ;;  %s112_s29 = sld [smem:[#allocation0]]   ;;  %124 = sst [smem:[#allocation24]] %s12992_s6  ;;  %v12997_v0 = vmov 0   ;;  %vm186_vm0 = vcmask 779264  }
  0x6f   :  { %544 = vmatprep.mubr.bf16.mxu0 %v12997_v0  ;;  %617 = vmatprep.mubr.bf16.mxu1 %v12997_v0  ;;  %126 = sst [smem:[#allocation24 + $0x1]] %s12992_s6  ;;  %s12998_s30 = smov [#allocation8]   ;;  %v15703_v1 = vmov 0.0   ;;  %vm191_vm1 = vcmask 785408   ;;  %vm5144_vm2 = vcmask 1041408  }
  0x70   :  { %s120_s10 = sshll.u32 %s12998_s30, 4  ;;  %s12999_s12 = smov 4   ;;  %s121_s10 = int_to_ptr.vmem [resolvable:$true] %s120_s10 }
  0x71   :  { %128 = sst [smem:[#allocation24 + $0x2]] %s12999_s12  ;;  %s13000_s20 = smov 64  }
  0x72   :  { %130 = sst [smem:[#allocation24 + $0x3]] %s13000_s20  ;;  %s13001_s13 = smov 128  }
  0x73   :  { %132 = sst [smem:[#allocation24 + $0x4]] %s13001_s13  ;;  %s13002_s15 = smov 2  }
  0x74   :  { %s11759_s14 = sshll.u32 %s112_s29, 26  ;;  %134 = sst [smem:[#allocation24 + $0x5]] %s13002_s15 }
  0x75   :  { %s11760_s17 = sadd.s32 134217728, %s11759_s14  ;;  %s13003_s4 = smov 256  }
  0x76   :  { %136 = sst [smem:[#allocation24 + $0x6]] %s13003_s4  ;;  %s13004_s16 = smov [#allocation10]  }
  0x77   :  { %138 = sst [smem:[#allocation24 + $0x7]] %s13000_s20  ;;  %s13005_s21 = smov [#allocation23]  }
  0x78   :  { %140 = sst [smem:[#allocation24 + $0x8]] %s12999_s12  ;;  %s13006_s22 = smov [#allocation9]  }
  0x79   :  { %142 = dma.general %s15694_s3, 81920, %s121_s10, %s13004_s16, %s13005_s21, [#allocation24], %s11760_s17, 0  }
  0x7a   :  { %159 = sst [smem:[#allocation26]] %s12992_s6  ;;  %s155_s24 = sshll.u32 %s13006_s22, 4  ;;  %s156_s24 = int_to_ptr.vmem [resolvable:$true] %s155_s24 }
  0x7b   :  { %161 = sst [smem:[#allocation26 + $0x1]] %s12992_s6  ;;  %s13007_s25 = smov [#allocation10 + $0x1]  }
  0x7c   :  { %163 = sst [smem:[#allocation26 + $0x2]] %s12999_s12  ;;  %s13008_s26 = smov [#allocation25]  }
  0x7d   :  { %165 = sst [smem:[#allocation26 + $0x3]] %s13000_s20 }
  0x7e   :  { %167 = sst [smem:[#allocation26 + $0x4]] %s13001_s13 }
  0x7f   :  { %169 = sst [smem:[#allocation26 + $0x5]] %s13002_s15 }
  0x80   :  { %171 = sst [smem:[#allocation26 + $0x6]] %s13003_s4 }
  0x81   :  { %173 = sst [smem:[#allocation26 + $0x7]] %s13000_s20 }
  0x82   :  { %175 = sst [smem:[#allocation26 + $0x8]] %s12999_s12 }
  0x83   :  { %177 = dma.general %s15696_s5, 40960, %s156_s24, %s13007_s25, %s13008_s26, [#allocation26], %s11760_s17, 0  }
  0x84   :  { %187 = vst.msk [vmem:[#allocation2] sm:$0x3] %vm186_vm0, %v15703_v1  ;;  %188 = vst.msk [vmem:[#allocation2 + $0x28] sm:$0x3] %vm186_vm0, %v15703_v1  ;;  %v212_v2 = vld [vmem:[#allocation11] sm:$0xff]  ;;  %v213_v4 = vld [vmem:[#allocation11 + $0x8] sm:$0xff] }
  0x85   :  { %189 = vst.msk [vmem:[#allocation2 + $0x22] sm:$0x3] %vm186_vm0, %v15703_v1  ;;  %190 = vst.msk [vmem:[#allocation2 + $0x4a] sm:$0x3] %vm186_vm0, %v15703_v1  ;;  %v216_v3 = vld [vmem:[#allocation11 + $0x20] sm:$0xff]  ;;  %v217_v6 = vld [vmem:[#allocation11 + $0x28] sm:$0xff] }
  0x86   :  { %v11764_v5 = vcombine.high %v212_v2, %v216_v3  ;;  %v11763_v7 = vcombine.low %v212_v2, %v216_v3  ;;  %v220_v8 = vld [vmem:[#allocation11 + $0x40] sm:$0xff]  ;;  %v11766_v10 = vcombine.high %v213_v4, %v217_v6  ;;  %v11765_v11 = vcombine.low %v213_v4, %v217_v6  ;;  %v221_v13 = vld [vmem:[#allocation11 + $0x48] sm:$0xff]  ;;  %v178_v29 = vld [vmem:[%s15691_s0] sm:$0xff] }
  0x87   :  { %v224_v9 = vld [vmem:[#allocation11 + $0x60] sm:$0xff]  ;;  %v225_v14 = vld [vmem:[#allocation11 + $0x68] sm:$0xff]  ;;  %v179_v30 = vld [vmem:[%s15691_s0 + $0x8] sm:$0xff]  ;;  %192 = vst.msk [vmem:[#allocation2 + $0x2] sm:$0xff] %vm191_vm1, %v178_v29 }
  0x88   :  { %v11772_v12 = vcombine.high %v220_v8, %v224_v9  ;;  %v228_v15 = vld [vmem:[#allocation11 + $0x80] sm:$0xff]  ;;  %512 = vmatprep.subr.bf16.mxu0 %v11764_v5  ;;  %v11774_v16 = vcombine.high %v221_v13, %v225_v14  ;;  %v229_v18 = vld [vmem:[#allocation11 + $0x88] sm:$0xff]  ;;  %585 = vmatprep.subr.bf16.mxu1 %v11766_v10  ;;  %v11771_v20 = vcombine.low %v220_v8, %v224_v9  ;;  %v182_v43 = vld [vmem:[%s15691_s0 + $0x20] sm:$0xff] }
  0x89   :  { %v232_v17 = vld [vmem:[#allocation11 + $0xa0] sm:$0xff]  ;;  %v233_v19 = vld [vmem:[#allocation11 + $0xa8] sm:$0xff]  ;;  %513 = vmatpush1.bf16.msra.mxu0 %v11763_v7  ;;  %586 = vmatpush1.bf16.msra.mxu1 %v11765_v11  ;;  %v11773_v21 = vcombine.low %v221_v13, %v225_v14  ;;  %193 = vst.msk [vmem:[#allocation2 + $0xa] sm:$0xff] %vm191_vm1, %v179_v30  ;;  %v183_v44 = vld [vmem:[%s15691_s0 + $0x28] sm:$0xff] }
  0x8a   :  { %514 = vmatprep.subr.bf16.mxu0 %v11772_v12  ;;  %v11780_v22 = vcombine.high %v228_v15, %v232_v17  ;;  %587 = vmatprep.subr.bf16.mxu1 %v11774_v16  ;;  %v11782_v23 = vcombine.high %v229_v18, %v233_v19  ;;  %v236_v24 = vld [vmem:[#allocation11 + $0xc0] sm:$0xff]  ;;  %v237_v26 = vld [vmem:[#allocation11 + $0xc8] sm:$0xff]  ;;  %v11779_v28 = vcombine.low %v228_v15, %v232_v17  ;;  %v214_v56 = vld [vmem:[#allocation11 + $0x10] sm:$0xff] }
  0x8b   :  { %v240_v25 = vld [vmem:[#allocation11 + $0xe0] sm:$0xff]  ;;  %v241_v27 = vld [vmem:[#allocation11 + $0xe8] sm:$0xff]  ;;  %v11781_v31 = vcombine.low %v229_v18, %v233_v19  ;;  %196 = vst.msk [vmem:[#allocation2 + $0x2a] sm:$0xff] %vm191_vm1, %v182_v43  ;;  %197 = vst.msk [vmem:[#allocation2 + $0x32] sm:$0xff] %vm191_vm1, %v183_v44 }
  0x8c   :  { %v11788_v32 = vcombine.high %v236_v24, %v240_v25  ;;  %v11790_v33 = vcombine.high %v237_v26, %v241_v27  ;;  %v244_v34 = vld [vmem:[#allocation11 + $0x100] sm:$0xff]  ;;  %v245_v36 = vld [vmem:[#allocation11 + $0x108] sm:$0xff]  ;;  %v11787_v40 = vcombine.low %v236_v24, %v240_v25  ;;  %v11789_v41 = vcombine.low %v237_v26, %v241_v27  ;;  %v218_v57 = vld [vmem:[#allocation11 + $0x30] sm:$0xff] }
  0x8d   :  { %515 = vmatpush1.bf16.msra.mxu0 %v11771_v20  ;;  %588 = vmatpush1.bf16.msra.mxu1 %v11773_v21  ;;  %v248_v35 = vld [vmem:[#allocation11 + $0x120] sm:$0xff]  ;;  %v249_v37 = vld [vmem:[#allocation11 + $0x128] sm:$0xff]  ;;  %v215_v58 = vld [vmem:[#allocation11 + $0x18] sm:$0xff]  ;;  %v11768_v2 = vcombine.high %v214_v56, %v218_v57  ;;  %v11767_v9 = vcombine.low %v214_v56, %v218_v57 }
  0x8e   :  { %516 = vmatprep.subr.bf16.mxu0 %v11780_v22  ;;  %589 = vmatprep.subr.bf16.mxu1 %v11782_v23  ;;  %v180_v38 = vld [vmem:[%s15691_s0 + $0x10] sm:$0xff]  ;;  %v181_v39 = vld [vmem:[%s15691_s0 + $0x18] sm:$0xff]  ;;  %v11796_v42 = vcombine.high %v244_v34, %v248_v35  ;;  %v11798_v45 = vcombine.high %v245_v36, %v249_v37  ;;  %v11795_v50 = vcombine.low %v244_v34, %v248_v35  ;;  %v219_v59 = vld [vmem:[#allocation11 + $0x38] sm:$0xff] }
  0x8f   :  { %194 = vst.msk [vmem:[#allocation2 + $0x12] sm:$0xff] %vm191_vm1, %v180_v38  ;;  %195 = vst.msk [vmem:[#allocation2 + $0x1a] sm:$0xff] %vm191_vm1, %v181_v39  ;;  %v252_v46 = vld [vmem:[#allocation11 + $0x140] sm:$0xff]  ;;  %v253_v48 = vld [vmem:[#allocation11 + $0x148] sm:$0xff]  ;;  %v11797_v51 = vcombine.low %v245_v36, %v249_v37  ;;  %v11770_v3 = vcombine.high %v215_v58, %v219_v59  ;;  %v11769_v10 = vcombine.low %v215_v58, %v219_v59 }
  0x90   :  { %v256_v47 = vld [vmem:[#allocation11 + $0x160] sm:$0xff]  ;;  %v257_v49 = vld [vmem:[#allocation11 + $0x168] sm:$0xff]  ;;  %v200_v61 = vld [vmem:[#allocation2] sm:$0xff] }
  0x91   :  { %517 = vmatpush1.bf16.msra.mxu0 %v11779_v28  ;;  %590 = vmatpush1.bf16.msra.mxu1 %v11781_v31  ;;  %v11804_v52 = vcombine.high %v252_v46, %v256_v47  ;;  %v184_v53 = vld [vmem:[%s15691_s0 + $0x30] sm:$0xff]  ;;  %v185_v54 = vld [vmem:[%s15691_s0 + $0x38] sm:$0xff]  ;;  %v11806_v55 = vcombine.high %v253_v48, %v257_v49  ;;  %v11803_v60 = vcombine.low %v252_v46, %v256_v47  ;;  %v201_v62 = vld [vmem:[#allocation2 + $0x8] sm:$0xff] }
  0x92   :  { %518 = vmatprep.subr.bf16.mxu0 %v11788_v32  ;;  %591 = vmatprep.subr.bf16.mxu1 %v11790_v33  ;;  %198 = vst.msk [vmem:[#allocation2 + $0x3a] sm:$0xff] %vm191_vm1, %v184_v53  ;;  %199 = vst.msk [vmem:[#allocation2 + $0x42] sm:$0xff] %vm191_vm1, %v185_v54  ;;  %v11805_v63 = vcombine.low %v253_v48, %v257_v49  ;;  %v222_v4 = vld [vmem:[#allocation11 + $0x50] sm:$0xff]  ;;  %v13195_v6 = vpack.c.bf16 %v201_v62, %v200_v61  ;;  %v223_v7 = vld [vmem:[#allocation11 + $0x58] sm:$0xff] }
  0x93   :  { %v226_v5 = vld [vmem:[#allocation11 + $0x70] sm:$0xff]  ;;  %v227_v8 = vld [vmem:[#allocation11 + $0x78] sm:$0xff]  ;;  %v205_v37 = vld [vmem:[#allocation2 + $0x30] sm:$0xff] }
  0x94   :  { %v11776_v11 = vcombine.high %v222_v4, %v226_v5  ;;  %v11778_v12 = vcombine.high %v223_v7, %v227_v8  ;;  %v230_v13 = vld [vmem:[#allocation11 + $0x90] sm:$0xff]  ;;  %v231_v15 = vld [vmem:[#allocation11 + $0x98] sm:$0xff]  ;;  %v11775_v17 = vcombine.low %v222_v4, %v226_v5  ;;  %v11777_v20 = vcombine.low %v223_v7, %v227_v8  ;;  %v882_v53 = vld [vmem:[#allocation11 + $0x188] sm:$0xff] }
  0x95   :  { %519 = vmatpush1.bf16.msra.mxu0 %v11787_v40  ;;  %592 = vmatpush1.bf16.msra.mxu1 %v11789_v41  ;;  %v234_v14 = vld [vmem:[#allocation11 + $0xb0] sm:$0xff]  ;;  %v235_v16 = vld [vmem:[#allocation11 + $0xb8] sm:$0xff]  ;;  %v886_v56 = vld [vmem:[#allocation11 + $0x1a8] sm:$0xff] }
  0x96   :  { %520 = vmatprep.subr.bf16.mxu0 %v11796_v42  ;;  %593 = vmatprep.subr.bf16.mxu1 %v11798_v45  ;;  %v202_v18 = vld [vmem:[#allocation2 + $0x10] sm:$0xff]  ;;  %v203_v19 = vld [vmem:[#allocation2 + $0x18] sm:$0xff]  ;;  %v11784_v21 = vcombine.high %v230_v13, %v234_v14  ;;  %v11786_v22 = vcombine.high %v231_v15, %v235_v16  ;;  %v238_v24 = vld [vmem:[#allocation11 + $0xd0] sm:$0xff]  ;;  %v11783_v26 = vcombine.low %v230_v13, %v234_v14 }
  0x97   :  { %v13203_v23 = vpack.c.bf16 %v203_v19, %v202_v18  ;;  %v242_v25 = vld [vmem:[#allocation11 + $0xf0] sm:$0xff]  ;;  %v239_v27 = vld [vmem:[#allocation11 + $0xd8] sm:$0xff]  ;;  %v11785_v29 = vcombine.low %v231_v15, %v235_v16  ;;  %v11830_v61 = vcombine.high %v882_v53, %v886_v56  ;;  %v889_v62 = vld [vmem:[#allocation11 + $0x1c0] sm:$0xff]  ;;  %v11829_v5 = vcombine.low %v882_v53, %v886_v56 }
  0x98   :  { %v243_v28 = vld [vmem:[#allocation11 + $0xf8] sm:$0xff]  ;;  %v11792_v30 = vcombine.high %v238_v24, %v242_v25  ;;  %v246_v31 = vld [vmem:[#allocation11 + $0x110] sm:$0xff]  ;;  %v11791_v38 = vcombine.low %v238_v24, %v242_v25  ;;  %v909_v18 = vld [vmem:[#allocation11 + $0x260] sm:$0xff] }
  0x99   :  { %521 = vmatpush1.bf16.msra.mxu0 %v11795_v50  ;;  %594 = vmatpush1.bf16.msra.mxu1 %v11797_v51  ;;  %v250_v32 = vld [vmem:[#allocation11 + $0x130] sm:$0xff]  ;;  %v11794_v33 = vcombine.high %v239_v27, %v243_v28  ;;  %v247_v34 = vld [vmem:[#allocation11 + $0x118] sm:$0xff]  ;;  %v11793_v39 = vcombine.low %v239_v27, %v243_v28  ;;  %v881_v51 = vld [vmem:[#allocation11 + $0x180] sm:$0xff] }
  0x9a   :  { %522 = vmatprep.subr.bf16.mxu0 %v11804_v52  ;;  %595 = vmatprep.subr.bf16.mxu1 %v11806_v55  ;;  %v251_v35 = vld [vmem:[#allocation11 + $0x138] sm:$0xff]  ;;  %v11800_v40 = vcombine.high %v246_v31, %v250_v32  ;;  %v254_v43 = vld [vmem:[#allocation11 + $0x150] sm:$0xff]  ;;  %v11799_v47 = vcombine.low %v246_v31, %v250_v32  ;;  %v885_v52 = vld [vmem:[#allocation11 + $0x1a0] sm:$0xff] }
  0x9b   :  { %v204_v36 = vld [vmem:[#allocation2 + $0x28] sm:$0xff]  ;;  %v11802_v41 = vcombine.high %v247_v34, %v251_v35  ;;  %v258_v44 = vld [vmem:[#allocation11 + $0x170] sm:$0xff]  ;;  %v11801_v48 = vcombine.low %v247_v34, %v251_v35  ;;  %v206_v54 = vld [vmem:[#allocation2 + $0x38] sm:$0xff]  ;;  %v11828_v59 = vcombine.high %v881_v51, %v885_v52  ;;  %v11827_v4 = vcombine.low %v881_v51, %v885_v52 }
  0x9c   :  { %v13211_v42 = vpack.c.bf16 %v205_v37, %v204_v36  ;;  %v255_v45 = vld [vmem:[#allocation11 + $0x158] sm:$0xff]  ;;  %v11808_v49 = vcombine.high %v254_v43, %v258_v44  ;;  %v207_v55 = vld [vmem:[#allocation2 + $0x40] sm:$0xff]  ;;  %v11807_v57 = vcombine.low %v254_v43, %v258_v44  ;;  %v913_v24 = vld [vmem:[#allocation11 + $0x280] sm:$0xff] }
  0x9d   :  { %523 = vmatpush1.bf16.msra.mxu0 %v11803_v60  ;;  %596 = vmatpush1.bf16.msra.mxu1 %v11805_v63  ;;  %v259_v46 = vld [vmem:[#allocation11 + $0x178] sm:$0xff]  ;;  %v13219_v60 = vpack.c.bf16 %v207_v55, %v206_v54  ;;  %v893_v63 = vld [vmem:[#allocation11 + $0x1e0] sm:$0xff]  ;;  %v914_v27 = vld [vmem:[#allocation11 + $0x288] sm:$0xff] }
  0x9e   :  { %658 = vmatprep.subr.bf16.mxu0 %v11768_v2  ;;  %731 = vmatprep.subr.bf16.mxu1 %v11770_v3  ;;  %v11810_v50 = vcombine.high %v255_v45, %v259_v46  ;;  %v11809_v58 = vcombine.low %v255_v45, %v259_v46  ;;  %v890_v2 = vld [vmem:[#allocation11 + $0x1c8] sm:$0xff]  ;;  %v11836_v7 = vcombine.high %v889_v62, %v893_v63  ;;  %v917_v25 = vld [vmem:[#allocation11 + $0x2a0] sm:$0xff]  ;;  %v884_v43 = vld [vmem:[#allocation11 + $0x198] sm:$0xff] }
  0x9f   :  { %v894_v3 = vld [vmem:[#allocation11 + $0x1e8] sm:$0xff]  ;;  %v11835_v13 = vcombine.low %v889_v62, %v893_v63  ;;  %v11860_v31 = vcombine.high %v913_v24, %v917_v25  ;;  %v925_v34 = vld [vmem:[#allocation11 + $0x2e0] sm:$0xff]  ;;  %v11859_v37 = vcombine.low %v913_v24, %v917_v25  ;;  %v888_v44 = vld [vmem:[#allocation11 + $0x1b8] sm:$0xff] }
  0xa0   :  { %11811 = vmatmul.mubr.msk.bf16.vlgmr.msra.gmra.mrb[0].mxu0 %vm191_vm1, %v13195_v6  ;;  %11815 = vmatmul.mubr.msk.bf16.vlgmr.msra.gmra.mrb[0].mxu1 %vm191_vm1, %v13195_v6  ;;  %v11838_v8 = vcombine.high %v890_v2, %v894_v3  ;;  %v11837_v14 = vcombine.low %v890_v2, %v894_v3  ;;  %v918_v28 = vld [vmem:[#allocation11 + $0x2a8] sm:$0xff]  ;;  %v895_v51 = vld [vmem:[#allocation11 + $0x1f0] sm:$0xff]  ;;  %v892_v53 = vld [vmem:[#allocation11 + $0x1d8] sm:$0xff]  ;;  %v11833_v56 = vcombine.low %v884_v43, %v888_v44 }
  0xa1   :  { %659 = vmatpush1.bf16.msra.mxu0 %v11767_v9  ;;  %732 = vmatpush1.bf16.msra.mxu1 %v11769_v10  ;;  %v897_v9 = vld [vmem:[#allocation11 + $0x200] sm:$0xff]  ;;  %v11862_v32 = vcombine.high %v914_v27, %v918_v28  ;;  %v922_v35 = vld [vmem:[#allocation11 + $0x2c8] sm:$0xff]  ;;  %v896_v54 = vld [vmem:[#allocation11 + $0x1f8] sm:$0xff] }
  0xa2   :  { %660 = vmatprep.subr.bf16.mxu0 %v11776_v11  ;;  %733 = vmatprep.subr.bf16.mxu1 %v11778_v12  ;;  %v901_v10 = vld [vmem:[#allocation11 + $0x220] sm:$0xff]  ;;  %v898_v11 = vld [vmem:[#allocation11 + $0x208] sm:$0xff]  ;;  %v904_v62 = vld [vmem:[#allocation11 + $0x238] sm:$0xff] }
  0xa3   :  { %554 = vmatprep.mubr.bf16.mxu0 %v12997_v0  ;;  %627 = vmatprep.mubr.bf16.mxu1 %v12997_v0  ;;  %v902_v12 = vld [vmem:[#allocation11 + $0x228] sm:$0xff]  ;;  %v11844_v15 = vcombine.high %v897_v9, %v901_v10  ;;  %v11843_v19 = vcombine.low %v897_v9, %v901_v10  ;;  %v907_v9 = vld [vmem:[#allocation11 + $0x250] sm:$0xff] }
  0xa4   :  { %v11846_v16 = vcombine.high %v898_v11, %v902_v12  ;;  %v926_v36 = vld [vmem:[#allocation11 + $0x2e8] sm:$0xff]  ;;  %v911_v10 = vld [vmem:[#allocation11 + $0x270] sm:$0xff] }
  0xa5   :  { %661 = vmatpush1.bf16.msra.mxu0 %v11775_v17  ;;  %734 = vmatpush1.bf16.msra.mxu1 %v11777_v20  ;;  %v905_v17 = vld [vmem:[#allocation11 + $0x240] sm:$0xff]  ;;  %v906_v20 = vld [vmem:[#allocation11 + $0x248] sm:$0xff]  ;;  %v11869_v46 = vcombine.low %v922_v35, %v926_v36 }
  0xa6   :  { %662 = vmatprep.subr.bf16.mxu0 %v11784_v21  ;;  %735 = vmatprep.subr.bf16.mxu1 %v11786_v22  ;;  %v910_v21 = vld [vmem:[#allocation11 + $0x268] sm:$0xff]  ;;  %v11852_v22 = vcombine.high %v905_v17, %v909_v18 }
  0xa7   :  { %v870_v2 = vld [vmem:[#allocation2 + $0x11] sm:$0xff]  ;;  %v871_v3 = vld [vmem:[#allocation2 + $0x19] sm:$0xff] }
  0xa8   :  { %11812 = vmatmul.mubr.msk.bf16.gmra.mrb[4].mxu0 %vm191_vm1, %v13203_v23  ;;  %11816 = vmatmul.mubr.msk.bf16.gmra.mrb[4].mxu1 %vm191_vm1, %v13203_v23 }
  0xa9   :  { %663 = vmatpush1.bf16.msra.mxu0 %v11783_v26  ;;  %736 = vmatpush1.bf16.msra.mxu1 %v11785_v29  ;;  %v11854_v26 = vcombine.high %v906_v20, %v910_v21  ;;  %v11851_v29 = vcombine.low %v905_v17, %v909_v18  ;;  %v919_v17 = vld [vmem:[#allocation11 + $0x2b0] sm:$0xff] }
  0xaa   :  { %564 = vmatprep.mubr.bf16.mxu0 %v12997_v0  ;;  %637 = vmatprep.mubr.bf16.mxu1 %v12997_v0 }
  0xab   :  { %664 = vmatprep.subr.bf16.mxu0 %v11792_v30  ;;  %737 = vmatprep.subr.bf16.mxu1 %v11794_v33  ;;  %v11853_v30 = vcombine.low %v906_v20, %v910_v21  ;;  %v921_v33 = vld [vmem:[#allocation11 + $0x2c0] sm:$0xff]  ;;  %v920_v20 = vld [vmem:[#allocation11 + $0x2b8] sm:$0xff] }
  0xac   :  { %v11867_v45 = vcombine.low %v921_v33, %v925_v34  ;;  %v872_v21 = vld [vmem:[#allocation2 + $0x29] sm:$0xff] }
  0xad   :  { %665 = vmatpush1.bf16.msra.mxu0 %v11791_v38  ;;  %738 = vmatpush1.bf16.msra.mxu1 %v11793_v39  ;;  %v11868_v38 = vcombine.high %v921_v33, %v925_v34  ;;  %v11870_v39 = vcombine.high %v922_v35, %v926_v36  ;;  %v874_v35 = vld [vmem:[#allocation2 + $0x39] sm:$0xff] }
  0xae   :  { %666 = vmatprep.subr.bf16.mxu0 %v11800_v40  ;;  %739 = vmatprep.subr.bf16.mxu1 %v11802_v41  ;;  %v883_v40 = vld [vmem:[#allocation11 + $0x190] sm:$0xff] }
  0xaf   :  { %v887_v41 = vld [vmem:[#allocation11 + $0x1b0] sm:$0xff] }
  0xb0   :  { %11813 = vmatmul.mubr.msk.bf16.gmra.mrb[8].mxu0 %vm191_vm1, %v13211_v42  ;;  %11817 = vmatmul.mubr.msk.bf16.gmra.mrb[8].mxu1 %vm191_vm1, %v13211_v42  ;;  %v11831_v55 = vcombine.low %v883_v40, %v887_v41 }
  0xb1   :  { %574 = vmatprep.mubr.bf16.mxu0 %v12997_v0  ;;  %647 = vmatprep.mubr.bf16.mxu1 %v12997_v0 }
  0xb2   :  { %667 = vmatpush1.bf16.msra.mxu0 %v11799_v47  ;;  %740 = vmatpush1.bf16.msra.mxu1 %v11801_v48  ;;  %v11832_v47 = vcombine.high %v883_v40, %v887_v41  ;;  %v11834_v48 = vcombine.high %v884_v43, %v888_v44  ;;  %v1683_v40 = vld [vmem:[#allocation11 + $0x328] sm:$0xff] }
  0xb3   :  { %668 = vmatprep.subr.bf16.mxu0 %v11808_v49  ;;  %741 = vmatprep.subr.bf16.mxu1 %v11810_v50  ;;  %v869_v49 = vld [vmem:[#allocation2 + $0x9] sm:$0xff]  ;;  %v891_v50 = vld [vmem:[#allocation11 + $0x1d0] sm:$0xff] }
  0xb4   :  { %v11839_v63 = vcombine.low %v891_v50, %v895_v51 }
  0xb6   :  { %669 = vmatpush1.bf16.msra.mxu0 %v11807_v57  ;;  %742 = vmatpush1.bf16.msra.mxu1 %v11809_v58  ;;  %v11840_v57 = vcombine.high %v891_v50, %v895_v51  ;;  %v11842_v58 = vcombine.high %v892_v53, %v896_v54 }
  0xb7   :  { %1181 = vmatprep.subr.bf16.mxu0 %v11828_v59  ;;  %1254 = vmatprep.subr.bf16.mxu1 %v11830_v61  ;;  %v899_v59 = vld [vmem:[#allocation11 + $0x210] sm:$0xff] }
  0xb8   :  { %11814 = vmatmul.mubr.msk.bf16.gmra.mrb[12].mxu0 %vm191_vm1, %v13219_v60  ;;  %11818 = vmatmul.mubr.msk.bf16.gmra.mrb[12].mxu1 %vm191_vm1, %v13219_v60  ;;  %v903_v61 = vld [vmem:[#allocation11 + $0x230] sm:$0xff] }
  0xb9   :  { %690 = vmatprep.mubr.bf16.mxu0 %v12997_v0  ;;  %763 = vmatprep.mubr.bf16.mxu1 %v12997_v0 }
  0xc0   :  { %11819 = vmatmul.mubr.msk.bf16.vlgmr.msra.gmra.mrb[16].mxu0 %vm191_vm1, %v13195_v6  ;;  %11823 = vmatmul.mubr.msk.bf16.vlgmr.msra.gmra.mrb[16].mxu1 %vm191_vm1, %v13195_v6  ;;  %v11845_v6 = vcombine.low %v898_v11, %v902_v12  ;;  %v11847_v11 = vcombine.low %v899_v59, %v903_v61  ;;  %v908_v12 = vld [vmem:[#allocation11 + $0x258] sm:$0xff] }
  0xc1   :  { %1182 = vmatpush1.bf16.msra.mxu0 %v11827_v4  ;;  %1255 = vmatpush1.bf16.msra.mxu1 %v11829_v5  ;;  %v11841_v4 = vcombine.low %v892_v53, %v896_v54  ;;  %v11848_v5 = vcombine.high %v899_v59, %v903_v61 }
  0xc2   :  { %1183 = vmatprep.subr.bf16.mxu0 %v11836_v7  ;;  %1256 = vmatprep.subr.bf16.mxu1 %v11838_v8  ;;  %v13259_v8 = vpack.c.bf16 %v871_v3, %v870_v2  ;;  %v1706_v2 = vld [vmem:[#allocation11 + $0x3e0] sm:$0xff] }
  0xc3   :  { %700 = vmatprep.mubr.bf16.mxu0 %v12997_v0  ;;  %773 = vmatprep.mubr.bf16.mxu1 %v12997_v0 }
  0xc5   :  { %1184 = vmatpush1.bf16.msra.mxu0 %v11835_v13  ;;  %1257 = vmatpush1.bf16.msra.mxu1 %v11837_v14  ;;  %v912_v13 = vld [vmem:[#allocation11 + $0x278] sm:$0xff] }
  0xc6   :  { %1185 = vmatprep.subr.bf16.mxu0 %v11844_v15  ;;  %1258 = vmatprep.subr.bf16.mxu1 %v11846_v16  ;;  %v11856_v15 = vcombine.high %v907_v9, %v911_v10  ;;  %v915_v16 = vld [vmem:[#allocation11 + $0x290] sm:$0xff]  ;;  %v11858_v18 = vcombine.high %v908_v12, %v912_v13  ;;  %v11857_v24 = vcombine.low %v908_v12, %v912_v13  ;;  %v1711_v12 = vld [vmem:[#allocation11 + $0x408] sm:$0xff] }
  0xc7   :  { %v11864_v25 = vcombine.high %v915_v16, %v919_v17  ;;  %v1715_v13 = vld [vmem:[#allocation11 + $0x428] sm:$0xff] }
  0xc8   :  { %11820 = vmatmul.mubr.msk.bf16.gmra.mrb[20].mxu0 %vm191_vm1, %v13203_v23  ;;  %11824 = vmatmul.mubr.msk.bf16.gmra.mrb[20].mxu1 %vm191_vm1, %v13203_v23  ;;  %v11861_v23 = vcombine.low %v914_v27, %v918_v28  ;;  %v923_v28 = vld [vmem:[#allocation11 + $0x2d0] sm:$0xff] }
  0xc9   :  { %1186 = vmatpush1.bf16.msra.mxu0 %v11843_v19  ;;  %1259 = vmatpush1.bf16.msra.mxu1 %v11845_v6  ;;  %v916_v19 = vld [vmem:[#allocation11 + $0x298] sm:$0xff]  ;;  %v873_v6 = vld [vmem:[#allocation2 + $0x31] sm:$0xff] }
  0xca   :  { %710 = vmatprep.mubr.bf16.mxu0 %v12997_v0  ;;  %783 = vmatprep.mubr.bf16.mxu1 %v12997_v0  ;;  %v13267_v27 = vpack.c.bf16 %v873_v6, %v872_v21  ;;  %v11865_v33 = vcombine.low %v916_v19, %v920_v20  ;;  %v1723_v21 = vld [vmem:[#allocation11 + $0x468] sm:$0xff] }
  0xcb   :  { %1187 = vmatprep.subr.bf16.mxu0 %v11852_v22  ;;  %1260 = vmatprep.subr.bf16.mxu1 %v11854_v26  ;;  %v11855_v22 = vcombine.low %v907_v9, %v911_v10  ;;  %v11866_v26 = vcombine.high %v916_v19, %v920_v20  ;;  %v1710_v9 = vld [vmem:[#allocation11 + $0x400] sm:$0xff]  ;;  %v1719_v20 = vld [vmem:[#allocation11 + $0x448] sm:$0xff] }
  0xcc   :  { %v1714_v10 = vld [vmem:[#allocation11 + $0x420] sm:$0xff] }
  0xcd   :  { %1188 = vmatpush1.bf16.msra.mxu0 %v11851_v29  ;;  %1261 = vmatpush1.bf16.msra.mxu1 %v11853_v30  ;;  %v927_v29 = vld [vmem:[#allocation11 + $0x2f0] sm:$0xff]  ;;  %v924_v30 = vld [vmem:[#allocation11 + $0x2d8] sm:$0xff]  ;;  %v1722_v19 = vld [vmem:[#allocation11 + $0x460] sm:$0xff]  ;;  %v11923_v6 = vcombine.low %v1710_v9, %v1714_v10 }
  0xce   :  { %1189 = vmatprep.subr.bf16.mxu0 %v11860_v31  ;;  %1262 = vmatprep.subr.bf16.mxu1 %v11862_v32  ;;  %v928_v31 = vld [vmem:[#allocation11 + $0x2f8] sm:$0xff]  ;;  %v11863_v32 = vcombine.low %v915_v16, %v919_v17  ;;  %v11872_v34 = vcombine.high %v923_v28, %v927_v29  ;;  %v11871_v41 = vcombine.low %v923_v28, %v927_v29 }
  0xcf   :  { %v11874_v36 = vcombine.high %v924_v30, %v928_v31  ;;  %v11873_v43 = vcombine.low %v924_v30, %v928_v31  ;;  %v11924_v16 = vcombine.high %v1710_v9, %v1714_v10  ;;  %v11926_v17 = vcombine.high %v1711_v12, %v1715_v13  ;;  %v1681_v28 = vld [vmem:[#allocation11 + $0x318] sm:$0xff] }
  0xd0   :  { %11821 = vmatmul.mubr.msk.bf16.gmra.mrb[24].mxu0 %vm191_vm1, %v13211_v42  ;;  %11825 = vmatmul.mubr.msk.bf16.gmra.mrb[24].mxu1 %vm191_vm1, %v13211_v42  ;;  %v868_v42 = vld [vmem:[#allocation2 + $0x1] sm:$0xff]  ;;  %v11933_v31 = vcombine.low %v1719_v20, %v1723_v21 }
  0xd1   :  { %720 = vmatprep.mubr.bf16.mxu0 %v12997_v0  ;;  %793 = vmatprep.mubr.bf16.mxu1 %v12997_v0  ;;  %v13251_v52 = vpack.c.bf16 %v869_v49, %v868_v42  ;;  %v1687_v42 = vld [vmem:[#allocation11 + $0x348] sm:$0xff]  ;;  %v1685_v29 = vld [vmem:[#allocation11 + $0x338] sm:$0xff] }
  0xd2   :  { %1190 = vmatpush1.bf16.msra.mxu0 %v11859_v37  ;;  %1263 = vmatpush1.bf16.msra.mxu1 %v11861_v23  ;;  %v1678_v37 = vld [vmem:[#allocation11 + $0x300] sm:$0xff]  ;;  %v1691_v49 = vld [vmem:[#allocation11 + $0x368] sm:$0xff] }
  0xd3   :  { %1191 = vmatprep.subr.bf16.mxu0 %v11868_v38  ;;  %1264 = vmatprep.subr.bf16.mxu1 %v11870_v39  ;;  %v1682_v23 = vld [vmem:[#allocation11 + $0x320] sm:$0xff]  ;;  %v875_v38 = vld [vmem:[#allocation2 + $0x41] sm:$0xff]  ;;  %v1679_v39 = vld [vmem:[#allocation11 + $0x308] sm:$0xff]  ;;  %v11902_v54 = vcombine.high %v1687_v42, %v1691_v49  ;;  %v11901_v61 = vcombine.low %v1687_v42, %v1691_v49 }
  0xd4   :  { %v11892_v44 = vcombine.high %v1678_v37, %v1682_v23  ;;  %v11891_v50 = vcombine.low %v1678_v37, %v1682_v23  ;;  %v11893_v51 = vcombine.low %v1679_v39, %v1683_v40  ;;  %v1689_v23 = vld [vmem:[#allocation11 + $0x358] sm:$0xff]  ;;  %v1667_v42 = vld [vmem:[#allocation2 + $0x12] sm:$0xff]  ;;  %v1668_v49 = vld [vmem:[#allocation2 + $0x1a] sm:$0xff] }
  0xd6   :  { %1192 = vmatpush1.bf16.msra.mxu0 %v11867_v45  ;;  %1265 = vmatpush1.bf16.msra.mxu1 %v11869_v46  ;;  %v13275_v45 = vpack.c.bf16 %v875_v38, %v874_v35  ;;  %v11894_v46 = vcombine.high %v1679_v39, %v1683_v40  ;;  %v1688_v35 = vld [vmem:[#allocation11 + $0x350] sm:$0xff]  ;;  %v1693_v38 = vld [vmem:[#allocation11 + $0x378] sm:$0xff]  ;;  %v11897_v40 = vcombine.low %v1681_v28, %v1685_v29 }
  0xd7   :  { %1327 = vmatprep.subr.bf16.mxu0 %v11832_v47  ;;  %1400 = vmatprep.subr.bf16.mxu1 %v11834_v48  ;;  %v1686_v47 = vld [vmem:[#allocation11 + $0x340] sm:$0xff] }
  0xd8   :  { %11822 = vmatmul.mubr.msk.bf16.gmra.mrb[28].mxu0 %vm191_vm1, %v13219_v60  ;;  %11826 = vmatmul.mubr.msk.bf16.gmra.mrb[28].mxu1 %vm191_vm1, %v13219_v60  ;;  %v900_v60 = vld [vmem:[#allocation11 + $0x218] sm:$0xff]  ;;  %v1690_v48 = vld [vmem:[#allocation11 + $0x360] sm:$0xff] }
  0xd9   :  { %1213 = vmatprep.mubr.bf16.mxu0 %v12997_v0  ;;  %1286 = vmatprep.mubr.bf16.mxu1 %v12997_v0  ;;  %v11850_v7 = vcombine.high %v900_v60, %v904_v62  ;;  %v11849_v14 = vcombine.low %v900_v60, %v904_v62  ;;  %v11900_v53 = vcombine.high %v1686_v47, %v1690_v48 }
  0xda   :  { %v11899_v59 = vcombine.low %v1686_v47, %v1690_v48  ;;  %v1701_v47 = vld [vmem:[#allocation11 + $0x3b8] sm:$0xff] }
  0xe0   :  { %11875 = vmatmul.mubr.msk.bf16.vlgmr.msra.gmra.mrb[0].mxu0 %vm191_vm1, %v13251_v52  ;;  %11879 = vmatmul.mubr.msk.bf16.vlgmr.msra.gmra.mrb[0].mxu1 %vm191_vm1, %v13251_v52 }
  0xe1   :  { %1328 = vmatpush1.bf16.msra.mxu0 %v11831_v55  ;;  %1401 = vmatpush1.bf16.msra.mxu1 %v11833_v56  ;;  %v1694_v55 = vld [vmem:[#allocation11 + $0x380] sm:$0xff] }
  0xe2   :  { %1329 = vmatprep.subr.bf16.mxu0 %v11840_v57  ;;  %1402 = vmatprep.subr.bf16.mxu1 %v11842_v58  ;;  %v1698_v56 = vld [vmem:[#allocation11 + $0x3a0] sm:$0xff]  ;;  %v1695_v57 = vld [vmem:[#allocation11 + $0x388] sm:$0xff] }
  0xe3   :  { %1223 = vmatprep.mubr.bf16.mxu0 %v12997_v0  ;;  %1296 = vmatprep.mubr.bf16.mxu1 %v12997_v0  ;;  %v1699_v58 = vld [vmem:[#allocation11 + $0x3a8] sm:$0xff]  ;;  %v11908_v60 = vcombine.high %v1694_v55, %v1698_v56  ;;  %v11907_v3 = vcombine.low %v1694_v55, %v1698_v56  ;;  %v1704_v55 = vld [vmem:[#allocation11 + $0x3d0] sm:$0xff] }
  0xe4   :  { %v11910_v62 = vcombine.high %v1695_v57, %v1699_v58  ;;  %v1708_v56 = vld [vmem:[#allocation11 + $0x3f0] sm:$0xff] }
  0xe5   :  { %1330 = vmatpush1.bf16.msra.mxu0 %v11839_v63  ;;  %1403 = vmatpush1.bf16.msra.mxu1 %v11841_v4  ;;  %v1702_v63 = vld [vmem:[#allocation11 + $0x3c0] sm:$0xff]  ;;  %v1703_v4 = vld [vmem:[#allocation11 + $0x3c8] sm:$0xff] }
  0xe6   :  { %1331 = vmatprep.subr.bf16.mxu0 %v11848_v5  ;;  %1404 = vmatprep.subr.bf16.mxu1 %v11850_v7  ;;  %v1707_v5 = vld [vmem:[#allocation11 + $0x3e8] sm:$0xff]  ;;  %v11916_v7 = vcombine.high %v1702_v63, %v1706_v2 }
  0xe8   :  { %11876 = vmatmul.mubr.msk.bf16.gmra.mrb[4].mxu0 %vm191_vm1, %v13259_v8  ;;  %11880 = vmatmul.mubr.msk.bf16.gmra.mrb[4].mxu1 %vm191_vm1, %v13259_v8 }
  0xe9   :  { %1332 = vmatpush1.bf16.msra.mxu0 %v11847_v11  ;;  %1405 = vmatpush1.bf16.msra.mxu1 %v11849_v14  ;;  %v11918_v11 = vcombine.high %v1703_v4, %v1707_v5  ;;  %v11915_v14 = vcombine.low %v1702_v63, %v1706_v2  ;;  %v1716_v63 = vld [vmem:[#allocation11 + $0x430] sm:$0xff] }
  0xea   :  { %1233 = vmatprep.mubr.bf16.mxu0 %v12997_v0  ;;  %1306 = vmatprep.mubr.bf16.mxu1 %v12997_v0 }
  0xeb   :  { %1333 = vmatprep.subr.bf16.mxu0 %v11856_v15  ;;  %1406 = vmatprep.subr.bf16.mxu1 %v11858_v18  ;;  %v11917_v15 = vcombine.low %v1703_v4, %v1707_v5  ;;  %v1718_v18 = vld [vmem:[#allocation11 + $0x440] sm:$0xff]  ;;  %v1717_v4 = vld [vmem:[#allocation11 + $0x438] sm:$0xff] }
  0xec   :  { %v11931_v30 = vcombine.low %v1718_v18, %v1722_v19  ;;  %v1669_v5 = vld [vmem:[#allocation2 + $0x2a] sm:$0xff] }
  0xed   :  { %1334 = vmatpush1.bf16.msra.mxu0 %v11855_v22  ;;  %1407 = vmatpush1.bf16.msra.mxu1 %v11857_v24  ;;  %v11932_v22 = vcombine.high %v1718_v18, %v1722_v19  ;;  %v11934_v24 = vcombine.high %v1719_v20, %v1723_v21  ;;  %v1671_v20 = vld [vmem:[#allocation2 + $0x3a] sm:$0xff] }
  0xee   :  { %1335 = vmatprep.subr.bf16.mxu0 %v11864_v25  ;;  %1408 = vmatprep.subr.bf16.mxu1 %v11866_v26  ;;  %v1680_v25 = vld [vmem:[#allocation11 + $0x310] sm:$0xff] }
  0xef   :  { %v1684_v26 = vld [vmem:[#allocation11 + $0x330] sm:$0xff] }
  0xf0   :  { %11877 = vmatmul.mubr.msk.bf16.gmra.mrb[8].mxu0 %vm191_vm1, %v13267_v27  ;;  %11881 = vmatmul.mubr.msk.bf16.gmra.mrb[8].mxu1 %vm191_vm1, %v13267_v27  ;;  %v11895_v39 = vcombine.low %v1680_v25, %v1684_v26 }
  0xf1   :  { %1243 = vmatprep.mubr.bf16.mxu0 %v12997_v0  ;;  %1316 = vmatprep.mubr.bf16.mxu1 %v12997_v0 }
  0xf2   :  { %1336 = vmatpush1.bf16.msra.mxu0 %v11863_v32  ;;  %1409 = vmatpush1.bf16.msra.mxu1 %v11865_v33  ;;  %v11896_v32 = vcombine.high %v1680_v25, %v1684_v26  ;;  %v11898_v33 = vcombine.high %v1681_v28, %v1685_v29  ;;  %v2480_v25 = vld [vmem:[#allocation11 + $0x4a8] sm:$0xff] }
  0xf3   :  { %1337 = vmatprep.subr.bf16.mxu0 %v11872_v34  ;;  %1410 = vmatprep.subr.bf16.mxu1 %v11874_v36  ;;  %v1666_v34 = vld [vmem:[#allocation2 + $0xa] sm:$0xff]  ;;  %v1692_v36 = vld [vmem:[#allocation11 + $0x370] sm:$0xff] }
  0xf4   :  { %v11903_v48 = vcombine.low %v1688_v35, %v1692_v36 }
  0xf6   :  { %1338 = vmatpush1.bf16.msra.mxu0 %v11871_v41  ;;  %1411 = vmatpush1.bf16.msra.mxu1 %v11873_v43  ;;  %v11904_v41 = vcombine.high %v1688_v35, %v1692_v36  ;;  %v11906_v43 = vcombine.high %v1689_v23, %v1693_v38 }
  0xf7   :  { %1978 = vmatprep.subr.bf16.mxu0 %v11892_v44  ;;  %2051 = vmatprep.subr.bf16.mxu1 %v11894_v46  ;;  %v1696_v44 = vld [vmem:[#allocation11 + $0x390] sm:$0xff] }
  0xf8   :  { %11878 = vmatmul.mubr.msk.bf16.gmra.mrb[12].mxu0 %vm191_vm1, %v13275_v45  ;;  %11882 = vmatmul.mubr.msk.bf16.gmra.mrb[12].mxu1 %vm191_vm1, %v13275_v45  ;;  %v1700_v46 = vld [vmem:[#allocation11 + $0x3b0] sm:$0xff] }
  0xf9   :  { %1359 = vmatprep.mubr.bf16.mxu0 %v12997_v0  ;;  %1432 = vmatprep.mubr.bf16.mxu1 %v12997_v0 }
 0x100   :  { %11883 = vmatmul.mubr.msk.bf16.vlgmr.msra.gmra.mrb[16].mxu0 %vm191_vm1, %v13251_v52  ;;  %11887 = vmatmul.mubr.msk.bf16.vlgmr.msra.gmra.mrb[16].mxu1 %vm191_vm1, %v13251_v52  ;;  %v11909_v52 = vcombine.low %v1695_v57, %v1699_v58  ;;  %v11911_v57 = vcombine.low %v1696_v44, %v1700_v46  ;;  %v1705_v58 = vld [vmem:[#allocation11 + $0x3d8] sm:$0xff] }
 0x101   :  { %1979 = vmatpush1.bf16.msra.mxu0 %v11891_v50  ;;  %2052 = vmatpush1.bf16.msra.mxu1 %v11893_v51  ;;  %v11905_v50 = vcombine.low %v1689_v23, %v1693_v38  ;;  %v11912_v51 = vcombine.high %v1696_v44, %v1700_v46 }
 0x102   :  { %1980 = vmatprep.subr.bf16.mxu0 %v11900_v53  ;;  %2053 = vmatprep.subr.bf16.mxu1 %v11902_v54  ;;  %v13315_v54 = vpack.c.bf16 %v1668_v49, %v1667_v42  ;;  %v2503_v42 = vld [vmem:[#allocation11 + $0x560] sm:$0xff] }
 0x103   :  { %1369 = vmatprep.mubr.bf16.mxu0 %v12997_v0  ;;  %1442 = vmatprep.mubr.bf16.mxu1 %v12997_v0 }
 0x105   :  { %1981 = vmatpush1.bf16.msra.mxu0 %v11899_v59  ;;  %2054 = vmatpush1.bf16.msra.mxu1 %v11901_v61  ;;  %v1709_v59 = vld [vmem:[#allocation11 + $0x3f8] sm:$0xff] }
 0x106   :  { %1982 = vmatprep.subr.bf16.mxu0 %v11908_v60  ;;  %2055 = vmatprep.subr.bf16.mxu1 %v11910_v62  ;;  %v11920_v60 = vcombine.high %v1704_v55, %v1708_v56  ;;  %v1712_v62 = vld [vmem:[#allocation11 + $0x410] sm:$0xff]  ;;  %v11922_v2 = vcombine.high %v1705_v58, %v1709_v59  ;;  %v11921_v9 = vcombine.low %v1705_v58, %v1709_v59  ;;  %v2508_v58 = vld [vmem:[#allocation11 + $0x588] sm:$0xff] }
 0x107   :  { %v11928_v10 = vcombine.high %v1712_v62, %v1716_v63  ;;  %v2512_v59 = vld [vmem:[#allocation11 + $0x5a8] sm:$0xff] }
 0x108   :  { %11884 = vmatmul.mubr.msk.bf16.gmra.mrb[20].mxu0 %vm191_vm1, %v13259_v8  ;;  %11888 = vmatmul.mubr.msk.bf16.gmra.mrb[20].mxu1 %vm191_vm1, %v13259_v8  ;;  %v11925_v8 = vcombine.low %v1711_v12, %v1715_v13  ;;  %v1720_v13 = vld [vmem:[#allocation11 + $0x450] sm:$0xff] }
 0x109   :  { %1983 = vmatpush1.bf16.msra.mxu0 %v11907_v3  ;;  %2056 = vmatpush1.bf16.msra.mxu1 %v11909_v52  ;;  %v1713_v3 = vld [vmem:[#allocation11 + $0x418] sm:$0xff]  ;;  %v1670_v52 = vld [vmem:[#allocation2 + $0x32] sm:$0xff] }
 0x10a   :  { %1379 = vmatprep.mubr.bf16.mxu0 %v12997_v0  ;;  %1452 = vmatprep.mubr.bf16.mxu1 %v12997_v0  ;;  %v13323_v12 = vpack.c.bf16 %v1670_v52, %v1669_v5  ;;  %v11929_v18 = vcombine.low %v1713_v3, %v1717_v4  ;;  %v2520_v5 = vld [vmem:[#allocation11 + $0x5e8] sm:$0xff] }
 0x10b   :  { %1984 = vmatprep.subr.bf16.mxu0 %v11916_v7  ;;  %2057 = vmatprep.subr.bf16.mxu1 %v11918_v11  ;;  %v11919_v7 = vcombine.low %v1704_v55, %v1708_v56  ;;  %v11930_v11 = vcombine.high %v1713_v3, %v1717_v4  ;;  %v2507_v55 = vld [vmem:[#allocation11 + $0x580] sm:$0xff]  ;;  %v2516_v4 = vld [vmem:[#allocation11 + $0x5c8] sm:$0xff] }
 0x10c   :  { %v2511_v56 = vld [vmem:[#allocation11 + $0x5a0] sm:$0xff] }
 0x10d   :  { %1985 = vmatpush1.bf16.msra.mxu0 %v11915_v14  ;;  %2058 = vmatpush1.bf16.msra.mxu1 %v11917_v15  ;;  %v1724_v14 = vld [vmem:[#allocation11 + $0x470] sm:$0xff]  ;;  %v1721_v15 = vld [vmem:[#allocation11 + $0x458] sm:$0xff]  ;;  %v2519_v3 = vld [vmem:[#allocation11 + $0x5e0] sm:$0xff]  ;;  %v11987_v52 = vcombine.low %v2507_v55, %v2511_v56 }
 0x10e   :  { %1986 = vmatprep.subr.bf16.mxu0 %v11924_v16  ;;  %2059 = vmatprep.subr.bf16.mxu1 %v11926_v17  ;;  %v1725_v16 = vld [vmem:[#allocation11 + $0x478] sm:$0xff]  ;;  %v11927_v17 = vcombine.low %v1712_v62, %v1716_v63  ;;  %v11936_v19 = vcombine.high %v1720_v13, %v1724_v14  ;;  %v11935_v26 = vcombine.low %v1720_v13, %v1724_v14 }
 0x10f   :  { %v11938_v21 = vcombine.high %v1721_v15, %v1725_v16  ;;  %v11937_v28 = vcombine.low %v1721_v15, %v1725_v16  ;;  %v11988_v62 = vcombine.high %v2507_v55, %v2511_v56  ;;  %v11990_v63 = vcombine.high %v2508_v58, %v2512_v59  ;;  %v2478_v13 = vld [vmem:[#allocation11 + $0x498] sm:$0xff] }
 0x110   :  { %11885 = vmatmul.mubr.msk.bf16.gmra.mrb[24].mxu0 %vm191_vm1, %v13267_v27  ;;  %11889 = vmatmul.mubr.msk.bf16.gmra.mrb[24].mxu1 %vm191_vm1, %v13267_v27  ;;  %v1665_v27 = vld [vmem:[#allocation2 + $0x2] sm:$0xff]  ;;  %v11997_v16 = vcombine.low %v2516_v4, %v2520_v5 }
 0x111   :  { %1389 = vmatprep.mubr.bf16.mxu0 %v12997_v0  ;;  %1462 = vmatprep.mubr.bf16.mxu1 %v12997_v0  ;;  %v13307_v37 = vpack.c.bf16 %v1666_v34, %v1665_v27  ;;  %v2484_v27 = vld [vmem:[#allocation11 + $0x4c8] sm:$0xff]  ;;  %v2482_v14 = vld [vmem:[#allocation11 + $0x4b8] sm:$0xff] }
 0x112   :  { %1987 = vmatpush1.bf16.msra.mxu0 %v11923_v6  ;;  %2060 = vmatpush1.bf16.msra.mxu1 %v11925_v8  ;;  %v2475_v6 = vld [vmem:[#allocation11 + $0x480] sm:$0xff]  ;;  %v2488_v34 = vld [vmem:[#allocation11 + $0x4e8] sm:$0xff] }
 0x113   :  { %1988 = vmatprep.subr.bf16.mxu0 %v11932_v22  ;;  %2061 = vmatprep.subr.bf16.mxu1 %v11934_v24  ;;  %v2479_v8 = vld [vmem:[#allocation11 + $0x4a0] sm:$0xff]  ;;  %v1672_v22 = vld [vmem:[#allocation2 + $0x42] sm:$0xff]  ;;  %v2476_v24 = vld [vmem:[#allocation11 + $0x488] sm:$0xff]  ;;  %v11966_v38 = vcombine.high %v2484_v27, %v2488_v34  ;;  %v11965_v46 = vcombine.low %v2484_v27, %v2488_v34 }
 0x114   :  { %v11956_v29 = vcombine.high %v2475_v6, %v2479_v8  ;;  %v11955_v35 = vcombine.low %v2475_v6, %v2479_v8  ;;  %v11957_v36 = vcombine.low %v2476_v24, %v2480_v25  ;;  %v2486_v8 = vld [vmem:[#allocation11 + $0x4d8] sm:$0xff]  ;;  %v2464_v27 = vld [vmem:[#allocation2 + $0x13] sm:$0xff]  ;;  %v2465_v34 = vld [vmem:[#allocation2 + $0x1b] sm:$0xff] }
 0x116   :  { %1989 = vmatpush1.bf16.msra.mxu0 %v11931_v30  ;;  %2062 = vmatpush1.bf16.msra.mxu1 %v11933_v31  ;;  %v13331_v30 = vpack.c.bf16 %v1672_v22, %v1671_v20  ;;  %v11958_v31 = vcombine.high %v2476_v24, %v2480_v25  ;;  %v2485_v20 = vld [vmem:[#allocation11 + $0x4d0] sm:$0xff]  ;;  %v2490_v22 = vld [vmem:[#allocation11 + $0x4f8] sm:$0xff]  ;;  %v11961_v25 = vcombine.low %v2478_v13, %v2482_v14 }
 0x117   :  { %2124 = vmatprep.subr.bf16.mxu0 %v11896_v32  ;;  %2197 = vmatprep.subr.bf16.mxu1 %v11898_v33  ;;  %v2483_v32 = vld [vmem:[#allocation11 + $0x4c0] sm:$0xff] }
 0x118   :  { %11886 = vmatmul.mubr.msk.bf16.gmra.mrb[28].mxu0 %vm191_vm1, %v13275_v45  ;;  %11890 = vmatmul.mubr.msk.bf16.gmra.mrb[28].mxu1 %vm191_vm1, %v13275_v45  ;;  %v1697_v45 = vld [vmem:[#allocation11 + $0x398] sm:$0xff]  ;;  %v2487_v33 = vld [vmem:[#allocation11 + $0x4e0] sm:$0xff] }
 0x119   :  { %2010 = vmatprep.mubr.bf16.mxu0 %v12997_v0  ;;  %2083 = vmatprep.mubr.bf16.mxu1 %v12997_v0  ;;  %v11914_v53 = vcombine.high %v1697_v45, %v1701_v47  ;;  %v11913_v61 = vcombine.low %v1697_v45, %v1701_v47  ;;  %v11964_v23 = vcombine.high %v2483_v32, %v2487_v33 }
 0x11a   :  { %v11963_v44 = vcombine.low %v2483_v32, %v2487_v33  ;;  %v2498_v32 = vld [vmem:[#allocation11 + $0x538] sm:$0xff] }
 0x120   :  { %11939 = vmatmul.mubr.msk.bf16.vlgmr.msra.gmra.mrb[0].mxu0 %vm191_vm1, %v13307_v37  ;;  %11943 = vmatmul.mubr.msk.bf16.vlgmr.msra.gmra.mrb[0].mxu1 %vm191_vm1, %v13307_v37 }
 0x121   :  { %2125 = vmatpush1.bf16.msra.mxu0 %v11895_v39  ;;  %2198 = vmatpush1.bf16.msra.mxu1 %v11897_v40  ;;  %v2491_v39 = vld [vmem:[#allocation11 + $0x500] sm:$0xff] }
 0x122   :  { %2126 = vmatprep.subr.bf16.mxu0 %v11904_v41  ;;  %2199 = vmatprep.subr.bf16.mxu1 %v11906_v43  ;;  %v2495_v40 = vld [vmem:[#allocation11 + $0x520] sm:$0xff]  ;;  %v2492_v41 = vld [vmem:[#allocation11 + $0x508] sm:$0xff] }
 0x123   :  { %2020 = vmatprep.mubr.bf16.mxu0 %v12997_v0  ;;  %2093 = vmatprep.mubr.bf16.mxu1 %v12997_v0  ;;  %v2496_v43 = vld [vmem:[#allocation11 + $0x528] sm:$0xff]  ;;  %v11972_v45 = vcombine.high %v2491_v39, %v2495_v40  ;;  %v11971_v49 = vcombine.low %v2491_v39, %v2495_v40  ;;  %v2501_v39 = vld [vmem:[#allocation11 + $0x550] sm:$0xff] }
 0x124   :  { %v11974_v47 = vcombine.high %v2492_v41, %v2496_v43  ;;  %v2505_v40 = vld [vmem:[#allocation11 + $0x570] sm:$0xff] }
 0x125   :  { %2127 = vmatpush1.bf16.msra.mxu0 %v11903_v48  ;;  %2200 = vmatpush1.bf16.msra.mxu1 %v11905_v50  ;;  %v2499_v48 = vld [vmem:[#allocation11 + $0x540] sm:$0xff]  ;;  %v2500_v50 = vld [vmem:[#allocation11 + $0x548] sm:$0xff] }
 0x126   :  { %2128 = vmatprep.subr.bf16.mxu0 %v11912_v51  ;;  %2201 = vmatprep.subr.bf16.mxu1 %v11914_v53  ;;  %v2504_v51 = vld [vmem:[#allocation11 + $0x568] sm:$0xff]  ;;  %v11980_v53 = vcombine.high %v2499_v48, %v2503_v42 }
 0x128   :  { %11940 = vmatmul.mubr.msk.bf16.gmra.mrb[4].mxu0 %vm191_vm1, %v13315_v54  ;;  %11944 = vmatmul.mubr.msk.bf16.gmra.mrb[4].mxu1 %vm191_vm1, %v13315_v54 }
 0x129   :  { %2129 = vmatpush1.bf16.msra.mxu0 %v11911_v57  ;;  %2202 = vmatpush1.bf16.msra.mxu1 %v11913_v61  ;;  %v11982_v57 = vcombine.high %v2500_v50, %v2504_v51  ;;  %v11979_v61 = vcombine.low %v2499_v48, %v2503_v42  ;;  %v2513_v48 = vld [vmem:[#allocation11 + $0x5b0] sm:$0xff] }
 0x12a   :  { %2030 = vmatprep.mubr.bf16.mxu0 %v12997_v0  ;;  %2103 = vmatprep.mubr.bf16.mxu1 %v12997_v0 }
 0x12b   :  { %2130 = vmatprep.subr.bf16.mxu0 %v11920_v60  ;;  %2203 = vmatprep.subr.bf16.mxu1 %v11922_v2  ;;  %v11981_v60 = vcombine.low %v2500_v50, %v2504_v51  ;;  %v2515_v2 = vld [vmem:[#allocation11 + $0x5c0] sm:$0xff]  ;;  %v2514_v50 = vld [vmem:[#allocation11 + $0x5b8] sm:$0xff] }
 0x12c   :  { %v11995_v15 = vcombine.low %v2515_v2, %v2519_v3  ;;  %v2466_v51 = vld [vmem:[#allocation2 + $0x2b] sm:$0xff] }
 0x12d   :  { %2131 = vmatpush1.bf16.msra.mxu0 %v11919_v7  ;;  %2204 = vmatpush1.bf16.msra.mxu1 %v11921_v9  ;;  %v11996_v7 = vcombine.high %v2515_v2, %v2519_v3  ;;  %v11998_v9 = vcombine.high %v2516_v4, %v2520_v5  ;;  %v2468_v4 = vld [vmem:[#allocation2 + $0x3b] sm:$0xff] }
 0x12e   :  { %2132 = vmatprep.subr.bf16.mxu0 %v11928_v10  ;;  %2205 = vmatprep.subr.bf16.mxu1 %v11930_v11  ;;  %v2477_v10 = vld [vmem:[#allocation11 + $0x490] sm:$0xff] }
 0x12f   :  { %v2481_v11 = vld [vmem:[#allocation11 + $0x4b0] sm:$0xff] }
 0x130   :  { %11941 = vmatmul.mubr.msk.bf16.gmra.mrb[8].mxu0 %vm191_vm1, %v13323_v12  ;;  %11945 = vmatmul.mubr.msk.bf16.gmra.mrb[8].mxu1 %vm191_vm1, %v13323_v12  ;;  %v11959_v24 = vcombine.low %v2477_v10, %v2481_v11 }
 0x131   :  { %2040 = vmatprep.mubr.bf16.mxu0 %v12997_v0  ;;  %2113 = vmatprep.mubr.bf16.mxu1 %v12997_v0 }
 0x132   :  { %2133 = vmatpush1.bf16.msra.mxu0 %v11927_v17  ;;  %2206 = vmatpush1.bf16.msra.mxu1 %v11929_v18  ;;  %v11960_v17 = vcombine.high %v2477_v10, %v2481_v11  ;;  %v11962_v18 = vcombine.high %v2478_v13, %v2482_v14  ;;  %v3277_v10 = vld [vmem:[#allocation11 + $0x628] sm:$0xff] }
 0x133   :  { %2134 = vmatprep.subr.bf16.mxu0 %v11936_v19  ;;  %2207 = vmatprep.subr.bf16.mxu1 %v11938_v21  ;;  %v2463_v19 = vld [vmem:[#allocation2 + $0xb] sm:$0xff]  ;;  %v2489_v21 = vld [vmem:[#allocation11 + $0x4f0] sm:$0xff] }
 0x134   :  { %v11967_v33 = vcombine.low %v2485_v20, %v2489_v21 }
 0x136   :  { %2135 = vmatpush1.bf16.msra.mxu0 %v11935_v26  ;;  %2208 = vmatpush1.bf16.msra.mxu1 %v11937_v28  ;;  %v11968_v26 = vcombine.high %v2485_v20, %v2489_v21  ;;  %v11970_v28 = vcombine.high %v2486_v8, %v2490_v22 }
 0x137   :  { %2775 = vmatprep.subr.bf16.mxu0 %v11956_v29  ;;  %2848 = vmatprep.subr.bf16.mxu1 %v11958_v31  ;;  %v2493_v29 = vld [vmem:[#allocation11 + $0x510] sm:$0xff] }
 0x138   :  { %11942 = vmatmul.mubr.msk.bf16.gmra.mrb[12].mxu0 %vm191_vm1, %v13331_v30  ;;  %11946 = vmatmul.mubr.msk.bf16.gmra.mrb[12].mxu1 %vm191_vm1, %v13331_v30  ;;  %v2497_v31 = vld [vmem:[#allocation11 + $0x530] sm:$0xff] }
 0x139   :  { %2156 = vmatprep.mubr.bf16.mxu0 %v12997_v0  ;;  %2229 = vmatprep.mubr.bf16.mxu1 %v12997_v0 }
 0x140   :  { %11947 = vmatmul.mubr.msk.bf16.vlgmr.msra.gmra.mrb[16].mxu0 %vm191_vm1, %v13307_v37  ;;  %11951 = vmatmul.mubr.msk.bf16.vlgmr.msra.gmra.mrb[16].mxu1 %vm191_vm1, %v13307_v37  ;;  %v11973_v37 = vcombine.low %v2492_v41, %v2496_v43  ;;  %v11975_v41 = vcombine.low %v2493_v29, %v2497_v31  ;;  %v2502_v43 = vld [vmem:[#allocation11 + $0x558] sm:$0xff] }
 0x141   :  { %2776 = vmatpush1.bf16.msra.mxu0 %v11955_v35  ;;  %2849 = vmatpush1.bf16.msra.mxu1 %v11957_v36  ;;  %v11969_v35 = vcombine.low %v2486_v8, %v2490_v22  ;;  %v11976_v36 = vcombine.high %v2493_v29, %v2497_v31 }
 0x142   :  { %2777 = vmatprep.subr.bf16.mxu0 %v11964_v23  ;;  %2850 = vmatprep.subr.bf16.mxu1 %v11966_v38  ;;  %v13371_v38 = vpack.c.bf16 %v2465_v34, %v2464_v27  ;;  %v3300_v27 = vld [vmem:[#allocation11 + $0x6e0] sm:$0xff] }
 0x143   :  { %2166 = vmatprep.mubr.bf16.mxu0 %v12997_v0  ;;  %2239 = vmatprep.mubr.bf16.mxu1 %v12997_v0 }
 0x145   :  { %2778 = vmatpush1.bf16.msra.mxu0 %v11963_v44  ;;  %2851 = vmatpush1.bf16.msra.mxu1 %v11965_v46  ;;  %v2506_v44 = vld [vmem:[#allocation11 + $0x578] sm:$0xff] }
 0x146   :  { %2779 = vmatprep.subr.bf16.mxu0 %v11972_v45  ;;  %2852 = vmatprep.subr.bf16.mxu1 %v11974_v47  ;;  %v11984_v45 = vcombine.high %v2501_v39, %v2505_v40  ;;  %v2509_v47 = vld [vmem:[#allocation11 + $0x590] sm:$0xff]  ;;  %v11986_v42 = vcombine.high %v2502_v43, %v2506_v44  ;;  %v11985_v55 = vcombine.low %v2502_v43, %v2506_v44  ;;  %v3305_v43 = vld [vmem:[#allocation11 + $0x708] sm:$0xff] }
 0x147   :  { %v11992_v56 = vcombine.high %v2509_v47, %v2513_v48  ;;  %v3309_v44 = vld [vmem:[#allocation11 + $0x728] sm:$0xff] }
 0x148   :  { %11948 = vmatmul.mubr.msk.bf16.gmra.mrb[20].mxu0 %vm191_vm1, %v13315_v54  ;;  %11952 = vmatmul.mubr.msk.bf16.gmra.mrb[20].mxu1 %vm191_vm1, %v13315_v54  ;;  %v11989_v54 = vcombine.low %v2508_v58, %v2512_v59  ;;  %v2517_v59 = vld [vmem:[#allocation11 + $0x5d0] sm:$0xff] }
 0x149   :  { %2780 = vmatpush1.bf16.msra.mxu0 %v11971_v49  ;;  %2853 = vmatpush1.bf16.msra.mxu1 %v11973_v37  ;;  %v2510_v49 = vld [vmem:[#allocation11 + $0x598] sm:$0xff]  ;;  %v2467_v37 = vld [vmem:[#allocation2 + $0x33] sm:$0xff] }
 0x14a   :  { %2176 = vmatprep.mubr.bf16.mxu0 %v12997_v0  ;;  %2249 = vmatprep.mubr.bf16.mxu1 %v12997_v0  ;;  %v13379_v58 = vpack.c.bf16 %v2467_v37, %v2466_v51  ;;  %v11993_v2 = vcombine.low %v2510_v49, %v2514_v50  ;;  %v3317_v51 = vld [vmem:[#allocation11 + $0x768] sm:$0xff] }
 0x14b   :  { %2781 = vmatprep.subr.bf16.mxu0 %v11980_v53  ;;  %2854 = vmatprep.subr.bf16.mxu1 %v11982_v57  ;;  %v11983_v53 = vcombine.low %v2501_v39, %v2505_v40  ;;  %v11994_v57 = vcombine.high %v2510_v49, %v2514_v50  ;;  %v3304_v39 = vld [vmem:[#allocation11 + $0x700] sm:$0xff]  ;;  %v3313_v50 = vld [vmem:[#allocation11 + $0x748] sm:$0xff] }
 0x14c   :  { %v3308_v40 = vld [vmem:[#allocation11 + $0x720] sm:$0xff] }
 0x14d   :  { %2782 = vmatpush1.bf16.msra.mxu0 %v11979_v61  ;;  %2855 = vmatpush1.bf16.msra.mxu1 %v11981_v60  ;;  %v2521_v61 = vld [vmem:[#allocation11 + $0x5f0] sm:$0xff]  ;;  %v2518_v60 = vld [vmem:[#allocation11 + $0x5d8] sm:$0xff]  ;;  %v3316_v49 = vld [vmem:[#allocation11 + $0x760] sm:$0xff]  ;;  %v12051_v37 = vcombine.low %v3304_v39, %v3308_v40 }
 0x14e   :  { %2783 = vmatprep.subr.bf16.mxu0 %v11988_v62  ;;  %2856 = vmatprep.subr.bf16.mxu1 %v11990_v63  ;;  %v2522_v62 = vld [vmem:[#allocation11 + $0x5f8] sm:$0xff]  ;;  %v11991_v63 = vcombine.low %v2509_v47, %v2513_v48  ;;  %v12000_v3 = vcombine.high %v2517_v59, %v2521_v61  ;;  %v11999_v11 = vcombine.low %v2517_v59, %v2521_v61 }
 0x14f   :  { %v12002_v5 = vcombine.high %v2518_v60, %v2522_v62  ;;  %v12001_v13 = vcombine.low %v2518_v60, %v2522_v62  ;;  %v12052_v47 = vcombine.high %v3304_v39, %v3308_v40  ;;  %v12054_v48 = vcombine.high %v3305_v43, %v3309_v44  ;;  %v3275_v59 = vld [vmem:[#allocation11 + $0x618] sm:$0xff] }
 0x150   :  { %11949 = vmatmul.mubr.msk.bf16.gmra.mrb[24].mxu0 %vm191_vm1, %v13323_v12  ;;  %11953 = vmatmul.mubr.msk.bf16.gmra.mrb[24].mxu1 %vm191_vm1, %v13323_v12  ;;  %v2462_v12 = vld [vmem:[#allocation2 + $0x3] sm:$0xff]  ;;  %v12061_v62 = vcombine.low %v3313_v50, %v3317_v51 }
 0x151   :  { %2186 = vmatprep.mubr.bf16.mxu0 %v12997_v0  ;;  %2259 = vmatprep.mubr.bf16.mxu1 %v12997_v0  ;;  %v13363_v6 = vpack.c.bf16 %v2463_v19, %v2462_v12  ;;  %v3281_v12 = vld [vmem:[#allocation11 + $0x648] sm:$0xff]  ;;  %v3279_v61 = vld [vmem:[#allocation11 + $0x638] sm:$0xff] }
 0x152   :  { %2784 = vmatpush1.bf16.msra.mxu0 %v11987_v52  ;;  %2857 = vmatpush1.bf16.msra.mxu1 %v11989_v54  ;;  %v3272_v52 = vld [vmem:[#allocation11 + $0x600] sm:$0xff]  ;;  %v3285_v19 = vld [vmem:[#allocation11 + $0x668] sm:$0xff] }
 0x153   :  { %2785 = vmatprep.subr.bf16.mxu0 %v11996_v7  ;;  %2858 = vmatprep.subr.bf16.mxu1 %v11998_v9  ;;  %v3276_v54 = vld [vmem:[#allocation11 + $0x620] sm:$0xff]  ;;  %v2469_v7 = vld [vmem:[#allocation2 + $0x43] sm:$0xff]  ;;  %v3273_v9 = vld [vmem:[#allocation11 + $0x608] sm:$0xff]  ;;  %v12030_v22 = vcombine.high %v3281_v12, %v3285_v19  ;;  %v12029_v31 = vcombine.low %v3281_v12, %v3285_v19 }
 0x154   :  { %v12020_v14 = vcombine.high %v3272_v52, %v3276_v54  ;;  %v12019_v20 = vcombine.low %v3272_v52, %v3276_v54  ;;  %v12021_v21 = vcombine.low %v3273_v9, %v3277_v10  ;;  %v3283_v54 = vld [vmem:[#allocation11 + $0x658] sm:$0xff]  ;;  %v3261_v12 = vld [vmem:[#allocation2 + $0x14] sm:$0xff]  ;;  %v3262_v19 = vld [vmem:[#allocation2 + $0x1c] sm:$0xff] }
 0x156   :  { %2786 = vmatpush1.bf16.msra.mxu0 %v11995_v15  ;;  %2859 = vmatpush1.bf16.msra.mxu1 %v11997_v16  ;;  %v13387_v15 = vpack.c.bf16 %v2469_v7, %v2468_v4  ;;  %v12022_v16 = vcombine.high %v3273_v9, %v3277_v10  ;;  %v3282_v4 = vld [vmem:[#allocation11 + $0x650] sm:$0xff]  ;;  %v3287_v7 = vld [vmem:[#allocation11 + $0x678] sm:$0xff]  ;;  %v12025_v10 = vcombine.low %v3275_v59, %v3279_v61 }
 0x157   :  { %2921 = vmatprep.subr.bf16.mxu0 %v11960_v17  ;;  %2994 = vmatprep.subr.bf16.mxu1 %v11962_v18  ;;  %v3280_v17 = vld [vmem:[#allocation11 + $0x640] sm:$0xff] }
 0x158   :  { %11950 = vmatmul.mubr.msk.bf16.gmra.mrb[28].mxu0 %vm191_vm1, %v13331_v30  ;;  %11954 = vmatmul.mubr.msk.bf16.gmra.mrb[28].mxu1 %vm191_vm1, %v13331_v30  ;;  %v2494_v30 = vld [vmem:[#allocation11 + $0x518] sm:$0xff]  ;;  %v3284_v18 = vld [vmem:[#allocation11 + $0x660] sm:$0xff] }
 0x159   :  { %2807 = vmatprep.mubr.bf16.mxu0 %v12997_v0  ;;  %2880 = vmatprep.mubr.bf16.mxu1 %v12997_v0  ;;  %v11978_v23 = vcombine.high %v2494_v30, %v2498_v32  ;;  %v11977_v46 = vcombine.low %v2494_v30, %v2498_v32  ;;  %v12028_v8 = vcombine.high %v3280_v17, %v3284_v18 }
 0x15a   :  { %v12027_v29 = vcombine.low %v3280_v17, %v3284_v18  ;;  %v3295_v17 = vld [vmem:[#allocation11 + $0x6b8] sm:$0xff] }
 0x160   :  { %12003 = vmatmul.mubr.msk.bf16.vlgmr.msra.gmra.mrb[0].mxu0 %vm191_vm1, %v13363_v6  ;;  %12007 = vmatmul.mubr.msk.bf16.vlgmr.msra.gmra.mrb[0].mxu1 %vm191_vm1, %v13363_v6 }
 0x161   :  { %2922 = vmatpush1.bf16.msra.mxu0 %v11959_v24  ;;  %2995 = vmatpush1.bf16.msra.mxu1 %v11961_v25  ;;  %v3288_v24 = vld [vmem:[#allocation11 + $0x680] sm:$0xff] }
 0x162   :  { %2923 = vmatprep.subr.bf16.mxu0 %v11968_v26  ;;  %2996 = vmatprep.subr.bf16.mxu1 %v11970_v28  ;;  %v3292_v25 = vld [vmem:[#allocation11 + $0x6a0] sm:$0xff]  ;;  %v3289_v26 = vld [vmem:[#allocation11 + $0x688] sm:$0xff] }
 0x163   :  { %2817 = vmatprep.mubr.bf16.mxu0 %v12997_v0  ;;  %2890 = vmatprep.mubr.bf16.mxu1 %v12997_v0  ;;  %v3293_v28 = vld [vmem:[#allocation11 + $0x6a8] sm:$0xff]  ;;  %v12036_v30 = vcombine.high %v3288_v24, %v3292_v25  ;;  %v12035_v34 = vcombine.low %v3288_v24, %v3292_v25  ;;  %v3298_v24 = vld [vmem:[#allocation11 + $0x6d0] sm:$0xff] }
 0x164   :  { %v12038_v32 = vcombine.high %v3289_v26, %v3293_v28  ;;  %v3302_v25 = vld [vmem:[#allocation11 + $0x6f0] sm:$0xff] }
 0x165   :  { %2924 = vmatpush1.bf16.msra.mxu0 %v11967_v33  ;;  %2997 = vmatpush1.bf16.msra.mxu1 %v11969_v35  ;;  %v3296_v33 = vld [vmem:[#allocation11 + $0x6c0] sm:$0xff]  ;;  %v3297_v35 = vld [vmem:[#allocation11 + $0x6c8] sm:$0xff] }
 0x166   :  { %2925 = vmatprep.subr.bf16.mxu0 %v11976_v36  ;;  %2998 = vmatprep.subr.bf16.mxu1 %v11978_v23  ;;  %v3301_v36 = vld [vmem:[#allocation11 + $0x6e8] sm:$0xff]  ;;  %v12044_v23 = vcombine.high %v3296_v33, %v3300_v27 }
 0x168   :  { %12004 = vmatmul.mubr.msk.bf16.gmra.mrb[4].mxu0 %vm191_vm1, %v13371_v38  ;;  %12008 = vmatmul.mubr.msk.bf16.gmra.mrb[4].mxu1 %vm191_vm1, %v13371_v38 }
 0x169   :  { %2926 = vmatpush1.bf16.msra.mxu0 %v11975_v41  ;;  %2999 = vmatpush1.bf16.msra.mxu1 %v11977_v46  ;;  %v12046_v41 = vcombine.high %v3297_v35, %v3301_v36  ;;  %v12043_v46 = vcombine.low %v3296_v33, %v3300_v27  ;;  %v3310_v33 = vld [vmem:[#allocation11 + $0x730] sm:$0xff] }
 0x16a   :  { %2827 = vmatprep.mubr.bf16.mxu0 %v12997_v0  ;;  %2900 = vmatprep.mubr.bf16.mxu1 %v12997_v0 }
 0x16b   :  { %2927 = vmatprep.subr.bf16.mxu0 %v11984_v45  ;;  %3000 = vmatprep.subr.bf16.mxu1 %v11986_v42  ;;  %v12045_v45 = vcombine.low %v3297_v35, %v3301_v36  ;;  %v3312_v42 = vld [vmem:[#allocation11 + $0x740] sm:$0xff]  ;;  %v3311_v35 = vld [vmem:[#allocation11 + $0x738] sm:$0xff] }
 0x16c   :  { %v12059_v60 = vcombine.low %v3312_v42, %v3316_v49  ;;  %v3263_v36 = vld [vmem:[#allocation2 + $0x2c] sm:$0xff] }
 0x16d   :  { %2928 = vmatpush1.bf16.msra.mxu0 %v11983_v53  ;;  %3001 = vmatpush1.bf16.msra.mxu1 %v11985_v55  ;;  %v12060_v53 = vcombine.high %v3312_v42, %v3316_v49  ;;  %v12062_v55 = vcombine.high %v3313_v50, %v3317_v51  ;;  %v3265_v51 = vld [vmem:[#allocation2 + $0x3c] sm:$0xff] }
 0x16e   :  { %2929 = vmatprep.subr.bf16.mxu0 %v11992_v56  ;;  %3002 = vmatprep.subr.bf16.mxu1 %v11994_v57  ;;  %v3274_v56 = vld [vmem:[#allocation11 + $0x610] sm:$0xff] }
 0x16f   :  { %v3278_v57 = vld [vmem:[#allocation11 + $0x630] sm:$0xff] }
 0x170   :  { %12005 = vmatmul.mubr.msk.bf16.gmra.mrb[8].mxu0 %vm191_vm1, %v13379_v58  ;;  %12009 = vmatmul.mubr.msk.bf16.gmra.mrb[8].mxu1 %vm191_vm1, %v13379_v58  ;;  %v12023_v9 = vcombine.low %v3274_v56, %v3278_v57 }
 0x171   :  { %2837 = vmatprep.mubr.bf16.mxu0 %v12997_v0  ;;  %2910 = vmatprep.mubr.bf16.mxu1 %v12997_v0 }
 0x172   :  { %2930 = vmatpush1.bf16.msra.mxu0 %v11991_v63  ;;  %3003 = vmatpush1.bf16.msra.mxu1 %v11993_v2  ;;  %v12024_v63 = vcombine.high %v3274_v56, %v3278_v57  ;;  %v12026_v2 = vcombine.high %v3275_v59, %v3279_v61 }
 0x173   :  { %2931 = vmatprep.subr.bf16.mxu0 %v12000_v3  ;;  %3004 = vmatprep.subr.bf16.mxu1 %v12002_v5  ;;  %v3260_v3 = vld [vmem:[#allocation2 + $0xc] sm:$0xff]  ;;  %v3286_v5 = vld [vmem:[#allocation11 + $0x670] sm:$0xff] }
 0x174   :  { %v12031_v18 = vcombine.low %v3282_v4, %v3286_v5 }
 0x176   :  { %2932 = vmatpush1.bf16.msra.mxu0 %v11999_v11  ;;  %3005 = vmatpush1.bf16.msra.mxu1 %v12001_v13  ;;  %v12032_v11 = vcombine.high %v3282_v4, %v3286_v5  ;;  %v12034_v13 = vcombine.high %v3283_v54, %v3287_v7 }
 0x177   :  { %3572 = vmatprep.subr.bf16.mxu0 %v12020_v14  ;;  %3645 = vmatprep.subr.bf16.mxu1 %v12022_v16  ;;  %v3290_v14 = vld [vmem:[#allocation11 + $0x690] sm:$0xff] }
 0x178   :  { %12006 = vmatmul.mubr.msk.bf16.gmra.mrb[12].mxu0 %vm191_vm1, %v13387_v15  ;;  %12010 = vmatmul.mubr.msk.bf16.gmra.mrb[12].mxu1 %vm191_vm1, %v13387_v15  ;;  %v3294_v16 = vld [vmem:[#allocation11 + $0x6b0] sm:$0xff] }
 0x179   :  { %2953 = vmatprep.mubr.bf16.mxu0 %v12997_v0  ;;  %3026 = vmatprep.mubr.bf16.mxu1 %v12997_v0 }
 0x180   :  { %12011 = vmatmul.mubr.msk.bf16.vlgmr.msra.gmra.mrb[16].mxu0 %vm191_vm1, %v13363_v6  ;;  %12015 = vmatmul.mubr.msk.bf16.vlgmr.msra.gmra.mrb[16].mxu1 %vm191_vm1, %v13363_v6  ;;  %v12037_v6 = vcombine.low %v3289_v26, %v3293_v28  ;;  %v12039_v26 = vcombine.low %v3290_v14, %v3294_v16  ;;  %v3299_v28 = vld [vmem:[#allocation11 + $0x6d8] sm:$0xff] }
 0x181   :  { %3573 = vmatpush1.bf16.msra.mxu0 %v12019_v20  ;;  %3646 = vmatpush1.bf16.msra.mxu1 %v12021_v21  ;;  %v12033_v20 = vcombine.low %v3283_v54, %v3287_v7  ;;  %v12040_v21 = vcombine.high %v3290_v14, %v3294_v16 }
 0x182   :  { %3574 = vmatprep.subr.bf16.mxu0 %v12028_v8  ;;  %3647 = vmatprep.subr.bf16.mxu1 %v12030_v22  ;;  %v13427_v22 = vpack.c.bf16 %v3262_v19, %v3261_v12  ;;  %v4191_v12 = vlaneseq }
 0x183   :  { %2963 = vmatprep.mubr.bf16.mxu0 %v12997_v0  ;;  %3036 = vmatprep.mubr.bf16.mxu1 %v12997_v0 }
 0x185   :  { %3575 = vmatpush1.bf16.msra.mxu0 %v12027_v29  ;;  %3648 = vmatpush1.bf16.msra.mxu1 %v12029_v31  ;;  %v3303_v29 = vld [vmem:[#allocation11 + $0x6f8] sm:$0xff] }
 0x186   :  { %3576 = vmatprep.subr.bf16.mxu0 %v12036_v30  ;;  %3649 = vmatprep.subr.bf16.mxu1 %v12038_v32  ;;  %v12048_v30 = vcombine.high %v3298_v24, %v3302_v25  ;;  %v3306_v32 = vld [vmem:[#allocation11 + $0x710] sm:$0xff]  ;;  %v12050_v27 = vcombine.high %v3299_v28, %v3303_v29  ;;  %v12049_v39 = vcombine.low %v3299_v28, %v3303_v29  ;;  %v4192_v29 = vshrl.u32 %v4191_v12, 7 }
 0x187   :  { %v12056_v40 = vcombine.high %v3306_v32, %v3310_v33 }
 0x188   :  { %12012 = vmatmul.mubr.msk.bf16.gmra.mrb[20].mxu0 %vm191_vm1, %v13371_v38  ;;  %12016 = vmatmul.mubr.msk.bf16.gmra.mrb[20].mxu1 %vm191_vm1, %v13371_v38  ;;  %v12053_v38 = vcombine.low %v3305_v43, %v3309_v44  ;;  %v3314_v44 = vld [vmem:[#allocation11 + $0x750] sm:$0xff] }
 0x189   :  { %3577 = vmatpush1.bf16.msra.mxu0 %v12035_v34  ;;  %3650 = vmatpush1.bf16.msra.mxu1 %v12037_v6  ;;  %v3307_v34 = vld [vmem:[#allocation11 + $0x718] sm:$0xff]  ;;  %v3264_v6 = vld [vmem:[#allocation2 + $0x34] sm:$0xff] }
 0x18a   :  { %2973 = vmatprep.mubr.bf16.mxu0 %v12997_v0  ;;  %3046 = vmatprep.mubr.bf16.mxu1 %v12997_v0  ;;  %v3269_v43 = vpack.c.bf16 %v3264_v6, %v3263_v36  ;;  %v12057_v42 = vcombine.low %v3307_v34, %v3311_v35  ;;  %v6053_v36 = vsub.s32 2, %v4192_v29 }
 0x18b   :  { %3578 = vmatprep.subr.bf16.mxu0 %v12044_v23  ;;  %3651 = vmatprep.subr.bf16.mxu1 %v12046_v41  ;;  %v12047_v23 = vcombine.low %v3298_v24, %v3302_v25  ;;  %v12058_v41 = vcombine.high %v3307_v34, %v3311_v35 }
 0x18d   :  { %3579 = vmatpush1.bf16.msra.mxu0 %v12043_v46  ;;  %3652 = vmatpush1.bf16.msra.mxu1 %v12045_v45  ;;  %v3318_v46 = vld [vmem:[#allocation11 + $0x770] sm:$0xff]  ;;  %v3315_v45 = vld [vmem:[#allocation11 + $0x758] sm:$0xff] }
 0x18e   :  { %3580 = vmatprep.subr.bf16.mxu0 %v12052_v47  ;;  %3653 = vmatprep.subr.bf16.mxu1 %v12054_v48  ;;  %v3319_v47 = vld [vmem:[#allocation11 + $0x778] sm:$0xff]  ;;  %v12055_v48 = vcombine.low %v3306_v32, %v3310_v33  ;;  %v12064_v49 = vcombine.high %v3314_v44, %v3318_v46  ;;  %v6041_v32 = vld [vmem:[#allocation14] sm:$0xf] }
 0x18f   :  { %v12066_v50 = vcombine.high %v3315_v45, %v3319_v47 }
 0x190   :  { %12013 = vmatmul.mubr.msk.bf16.gmra.mrb[24].mxu0 %vm191_vm1, %v13379_v58  ;;  %12017 = vmatmul.mubr.msk.bf16.gmra.mrb[24].mxu1 %vm191_vm1, %v13379_v58  ;;  %v3259_v58 = vld [vmem:[#allocation2 + $0x4] sm:$0xff] }
 0x191   :  { %2983 = vmatprep.mubr.bf16.mxu0 %v12997_v0  ;;  %3056 = vmatprep.mubr.bf16.mxu1 %v12997_v0  ;;  %v13419_v52 = vpack.c.bf16 %v3260_v3, %v3259_v58 }
 0x192   :  { %3581 = vmatpush1.bf16.msra.mxu0 %v12051_v37  ;;  %3654 = vmatpush1.bf16.msra.mxu1 %v12053_v38  ;;  %v3266_v37 = vld [vmem:[#allocation2 + $0x44] sm:$0xff]  ;;  %v12063_v38 = vcombine.low %v3314_v44, %v3318_v46  ;;  %v13516_v46 = vsub.s32 1, %v4192_v29 }
 0x193   :  { %3582 = vmatprep.subr.bf16.mxu0 %v12060_v53  ;;  %3655 = vmatprep.subr.bf16.mxu1 %v12062_v55  ;;  %v12065_v53 = vcombine.low %v3315_v45, %v3319_v47  ;;  %v3270_v55 = vpack.c.bf16 %v3266_v37, %v3265_v51  ;;  %v6057_v45 = vsub.s32 3, %v4192_v29 }
 0x194   :  { %15729 = vst [vmem:[#allocation52_spill] sm:$0xff] %v13516_v46 }
 0x196   :  { %3583 = vmatpush1.bf16.msra.mxu0 %v12059_v60  ;;  %3656 = vmatpush1.bf16.msra.mxu1 %v12061_v62 }
 0x197   :  { %3718 = vmatprep.subr.bf16.mxu0 %v12024_v63  ;;  %3791 = vmatprep.subr.bf16.mxu1 %v12026_v2 }
 0x198   :  { %12014 = vmatmul.mubr.msk.bf16.gmra.mrb[28].mxu0 %vm191_vm1, %v13387_v15  ;;  %12018 = vmatmul.mubr.msk.bf16.gmra.mrb[28].mxu1 %vm191_vm1, %v13387_v15  ;;  %v3291_v15 = vld [vmem:[#allocation11 + $0x698] sm:$0xff] }
 0x199   :  { %3604 = vmatprep.mubr.bf16.mxu0 %v12997_v0  ;;  %3677 = vmatprep.mubr.bf16.mxu1 %v12997_v0  ;;  %v12042_v8 = vcombine.high %v3291_v15, %v3295_v17  ;;  %v12041_v31 = vcombine.low %v3291_v15, %v3295_v17 }
 0x1a0   :  { %12067 = vmatmul.mubr.msk.bf16.vlgmr.msra.gmra.mrb[0].mxu0 %vm191_vm1, %v13419_v52  ;;  %12071 = vmatmul.mubr.msk.bf16.vlgmr.msra.gmra.mrb[0].mxu1 %vm191_vm1, %v13419_v52 }
 0x1a1   :  { %3719 = vmatpush1.bf16.msra.mxu0 %v12023_v9  ;;  %3792 = vmatpush1.bf16.msra.mxu1 %v12025_v10 }
 0x1a2   :  { %3720 = vmatprep.subr.bf16.mxu0 %v12032_v11  ;;  %3793 = vmatprep.subr.bf16.mxu1 %v12034_v13 }
 0x1a3   :  { %3614 = vmatprep.mubr.bf16.mxu0 %v12997_v0  ;;  %3687 = vmatprep.mubr.bf16.mxu1 %v12997_v0 }
 0x1a5   :  { %3721 = vmatpush1.bf16.msra.mxu0 %v12031_v18  ;;  %3794 = vmatpush1.bf16.msra.mxu1 %v12033_v20 }
 0x1a6   :  { %3722 = vmatprep.subr.bf16.mxu0 %v12040_v21  ;;  %3795 = vmatprep.subr.bf16.mxu1 %v12042_v8 }
 0x1a8   :  { %12068 = vmatmul.mubr.msk.bf16.gmra.mrb[4].mxu0 %vm191_vm1, %v13427_v22  ;;  %12072 = vmatmul.mubr.msk.bf16.gmra.mrb[4].mxu1 %vm191_vm1, %v13427_v22 }
 0x1a9   :  { %3723 = vmatpush1.bf16.msra.mxu0 %v12039_v26  ;;  %3796 = vmatpush1.bf16.msra.mxu1 %v12041_v31 }
 0x1aa   :  { %3624 = vmatprep.mubr.bf16.mxu0 %v12997_v0  ;;  %3697 = vmatprep.mubr.bf16.mxu1 %v12997_v0 }
 0x1ab   :  { %3724 = vmatprep.subr.bf16.mxu0 %v12048_v30  ;;  %3797 = vmatprep.subr.bf16.mxu1 %v12050_v27  ;;  %v13509_v30 = vsub.s32 0, %v4192_v29 }
 0x1ad   :  { %3725 = vmatpush1.bf16.msra.mxu0 %v12047_v23  ;;  %3798 = vmatpush1.bf16.msra.mxu1 %v12049_v39  ;;  %15727 = vst [vmem:[#allocation50_spill] sm:$0xff] %v13509_v30 }
 0x1ae   :  { %3726 = vmatprep.subr.bf16.mxu0 %v12056_v40  ;;  %3799 = vmatprep.subr.bf16.mxu1 %v12058_v41  ;;  %v13514_v41 = vrot.slane %v6041_v32, %v13509_v30 }
 0x1b0   :  { %12069 = vmatmul.mubr.msk.bf16.gmra.mrb[8].mxu0 %vm191_vm1, %v3269_v43  ;;  %12073 = vmatmul.mubr.msk.bf16.gmra.mrb[8].mxu1 %vm191_vm1, %v3269_v43 }
 0x1b1   :  { %3634 = vmatprep.mubr.bf16.mxu0 %v12997_v0  ;;  %3707 = vmatprep.mubr.bf16.mxu1 %v12997_v0 }
 0x1b2   :  { %3727 = vmatpush1.bf16.msra.mxu0 %v12055_v48  ;;  %3800 = vmatpush1.bf16.msra.mxu1 %v12057_v42 }
 0x1b3   :  { %3728 = vmatprep.subr.bf16.mxu0 %v12064_v49  ;;  %3801 = vmatprep.subr.bf16.mxu1 %v12066_v50 }
 0x1b6   :  { %3729 = vmatpush1.bf16.msra.mxu0 %v12063_v38  ;;  %3802 = vmatpush1.bf16.msra.mxu1 %v12065_v53 }
 0x1b8   :  { %12070 = vmatmul.mubr.msk.bf16.gmra.mrb[12].mxu0 %vm191_vm1, %v3270_v55  ;;  %12074 = vmatmul.mubr.msk.bf16.gmra.mrb[12].mxu1 %vm191_vm1, %v3270_v55 }
 0x1b9   :  { %3750 = vmatprep.mubr.bf16.mxu0 %v12997_v0  ;;  %3823 = vmatprep.mubr.bf16.mxu1 %v12997_v0 }
 0x1c0   :  { %12075 = vmatmul.mubr.msk.bf16.vlgmr.msra.gmra.mrb[16].mxu0 %vm191_vm1, %v13419_v52  ;;  %12079 = vmatmul.mubr.msk.bf16.vlgmr.msra.gmra.mrb[16].mxu1 %vm191_vm1, %v13419_v52 }
 0x1c1   :  { %3760 = vmatprep.mubr.bf16.mxu0 %v12997_v0  ;;  %3833 = vmatprep.mubr.bf16.mxu1 %v12997_v0 }
 0x1c8   :  { %12076 = vmatmul.mubr.msk.bf16.gmra.mrb[20].mxu0 %vm191_vm1, %v13427_v22  ;;  %12080 = vmatmul.mubr.msk.bf16.gmra.mrb[20].mxu1 %vm191_vm1, %v13427_v22  ;;  %v13010_v22 = vmov 1983009808  }
 0x1c9   :  { %3770 = vmatprep.mubr.bf16.mxu0 %v12997_v0  ;;  %3843 = vmatprep.mubr.bf16.mxu1 %v12997_v0  ;;  %v4189_v24 = vunpack.c.l.s4 %v13010_v22 }
 0x1cb   :  { %v4190_v31 = vunpack.c.0.s8 %v4189_v24 }
 0x1cd   :  { %v13511_v39 = vsub.s32 %v4190_v31, %v4192_v29  ;;  %v13533_v29 = vrot.slane %v6041_v32, %v13516_v46 }
 0x1cf   :  { %15728 = vst [vmem:[#allocation51_spill] sm:$0xff] %v13511_v39 }
 0x1d0   :  { %12077 = vmatmul.mubr.msk.bf16.gmra.mrb[24].mxu0 %vm191_vm1, %v3269_v43  ;;  %12081 = vmatmul.mubr.msk.bf16.gmra.mrb[24].mxu1 %vm191_vm1, %v3269_v43 }
 0x1d1   :  { %3780 = vmatprep.mubr.bf16.mxu0 %v12997_v0  ;;  %3853 = vmatprep.mubr.bf16.mxu1 %v12997_v0 }
 0x1d8   :  { %12078 = vmatmul.mubr.msk.bf16.gmra.mrb[28].mxu0 %vm191_vm1, %v3270_v55  ;;  %12082 = vmatmul.mubr.msk.bf16.gmra.mrb[28].mxu1 %vm191_vm1, %v3270_v55 }
 0x273   :  { %v3606_v56 = vpop.f32.mrb[0].mxu0  ;;  %v3679_v57 = vpop.f32.mrb[0].mxu1 }
 0x274   :  { %v3608_v59 = vpop.f32.mrb[1].mxu0  ;;  %v3681_v61 = vpop.f32.mrb[1].mxu1 }
 0x275   :  { %v3610_v60 = vpop.f32.mrb[2].mxu0  ;;  %v3683_v62 = vpop.f32.mrb[2].mxu1 }
 0x276   :  { %v3612_v63 = vpop.f32.mrb[3].mxu0  ;;  %v3685_v2 = vpop.f32.mrb[3].mxu1 }
 0x27b   :  { %v13461_v58 = vpop.f32.mrb[4].mxu0  ;;  %v13463_v3 = vpop.f32.mrb[4].mxu1 }
 0x27c   :  { %v13465_v4 = vpop.f32.mrb[5].mxu0  ;;  %v13467_v5 = vpop.f32.mrb[5].mxu1 }
 0x27d   :  { %v13469_v0 = vpop.f32.mrb[6].mxu0  ;;  %v13471_v52 = vpop.f32.mrb[6].mxu1 }
 0x27e   :  { %v13473_v54 = vpop.f32.mrb[7].mxu0  ;;  %v13475_v7 = vpop.f32.mrb[7].mxu1 }
 0x283   :  { %v13477_v9 = vpop.f32.mrb[8].mxu0  ;;  %v13479_v10 = vpop.f32.mrb[8].mxu1 }
 0x284   :  { %15711 = vst [vmem:[#allocation34_spill] sm:$0xff] %v13477_v9  ;;  %15712 = vst [vmem:[#allocation35_spill] sm:$0xff] %v13479_v10  ;;  %v13481_v11 = vpop.f32.mrb[9].mxu0  ;;  %v13483_v13 = vpop.f32.mrb[9].mxu1 }
 0x285   :  { %15713 = vst [vmem:[#allocation36_spill] sm:$0xff] %v13481_v11  ;;  %15714 = vst [vmem:[#allocation37_spill] sm:$0xff] %v13483_v13  ;;  %v13485_v14 = vpop.f32.mrb[10].mxu0  ;;  %v13487_v16 = vpop.f32.mrb[10].mxu1 }
 0x286   :  { %15715 = vst [vmem:[#allocation38_spill] sm:$0xff] %v13485_v14  ;;  %15716 = vst [vmem:[#allocation39_spill] sm:$0xff] %v13487_v16  ;;  %v13489_v15 = vpop.f32.mrb[11].mxu0  ;;  %v13491_v17 = vpop.f32.mrb[11].mxu1 }
 0x287   :  { %15717 = vst [vmem:[#allocation40_spill] sm:$0xff] %v13489_v15  ;;  %15718 = vst [vmem:[#allocation41_spill] sm:$0xff] %v13491_v17 }
 0x28b   :  { %v13493_v18 = vpop.f32.mrb[12].mxu0  ;;  %v13495_v19 = vpop.f32.mrb[12].mxu1 }
 0x28c   :  { %15719 = vst [vmem:[#allocation42_spill] sm:$0xff] %v13493_v18  ;;  %15720 = vst [vmem:[#allocation43_spill] sm:$0xff] %v13495_v19  ;;  %v13497_v20 = vpop.f32.mrb[13].mxu0  ;;  %v13499_v21 = vpop.f32.mrb[13].mxu1 }
 0x28d   :  { %15721 = vst [vmem:[#allocation44_spill] sm:$0xff] %v13497_v20  ;;  %15722 = vst [vmem:[#allocation45_spill] sm:$0xff] %v13499_v21  ;;  %v13501_v8 = vpop.f32.mrb[14].mxu0  ;;  %v13503_v25 = vpop.f32.mrb[14].mxu1 }
 0x28e   :  { %15723 = vst [vmem:[#allocation46_spill] sm:$0xff] %v13501_v8  ;;  %15724 = vst [vmem:[#allocation47_spill] sm:$0xff] %v13503_v25  ;;  %v13505_v26 = vpop.f32.mrb[15].mxu0  ;;  %v13507_v28 = vpop.f32.mrb[15].mxu1 }
 0x28f   :  { %15725 = vst [vmem:[#allocation48_spill] sm:$0xff] %v13505_v26  ;;  %15726 = vst [vmem:[#allocation49_spill] sm:$0xff] %v13507_v28 }
 0x293   :  { %v3752_v33 = vpop.f32.mrb[16].mxu0  ;;  %v3825_v34 = vpop.f32.mrb[16].mxu1 }
 0x294   :  { %v4120_v27 = vmax.f32 %v3606_v56, %v3752_v33  ;;  %v3754_v35 = vpop.f32.mrb[17].mxu0  ;;  %v4122_v6 = vmax.f32 %v3679_v57, %v3825_v34  ;;  %v3827_v40 = vpop.f32.mrb[17].mxu1  ;;  %v13520_v56 = vrot.slane %v6041_v32, %v6053_v36 }
 0x295   :  { %v4121_v23 = vmax.f32 %v3608_v59, %v3754_v35  ;;  %v3756_v43 = vpop.f32.mrb[18].mxu0  ;;  %v4123_v44 = vmax.f32 %v3681_v61, %v3827_v40  ;;  %v3829_v48 = vpop.f32.mrb[18].mxu1 }
 0x296   :  { %v4124_v47 = vmax.f32 %v3610_v60, %v3756_v43  ;;  %v3758_v42 = vpop.f32.mrb[19].mxu0  ;;  %v13518_v51 = vmax.f32 %v3683_v62, %v3829_v48  ;;  %v3831_v38 = vpop.f32.mrb[19].mxu1 }
 0x297   :  { %v4184_v49 = vcombine.low %v4120_v27, %v4121_v23  ;;  %v4185_v50 = vcombine.high %v4120_v27, %v4121_v23  ;;  %v4125_v37 = vmax.f32 %v3612_v63, %v3758_v42  ;;  %v4186_v53 = vcombine.low %v4122_v6, %v4123_v44 }
 0x298   :  { %v4187_v55 = vcombine.high %v4122_v6, %v4123_v44  ;;  %v13522_v57 = vmax.f32 %v3685_v2, %v3831_v38  ;;  %v13535_v2 = vrot.slane %v6041_v32, %v6057_v45 }
 0x299   :  { %v4194_v59 = vrot.slane %v4184_v49, %v13511_v39  ;;  %v4201_v61 = vrot.slane %v4185_v50, %v13511_v39  ;;  %v4220_v60 = vcombine.low %v4124_v47, %v4125_v37  ;;  %v4221_v12 = vcombine.high %v4124_v47, %v4125_v37 }
 0x29a   :  { %v4208_v22 = vrot.slane %v4186_v53, %v13511_v39  ;;  %v4215_v24 = vrot.slane %v4187_v55, %v13511_v39 }
 0x29b   :  { %v13538_v31 = vrot.slane %v4220_v60, %v13511_v39  ;;  %v13541_v33 = vrot.slane %v4221_v12, %v13511_v39  ;;  %v13543_v27 = vpop.f32.mrb[20].mxu0  ;;  %v13545_v23 = vpop.f32.mrb[20].mxu1 }
 0x29c   :  { %v4216_v34 = vcombine.low %v4194_v59, %v4208_v22  ;;  %v4217_v35 = vcombine.high %v4194_v59, %v4208_v22  ;;  %v4218_v36 = vcombine.low %v4201_v61, %v4215_v24  ;;  %v4219_v6 = vcombine.high %v4201_v61, %v4215_v24  ;;  %v13547_v40 = vpop.f32.mrb[21].mxu0  ;;  %v13549_v47 = vpop.f32.mrb[21].mxu1 }
 0x29d   :  { %v12083_v43 = vcombine.low %v4208_v22, %v4208_v22  ;;  %v12084_v44 = vcombine.high %v4208_v22, %v4208_v22  ;;  %v12085_v32 = vcombine.low %v4215_v24, %v4215_v24  ;;  %v12086_v45 = vcombine.high %v4215_v24, %v4215_v24  ;;  %v13551_v48 = vpop.f32.mrb[22].mxu0  ;;  %v13561_v38 = vpop.f32.mrb[22].mxu1 }
 0x29e   :  { %v4479_v42 = vrot.slane %v4216_v34, %v13511_v39  ;;  %v4496_v49 = vrot.slane %v4217_v35, %v13511_v39  ;;  %v13556_v50 = vrot.slane %v4218_v36, %v13511_v39  ;;  %v13559_v37 = vrot.slane %v4219_v6, %v13511_v39  ;;  %v13563_v53 = vpop.f32.mrb[23].mxu0  ;;  %v13573_v12 = vpop.f32.mrb[23].mxu1 }
 0x29f   :  { %v4486_v55 = vrot.slane %v12083_v43, %v13511_v39  ;;  %v4503_v59 = vrot.slane %v12084_v44, %v13511_v39  ;;  %v13568_v61 = vrot.slane %v12085_v32, %v13511_v39  ;;  %v13571_v60 = vrot.slane %v12086_v45, %v13511_v39 }
 0x2a0   :  { %v4487_v22 = vcombine.high %v4479_v42, %v4479_v42  ;;  %v4504_v24 = vcombine.high %v4496_v49, %v4496_v49  ;;  %v5145_v32 = vsel %vm5144_vm2, %v4479_v42, -inf  ;;  %v5173_v63 = vsel %vm5144_vm2, %v4496_v49, -inf }
 0x2a1   :  { %v4488_v36 = vcombine.high %v4486_v55, %v4486_v55  ;;  %v4505_v6 = vcombine.high %v4503_v59, %v4503_v59  ;;  %v5159_v1 = vsel %vm5144_vm2, %v4486_v55, -inf  ;;  %v5146_v62 = vrot.slane %v5145_v32, 4 }
 0x2a2   :  { %v5152_v45 = vsel %vm5144_vm2, %v4487_v22, -inf  ;;  %v5160_v46 = vrot.slane %v5159_v1, 4  ;;  %v5174_v28 = vrot.slane %v5173_v63, 4  ;;  %v5180_v43 = vsel %vm5144_vm2, %v4504_v24, -inf }
 0x2a3   :  { %v5153_v34 = vrot.slane %v5152_v45, 4  ;;  %v5166_v35 = vsel %vm5144_vm2, %v4488_v36, -inf  ;;  %v5187_v26 = vsel %vm5144_vm2, %v4503_v59, -inf  ;;  %v5147_v44 = vmax.f32 %v5145_v32, %v5146_v62  ;;  %v13591_v36 = vpop.f32.mrb[24].mxu0  ;;  %v13593_v15 = vpop.f32.mrb[24].mxu1 }
 0x2a4   :  { %v5167_v30 = vrot.slane %v5166_v35, 4  ;;  %v5161_v42 = vmax.f32 %v5159_v1, %v5160_v46  ;;  %v5181_v8 = vrot.slane %v5180_v43, 4  ;;  %v5175_v21 = vmax.f32 %v5173_v63, %v5174_v28  ;;  %15730 = vst [vmem:[#allocation53_spill] sm:$0xff] %v13591_v36  ;;  %15731 = vst [vmem:[#allocation54_spill] sm:$0xff] %v13593_v15 }
 0x2a5   :  { %v5154_v25 = vmax.f32 %v5152_v45, %v5153_v34  ;;  %v5188_v55 = vrot.slane %v5187_v26, 4  ;;  %v5194_v49 = vsel %vm5144_vm2, %v4505_v6, -inf  ;;  %v5148_v20 = vrot.slane %v5147_v44, 2  ;;  %v13595_v34 = vpop.f32.mrb[25].mxu0 }
 0x2a6   :  { %v5168_v22 = vmax.f32 %v5166_v35, %v5167_v30  ;;  %v5162_v18 = vrot.slane %v5161_v42, 2  ;;  %v5182_v17 = vmax.f32 %v5180_v43, %v5181_v8  ;;  %v5176_v16 = vrot.slane %v5175_v21, 2  ;;  %15732 = vst [vmem:[#allocation55_spill] sm:$0xff] %v13595_v34 }
 0x2a7   :  { %v5155_v19 = vrot.slane %v5154_v25, 2  ;;  %v5189_v59 = vmax.f32 %v5187_v26, %v5188_v55  ;;  %v5195_v62 = vrot.slane %v5194_v49, 4  ;;  %v5149_v1 = vmax.f32 %v5147_v44, %v5148_v20 }
 0x2a8   :  { %v5169_v24 = vrot.slane %v5168_v22, 2  ;;  %v5163_v28 = vmax.f32 %v5161_v42, %v5162_v18  ;;  %v5183_v46 = vrot.slane %v5182_v17, 2  ;;  %v5177_v35 = vmax.f32 %v5175_v21, %v5176_v16 }
 0x2a9   :  { %v5156_v30 = vmax.f32 %v5154_v25, %v5155_v19  ;;  %v5190_v6 = vrot.slane %v5189_v59, 2  ;;  %v5196_v32 = vmax.f32 %v5194_v49, %v5195_v62  ;;  %v5150_v45 = vrot.slane %v5149_v1, 1 }
 0x2aa   :  { %v5170_v63 = vmax.f32 %v5168_v22, %v5169_v24  ;;  %v5164_v43 = vrot.slane %v5163_v28, 1  ;;  %v5184_v14 = vmax.f32 %v5182_v17, %v5183_v46  ;;  %v5178_v11 = vrot.slane %v5177_v35, 1 }
 0x2ab   :  { %v5157_v8 = vrot.slane %v5156_v30, 1  ;;  %v5191_v10 = vmax.f32 %v5189_v59, %v5190_v6  ;;  %v5197_v15 = vrot.slane %v5196_v32, 2  ;;  %v13597_v26 = vmax.f32 %v5149_v1, %v5150_v45 }
 0x2ac   :  { %v5171_v13 = vrot.slane %v5170_v63, 1  ;;  %v13601_v20 = vmax.f32 %v5163_v28, %v5164_v43  ;;  %v5185_v18 = vrot.slane %v5184_v14, 1  ;;  %v13605_v16 = vmax.f32 %v5177_v35, %v5178_v11 }
 0x2ad   :  { %v13599_v55 = vmax.f32 %v5156_v30, %v5157_v8  ;;  %v5192_v21 = vrot.slane %v5191_v10, 1  ;;  %v5198_v25 = vmax.f32 %v5196_v32, %v5197_v15  ;;  %v5201_v17 = vsel %vm5144_vm2, %v13556_v50, -inf }
 0x2ae   :  { %v13603_v19 = vmax.f32 %v5170_v63, %v5171_v13  ;;  %v13607_v44 = vmax.f32 %v5184_v14, %v5185_v18  ;;  %v15733_v42 = vcombine.high %v13556_v50, %v13556_v50  ;;  %v5215_v49 = vsel %vm5144_vm2, %v13568_v61, -inf }
 0x2af   :  { %v5193_v24 = vmax.f32 %v5191_v10, %v5192_v21  ;;  %v5199_v13 = vrot.slane %v5198_v25, 1  ;;  %v5202_v59 = vrot.slane %v5201_v17, 4  ;;  %v5216_v62 = vrot.slane %v5215_v49, 4 }
 0x2b0   :  { %v5208_v22 = vsel %vm5144_vm2, %v15733_v42, -inf  ;;  %v15734_v14 = vcombine.high %v13568_v61, %v13568_v61  ;;  %v5229_v1 = vsel %vm5144_vm2, %v13559_v37, -inf  ;;  %v15735_v50 = vcombine.high %v13559_v37, %v13559_v37 }
 0x2b1   :  { %v5209_v11 = vrot.slane %v5208_v22, 4  ;;  %v5200_v28 = vmax.f32 %v5198_v25, %v5199_v13  ;;  %v5203_v46 = vmax.f32 %v5201_v17, %v5202_v59  ;;  %v5217_v35 = vmax.f32 %v5215_v49, %v5216_v62 }
 0x2b2   :  { %v5222_v15 = vsel %vm5144_vm2, %v15734_v14, -inf  ;;  %v5236_v30 = vsel %vm5144_vm2, %v15735_v50, -inf  ;;  %v5230_v6 = vrot.slane %v5229_v1, 4  ;;  %v5243_v61 = vsel %vm5144_vm2, %v13571_v60, -inf }
 0x2b3   :  { %v5210_v10 = vmax.f32 %v5208_v22, %v5209_v11  ;;  %v5223_v63 = vrot.slane %v5222_v15, 4  ;;  %v5237_v32 = vrot.slane %v5236_v30, 4  ;;  %v5204_v45 = vrot.slane %v5203_v46, 2 }
 0x2b4   :  { %v5244_v18 = vrot.slane %v5243_v61, 4  ;;  %v5218_v21 = vrot.slane %v5217_v35, 2  ;;  %v5231_v42 = vmax.f32 %v5229_v1, %v5230_v6  ;;  %v15736_v37 = vcombine.high %v13571_v60, %v13571_v60 }
 0x2b5   :  { %v5211_v8 = vrot.slane %v5210_v10, 2  ;;  %v5224_v43 = vmax.f32 %v5222_v15, %v5223_v63  ;;  %v5238_v14 = vmax.f32 %v5236_v30, %v5237_v32  ;;  %v5205_v17 = vmax.f32 %v5203_v46, %v5204_v45  ;;  %v13633_v32 = vpop.f32.mrb[25].mxu1 }
 0x2b6   :  { %v5250_v25 = vsel %vm5144_vm2, %v15736_v37, -inf  ;;  %v5245_v13 = vmax.f32 %v5243_v61, %v5244_v18  ;;  %v5219_v59 = vmax.f32 %v5217_v35, %v5218_v21  ;;  %v5232_v11 = vrot.slane %v5231_v42, 2 }
 0x2b7   :  { %v5212_v22 = vmax.f32 %v5210_v10, %v5211_v8  ;;  %v5225_v49 = vrot.slane %v5224_v43, 2  ;;  %v5239_v62 = vrot.slane %v5238_v14, 2  ;;  %v5251_v50 = vrot.slane %v5250_v25, 4 }
 0x2b8   :  { %v5206_v34 = vrot.slane %v5205_v17, 1  ;;  %v5246_v63 = vrot.slane %v5245_v13, 2  ;;  %v5220_v36 = vrot.slane %v5219_v59, 1  ;;  %v5233_v1 = vmax.f32 %v5231_v42, %v5232_v11 }
 0x2b9   :  { %v5213_v9 = vrot.slane %v5212_v22, 1  ;;  %v5226_v15 = vmax.f32 %v5224_v43, %v5225_v49  ;;  %v5240_v30 = vmax.f32 %v5238_v14, %v5239_v62  ;;  %v5252_v6 = vmax.f32 %v5250_v25, %v5251_v50 }
 0x2ba   :  { %v5207_v60 = vmax.f32 %v5205_v17, %v5206_v34  ;;  %v5247_v10 = vmax.f32 %v5245_v13, %v5246_v63  ;;  %v5221_v45 = vmax.f32 %v5219_v59, %v5220_v36  ;;  %v5234_v61 = vrot.slane %v5233_v1, 1 }
 0x2bb   :  { %v5214_v37 = vmax.f32 %v5212_v22, %v5213_v9  ;;  %v5227_v46 = vrot.slane %v5226_v15, 1  ;;  %v5241_v35 = vrot.slane %v5240_v30, 1  ;;  %v5253_v8 = vrot.slane %v5252_v6, 2 }
 0x2bc   :  { %v5248_v21 = vrot.slane %v5247_v10, 1  ;;  %v13637_v43 = vadd.f32 %v13514_v41, %v13597_v26  ;;  %v13641_v42 = vadd.f32 %v13533_v29, %v13599_v55  ;;  %v5235_v14 = vmax.f32 %v5233_v1, %v5234_v61 }
 0x2bd   :  { %v5228_v18 = vmax.f32 %v5226_v15, %v5227_v46  ;;  %v5242_v25 = vmax.f32 %v5240_v30, %v5241_v35  ;;  %v5254_v34 = vmax.f32 %v5252_v6, %v5253_v8  ;;  %v13645_v9 = vadd.f32 %v13520_v56, %v13601_v20 }
 0x2be   :  { %15737 = vst [vmem:[#allocation56_spill] sm:$0xff] %v13637_v43  ;;  %15738 = vst [vmem:[#allocation57_spill] sm:$0xff] %v13641_v42  ;;  %v5249_v36 = vmax.f32 %v5247_v10, %v5248_v21  ;;  %v13649_v17 = vadd.f32 %v13535_v2, %v13603_v19  ;;  %v13653_v26 = vadd.f32 %v13514_v41, %v13605_v16 }
 0x2bf   :  { %15739 = vst [vmem:[#allocation58_spill] sm:$0xff] %v13645_v9  ;;  %v13657_v55 = vadd.f32 %v13533_v29, %v13607_v44  ;;  %v5255_v22 = vrot.slane %v5254_v34, 1  ;;  %v13660_v49 = vadd.f32 %v13520_v56, %v5193_v24  ;;  %v13663_v20 = vadd.f32 %v13535_v2, %v5200_v28 }
 0x2c0   :  { %15740 = vst [vmem:[#allocation59_spill] sm:$0xff] %v13649_v17  ;;  %15741 = vst [vmem:[#allocation60_spill] sm:$0xff] %v13653_v26  ;;  %v13666_v13 = vadd.f32 %v13514_v41, %v5207_v60  ;;  %v13669_v19 = vadd.f32 %v13533_v29, %v5214_v37  ;;  %v13672_v16 = vadd.f32 %v13520_v56, %v5221_v45 }
 0x2c1   :  { %15742 = vst [vmem:[#allocation61_spill] sm:$0xff] %v13657_v55  ;;  %15743 = vst [vmem:[#allocation62_spill] sm:$0xff] %v13660_v49  ;;  %v13675_v59 = vadd.f32 %v13535_v2, %v5228_v18  ;;  %v13678_v44 = vadd.f32 %v13514_v41, %v5235_v14  ;;  %v5256_v24 = vmax.f32 %v5254_v34, %v5255_v22 }
 0x2c2   :  { %15744 = vst [vmem:[#allocation63_spill] sm:$0xff] %v13663_v20  ;;  %15745 = vst [vmem:[#allocation64_spill] sm:$0xff] %v13666_v13  ;;  %v13681_v11 = vadd.f32 %v13533_v29, %v5242_v25  ;;  %v13684_v28 = vadd.f32 %v13520_v56, %v5249_v36  ;;  %v15752_v62 = vcombine.low %v13518_v51, %v13522_v57 }
 0x2c3   :  { %15746 = vst [vmem:[#allocation65_spill] sm:$0xff] %v13669_v19  ;;  %15747 = vst [vmem:[#allocation66_spill] sm:$0xff] %v13672_v16  ;;  %v15753_v15 = vcombine.high %v13518_v51, %v13522_v57  ;;  %v13696_v1 = vmax.f32 %v13461_v58, %v13543_v27  ;;  %v13700_v30 = vmax.f32 %v13463_v3, %v13545_v23 }
 0x2c4   :  { %15748 = vst [vmem:[#allocation67_spill] sm:$0xff] %v13675_v59  ;;  %15749 = vst [vmem:[#allocation68_spill] sm:$0xff] %v13678_v44  ;;  %v4244_v50 = vrot.slane %v15752_v62, %v13511_v39  ;;  %v13704_v6 = vmax.f32 %v13465_v4, %v13547_v40  ;;  %v13707_v60 = vadd.f32 %v13535_v2, %v5256_v24 }
 0x2c5   :  { %15750 = vst [vmem:[#allocation69_spill] sm:$0xff] %v13681_v11  ;;  %15751 = vst [vmem:[#allocation70_spill] sm:$0xff] %v13684_v28  ;;  %v4251_v63 = vrot.slane %v15753_v15, %v13511_v39 }
 0x2c6   :  { %15754 = vst [vmem:[#allocation71_spill] sm:$0xff] %v13707_v60  ;;  %v4252_v37 = vcombine.low %v13538_v31, %v4244_v50  ;;  %v4253_v51 = vcombine.high %v13538_v31, %v4244_v50  ;;  %v12087_v57 = vcombine.low %v4244_v50, %v4244_v50  ;;  %v12088_v27 = vcombine.high %v4244_v50, %v4244_v50 }
 0x2c7   :  { %v4254_v46 = vcombine.low %v13541_v33, %v4251_v63  ;;  %v4255_v58 = vcombine.high %v13541_v33, %v4251_v63  ;;  %v12089_v10 = vcombine.low %v4251_v63, %v4251_v63  ;;  %v12090_v40 = vcombine.high %v4251_v63, %v4251_v63 }
 0x2c8   :  { %v4547_v3 = vrot.slane %v4252_v37, %v13511_v39  ;;  %v4554_v23 = vrot.slane %v12087_v57, %v13511_v39  ;;  %v4564_v4 = vrot.slane %v4253_v51, %v13511_v39  ;;  %v4571_v45 = vrot.slane %v12088_v27, %v13511_v39 }
 0x2c9   :  { %v13718_v61 = vrot.slane %v4254_v46, %v13511_v39  ;;  %v13721_v31 = vrot.slane %v12089_v10, %v13511_v39  ;;  %v13724_v35 = vrot.slane %v4255_v58, %v13511_v39  ;;  %v13727_v21 = vrot.slane %v12090_v40, %v13511_v39 }
 0x2ca   :  { %v4555_v33 = vcombine.high %v4547_v3, %v4547_v3  ;;  %v4556_v8 = vcombine.high %v4554_v23, %v4554_v23  ;;  %v4572_v18 = vcombine.high %v4564_v4, %v4564_v4  ;;  %v4573_v14 = vcombine.high %v4571_v45, %v4571_v45 }
 0x2cb   :  { %v4589_v25 = vcombine.high %v13718_v61, %v13718_v61  ;;  %v5257_v24 = vsel %vm5144_vm2, %v4547_v3, -inf  ;;  %v5271_v50 = vsel %vm5144_vm2, %v4554_v23, -inf  ;;  %v5285_v46 = vsel %vm5144_vm2, %v4564_v4, -inf }
 0x2cc   :  { %v5264_v62 = vsel %vm5144_vm2, %v4555_v33, -inf  ;;  %v5258_v15 = vrot.slane %v5257_v24, 4  ;;  %v5272_v37 = vrot.slane %v5271_v50, 4  ;;  %v5278_v51 = vsel %vm5144_vm2, %v4556_v8, -inf }
 0x2cd   :  { %v5265_v63 = vrot.slane %v5264_v62, 4  ;;  %v5279_v57 = vrot.slane %v5278_v51, 4  ;;  %v5292_v58 = vsel %vm5144_vm2, %v4572_v18, -inf  ;;  %v5299_v27 = vsel %vm5144_vm2, %v4571_v45, -inf  ;;  %v13745_v18 = vpop.f32.mrb[26].mxu0  ;;  %v13747_v45 = vpop.f32.mrb[26].mxu1 }
 0x2ce   :  { %v5259_v10 = vmax.f32 %v5257_v24, %v5258_v15  ;;  %v5273_v22 = vmax.f32 %v5271_v50, %v5272_v37  ;;  %v5286_v3 = vrot.slane %v5285_v46, 4  ;;  %v5293_v33 = vrot.slane %v5292_v58, 4  ;;  %v13751_v37 = vpop.f32.mrb[27].mxu1 }
 0x2cf   :  { %v5266_v40 = vmax.f32 %v5264_v62, %v5265_v63  ;;  %v5280_v36 = vmax.f32 %v5278_v51, %v5279_v57  ;;  %v5300_v34 = vrot.slane %v5299_v27, 4  ;;  %v5306_v23 = vsel %vm5144_vm2, %v4573_v14, -inf  ;;  %v13749_v63 = vpop.f32.mrb[27].mxu0  ;;  %15755 = vst [vmem:[#allocation72_spill] sm:$0xff] %v13751_v37 }
 0x2d0   :  { %v5260_v28 = vrot.slane %v5259_v10, 2  ;;  %v5274_v49 = vrot.slane %v5273_v22, 2  ;;  %v5287_v8 = vmax.f32 %v5285_v46, %v5286_v3  ;;  %v5294_v60 = vmax.f32 %v5292_v58, %v5293_v33 }
 0x2d1   :  { %v5267_v16 = vrot.slane %v5266_v40, 2  ;;  %v5281_v9 = vrot.slane %v5280_v36, 2  ;;  %v5301_v4 = vmax.f32 %v5299_v27, %v5300_v34  ;;  %v5307_v59 = vrot.slane %v5306_v23, 4 }
 0x2d2   :  { %v5261_v24 = vmax.f32 %v5259_v10, %v5260_v28  ;;  %v5275_v50 = vmax.f32 %v5273_v22, %v5274_v49  ;;  %v5288_v15 = vrot.slane %v5287_v8, 2  ;;  %v5295_v51 = vrot.slane %v5294_v60, 2 }
 0x2d3   :  { %v5268_v62 = vmax.f32 %v5266_v40, %v5267_v16  ;;  %v5282_v14 = vmax.f32 %v5280_v36, %v5281_v9  ;;  %v5302_v57 = vrot.slane %v5301_v4, 2  ;;  %v5308_v46 = vmax.f32 %v5306_v23, %v5307_v59 }
 0x2d4   :  { %v5262_v3 = vrot.slane %v5261_v24, 1  ;;  %v5276_v34 = vrot.slane %v5275_v50, 1  ;;  %v5289_v27 = vmax.f32 %v5287_v8, %v5288_v15  ;;  %v5296_v20 = vmax.f32 %v5294_v60, %v5295_v51 }
 0x2d5   :  { %v5269_v58 = vrot.slane %v5268_v62, 1  ;;  %v5283_v33 = vrot.slane %v5282_v14, 1  ;;  %v5303_v17 = vmax.f32 %v5301_v4, %v5302_v57  ;;  %v5309_v44 = vrot.slane %v5308_v46, 2 }
 0x2d6   :  { %v13753_v28 = vmax.f32 %v5261_v24, %v5262_v3  ;;  %v13757_v16 = vmax.f32 %v5275_v50, %v5276_v34  ;;  %v5290_v22 = vrot.slane %v5289_v27, 1  ;;  %v5297_v9 = vrot.slane %v5296_v20, 1 }
 0x2d7   :  { %v13755_v49 = vmax.f32 %v5268_v62, %v5269_v58  ;;  %v13759_v10 = vmax.f32 %v5282_v14, %v5283_v33  ;;  %v5304_v36 = vrot.slane %v5303_v17, 1  ;;  %v5310_v59 = vmax.f32 %v5308_v46, %v5309_v44 }
 0x2d8   :  { %v5291_v40 = vmax.f32 %v5289_v27, %v5290_v22  ;;  %v5313_v23 = vsel %vm5144_vm2, %v13718_v61, -inf  ;;  %v5320_v60 = vsel %vm5144_vm2, %v4589_v25, -inf  ;;  %v5327_v8 = vsel %vm5144_vm2, %v13721_v31, -inf }
 0x2d9   :  { %v5298_v4 = vmax.f32 %v5296_v20, %v5297_v9  ;;  %v5305_v24 = vmax.f32 %v5303_v17, %v5304_v36  ;;  %v5311_v62 = vrot.slane %v5310_v59, 1  ;;  %v5314_v50 = vrot.slane %v5313_v23, 4 }
 0x2da   :  { %v5321_v15 = vrot.slane %v5320_v60, 4  ;;  %v5328_v51 = vrot.slane %v5327_v8, 4  ;;  %v15756_v14 = vcombine.high %v13721_v31, %v13721_v31  ;;  %v5341_v57 = vsel %vm5144_vm2, %v13724_v35, -inf }
 0x2db   :  { %v5312_v61 = vmax.f32 %v5310_v59, %v5311_v62  ;;  %v5315_v46 = vmax.f32 %v5313_v23, %v5314_v50  ;;  %v5342_v3 = vrot.slane %v5341_v57, 4  ;;  %v15757_v17 = vcombine.high %v13724_v35, %v13724_v35 }
 0x2dc   :  { %v5334_v44 = vsel %vm5144_vm2, %v15756_v14, -inf  ;;  %v5322_v58 = vmax.f32 %v5320_v60, %v5321_v15  ;;  %v5329_v34 = vmax.f32 %v5327_v8, %v5328_v51  ;;  %v5355_v27 = vsel %vm5144_vm2, %v13727_v21, -inf }
 0x2dd   :  { %v5335_v25 = vrot.slane %v5334_v44, 4  ;;  %v5348_v20 = vsel %vm5144_vm2, %v15757_v17, -inf  ;;  %v5316_v31 = vrot.slane %v5315_v46, 2  ;;  %v5343_v22 = vmax.f32 %v5341_v57, %v5342_v3 }
 0x2de   :  { %v5349_v9 = vrot.slane %v5348_v20, 4  ;;  %v5323_v36 = vrot.slane %v5322_v58, 2  ;;  %v5330_v14 = vrot.slane %v5329_v34, 2  ;;  %v5356_v59 = vrot.slane %v5355_v27, 4 }
 0x2df   :  { %v5336_v33 = vmax.f32 %v5334_v44, %v5335_v25  ;;  %v15758_v23 = vcombine.high %v13727_v21, %v13727_v21  ;;  %v5317_v8 = vmax.f32 %v5315_v46, %v5316_v31  ;;  %v5344_v35 = vrot.slane %v5343_v22, 2 }
 0x2e0   :  { %v5350_v50 = vmax.f32 %v5348_v20, %v5349_v9  ;;  %v5324_v15 = vmax.f32 %v5322_v58, %v5323_v36  ;;  %v5331_v51 = vmax.f32 %v5329_v34, %v5330_v14  ;;  %v5357_v17 = vmax.f32 %v5355_v27, %v5356_v59 }
 0x2e1   :  { %v5362_v60 = vsel %vm5144_vm2, %v15758_v23, -inf  ;;  %v5337_v62 = vrot.slane %v5336_v33, 2  ;;  %v5318_v26 = vrot.slane %v5317_v8, 1  ;;  %v5345_v57 = vmax.f32 %v5343_v22, %v5344_v35 }
 0x2e2   :  { %v5363_v13 = vrot.slane %v5362_v60, 4  ;;  %v5351_v25 = vrot.slane %v5350_v50, 2  ;;  %v5325_v3 = vrot.slane %v5324_v15, 1  ;;  %v5332_v43 = vrot.slane %v5331_v51, 1 }
 0x2e3   :  { %v5338_v44 = vmax.f32 %v5336_v33, %v5337_v62  ;;  %v5358_v11 = vrot.slane %v5357_v17, 2  ;;  %v5319_v55 = vmax.f32 %v5317_v8, %v5318_v26  ;;  %v5346_v42 = vrot.slane %v5345_v57, 1 }
 0x2e4   :  { %v5364_v19 = vmax.f32 %v5362_v60, %v5363_v13  ;;  %v5352_v23 = vmax.f32 %v5350_v50, %v5351_v25  ;;  %v5326_v46 = vmax.f32 %v5324_v15, %v5325_v3  ;;  %v5333_v31 = vmax.f32 %v5331_v51, %v5332_v43 }
 0x2e5   :  { %v5339_v21 = vrot.slane %v5338_v44, 1  ;;  %v5359_v37 = vmax.f32 %v5357_v17, %v5358_v11  ;;  %v5347_v34 = vmax.f32 %v5345_v57, %v5346_v42  ;;  %v13784_v33 = vadd.f32 %v13514_v41, %v13753_v28 }
 0x2e6   :  { %v5365_v20 = vrot.slane %v5364_v19, 2  ;;  %v5353_v27 = vrot.slane %v5352_v23, 1  ;;  %v13788_v13 = vadd.f32 %v13533_v29, %v13755_v49  ;;  %v13792_v26 = vadd.f32 %v13520_v56, %v13757_v16 }
 0x2e7   :  { %v5340_v58 = vmax.f32 %v5338_v44, %v5339_v21  ;;  %15759 = vst [vmem:[#allocation73_spill] sm:$0xff] %v13784_v33  ;;  %v5360_v22 = vrot.slane %v5359_v37, 1  ;;  %v13796_v11 = vadd.f32 %v13535_v2, %v13759_v10  ;;  %v13799_v42 = vadd.f32 %v13514_v41, %v5291_v40 }
 0x2e8   :  { %v5366_v9 = vmax.f32 %v5364_v19, %v5365_v20  ;;  %15760 = vst [vmem:[#allocation74_spill] sm:$0xff] %v13792_v26  ;;  %v5354_v43 = vmax.f32 %v5352_v23, %v5353_v27  ;;  %v13802_v28 = vadd.f32 %v13533_v29, %v5298_v4  ;;  %v13805_v49 = vadd.f32 %v13520_v56, %v5305_v24 }
 0x2e9   :  { %15761 = vst [vmem:[#allocation75_spill] sm:$0xff] %v13796_v11  ;;  %15762 = vst [vmem:[#allocation76_spill] sm:$0xff] %v13799_v42  ;;  %v5361_v19 = vmax.f32 %v5359_v37, %v5360_v22  ;;  %v13808_v14 = vadd.f32 %v13535_v2, %v5312_v61  ;;  %v13811_v16 = vadd.f32 %v13514_v41, %v5319_v55 }
 0x2ea   :  { %v5367_v36 = vrot.slane %v5366_v9, 1  ;;  %15763 = vst [vmem:[#allocation77_spill] sm:$0xff] %v13805_v49  ;;  %v13814_v10 = vadd.f32 %v13533_v29, %v5326_v46  ;;  %v13817_v40 = vadd.f32 %v13520_v56, %v5333_v31  ;;  %v13820_v4 = vadd.f32 %v13535_v2, %v5340_v58 }
 0x2eb   :  { %15764 = vst [vmem:[#allocation78_spill] sm:$0xff] %v13808_v14  ;;  %15765 = vst [vmem:[#allocation79_spill] sm:$0xff] %v13811_v16  ;;  %v13823_v59 = vadd.f32 %v13514_v41, %v5347_v34  ;;  %v13826_v24 = vadd.f32 %v13533_v29, %v5354_v43  ;;  %v13829_v61 = vadd.f32 %v13520_v56, %v5361_v19 }
 0x2ec   :  { %15766 = vst [vmem:[#allocation80_spill] sm:$0xff] %v13814_v10  ;;  %15767 = vst [vmem:[#allocation81_spill] sm:$0xff] %v13817_v40  ;;  %v5368_v37 = vmax.f32 %v5366_v9, %v5367_v36  ;;  %v4256_v55 = vcombine.low %v13696_v1, %v13704_v6  ;;  %v4257_v60 = vcombine.high %v13696_v1, %v13704_v6 }
 0x2ed   :  { %15768 = vst [vmem:[#allocation82_spill] sm:$0xff] %v13820_v4  ;;  %15769 = vst [vmem:[#allocation83_spill] sm:$0xff] %v13823_v59  ;;  %v4131_v8 = vmax.f32 %v13467_v5, %v13549_v47  ;;  %v4132_v62 = vmax.f32 %v13469_v0, %v13551_v48  ;;  %v4134_v50 = vmax.f32 %v13471_v52, %v13561_v38 }
 0x2ee   :  { %15770 = vst [vmem:[#allocation84_spill] sm:$0xff] %v13829_v61  ;;  %v13840_v35 = vadd.f32 %v13535_v2, %v5368_v37  ;;  %v4133_v15 = vmax.f32 %v13473_v54, %v13563_v53  ;;  %v4135_v51 = vmax.f32 %v13475_v7, %v13573_v12  ;;  %v4266_v1 = vrot.slane %v4256_v55, %v13511_v39  ;;  %v15772_v54 = vld [vmem:[#allocation53_spill] sm:$0xff]  ;;  %v15773_v53 = vld [vmem:[#allocation34_spill] sm:$0xff]  ;;  %v15775_v12 = vld [vmem:[#allocation35_spill] sm:$0xff] }
 0x2ef   :  { %v4273_v6 = vrot.slane %v4257_v60, %v13511_v39  ;;  %v4258_v5 = vcombine.low %v13700_v30, %v4131_v8  ;;  %v4259_v0 = vcombine.high %v13700_v30, %v4131_v8  ;;  %v13856_v57 = vmax.f32 %v15773_v53, %v15772_v54  ;;  %v15774_v7 = vld [vmem:[#allocation54_spill] sm:$0xff] }
 0x2f0   :  { %15771 = vst [vmem:[#allocation85_spill] sm:$0xff] %v13840_v35  ;;  %v4292_v47 = vcombine.low %v4132_v62, %v4133_v15  ;;  %v4293_v48 = vcombine.high %v4132_v62, %v4133_v15  ;;  %v4294_v17 = vcombine.low %v4134_v50, %v4135_v51  ;;  %v4295_v44 = vcombine.high %v4134_v50, %v4135_v51 }
 0x2f1   :  { %v4280_v52 = vrot.slane %v4258_v5, %v13511_v39  ;;  %v4287_v38 = vrot.slane %v4259_v0, %v13511_v39  ;;  %v13860_v25 = vmax.f32 %v15775_v12, %v15774_v7 }
 0x2f2   :  { %v13863_v3 = vrot.slane %v4292_v47, %v13511_v39  ;;  %v13866_v30 = vrot.slane %v4293_v48, %v13511_v39  ;;  %v13869_v21 = vrot.slane %v4294_v17, %v13511_v39  ;;  %v13872_v23 = vrot.slane %v4295_v44, %v13511_v39  ;;  %v13908_v47 = vpop.f32.mrb[28].mxu1 }
 0x2f3   :  { %v4288_v46 = vcombine.low %v4266_v1, %v4280_v52  ;;  %v4289_v31 = vcombine.high %v4266_v1, %v4280_v52  ;;  %v4290_v20 = vcombine.low %v4273_v6, %v4287_v38  ;;  %v4291_v58 = vcombine.high %v4273_v6, %v4287_v38  ;;  %v13948_v16 = vpop.f32.mrb[29].mxu1 }
 0x2f4   :  { %v12091_v34 = vcombine.low %v4280_v52, %v4280_v52  ;;  %v12092_v27 = vcombine.high %v4280_v52, %v4280_v52  ;;  %v12093_v22 = vcombine.low %v4287_v38, %v4287_v38  ;;  %v12094_v9 = vcombine.high %v4287_v38, %v4287_v38 }
 0x2f5   :  { %v4615_v43 = vrot.slane %v4288_v46, %v13511_v39  ;;  %v4632_v19 = vrot.slane %v4289_v31, %v13511_v39  ;;  %v13877_v36 = vrot.slane %v4290_v20, %v13511_v39  ;;  %v13880_v37 = vrot.slane %v4291_v58, %v13511_v39 }
 0x2f6   :  { %v4622_v55 = vrot.slane %v12091_v34, %v13511_v39  ;;  %v4639_v60 = vrot.slane %v12092_v27, %v13511_v39  ;;  %v13885_v8 = vrot.slane %v12093_v22, %v13511_v39  ;;  %v13888_v62 = vrot.slane %v12094_v9, %v13511_v39 }
 0x2f7   :  { %v4623_v50 = vcombine.high %v4615_v43, %v4615_v43  ;;  %v4640_v15 = vcombine.high %v4632_v19, %v4632_v19  ;;  %v5369_v48 = vsel %vm5144_vm2, %v4615_v43, -inf  ;;  %v5397_v52 = vsel %vm5144_vm2, %v4632_v19, -inf }
 0x2f8   :  { %v4624_v6 = vcombine.high %v4622_v55, %v4622_v55  ;;  %v4641_v5 = vcombine.high %v4639_v60, %v4639_v60  ;;  %v5383_v44 = vsel %vm5144_vm2, %v4622_v55, -inf  ;;  %v5370_v38 = vrot.slane %v5369_v48, 4 }
 0x2f9   :  { %v5376_v17 = vsel %vm5144_vm2, %v4623_v50, -inf  ;;  %v5384_v53 = vrot.slane %v5383_v44, 4  ;;  %v5398_v46 = vrot.slane %v5397_v52, 4  ;;  %v5404_v31 = vsel %vm5144_vm2, %v4640_v15, -inf  ;;  %v13906_v50 = vpop.f32.mrb[28].mxu0 }
 0x2fa   :  { %v5377_v54 = vrot.slane %v5376_v17, 4  ;;  %v5390_v7 = vsel %vm5144_vm2, %v4624_v6, -inf  ;;  %v5411_v20 = vsel %vm5144_vm2, %v4639_v60, -inf  ;;  %v5371_v58 = vmax.f32 %v5369_v48, %v5370_v38  ;;  %v13910_v15 = vpop.f32.mrb[29].mxu0 }
 0x2fb   :  { %v5391_v12 = vrot.slane %v5390_v7, 4  ;;  %v5385_v27 = vmax.f32 %v5383_v44, %v5384_v53  ;;  %v5405_v22 = vrot.slane %v5404_v31, 4  ;;  %v5399_v43 = vmax.f32 %v5397_v52, %v5398_v46 }
 0x2fc   :  { %v5378_v34 = vmax.f32 %v5376_v17, %v5377_v54  ;;  %v5412_v55 = vrot.slane %v5411_v20, 4  ;;  %v5418_v19 = vsel %vm5144_vm2, %v4641_v5, -inf  ;;  %v5372_v6 = vrot.slane %v5371_v58, 2 }
 0x2fd   :  { %v5392_v9 = vmax.f32 %v5390_v7, %v5391_v12  ;;  %v5386_v0 = vrot.slane %v5385_v27, 2  ;;  %v5406_v51 = vmax.f32 %v5404_v31, %v5405_v22  ;;  %v5400_v48 = vrot.slane %v5399_v43, 2 }
 0x2fe   :  { %v5379_v1 = vrot.slane %v5378_v34, 2  ;;  %v5413_v17 = vmax.f32 %v5411_v20, %v5412_v55  ;;  %v5419_v44 = vrot.slane %v5418_v19, 4  ;;  %v5373_v38 = vmax.f32 %v5371_v58, %v5372_v6 }
 0x2ff   :  { %v5393_v60 = vrot.slane %v5392_v9, 2  ;;  %v5387_v52 = vmax.f32 %v5385_v27, %v5386_v0  ;;  %v5407_v53 = vrot.slane %v5406_v51, 2  ;;  %v5401_v5 = vmax.f32 %v5399_v43, %v5400_v48 }
 0x300   :  { %v5380_v54 = vmax.f32 %v5378_v34, %v5379_v1  ;;  %v5414_v12 = vrot.slane %v5413_v17, 2  ;;  %v5420_v46 = vmax.f32 %v5418_v19, %v5419_v44  ;;  %v5374_v40 = vrot.slane %v5373_v38, 1 }
 0x301   :  { %v5394_v7 = vmax.f32 %v5392_v9, %v5393_v60  ;;  %v5388_v49 = vrot.slane %v5387_v52, 1  ;;  %v5408_v26 = vmax.f32 %v5406_v51, %v5407_v53  ;;  %v5402_v31 = vrot.slane %v5401_v5, 1 }
 0x302   :  { %v5381_v61 = vrot.slane %v5380_v54, 1  ;;  %v5415_v22 = vmax.f32 %v5413_v17, %v5414_v12  ;;  %v5421_v35 = vrot.slane %v5420_v46, 2  ;;  %v13912_v14 = vmax.f32 %v5373_v38, %v5374_v40 }
 0x303   :  { %v5395_v4 = vrot.slane %v5394_v7, 1  ;;  %v13916_v58 = vmax.f32 %v5387_v52, %v5388_v49  ;;  %v5409_v1 = vrot.slane %v5408_v26, 1  ;;  %v13920_v34 = vmax.f32 %v5401_v5, %v5402_v31 }
 0x304   :  { %v13914_v20 = vmax.f32 %v5380_v54, %v5381_v61  ;;  %v5416_v27 = vrot.slane %v5415_v22, 1  ;;  %v5422_v9 = vmax.f32 %v5420_v46, %v5421_v35  ;;  %v5425_v51 = vsel %vm5144_vm2, %v13877_v36, -inf }
 0x305   :  { %v13918_v0 = vmax.f32 %v5394_v7, %v5395_v4  ;;  %v13922_v43 = vmax.f32 %v5408_v26, %v5409_v1  ;;  %v15776_v40 = vcombine.high %v13877_v36, %v13877_v36  ;;  %v5439_v49 = vsel %vm5144_vm2, %v13885_v8, -inf }
 0x306   :  { %v5417_v55 = vmax.f32 %v5415_v22, %v5416_v27  ;;  %v5423_v4 = vrot.slane %v5422_v9, 1  ;;  %v5426_v19 = vrot.slane %v5425_v51, 4  ;;  %v5440_v60 = vrot.slane %v5439_v49, 4 }
 0x307   :  { %v5432_v61 = vsel %vm5144_vm2, %v15776_v40, -inf  ;;  %v15777_v26 = vcombine.high %v13885_v8, %v13885_v8  ;;  %v5453_v48 = vsel %vm5144_vm2, %v13880_v37, -inf  ;;  %v15778_v36 = vcombine.high %v13880_v37, %v13880_v37 }
 0x308   :  { %v5433_v6 = vrot.slane %v5432_v61, 4  ;;  %v5424_v44 = vmax.f32 %v5422_v9, %v5423_v4  ;;  %v5427_v38 = vmax.f32 %v5425_v51, %v5426_v19  ;;  %v5441_v53 = vmax.f32 %v5439_v49, %v5440_v60 }
 0x309   :  { %v5446_v35 = vsel %vm5144_vm2, %v15777_v26, -inf  ;;  %v5460_v17 = vsel %vm5144_vm2, %v15778_v36, -inf  ;;  %v5454_v7 = vrot.slane %v5453_v48, 4  ;;  %v5467_v8 = vsel %vm5144_vm2, %v13888_v62, -inf }
 0x30a   :  { %v5434_v54 = vmax.f32 %v5432_v61, %v5433_v6  ;;  %v5447_v52 = vrot.slane %v5446_v35, 4  ;;  %v5461_v5 = vrot.slane %v5460_v17, 4  ;;  %v5428_v12 = vrot.slane %v5427_v38, 2 }
 0x30b   :  { %v5468_v22 = vrot.slane %v5467_v8, 4  ;;  %v5442_v1 = vrot.slane %v5441_v53, 2  ;;  %v5455_v27 = vmax.f32 %v5453_v48, %v5454_v7  ;;  %v15779_v37 = vcombine.high %v13888_v62, %v13888_v62 }
 0x30c   :  { %v5435_v46 = vrot.slane %v5434_v54, 2  ;;  %v5448_v31 = vmax.f32 %v5446_v35, %v5447_v52  ;;  %v5462_v40 = vmax.f32 %v5460_v17, %v5461_v5  ;;  %v5429_v51 = vmax.f32 %v5427_v38, %v5428_v12 }
 0x30d   :  { %v5474_v9 = vsel %vm5144_vm2, %v15779_v37, -inf  ;;  %v5469_v4 = vmax.f32 %v5467_v8, %v5468_v22  ;;  %v5443_v19 = vmax.f32 %v5441_v53, %v5442_v1  ;;  %v5456_v6 = vrot.slane %v5455_v27, 2 }
 0x30e   :  { %v5436_v61 = vmax.f32 %v5434_v54, %v5435_v46  ;;  %v5449_v49 = vrot.slane %v5448_v31, 2  ;;  %v5463_v60 = vrot.slane %v5462_v40, 2  ;;  %v5475_v26 = vrot.slane %v5474_v9, 4 }
 0x30f   :  { %v5430_v36 = vrot.slane %v5429_v51, 1  ;;  %v5470_v52 = vrot.slane %v5469_v4, 2  ;;  %v5444_v48 = vrot.slane %v5443_v19, 1  ;;  %v5457_v17 = vmax.f32 %v5455_v27, %v5456_v6 }
 0x310   :  { %v5437_v11 = vrot.slane %v5436_v61, 1  ;;  %v5450_v35 = vmax.f32 %v5448_v31, %v5449_v49  ;;  %v5464_v7 = vmax.f32 %v5462_v40, %v5463_v60  ;;  %v5476_v62 = vmax.f32 %v5474_v9, %v5475_v26 }
 0x311   :  { %v5431_v5 = vmax.f32 %v5429_v51, %v5430_v36  ;;  %v5471_v54 = vmax.f32 %v5469_v4, %v5470_v52  ;;  %v5445_v12 = vmax.f32 %v5443_v19, %v5444_v48  ;;  %v5458_v8 = vrot.slane %v5457_v17, 1 }
 0x312   :  { %v5438_v37 = vmax.f32 %v5436_v61, %v5437_v11  ;;  %v5451_v38 = vrot.slane %v5450_v35, 1  ;;  %v5465_v53 = vrot.slane %v5464_v7, 1  ;;  %v5477_v46 = vrot.slane %v5476_v62, 2 }
 0x313   :  { %v5472_v1 = vrot.slane %v5471_v54, 1  ;;  %v13952_v31 = vadd.f32 %v13514_v41, %v13912_v14  ;;  %v13956_v49 = vadd.f32 %v13533_v29, %v13914_v20  ;;  %v5459_v27 = vmax.f32 %v5457_v17, %v5458_v8 }
 0x314   :  { %v5452_v22 = vmax.f32 %v5450_v35, %v5451_v38  ;;  %v5466_v40 = vmax.f32 %v5464_v7, %v5465_v53  ;;  %v5478_v9 = vmax.f32 %v5476_v62, %v5477_v46  ;;  %v13960_v11 = vadd.f32 %v13520_v56, %v13916_v58 }
 0x315   :  { %15780 = vst [vmem:[#allocation53_spill] sm:$0xff] %v13952_v31  ;;  %15781 = vst [vmem:[#allocation34_spill] sm:$0xff] %v13956_v49  ;;  %v5473_v51 = vmax.f32 %v5471_v54, %v5472_v1  ;;  %v13964_v61 = vadd.f32 %v13535_v2, %v13918_v0  ;;  %v13968_v14 = vadd.f32 %v13514_v41, %v13920_v34 }
 0x316   :  { %15782 = vst [vmem:[#allocation54_spill] sm:$0xff] %v13960_v11  ;;  %v13972_v20 = vadd.f32 %v13533_v29, %v13922_v43  ;;  %v5479_v4 = vrot.slane %v5478_v9, 1  ;;  %v13975_v19 = vadd.f32 %v13520_v56, %v5417_v55  ;;  %v13978_v58 = vadd.f32 %v13535_v2, %v5424_v44 }
 0x317   :  { %15783 = vst [vmem:[#allocation35_spill] sm:$0xff] %v13964_v61  ;;  %15784 = vst [vmem:[#allocation86_spill] sm:$0xff] %v13968_v14  ;;  %v13981_v6 = vadd.f32 %v13514_v41, %v5431_v5  ;;  %v13984_v0 = vadd.f32 %v13533_v29, %v5438_v37  ;;  %v13987_v34 = vadd.f32 %v13520_v56, %v5445_v12  ;;  %v14052_v61 = vpop.f32.mrb[30].mxu0 }
 0x318   :  { %15785 = vst [vmem:[#allocation87_spill] sm:$0xff] %v13972_v20  ;;  %15786 = vst [vmem:[#allocation88_spill] sm:$0xff] %v13975_v19  ;;  %v13990_v60 = vadd.f32 %v13535_v2, %v5452_v22  ;;  %v13993_v43 = vadd.f32 %v13514_v41, %v5459_v27  ;;  %v5480_v55 = vmax.f32 %v5478_v9, %v5479_v4 }
 0x319   :  { %15787 = vst [vmem:[#allocation89_spill] sm:$0xff] %v13978_v58  ;;  %15788 = vst [vmem:[#allocation90_spill] sm:$0xff] %v13981_v6  ;;  %v13996_v26 = vadd.f32 %v13533_v29, %v5466_v40  ;;  %v13999_v44 = vadd.f32 %v13520_v56, %v5473_v51  ;;  %v4324_v36 = vcombine.low %v13863_v3, %v13869_v21 }
 0x31a   :  { %15789 = vst [vmem:[#allocation91_spill] sm:$0xff] %v13984_v0  ;;  %15790 = vst [vmem:[#allocation92_spill] sm:$0xff] %v13987_v34  ;;  %v4325_v35 = vcombine.high %v13863_v3, %v13869_v21  ;;  %v4326_v52 = vcombine.low %v13866_v30, %v13872_v23  ;;  %v4327_v48 = vcombine.high %v13866_v30, %v13872_v23 }
 0x31b   :  { %15791 = vst [vmem:[#allocation93_spill] sm:$0xff] %v13990_v60  ;;  %15792 = vst [vmem:[#allocation94_spill] sm:$0xff] %v13993_v43  ;;  %v12095_v17 = vcombine.low %v13869_v21, %v13869_v21  ;;  %v14012_v7 = vadd.f32 %v13535_v2, %v5480_v55  ;;  %v4683_v62 = vrot.slane %v4324_v36, %v13511_v39 }
 0x31c   :  { %15793 = vst [vmem:[#allocation95_spill] sm:$0xff] %v13996_v26  ;;  %15794 = vst [vmem:[#allocation96_spill] sm:$0xff] %v13999_v44  ;;  %v12096_v5 = vcombine.high %v13869_v21, %v13869_v21  ;;  %v12097_v3 = vcombine.low %v13872_v23, %v13872_v23  ;;  %v4700_v38 = vrot.slane %v4325_v35, %v13511_v39 }
 0x31d   :  { %15795 = vst [vmem:[#allocation97_spill] sm:$0xff] %v14012_v7  ;;  %v4690_v37 = vrot.slane %v12095_v17, %v13511_v39  ;;  %v14022_v30 = vrot.slane %v4326_v52, %v13511_v39  ;;  %v12098_v54 = vcombine.high %v13872_v23, %v13872_v23  ;;  %v4691_v12 = vcombine.high %v4683_v62, %v4683_v62 }
 0x31e   :  { %v4707_v8 = vrot.slane %v12096_v5, %v13511_v39  ;;  %v14028_v53 = vrot.slane %v12097_v3, %v13511_v39  ;;  %v14031_v21 = vrot.slane %v4327_v48, %v13511_v39  ;;  %v4708_v22 = vcombine.high %v4700_v38, %v4700_v38 }
 0x31f   :  { %v4692_v46 = vcombine.high %v4690_v37, %v4690_v37  ;;  %v14036_v27 = vrot.slane %v12098_v54, %v13511_v39  ;;  %v5481_v51 = vsel %vm5144_vm2, %v4683_v62, -inf  ;;  %v5488_v36 = vsel %vm5144_vm2, %v4691_v12, -inf }
 0x320   :  { %v4709_v40 = vcombine.high %v4707_v8, %v4707_v8  ;;  %v5482_v55 = vrot.slane %v5481_v51, 4  ;;  %v5495_v35 = vsel %vm5144_vm2, %v4690_v37, -inf  ;;  %v5489_v52 = vrot.slane %v5488_v36, 4 }
 0x321   :  { %v5496_v48 = vrot.slane %v5495_v35, 4  ;;  %v5502_v17 = vsel %vm5144_vm2, %v4692_v46, -inf  ;;  %v5509_v5 = vsel %vm5144_vm2, %v4700_v38, -inf  ;;  %v5516_v9 = vsel %vm5144_vm2, %v4708_v22, -inf  ;;  %v14054_v22 = vpop.f32.mrb[30].mxu1 }
 0x322   :  { %v5483_v3 = vmax.f32 %v5481_v51, %v5482_v55  ;;  %v5503_v54 = vrot.slane %v5502_v17, 4  ;;  %v5510_v23 = vrot.slane %v5509_v5, 4  ;;  %v5490_v62 = vmax.f32 %v5488_v36, %v5489_v52 }
 0x323   :  { %v5497_v1 = vmax.f32 %v5495_v35, %v5496_v48  ;;  %v5517_v44 = vrot.slane %v5516_v9, 4  ;;  %v5523_v4 = vsel %vm5144_vm2, %v4707_v8, -inf  ;;  %v5530_v46 = vsel %vm5144_vm2, %v4709_v40, -inf  ;;  %v14056_v48 = vpop.f32.mrb[31].mxu0 }
 0x324   :  { %v5484_v34 = vrot.slane %v5483_v3, 2  ;;  %v5504_v12 = vmax.f32 %v5502_v17, %v5503_v54  ;;  %v5511_v19 = vmax.f32 %v5509_v5, %v5510_v23  ;;  %v5524_v37 = vrot.slane %v5523_v4, 4  ;;  %v14058_v23 = vpop.f32.mrb[31].mxu1 }
 0x325   :  { %v5491_v11 = vrot.slane %v5490_v62, 2  ;;  %v5498_v7 = vrot.slane %v5497_v1, 2  ;;  %v5518_v60 = vmax.f32 %v5516_v9, %v5517_v44  ;;  %v5531_v52 = vrot.slane %v5530_v46, 4 }
 0x326   :  { %v5485_v38 = vmax.f32 %v5483_v3, %v5484_v34  ;;  %v5505_v51 = vrot.slane %v5504_v12, 2  ;;  %v5512_v55 = vrot.slane %v5511_v19, 2  ;;  %v5525_v58 = vmax.f32 %v5523_v4, %v5524_v37 }
 0x327   :  { %v5492_v36 = vmax.f32 %v5490_v62, %v5491_v11  ;;  %v5499_v35 = vmax.f32 %v5497_v1, %v5498_v7  ;;  %v5519_v8 = vrot.slane %v5518_v60, 2  ;;  %v5532_v4 = vmax.f32 %v5530_v46, %v5531_v52 }
 0x328   :  { %v5486_v17 = vrot.slane %v5485_v38, 1  ;;  %v5506_v44 = vmax.f32 %v5504_v12, %v5505_v51  ;;  %v5513_v9 = vmax.f32 %v5511_v19, %v5512_v55  ;;  %v5526_v40 = vrot.slane %v5525_v58, 2 }
 0x329   :  { %v5493_v34 = vrot.slane %v5492_v36, 1  ;;  %v5500_v5 = vrot.slane %v5499_v35, 1  ;;  %v5520_v3 = vmax.f32 %v5518_v60, %v5519_v8  ;;  %v5533_v6 = vrot.slane %v5532_v4, 2 }
 0x32a   :  { %v14060_v54 = vmax.f32 %v5485_v38, %v5486_v17  ;;  %v5507_v37 = vrot.slane %v5506_v44, 1  ;;  %v5514_v43 = vrot.slane %v5513_v9, 1  ;;  %v5527_v11 = vmax.f32 %v5525_v58, %v5526_v40 }
 0x32b   :  { %v14062_v7 = vmax.f32 %v5492_v36, %v5493_v34  ;;  %v14064_v1 = vmax.f32 %v5499_v35, %v5500_v5  ;;  %v5521_v62 = vrot.slane %v5520_v3, 1  ;;  %v5537_v19 = vsel %vm5144_vm2, %v14022_v30, -inf }
 0x32c   :  { %v5508_v14 = vmax.f32 %v5506_v44, %v5507_v37  ;;  %v5515_v31 = vmax.f32 %v5513_v9, %v5514_v43  ;;  %v5528_v12 = vrot.slane %v5527_v11, 1  ;;  %v5534_v60 = vmax.f32 %v5532_v4, %v5533_v6 }
 0x32d   :  { %v14068_v51 = vmax.f32 %v5520_v3, %v5521_v62  ;;  %v5538_v46 = vrot.slane %v5537_v19, 4  ;;  %v15796_v38 = vcombine.high %v14022_v30, %v14022_v30  ;;  %v5551_v35 = vsel %vm5144_vm2, %v14028_v53, -inf }
 0x32e   :  { %v5529_v55 = vmax.f32 %v5527_v11, %v5528_v12  ;;  %v15797_v43 = vcombine.high %v14028_v53, %v14028_v53  ;;  %v5535_v52 = vrot.slane %v5534_v60, 1  ;;  %v5552_v44 = vrot.slane %v5551_v35, 4 }
 0x32f   :  { %v5544_v58 = vsel %vm5144_vm2, %v15796_v38, -inf  ;;  %v5539_v17 = vmax.f32 %v5537_v19, %v5538_v46  ;;  %v5565_v30 = vsel %vm5144_vm2, %v14031_v21, -inf  ;;  %v15798_v40 = vcombine.high %v14031_v21, %v14031_v21 }
 0x330   :  { %v5545_v36 = vrot.slane %v5544_v58, 4  ;;  %v5558_v8 = vsel %vm5144_vm2, %v15797_v43, -inf  ;;  %v5579_v5 = vsel %vm5144_vm2, %v14036_v27, -inf  ;;  %v5536_v3 = vmax.f32 %v5534_v60, %v5535_v52 }
 0x331   :  { %v5559_v6 = vrot.slane %v5558_v8, 4  ;;  %v5572_v34 = vsel %vm5144_vm2, %v15798_v40, -inf  ;;  %v5540_v53 = vrot.slane %v5539_v17, 2  ;;  %v5553_v4 = vmax.f32 %v5551_v35, %v5552_v44 }
 0x332   :  { %v5546_v9 = vmax.f32 %v5544_v58, %v5545_v36  ;;  %v5566_v62 = vrot.slane %v5565_v30, 4  ;;  %v5573_v12 = vrot.slane %v5572_v34, 4  ;;  %v5580_v19 = vrot.slane %v5579_v5, 4 }
 0x333   :  { %v5560_v37 = vmax.f32 %v5558_v8, %v5559_v6  ;;  %v5541_v46 = vmax.f32 %v5539_v17, %v5540_v53  ;;  %v5554_v38 = vrot.slane %v5553_v4, 2  ;;  %v15799_v36 = vcombine.high %v14036_v27, %v14036_v27 }
 0x334   :  { %v5547_v11 = vrot.slane %v5546_v9, 2  ;;  %v5567_v40 = vmax.f32 %v5565_v30, %v5566_v62  ;;  %v5574_v59 = vmax.f32 %v5572_v34, %v5573_v12  ;;  %v5581_v42 = vmax.f32 %v5579_v5, %v5580_v19 }
 0x335   :  { %v5561_v58 = vrot.slane %v5560_v37, 2  ;;  %v5586_v21 = vsel %vm5144_vm2, %v15799_v36, -inf  ;;  %v5542_v60 = vrot.slane %v5541_v46, 1  ;;  %v5555_v52 = vmax.f32 %v5553_v4, %v5554_v38 }
 0x336   :  { %v5548_v43 = vmax.f32 %v5546_v9, %v5547_v11  ;;  %v5587_v8 = vrot.slane %v5586_v21, 4  ;;  %v5568_v6 = vrot.slane %v5567_v40, 2  ;;  %v5575_v33 = vrot.slane %v5574_v59, 2 }
 0x337   :  { %v5562_v35 = vmax.f32 %v5560_v37, %v5561_v58  ;;  %v5582_v10 = vrot.slane %v5581_v42, 2  ;;  %v5543_v17 = vmax.f32 %v5541_v46, %v5542_v60  ;;  %v5556_v53 = vrot.slane %v5555_v52, 1  ;;  %v15811_v58 = vld [vmem:[#allocation55_spill] sm:$0xff]  ;;  %v15814_v60 = vld [vmem:[#allocation38_spill] sm:$0xff] }
 0x338   :  { %v5549_v44 = vrot.slane %v5548_v43, 1  ;;  %v5588_v0 = vmax.f32 %v5586_v21, %v5587_v8  ;;  %v5569_v27 = vmax.f32 %v5567_v40, %v5568_v6  ;;  %v5576_v49 = vmax.f32 %v5574_v59, %v5575_v33  ;;  %v15812_v21 = vld [vmem:[#allocation36_spill] sm:$0xff] }
 0x339   :  { %v5563_v26 = vrot.slane %v5562_v35, 1  ;;  %v5583_v36 = vmax.f32 %v5581_v42, %v5582_v10  ;;  %v5557_v9 = vmax.f32 %v5555_v52, %v5556_v53  ;;  %v14094_v5 = vadd.f32 %v13514_v41, %v14060_v54 }
 0x33a   :  { %v5550_v20 = vmax.f32 %v5548_v43, %v5549_v44  ;;  %v5589_v34 = vrot.slane %v5588_v0, 2  ;;  %v5570_v4 = vrot.slane %v5569_v27, 1  ;;  %v5577_v37 = vrot.slane %v5576_v49, 1  ;;  %v15813_v43 = vld [vmem:[#allocation37_spill] sm:$0xff]  ;;  %v15816_v44 = vld [vmem:[#allocation40_spill] sm:$0xff] }
 0x33b   :  { %v5564_v30 = vmax.f32 %v5562_v35, %v5563_v26  ;;  %v5584_v11 = vrot.slane %v5583_v36, 1  ;;  %v14098_v62 = vadd.f32 %v13533_v29, %v14062_v7  ;;  %v14102_v19 = vadd.f32 %v13520_v56, %v14064_v1  ;;  %v15815_v35 = vld [vmem:[#allocation39_spill] sm:$0xff] }
 0x33c   :  { %v5590_v12 = vmax.f32 %v5588_v0, %v5589_v34  ;;  %v14105_v33 = vadd.f32 %v13535_v2, %v5508_v14  ;;  %v14108_v42 = vadd.f32 %v13514_v41, %v5515_v31  ;;  %v5571_v10 = vmax.f32 %v5569_v27, %v5570_v4 }
 0x33d   :  { %15800 = vst [vmem:[#allocation98_spill] sm:$0xff] %v14102_v19  ;;  %v5578_v59 = vmax.f32 %v5576_v49, %v5577_v37  ;;  %v5585_v26 = vmax.f32 %v5583_v36, %v5584_v11  ;;  %v14112_v54 = vadd.f32 %v13533_v29, %v14068_v51  ;;  %v14115_v0 = vadd.f32 %v13520_v56, %v5529_v55  ;;  %v15818_v36 = vld [vmem:[#allocation72_spill] sm:$0xff] }
 0x33e   :  { %15801 = vst [vmem:[#allocation99_spill] sm:$0xff] %v14105_v33  ;;  %v5591_v7 = vrot.slane %v5590_v12, 1  ;;  %v14118_v1 = vadd.f32 %v13535_v2, %v5536_v3  ;;  %v14121_v14 = vadd.f32 %v13514_v41, %v5543_v17  ;;  %v14124_v31 = vadd.f32 %v13533_v29, %v5550_v20 }
 0x33f   :  { %15802 = vst [vmem:[#allocation100_spill] sm:$0xff] %v14115_v0  ;;  %v14127_v49 = vadd.f32 %v13520_v56, %v5557_v9  ;;  %v14130_v46 = vadd.f32 %v13535_v2, %v5564_v30  ;;  %v14133_v51 = vadd.f32 %v13514_v41, %v5571_v10  ;;  %v14136_v38 = vadd.f32 %v13533_v29, %v5578_v59  ;;  %v15819_v9 = vld [vmem:[#allocation41_spill] sm:$0xff] }
 0x340   :  { %15803 = vst [vmem:[#allocation101_spill] sm:$0xff] %v14118_v1  ;;  %15804 = vst [vmem:[#allocation102_spill] sm:$0xff] %v14121_v14  ;;  %v5592_v55 = vmax.f32 %v5590_v12, %v5591_v7  ;;  %v14139_v3 = vadd.f32 %v13520_v56, %v5585_v26  ;;  %v4137_v20 = vmax.f32 %v15812_v21, %v15811_v58  ;;  %v15820_v7 = vld [vmem:[#allocation42_spill] sm:$0xff]  ;;  %v15821_v58 = vld [vmem:[#allocation43_spill] sm:$0xff] }
 0x341   :  { %15805 = vst [vmem:[#allocation103_spill] sm:$0xff] %v14124_v31  ;;  %15806 = vst [vmem:[#allocation104_spill] sm:$0xff] %v14127_v49  ;;  %v4139_v40 = vmax.f32 %v15813_v43, %v13633_v32  ;;  %v4140_v52 = vmax.f32 %v15814_v60, %v13745_v18  ;;  %v4142_v8 = vmax.f32 %v15815_v35, %v13747_v45 }
 0x342   :  { %15807 = vst [vmem:[#allocation105_spill] sm:$0xff] %v14130_v46  ;;  %15808 = vst [vmem:[#allocation106_spill] sm:$0xff] %v14133_v51  ;;  %v4141_v6 = vmax.f32 %v15816_v44, %v13749_v63  ;;  %v14152_v17 = vadd.f32 %v13535_v2, %v5592_v55  ;;  %v4328_v53 = vcombine.low %v13856_v57, %v4137_v20 }
 0x343   :  { %15809 = vst [vmem:[#allocation107_spill] sm:$0xff] %v14136_v38  ;;  %15810 = vst [vmem:[#allocation108_spill] sm:$0xff] %v14139_v3  ;;  %v4329_v27 = vcombine.high %v13856_v57, %v4137_v20  ;;  %v4143_v30 = vmax.f32 %v15819_v9, %v15818_v36  ;;  %v4330_v32 = vcombine.low %v13860_v25, %v4139_v40 }
 0x344   :  { %15817 = vst [vmem:[#allocation55_spill] sm:$0xff] %v14152_v17  ;;  %v4331_v18 = vcombine.high %v13860_v25, %v4139_v40  ;;  %v4364_v34 = vcombine.low %v4140_v52, %v4141_v6  ;;  %v4365_v4 = vcombine.high %v4140_v52, %v4141_v6  ;;  %v4338_v45 = vrot.slane %v4328_v53, %v13511_v39 }
 0x345   :  { %v4345_v63 = vrot.slane %v4329_v27, %v13511_v39  ;;  %v4366_v37 = vcombine.low %v4142_v8, %v4143_v30  ;;  %v4367_v11 = vcombine.high %v4142_v8, %v4143_v30  ;;  %v4352_v12 = vrot.slane %v4330_v32, %v13511_v39 }
 0x346   :  { %v4359_v10 = vrot.slane %v4331_v18, %v13511_v39  ;;  %v14165_v57 = vrot.slane %v4364_v34, %v13511_v39  ;;  %v14168_v59 = vrot.slane %v4365_v4, %v13511_v39  ;;  %v14178_v55 = vmax.f32 %v15820_v7, %v13906_v50 }
 0x347   :  { %v14171_v25 = vrot.slane %v4366_v37, %v13511_v39  ;;  %v14174_v26 = vrot.slane %v4367_v11, %v13511_v39  ;;  %v14182_v21 = vmax.f32 %v15821_v58, %v13908_v47  ;;  %v4360_v20 = vcombine.low %v4338_v45, %v4352_v12 }
 0x348   :  { %v4361_v43 = vcombine.high %v4338_v45, %v4352_v12  ;;  %v4362_v40 = vcombine.low %v4345_v63, %v4359_v10  ;;  %v4363_v60 = vcombine.high %v4345_v63, %v4359_v10  ;;  %v12099_v52 = vcombine.low %v4352_v12, %v4352_v12 }
 0x349   :  { %v12100_v35 = vcombine.high %v4352_v12, %v4352_v12  ;;  %v12101_v8 = vcombine.low %v4359_v10, %v4359_v10  ;;  %v12102_v44 = vcombine.high %v4359_v10, %v4359_v10  ;;  %v4751_v6 = vrot.slane %v4360_v20, %v13511_v39 }
 0x34a   :  { %v4768_v53 = vrot.slane %v4361_v43, %v13511_v39  ;;  %v14187_v27 = vrot.slane %v4362_v40, %v13511_v39  ;;  %v14190_v50 = vrot.slane %v4363_v60, %v13511_v39  ;;  %v4758_v47 = vrot.slane %v12099_v52, %v13511_v39 }
 0x34b   :  { %v4775_v36 = vrot.slane %v12100_v35, %v13511_v39  ;;  %v14195_v9 = vrot.slane %v12101_v8, %v13511_v39  ;;  %v14198_v30 = vrot.slane %v12102_v44, %v13511_v39  ;;  %v4759_v32 = vcombine.high %v4751_v6, %v4751_v6 }
 0x34c   :  { %v4776_v18 = vcombine.high %v4768_v53, %v4768_v53  ;;  %v4793_v34 = vcombine.high %v14187_v27, %v14187_v27  ;;  %v4760_v45 = vcombine.high %v4758_v47, %v4758_v47  ;;  %v5593_v12 = vsel %vm5144_vm2, %v4751_v6, -inf }
 0x34d   :  { %v4777_v63 = vcombine.high %v4775_v36, %v4775_v36  ;;  %v5600_v10 = vsel %vm5144_vm2, %v4759_v32, -inf  ;;  %v5607_v7 = vsel %vm5144_vm2, %v4758_v47, -inf  ;;  %v5621_v58 = vsel %vm5144_vm2, %v4768_v53, -inf }
 0x34e   :  { %v5594_v20 = vrot.slane %v5593_v12, 4  ;;  %v5601_v43 = vrot.slane %v5600_v10, 4  ;;  %v5608_v40 = vrot.slane %v5607_v7, 4  ;;  %v5614_v60 = vsel %vm5144_vm2, %v4760_v45, -inf }
 0x34f   :  { %v5615_v52 = vrot.slane %v5614_v60, 4  ;;  %v5622_v35 = vrot.slane %v5621_v58, 4  ;;  %v5628_v8 = vsel %vm5144_vm2, %v4776_v18, -inf  ;;  %v5635_v44 = vsel %vm5144_vm2, %v4775_v36, -inf }
 0x350   :  { %v5595_v11 = vmax.f32 %v5593_v12, %v5594_v20  ;;  %v5602_v4 = vmax.f32 %v5600_v10, %v5601_v43  ;;  %v5609_v6 = vmax.f32 %v5607_v7, %v5608_v40  ;;  %v5629_v37 = vrot.slane %v5628_v8, 4 }
 0x351   :  { %v5616_v32 = vmax.f32 %v5614_v60, %v5615_v52  ;;  %v5623_v49 = vmax.f32 %v5621_v58, %v5622_v35  ;;  %v5636_v47 = vrot.slane %v5635_v44, 4  ;;  %v5642_v53 = vsel %vm5144_vm2, %v4777_v63, -inf }
 0x352   :  { %v5596_v46 = vrot.slane %v5595_v11, 2  ;;  %v5603_v3 = vrot.slane %v5602_v4, 2  ;;  %v5610_v17 = vrot.slane %v5609_v6, 2  ;;  %v5630_v14 = vmax.f32 %v5628_v8, %v5629_v37 }
 0x353   :  { %v5617_v45 = vrot.slane %v5616_v32, 2  ;;  %v5624_v31 = vrot.slane %v5623_v49, 2  ;;  %v5637_v51 = vmax.f32 %v5635_v44, %v5636_v47  ;;  %v5643_v38 = vrot.slane %v5642_v53, 4 }
 0x354   :  { %v5597_v18 = vmax.f32 %v5595_v11, %v5596_v46  ;;  %v5604_v0 = vmax.f32 %v5602_v4, %v5603_v3  ;;  %v5611_v36 = vmax.f32 %v5609_v6, %v5610_v17  ;;  %v5631_v12 = vrot.slane %v5630_v14, 2 }
 0x355   :  { %v5618_v10 = vmax.f32 %v5616_v32, %v5617_v45  ;;  %v5625_v7 = vmax.f32 %v5623_v49, %v5624_v31  ;;  %v5638_v20 = vrot.slane %v5637_v51, 2  ;;  %v5644_v43 = vmax.f32 %v5642_v53, %v5643_v38 }
 0x356   :  { %v5598_v58 = vrot.slane %v5597_v18, 1  ;;  %v5605_v40 = vrot.slane %v5604_v0, 1  ;;  %v5612_v60 = vrot.slane %v5611_v36, 1  ;;  %v5632_v63 = vmax.f32 %v5630_v14, %v5631_v12 }
 0x357   :  { %v5619_v52 = vrot.slane %v5618_v10, 1  ;;  %v5626_v35 = vrot.slane %v5625_v7, 1  ;;  %v5639_v19 = vmax.f32 %v5637_v51, %v5638_v20  ;;  %v5645_v37 = vrot.slane %v5644_v43, 2 }
 0x358   :  { %v5599_v8 = vmax.f32 %v5597_v18, %v5598_v58  ;;  %v5606_v1 = vmax.f32 %v5604_v0, %v5605_v40  ;;  %v14216_v44 = vmax.f32 %v5611_v36, %v5612_v60  ;;  %v5633_v46 = vrot.slane %v5632_v63, 1 }
 0x359   :  { %v14218_v3 = vmax.f32 %v5618_v10, %v5619_v52  ;;  %v14220_v17 = vmax.f32 %v5625_v7, %v5626_v35  ;;  %v5640_v31 = vrot.slane %v5639_v19, 1  ;;  %v5646_v49 = vmax.f32 %v5644_v43, %v5645_v37 }
 0x35a   :  { %v14222_v38 = vmax.f32 %v5632_v63, %v5633_v46  ;;  %v5649_v14 = vsel %vm5144_vm2, %v14187_v27, -inf  ;;  %v5656_v4 = vsel %vm5144_vm2, %v4793_v34, -inf  ;;  %v5663_v51 = vsel %vm5144_vm2, %v14195_v9, -inf }
 0x35b   :  { %v5641_v0 = vmax.f32 %v5639_v19, %v5640_v31  ;;  %v5647_v11 = vrot.slane %v5646_v49, 1  ;;  %v5650_v6 = vrot.slane %v5649_v14, 4  ;;  %v5657_v32 = vrot.slane %v5656_v4, 4 }
 0x35c   :  { %v5664_v47 = vrot.slane %v5663_v51, 4  ;;  %v15822_v53 = vcombine.high %v14195_v9, %v14195_v9  ;;  %v5677_v18 = vsel %vm5144_vm2, %v14190_v50, -inf  ;;  %v15823_v27 = vcombine.high %v14190_v50, %v14190_v50 }
 0x35d   :  { %v5648_v36 = vmax.f32 %v5646_v49, %v5647_v11  ;;  %v5651_v12 = vmax.f32 %v5649_v14, %v5650_v6  ;;  %v5658_v19 = vmax.f32 %v5656_v4, %v5657_v32  ;;  %v5678_v20 = vrot.slane %v5677_v18, 4 }
 0x35e   :  { %v5670_v45 = vsel %vm5144_vm2, %v15822_v53, -inf  ;;  %v5684_v34 = vsel %vm5144_vm2, %v15823_v27, -inf  ;;  %v5665_v7 = vmax.f32 %v5663_v51, %v5664_v47  ;;  %v5691_v9 = vsel %vm5144_vm2, %v14198_v30, -inf }
 0x35f   :  { %v5671_v10 = vrot.slane %v5670_v45, 4  ;;  %v5685_v43 = vrot.slane %v5684_v34, 4  ;;  %v5652_v58 = vrot.slane %v5651_v12, 2  ;;  %v5659_v40 = vrot.slane %v5658_v19, 2 }
 0x360   :  { %v5692_v63 = vrot.slane %v5691_v9, 4  ;;  %v5666_v52 = vrot.slane %v5665_v7, 2  ;;  %v5679_v35 = vmax.f32 %v5677_v18, %v5678_v20  ;;  %v15824_v50 = vcombine.high %v14198_v30, %v14198_v30 }
 0x361   :  { %v5672_v60 = vmax.f32 %v5670_v45, %v5671_v10  ;;  %v5686_v37 = vmax.f32 %v5684_v34, %v5685_v43  ;;  %v5653_v31 = vmax.f32 %v5651_v12, %v5652_v58  ;;  %v5660_v49 = vmax.f32 %v5658_v19, %v5659_v40 }
 0x362   :  { %v5698_v46 = vsel %vm5144_vm2, %v15824_v50, -inf  ;;  %v5693_v4 = vmax.f32 %v5691_v9, %v5692_v63  ;;  %v5667_v51 = vmax.f32 %v5665_v7, %v5666_v52  ;;  %v5680_v11 = vrot.slane %v5679_v35, 2 }
 0x363   :  { %v5673_v14 = vrot.slane %v5672_v60, 2  ;;  %v5687_v6 = vrot.slane %v5686_v37, 2  ;;  %v5699_v32 = vrot.slane %v5698_v46, 4  ;;  %v5654_v47 = vrot.slane %v5653_v31, 1 }
 0x364   :  { %v5661_v53 = vrot.slane %v5660_v49, 1  ;;  %v5694_v27 = vrot.slane %v5693_v4, 2  ;;  %v5668_v10 = vrot.slane %v5667_v51, 1  ;;  %v5681_v18 = vmax.f32 %v5679_v35, %v5680_v11 }
 0x365   :  { %v5674_v45 = vmax.f32 %v5672_v60, %v5673_v14  ;;  %v5688_v34 = vmax.f32 %v5686_v37, %v5687_v6  ;;  %v5700_v20 = vmax.f32 %v5698_v46, %v5699_v32  ;;  %v5655_v43 = vmax.f32 %v5653_v31, %v5654_v47 }
 0x366   :  { %v5662_v30 = vmax.f32 %v5660_v49, %v5661_v53  ;;  %v5695_v50 = vmax.f32 %v5693_v4, %v5694_v27  ;;  %v5669_v12 = vmax.f32 %v5667_v51, %v5668_v10  ;;  %v5682_v19 = vrot.slane %v5681_v18, 1 }
 0x367   :  { %v5675_v33 = vrot.slane %v5674_v45, 1  ;;  %v5689_v58 = vrot.slane %v5688_v34, 1  ;;  %v5701_v9 = vrot.slane %v5700_v20, 2  ;;  %v14246_v63 = vadd.f32 %v13514_v41, %v5599_v8 }
 0x368   :  { %v5696_v40 = vrot.slane %v5695_v50, 1  ;;  %v14249_v60 = vadd.f32 %v13533_v29, %v5606_v1  ;;  %v5683_v52 = vmax.f32 %v5681_v18, %v5682_v19  ;;  %v14253_v46 = vadd.f32 %v13520_v56, %v14216_v44 }
 0x369   :  { %v5676_v7 = vmax.f32 %v5674_v45, %v5675_v33  ;;  %15825 = vst [vmem:[#allocation36_spill] sm:$0xff] %v14246_v63  ;;  %v5690_v35 = vmax.f32 %v5688_v34, %v5689_v58  ;;  %v5702_v37 = vmax.f32 %v5700_v20, %v5701_v9  ;;  %v14257_v49 = vadd.f32 %v13535_v2, %v14218_v3 }
 0x36a   :  { %15826 = vst [vmem:[#allocation37_spill] sm:$0xff] %v14253_v46  ;;  %v5697_v31 = vmax.f32 %v5695_v50, %v5696_v40  ;;  %v14261_v33 = vadd.f32 %v13514_v41, %v14220_v17  ;;  %v14265_v1 = vadd.f32 %v13533_v29, %v14222_v38  ;;  %v14268_v14 = vadd.f32 %v13520_v56, %v5641_v0 }
 0x36b   :  { %15827 = vst [vmem:[#allocation38_spill] sm:$0xff] %v14257_v49  ;;  %v5703_v8 = vrot.slane %v5702_v37, 1  ;;  %v14271_v44 = vadd.f32 %v13535_v2, %v5648_v36  ;;  %v14274_v4 = vadd.f32 %v13514_v41, %v5655_v43  ;;  %v14277_v3 = vadd.f32 %v13533_v29, %v5662_v30 }
 0x36c   :  { %15828 = vst [vmem:[#allocation39_spill] sm:$0xff] %v14261_v33  ;;  %15829 = vst [vmem:[#allocation40_spill] sm:$0xff] %v14268_v14  ;;  %v14280_v17 = vadd.f32 %v13520_v56, %v5669_v12  ;;  %v14283_v51 = vadd.f32 %v13535_v2, %v5676_v7  ;;  %v14286_v38 = vadd.f32 %v13514_v41, %v5683_v52 }
 0x36d   :  { %15830 = vst [vmem:[#allocation72_spill] sm:$0xff] %v14271_v44  ;;  %15831 = vst [vmem:[#allocation41_spill] sm:$0xff] %v14274_v4  ;;  %v5704_v0 = vmax.f32 %v5702_v37, %v5703_v8  ;;  %v14289_v11 = vadd.f32 %v13533_v29, %v5690_v35  ;;  %v14292_v36 = vadd.f32 %v13520_v56, %v5697_v31 }
 0x36e   :  { %15832 = vst [vmem:[#allocation42_spill] sm:$0xff] %v14277_v3  ;;  %15833 = vst [vmem:[#allocation43_spill] sm:$0xff] %v14280_v17  ;;  %v4396_v6 = vcombine.low %v14165_v57, %v14171_v25  ;;  %v4397_v32 = vcombine.high %v14165_v57, %v14171_v25  ;;  %v4398_v47 = vcombine.low %v14168_v59, %v14174_v26 }
 0x36f   :  { %15834 = vst [vmem:[#allocation109_spill] sm:$0xff] %v14283_v51  ;;  %15835 = vst [vmem:[#allocation110_spill] sm:$0xff] %v14286_v38  ;;  %v4399_v53 = vcombine.high %v14168_v59, %v14174_v26  ;;  %v12103_v45 = vcombine.low %v14171_v25, %v14171_v25  ;;  %v14305_v27 = vadd.f32 %v13535_v2, %v5704_v0 }
 0x370   :  { %15836 = vst [vmem:[#allocation111_spill] sm:$0xff] %v14289_v11  ;;  %15837 = vst [vmem:[#allocation112_spill] sm:$0xff] %v14292_v36  ;;  %v4819_v10 = vrot.slane %v4396_v6, %v13511_v39  ;;  %v12104_v18 = vcombine.high %v14171_v25, %v14171_v25  ;;  %v12105_v57 = vcombine.low %v14174_v26, %v14174_v26 }
 0x371   :  { %15838 = vst [vmem:[#allocation113_spill] sm:$0xff] %v14305_v27  ;;  %v4826_v34 = vrot.slane %v12103_v45, %v13511_v39  ;;  %v4836_v20 = vrot.slane %v4397_v32, %v13511_v39  ;;  %v14315_v59 = vrot.slane %v4398_v47, %v13511_v39  ;;  %v12106_v43 = vcombine.high %v14174_v26, %v14174_v26 }
 0x372   :  { %v4827_v30 = vcombine.high %v4819_v10, %v4819_v10  ;;  %v4843_v50 = vrot.slane %v12104_v18, %v13511_v39  ;;  %v14321_v12 = vrot.slane %v12105_v57, %v13511_v39  ;;  %v14324_v25 = vrot.slane %v4399_v53, %v13511_v39 }
 0x373   :  { %v4828_v19 = vcombine.high %v4826_v34, %v4826_v34  ;;  %v4844_v58 = vcombine.high %v4836_v20, %v4836_v20  ;;  %v4861_v9 = vcombine.high %v14315_v59, %v14315_v59  ;;  %v14329_v7 = vrot.slane %v12106_v43, %v13511_v39 }
 0x374   :  { %v4845_v40 = vcombine.high %v4843_v50, %v4843_v50  ;;  %v4862_v26 = vcombine.high %v14321_v12, %v14321_v12  ;;  %v5705_v35 = vsel %vm5144_vm2, %v4819_v10, -inf  ;;  %v5712_v8 = vsel %vm5144_vm2, %v4827_v30, -inf }
 0x375   :  { %v5706_v31 = vrot.slane %v5705_v35, 4  ;;  %v5719_v0 = vsel %vm5144_vm2, %v4826_v34, -inf  ;;  %v5713_v6 = vrot.slane %v5712_v8, 4  ;;  %v5726_v47 = vsel %vm5144_vm2, %v4828_v19, -inf }
 0x376   :  { %v5720_v32 = vrot.slane %v5719_v0, 4  ;;  %v5733_v53 = vsel %vm5144_vm2, %v4836_v20, -inf  ;;  %v5727_v18 = vrot.slane %v5726_v47, 4  ;;  %v5740_v43 = vsel %vm5144_vm2, %v4844_v58, -inf }
 0x377   :  { %v5707_v45 = vmax.f32 %v5705_v35, %v5706_v31  ;;  %v5734_v57 = vrot.slane %v5733_v53, 4  ;;  %v5714_v10 = vmax.f32 %v5712_v8, %v5713_v6  ;;  %v5741_v36 = vrot.slane %v5740_v43, 4 }
 0x378   :  { %v5721_v52 = vmax.f32 %v5719_v0, %v5720_v32  ;;  %v5747_v37 = vsel %vm5144_vm2, %v4843_v50, -inf  ;;  %v5728_v30 = vmax.f32 %v5726_v47, %v5727_v18  ;;  %v5754_v19 = vsel %vm5144_vm2, %v4845_v40, -inf }
 0x379   :  { %v5708_v17 = vrot.slane %v5707_v45, 2  ;;  %v5735_v27 = vmax.f32 %v5733_v53, %v5734_v57  ;;  %v5748_v34 = vrot.slane %v5747_v37, 4  ;;  %v5715_v14 = vrot.slane %v5714_v10, 2 }
 0x37a   :  { %v5722_v46 = vrot.slane %v5721_v52, 2  ;;  %v5742_v51 = vmax.f32 %v5740_v43, %v5741_v36  ;;  %v5729_v35 = vrot.slane %v5728_v30, 2  ;;  %v5755_v0 = vrot.slane %v5754_v19, 4 }
 0x37b   :  { %v5709_v20 = vmax.f32 %v5707_v45, %v5708_v17  ;;  %v5736_v31 = vrot.slane %v5735_v27, 2  ;;  %v5749_v44 = vmax.f32 %v5747_v37, %v5748_v34  ;;  %v5716_v49 = vmax.f32 %v5714_v10, %v5715_v14 }
 0x37c   :  { %v5723_v58 = vmax.f32 %v5721_v52, %v5722_v46  ;;  %v5743_v8 = vrot.slane %v5742_v51, 2  ;;  %v5730_v32 = vmax.f32 %v5728_v30, %v5729_v35  ;;  %v5756_v57 = vmax.f32 %v5754_v19, %v5755_v0 }
 0x37d   :  { %v5710_v6 = vrot.slane %v5709_v20, 1  ;;  %v5737_v50 = vmax.f32 %v5735_v27, %v5736_v31  ;;  %v5750_v38 = vrot.slane %v5749_v44, 2  ;;  %v5717_v47 = vrot.slane %v5716_v49, 1 }
 0x37e   :  { %v5724_v53 = vrot.slane %v5723_v58, 1  ;;  %v5744_v18 = vmax.f32 %v5742_v51, %v5743_v8  ;;  %v5731_v36 = vrot.slane %v5730_v32, 1  ;;  %v5757_v14 = vrot.slane %v5756_v57, 2 }
 0x37f   :  { %v14345_v4 = vmax.f32 %v5709_v20, %v5710_v6  ;;  %v5738_v40 = vrot.slane %v5737_v50, 1  ;;  %v5751_v17 = vmax.f32 %v5749_v44, %v5750_v38  ;;  %v14347_v45 = vmax.f32 %v5716_v49, %v5717_v47 }
 0x380   :  { %v14349_v37 = vmax.f32 %v5723_v58, %v5724_v53  ;;  %v5745_v46 = vrot.slane %v5744_v18, 1  ;;  %v5732_v52 = vmax.f32 %v5730_v32, %v5731_v36  ;;  %v5761_v27 = vsel %vm5144_vm2, %v14315_v59, -inf }
 0x381   :  { %v5739_v43 = vmax.f32 %v5737_v50, %v5738_v40  ;;  %v5752_v10 = vrot.slane %v5751_v17, 1  ;;  %v5758_v51 = vmax.f32 %v5756_v57, %v5757_v14  ;;  %v5762_v34 = vrot.slane %v5761_v27, 4 }
 0x382   :  { %v14353_v30 = vmax.f32 %v5744_v18, %v5745_v46  ;;  %v5768_v19 = vsel %vm5144_vm2, %v4861_v9, -inf  ;;  %v5775_v49 = vsel %vm5144_vm2, %v14321_v12, -inf  ;;  %v5782_v38 = vsel %vm5144_vm2, %v4862_v26, -inf }
 0x383   :  { %v5753_v20 = vmax.f32 %v5751_v17, %v5752_v10  ;;  %v5769_v44 = vrot.slane %v5768_v19, 4  ;;  %v5759_v35 = vrot.slane %v5758_v51, 1  ;;  %v5763_v31 = vmax.f32 %v5761_v27, %v5762_v34 }
 0x384   :  { %v5776_v58 = vrot.slane %v5775_v49, 4  ;;  %v5783_v8 = vrot.slane %v5782_v38, 4  ;;  %v5789_v59 = vsel %vm5144_vm2, %v14324_v25, -inf  ;;  %v15839_v6 = vcombine.high %v14324_v25, %v14324_v25 }
 0x385   :  { %v5770_v0 = vmax.f32 %v5768_v19, %v5769_v44  ;;  %v5803_v32 = vsel %vm5144_vm2, %v14329_v7, -inf  ;;  %v5760_v50 = vmax.f32 %v5758_v51, %v5759_v35  ;;  %v5764_v12 = vrot.slane %v5763_v31, 2 }
 0x386   :  { %v5796_v9 = vsel %vm5144_vm2, %v15839_v6, -inf  ;;  %v5777_v47 = vmax.f32 %v5775_v49, %v5776_v58  ;;  %v5784_v26 = vmax.f32 %v5782_v38, %v5783_v8  ;;  %v5790_v18 = vrot.slane %v5789_v59, 4 }
 0x387   :  { %v5771_v53 = vrot.slane %v5770_v0, 2  ;;  %v5797_v57 = vrot.slane %v5796_v9, 4  ;;  %v5804_v36 = vrot.slane %v5803_v32, 4  ;;  %v5765_v40 = vmax.f32 %v5763_v31, %v5764_v12 }
 0x388   :  { %v5778_v17 = vrot.slane %v5777_v47, 2  ;;  %v5785_v46 = vrot.slane %v5784_v26, 2  ;;  %v15840_v14 = vcombine.high %v14329_v7, %v14329_v7  ;;  %v5791_v27 = vmax.f32 %v5789_v59, %v5790_v18 }
 0x389   :  { %v5772_v10 = vmax.f32 %v5770_v0, %v5771_v53  ;;  %v5798_v34 = vmax.f32 %v5796_v9, %v5797_v57  ;;  %v5805_v19 = vmax.f32 %v5803_v32, %v5804_v36  ;;  %v5766_v51 = vrot.slane %v5765_v40, 1 }
 0x38a   :  { %v5810_v25 = vsel %vm5144_vm2, %v15840_v14, -inf  ;;  %v5779_v44 = vmax.f32 %v5777_v47, %v5778_v17  ;;  %v5786_v49 = vmax.f32 %v5784_v26, %v5785_v46  ;;  %v5792_v58 = vrot.slane %v5791_v27, 2 }
 0x38b   :  { %v5811_v38 = vrot.slane %v5810_v25, 4  ;;  %v5773_v35 = vrot.slane %v5772_v10, 1  ;;  %v5799_v8 = vrot.slane %v5798_v34, 2  ;;  %v5806_v6 = vrot.slane %v5805_v19, 2 }
 0x38c   :  { %v5767_v31 = vmax.f32 %v5765_v40, %v5766_v51  ;;  %v5780_v12 = vrot.slane %v5779_v44, 1  ;;  %v5787_v33 = vrot.slane %v5786_v49, 1  ;;  %v5793_v7 = vmax.f32 %v5791_v27, %v5792_v58  ;;  %v15855_v58 = vld [vmem:[#allocation48_spill] sm:$0xff] }
 0x38d   :  { %v5812_v63 = vmax.f32 %v5810_v25, %v5811_v38  ;;  %v5774_v11 = vmax.f32 %v5772_v10, %v5773_v35  ;;  %v5800_v3 = vmax.f32 %v5798_v34, %v5799_v8  ;;  %v5807_v14 = vmax.f32 %v5805_v19, %v5806_v6  ;;  %v15851_v34 = vld [vmem:[#allocation44_spill] sm:$0xff]  ;;  %v15852_v19 = vld [vmem:[#allocation45_spill] sm:$0xff]  ;;  %v15854_v38 = vld [vmem:[#allocation47_spill] sm:$0xff] }
 0x38e   :  { %v5781_v0 = vmax.f32 %v5779_v44, %v5780_v12  ;;  %v5788_v59 = vmax.f32 %v5786_v49, %v5787_v33  ;;  %v14373_v32 = vadd.f32 %v13514_v41, %v14345_v4  ;;  %v5794_v47 = vrot.slane %v5793_v7, 1  ;;  %v15853_v44 = vld [vmem:[#allocation46_spill] sm:$0xff] }
 0x38f   :  { %v5813_v9 = vrot.slane %v5812_v63, 2  ;;  %v5801_v26 = vrot.slane %v5800_v3, 1  ;;  %v5808_v53 = vrot.slane %v5807_v14, 1  ;;  %v14377_v18 = vadd.f32 %v13533_v29, %v14347_v45 }
 0x390   :  { %v14381_v36 = vadd.f32 %v13520_v56, %v14349_v37  ;;  %v14384_v40 = vadd.f32 %v13535_v2, %v5732_v52  ;;  %v14387_v33 = vadd.f32 %v13514_v41, %v5739_v43  ;;  %v5795_v4 = vmax.f32 %v5793_v7, %v5794_v47 }
 0x391   :  { %v5814_v57 = vmax.f32 %v5812_v63, %v5813_v9  ;;  %v5802_v17 = vmax.f32 %v5800_v3, %v5801_v26  ;;  %v5809_v46 = vmax.f32 %v5807_v14, %v5808_v53  ;;  %v14391_v25 = vadd.f32 %v13533_v29, %v14353_v30 }
 0x392   :  { %15841 = vst [vmem:[#allocation114_spill] sm:$0xff] %v14381_v36  ;;  %15842 = vst [vmem:[#allocation115_spill] sm:$0xff] %v14384_v40  ;;  %v14394_v63 = vadd.f32 %v13520_v56, %v5753_v20  ;;  %v14397_v37 = vadd.f32 %v13535_v2, %v5760_v50  ;;  %v14400_v52 = vadd.f32 %v13514_v41, %v5767_v31 }
 0x393   :  { %15843 = vst [vmem:[#allocation116_spill] sm:$0xff] %v14387_v33  ;;  %v5815_v45 = vrot.slane %v5814_v57, 1  ;;  %v14403_v43 = vadd.f32 %v13533_v29, %v5774_v11  ;;  %v14406_v3 = vadd.f32 %v13520_v56, %v5781_v0  ;;  %v14409_v10 = vadd.f32 %v13535_v2, %v5788_v59 }
 0x394   :  { %15844 = vst [vmem:[#allocation117_spill] sm:$0xff] %v14394_v63  ;;  %15845 = vst [vmem:[#allocation118_spill] sm:$0xff] %v14397_v37  ;;  %v14412_v30 = vadd.f32 %v13514_v41, %v5795_v4  ;;  %v14415_v27 = vadd.f32 %v13533_v29, %v5802_v17  ;;  %v14418_v50 = vadd.f32 %v13520_v56, %v5809_v46 }
 0x395   :  { %15846 = vst [vmem:[#allocation119_spill] sm:$0xff] %v14400_v52  ;;  %15847 = vst [vmem:[#allocation120_spill] sm:$0xff] %v14406_v3  ;;  %v5816_v20 = vmax.f32 %v5814_v57, %v5815_v45  ;;  %v4145_v11 = vmax.f32 %v15851_v34, %v13910_v15  ;;  %v4147_v51 = vmax.f32 %v15852_v19, %v13948_v16  ;;  %v15857_v15 = vld [vmem:[#allocation49_spill] sm:$0xff] }
 0x396   :  { %15848 = vst [vmem:[#allocation121_spill] sm:$0xff] %v14409_v10  ;;  %15849 = vst [vmem:[#allocation122_spill] sm:$0xff] %v14412_v30  ;;  %v4148_v49 = vmax.f32 %v15853_v44, %v14052_v61  ;;  %v4150_v35 = vmax.f32 %v15854_v38, %v14054_v22  ;;  %v4149_v8 = vmax.f32 %v15855_v58, %v14056_v48 }
 0x397   :  { %15850 = vst [vmem:[#allocation123_spill] sm:$0xff] %v14418_v50  ;;  %v14431_v6 = vadd.f32 %v13535_v2, %v5816_v20  ;;  %v4400_v31 = vcombine.low %v14178_v55, %v4145_v11  ;;  %v4401_v12 = vcombine.high %v14178_v55, %v4145_v11  ;;  %v4151_v7 = vmax.f32 %v15857_v15, %v14058_v23 }
 0x398   :  { %v4402_v16 = vcombine.low %v14182_v21, %v4147_v51  ;;  %v4403_v61 = vcombine.high %v14182_v21, %v4147_v51  ;;  %v4436_v14 = vcombine.low %v4148_v49, %v4149_v8  ;;  %v4437_v0 = vcombine.high %v4148_v49, %v4149_v8 }
 0x399   :  { %15856 = vst [vmem:[#allocation44_spill] sm:$0xff] %v14431_v6  ;;  %v4410_v22 = vrot.slane %v4400_v31, %v13511_v39  ;;  %v4417_v48 = vrot.slane %v4401_v12, %v13511_v39  ;;  %v4438_v59 = vcombine.low %v4150_v35, %v4151_v7  ;;  %v4439_v9 = vcombine.high %v4150_v35, %v4151_v7 }
 0x39a   :  { %v4424_v47 = vrot.slane %v4402_v16, %v13511_v39  ;;  %v4431_v26 = vrot.slane %v4403_v61, %v13511_v39  ;;  %v14444_v55 = vrot.slane %v4436_v14, %v13511_v39  ;;  %v14447_v23 = vrot.slane %v4437_v0, %v13511_v39 }
 0x39b   :  { %v14450_v21 = vrot.slane %v4438_v59, %v13511_v39  ;;  %v14453_v53 = vrot.slane %v4439_v9, %v13511_v39 }
 0x39c   :  { %v4432_v57 = vcombine.low %v4410_v22, %v4424_v47  ;;  %v4433_v4 = vcombine.high %v4410_v22, %v4424_v47  ;;  %v4434_v17 = vcombine.low %v4417_v48, %v4431_v26  ;;  %v4435_v46 = vcombine.high %v4417_v48, %v4431_v26 }
 0x39d   :  { %v12107_v45 = vcombine.low %v4424_v47, %v4424_v47  ;;  %v12108_v20 = vcombine.high %v4424_v47, %v4424_v47  ;;  %v12109_v34 = vcombine.low %v4431_v26, %v4431_v26  ;;  %v12110_v11 = vcombine.high %v4431_v26, %v4431_v26 }
 0x39e   :  { %v4887_v19 = vrot.slane %v4432_v57, %v13511_v39  ;;  %v4904_v51 = vrot.slane %v4433_v4, %v13511_v39  ;;  %v14458_v44 = vrot.slane %v4434_v17, %v13511_v39  ;;  %v14461_v49 = vrot.slane %v4435_v46, %v13511_v39 }
 0x39f   :  { %v4894_v38 = vrot.slane %v12107_v45, %v13511_v39  ;;  %v4911_v35 = vrot.slane %v12108_v20, %v13511_v39  ;;  %v14466_v58 = vrot.slane %v12109_v34, %v13511_v39  ;;  %v14469_v8 = vrot.slane %v12110_v11, %v13511_v39 }
 0x3a0   :  { %v4895_v31 = vcombine.high %v4887_v19, %v4887_v19  ;;  %v4912_v12 = vcombine.high %v4904_v51, %v4904_v51  ;;  %v4929_v15 = vcombine.high %v14458_v44, %v14458_v44  ;;  %v5817_v22 = vsel %vm5144_vm2, %v4887_v19, -inf }
 0x3a1   :  { %v4896_v16 = vcombine.high %v4894_v38, %v4894_v38  ;;  %v4913_v61 = vcombine.high %v4911_v35, %v4911_v35  ;;  %v5831_v59 = vsel %vm5144_vm2, %v4894_v38, -inf  ;;  %v5845_v9 = vsel %vm5144_vm2, %v4904_v51, -inf }
 0x3a2   :  { %v5824_v48 = vsel %vm5144_vm2, %v4895_v31, -inf  ;;  %v5818_v47 = vrot.slane %v5817_v22, 4  ;;  %v5832_v57 = vrot.slane %v5831_v59, 4  ;;  %v5846_v46 = vrot.slane %v5845_v9, 4 }
 0x3a3   :  { %v5825_v26 = vrot.slane %v5824_v48, 4  ;;  %v5838_v4 = vsel %vm5144_vm2, %v4896_v16, -inf  ;;  %v5852_v45 = vsel %vm5144_vm2, %v4912_v12, -inf  ;;  %v5859_v20 = vsel %vm5144_vm2, %v4911_v35, -inf }
 0x3a4   :  { %v5839_v17 = vrot.slane %v5838_v4, 4  ;;  %v5819_v34 = vmax.f32 %v5817_v22, %v5818_v47  ;;  %v5833_v19 = vmax.f32 %v5831_v59, %v5832_v57  ;;  %v5853_v0 = vrot.slane %v5852_v45, 4 }
 0x3a5   :  { %v5826_v11 = vmax.f32 %v5824_v48, %v5825_v26  ;;  %v5847_v7 = vmax.f32 %v5845_v9, %v5846_v46  ;;  %v5860_v38 = vrot.slane %v5859_v20, 4  ;;  %v5866_v51 = vsel %vm5144_vm2, %v4913_v61, -inf }
 0x3a6   :  { %v5840_v31 = vmax.f32 %v5838_v4, %v5839_v17  ;;  %v5820_v14 = vrot.slane %v5819_v34, 2  ;;  %v5834_v10 = vrot.slane %v5833_v19, 2  ;;  %v5854_v50 = vmax.f32 %v5852_v45, %v5853_v0 }
 0x3a7   :  { %v5827_v3 = vrot.slane %v5826_v11, 2  ;;  %v5848_v6 = vrot.slane %v5847_v7, 2  ;;  %v5861_v63 = vmax.f32 %v5859_v20, %v5860_v38  ;;  %v5867_v36 = vrot.slane %v5866_v51, 4 }
 0x3a8   :  { %v5841_v16 = vrot.slane %v5840_v31, 2  ;;  %v5821_v12 = vmax.f32 %v5819_v34, %v5820_v14  ;;  %v5835_v35 = vmax.f32 %v5833_v19, %v5834_v10  ;;  %v5855_v22 = vrot.slane %v5854_v50, 2 }
 0x3a9   :  { %v5828_v37 = vmax.f32 %v5826_v11, %v5827_v3  ;;  %v5849_v59 = vmax.f32 %v5847_v7, %v5848_v6  ;;  %v5862_v47 = vrot.slane %v5861_v63, 2  ;;  %v5868_v26 = vmax.f32 %v5866_v51, %v5867_v36 }
 0x3aa   :  { %v5842_v48 = vmax.f32 %v5840_v31, %v5841_v16  ;;  %v5822_v9 = vrot.slane %v5821_v12, 1  ;;  %v5836_v4 = vrot.slane %v5835_v35, 1  ;;  %v5856_v61 = vmax.f32 %v5854_v50, %v5855_v22 }
 0x3ab   :  { %v5829_v57 = vrot.slane %v5828_v37, 1  ;;  %v5850_v46 = vrot.slane %v5849_v59, 1  ;;  %v5863_v40 = vmax.f32 %v5861_v63, %v5862_v47  ;;  %v5869_v0 = vrot.slane %v5868_v26, 2 }
 0x3ac   :  { %v5843_v17 = vrot.slane %v5842_v48, 1  ;;  %v5823_v45 = vmax.f32 %v5821_v12, %v5822_v9  ;;  %v14487_v20 = vmax.f32 %v5835_v35, %v5836_v4  ;;  %v5857_v14 = vrot.slane %v5856_v61, 1 }
 0x3ad   :  { %v5830_v52 = vmax.f32 %v5828_v37, %v5829_v57  ;;  %v14491_v10 = vmax.f32 %v5849_v59, %v5850_v46  ;;  %v5864_v6 = vrot.slane %v5863_v40, 1  ;;  %v5870_v7 = vmax.f32 %v5868_v26, %v5869_v0 }
 0x3ae   :  { %v14489_v3 = vmax.f32 %v5842_v48, %v5843_v17  ;;  %v14493_v36 = vmax.f32 %v5856_v61, %v5857_v14  ;;  %v5873_v50 = vsel %vm5144_vm2, %v14458_v44, -inf  ;;  %v5880_v34 = vsel %vm5144_vm2, %v4929_v15, -inf }
 0x3af   :  { %v5887_v63 = vsel %vm5144_vm2, %v14466_v58, -inf  ;;  %v5865_v37 = vmax.f32 %v5863_v40, %v5864_v6  ;;  %v5871_v11 = vrot.slane %v5870_v7, 1  ;;  %v5874_v19 = vrot.slane %v5873_v50, 4 }
 0x3b0   :  { %v5881_v31 = vrot.slane %v5880_v34, 4  ;;  %v5888_v38 = vrot.slane %v5887_v63, 4  ;;  %v15858_v51 = vcombine.high %v14466_v58, %v14466_v58  ;;  %v5901_v12 = vsel %vm5144_vm2, %v14461_v49, -inf }
 0x3b1   :  { %v15859_v44 = vcombine.high %v14461_v49, %v14461_v49  ;;  %v5872_v35 = vmax.f32 %v5870_v7, %v5871_v11  ;;  %v5875_v22 = vmax.f32 %v5873_v50, %v5874_v19  ;;  %v5902_v47 = vrot.slane %v5901_v12, 4 }
 0x3b2   :  { %v5894_v16 = vsel %vm5144_vm2, %v15858_v51, -inf  ;;  %v5882_v40 = vmax.f32 %v5880_v34, %v5881_v31  ;;  %v5889_v59 = vmax.f32 %v5887_v63, %v5888_v38  ;;  %v5915_v58 = vsel %vm5144_vm2, %v14469_v8, -inf }
 0x3b3   :  { %v5908_v15 = vsel %vm5144_vm2, %v15859_v44, -inf  ;;  %v5895_v48 = vrot.slane %v5894_v16, 4  ;;  %v5876_v9 = vrot.slane %v5875_v22, 2  ;;  %v5916_v61 = vrot.slane %v5915_v58, 4 }
 0x3b4   :  { %v5909_v26 = vrot.slane %v5908_v15, 4  ;;  %v5883_v57 = vrot.slane %v5882_v40, 2  ;;  %v5890_v17 = vrot.slane %v5889_v59, 2  ;;  %v5903_v46 = vmax.f32 %v5901_v12, %v5902_v47 }
 0x3b5   :  { %v5896_v4 = vmax.f32 %v5894_v16, %v5895_v48  ;;  %v15860_v49 = vcombine.high %v14469_v8, %v14469_v8  ;;  %v5877_v6 = vmax.f32 %v5875_v22, %v5876_v9  ;;  %v5917_v34 = vmax.f32 %v5915_v58, %v5916_v61 }
 0x3b6   :  { %v5910_v0 = vmax.f32 %v5908_v15, %v5909_v26  ;;  %v5884_v7 = vmax.f32 %v5882_v40, %v5883_v57  ;;  %v5891_v63 = vmax.f32 %v5889_v59, %v5890_v17  ;;  %v5904_v11 = vrot.slane %v5903_v46, 2 }
 0x3b7   :  { %v5922_v14 = vsel %vm5144_vm2, %v15860_v49, -inf  ;;  %v5897_v50 = vrot.slane %v5896_v4, 2  ;;  %v5878_v38 = vrot.slane %v5877_v6, 1  ;;  %v5918_v44 = vrot.slane %v5917_v34, 2 }
 0x3b8   :  { %v5911_v19 = vrot.slane %v5910_v0, 2  ;;  %v5923_v31 = vrot.slane %v5922_v14, 4  ;;  %v5885_v51 = vrot.slane %v5884_v7, 1  ;;  %v5892_v48 = vrot.slane %v5891_v63, 1 }
 0x3b9   :  { %v5898_v16 = vmax.f32 %v5896_v4, %v5897_v50  ;;  %v5905_v12 = vmax.f32 %v5903_v46, %v5904_v11  ;;  %v5879_v26 = vmax.f32 %v5877_v6, %v5878_v38  ;;  %v5919_v49 = vmax.f32 %v5917_v34, %v5918_v44 }
 0x3ba   :  { %v5912_v15 = vmax.f32 %v5910_v0, %v5911_v19  ;;  %v5924_v47 = vmax.f32 %v5922_v14, %v5923_v31  ;;  %v5886_v8 = vmax.f32 %v5884_v7, %v5885_v51  ;;  %v5893_v22 = vmax.f32 %v5891_v63, %v5892_v48 }
 0x3bb   :  { %v5899_v30 = vrot.slane %v5898_v16, 1  ;;  %v5906_v40 = vrot.slane %v5905_v12, 1  ;;  %v5920_v57 = vrot.slane %v5919_v49, 1  ;;  %v14517_v61 = vadd.f32 %v13514_v41, %v5823_v45 }
 0x3bc   :  { %v5913_v9 = vrot.slane %v5912_v15, 1  ;;  %v5925_v58 = vrot.slane %v5924_v47, 2  ;;  %v14520_v4 = vadd.f32 %v13533_v29, %v5830_v52  ;;  %v14524_v14 = vadd.f32 %v13520_v56, %v14487_v20 }
 0x3bd   :  { %v5900_v59 = vmax.f32 %v5898_v16, %v5899_v30  ;;  %15861 = vst [vmem:[#allocation45_spill] sm:$0xff] %v14517_v61  ;;  %v5907_v17 = vmax.f32 %v5905_v12, %v5906_v40  ;;  %v5921_v6 = vmax.f32 %v5919_v49, %v5920_v57  ;;  %v14528_v7 = vadd.f32 %v13535_v2, %v14489_v3 }
 0x3be   :  { %v5914_v46 = vmax.f32 %v5912_v15, %v5913_v9  ;;  %v5926_v0 = vmax.f32 %v5924_v47, %v5925_v58  ;;  %15862 = vst [vmem:[#allocation46_spill] sm:$0xff] %v14524_v14  ;;  %v14532_v30 = vadd.f32 %v13514_v41, %v14491_v10  ;;  %v14536_v52 = vadd.f32 %v13533_v29, %v14493_v36 }
 0x3bf   :  { %15863 = vst [vmem:[#allocation47_spill] sm:$0xff] %v14528_v7  ;;  %v14539_v50 = vadd.f32 %v13520_v56, %v5865_v37  ;;  %v14542_v20 = vadd.f32 %v13535_v2, %v5872_v35  ;;  %v14545_v34 = vadd.f32 %v13514_v41, %v5879_v26  ;;  %v14548_v3 = vadd.f32 %v13533_v29, %v5886_v8 }
 0x3c0   :  { %15864 = vst [vmem:[#allocation48_spill] sm:$0xff] %v14532_v30  ;;  %v5927_v45 = vrot.slane %v5926_v0, 1  ;;  %v14551_v10 = vadd.f32 %v13520_v56, %v5893_v22  ;;  %v14554_v63 = vadd.f32 %v13535_v2, %v5900_v59  ;;  %v14557_v36 = vadd.f32 %v13514_v41, %v5907_v17 }
 0x3c1   :  { %15865 = vst [vmem:[#allocation49_spill] sm:$0xff] %v14539_v50  ;;  %15866 = vst [vmem:[#allocation124_spill] sm:$0xff] %v14542_v20  ;;  %v14560_v11 = vadd.f32 %v13533_v29, %v5914_v46  ;;  %v14563_v35 = vadd.f32 %v13520_v56, %v5921_v6  ;;  %v4468_v19 = vcombine.low %v14444_v55, %v14450_v21 }
 0x3c2   :  { %15867 = vst [vmem:[#allocation125_spill] sm:$0xff] %v14545_v34  ;;  %15868 = vst [vmem:[#allocation126_spill] sm:$0xff] %v14551_v10  ;;  %v5928_v37 = vmax.f32 %v5926_v0, %v5927_v45  ;;  %v4469_v31 = vcombine.high %v14444_v55, %v14450_v21  ;;  %v4470_v38 = vcombine.low %v14447_v23, %v14453_v53 }
 0x3c3   :  { %15869 = vst [vmem:[#allocation127_spill] sm:$0xff] %v14554_v63  ;;  %15870 = vst [vmem:[#allocation128_spill] sm:$0xff] %v14557_v36  ;;  %v4471_v51 = vcombine.high %v14447_v23, %v14453_v53  ;;  %v12111_v16 = vcombine.low %v14450_v21, %v14450_v21  ;;  %v4955_v48 = vrot.slane %v4468_v19, %v13511_v39 }
 0x3c4   :  { %15871 = vst [vmem:[#allocation129_spill] sm:$0xff] %v14563_v35  ;;  %v14576_v44 = vadd.f32 %v13535_v2, %v5928_v37  ;;  %v12112_v12 = vcombine.high %v14450_v21, %v14450_v21  ;;  %v12113_v55 = vcombine.low %v14453_v53, %v14453_v53  ;;  %v4972_v47 = vrot.slane %v4469_v31, %v13511_v39 }
 0x3c5   :  { %v4962_v15 = vrot.slane %v12111_v16, %v13511_v39  ;;  %v14586_v23 = vrot.slane %v4470_v38, %v13511_v39  ;;  %v12114_v26 = vcombine.high %v14453_v53, %v14453_v53  ;;  %v4963_v8 = vcombine.high %v4955_v48, %v4955_v48 }
 0x3c6   :  { %15872 = vst [vmem:[#allocation130_spill] sm:$0xff] %v14576_v44  ;;  %v4979_v49 = vrot.slane %v12112_v12, %v13511_v39  ;;  %v14592_v22 = vrot.slane %v12113_v55, %v13511_v39  ;;  %v14595_v21 = vrot.slane %v4471_v51, %v13511_v39  ;;  %v4980_v9 = vcombine.high %v4972_v47, %v4972_v47 }
 0x3c7   :  { %v4964_v40 = vcombine.high %v4962_v15, %v4962_v15  ;;  %v4997_v58 = vcombine.high %v14586_v23, %v14586_v23  ;;  %v14600_v59 = vrot.slane %v12114_v26, %v13511_v39  ;;  %v5929_v46 = vsel %vm5144_vm2, %v4955_v48, -inf }
 0x3c8   :  { %v4981_v57 = vcombine.high %v4979_v49, %v4979_v49  ;;  %v4998_v53 = vcombine.high %v14592_v22, %v14592_v22  ;;  %v5930_v6 = vrot.slane %v5929_v46, 4  ;;  %v5936_v45 = vsel %vm5144_vm2, %v4963_v8, -inf }
 0x3c9   :  { %v5943_v37 = vsel %vm5144_vm2, %v4962_v15, -inf  ;;  %v5937_v19 = vrot.slane %v5936_v45, 4  ;;  %v5950_v38 = vsel %vm5144_vm2, %v4964_v40, -inf  ;;  %v5957_v51 = vsel %vm5144_vm2, %v4972_v47, -inf }
 0x3ca   :  { %v5944_v31 = vrot.slane %v5943_v37, 4  ;;  %v5931_v16 = vmax.f32 %v5929_v46, %v5930_v6  ;;  %v5951_v12 = vrot.slane %v5950_v38, 4  ;;  %v5958_v55 = vrot.slane %v5957_v51, 4 }
 0x3cb   :  { %v5964_v26 = vsel %vm5144_vm2, %v4980_v9, -inf  ;;  %v5938_v48 = vmax.f32 %v5936_v45, %v5937_v19  ;;  %v5971_v0 = vsel %vm5144_vm2, %v4979_v49, -inf  ;;  %v5978_v40 = vsel %vm5144_vm2, %v4981_v57, -inf }
 0x3cc   :  { %v5945_v17 = vmax.f32 %v5943_v37, %v5944_v31  ;;  %v5965_v39 = vrot.slane %v5964_v26, 4  ;;  %v5932_v35 = vrot.slane %v5931_v16, 2  ;;  %v5952_v8 = vmax.f32 %v5950_v38, %v5951_v12 }
 0x3cd   :  { %v5959_v10 = vmax.f32 %v5957_v51, %v5958_v55  ;;  %v5972_v15 = vrot.slane %v5971_v0, 4  ;;  %v5939_v44 = vrot.slane %v5938_v48, 2  ;;  %v5979_v37 = vrot.slane %v5978_v40, 4 }
 0x3ce   :  { %v5946_v50 = vrot.slane %v5945_v17, 2  ;;  %v5966_v63 = vmax.f32 %v5964_v26, %v5965_v39  ;;  %v5933_v47 = vmax.f32 %v5931_v16, %v5932_v35  ;;  %v5953_v46 = vrot.slane %v5952_v8, 2 }
 0x3cf   :  { %v5960_v6 = vrot.slane %v5959_v10, 2  ;;  %v5973_v14 = vmax.f32 %v5971_v0, %v5972_v15  ;;  %v5940_v20 = vmax.f32 %v5938_v48, %v5939_v44  ;;  %v5980_v55 = vmax.f32 %v5978_v40, %v5979_v37 }
 0x3d0   :  { %v5947_v9 = vmax.f32 %v5945_v17, %v5946_v50  ;;  %v5967_v45 = vrot.slane %v5966_v63, 2  ;;  %v5934_v19 = vrot.slane %v5933_v47, 1  ;;  %v5954_v31 = vmax.f32 %v5952_v8, %v5953_v46 }
 0x3d1   :  { %v5961_v49 = vmax.f32 %v5959_v10, %v5960_v6  ;;  %v5974_v7 = vrot.slane %v5973_v14, 2  ;;  %v5941_v38 = vrot.slane %v5940_v20, 1  ;;  %v5981_v44 = vrot.slane %v5980_v55, 2 }
 0x3d2   :  { %v5948_v51 = vrot.slane %v5947_v9, 1  ;;  %v5968_v12 = vmax.f32 %v5966_v63, %v5967_v45  ;;  %v14616_v36 = vmax.f32 %v5933_v47, %v5934_v19  ;;  %v5955_v39 = vrot.slane %v5954_v31, 1 }
 0x3d3   :  { %v5962_v57 = vrot.slane %v5961_v49, 1  ;;  %v5975_v35 = vmax.f32 %v5973_v14, %v5974_v7  ;;  %v14618_v16 = vmax.f32 %v5940_v20, %v5941_v38  ;;  %v5985_v10 = vsel %vm5144_vm2, %v14586_v23, -inf }
 0x3d4   :  { %v14620_v0 = vmax.f32 %v5947_v9, %v5948_v51  ;;  %v5969_v50 = vrot.slane %v5968_v12, 1  ;;  %v5956_v17 = vmax.f32 %v5954_v31, %v5955_v39  ;;  %v5982_v63 = vmax.f32 %v5980_v55, %v5981_v44 }
 0x3d5   :  { %v5963_v26 = vmax.f32 %v5961_v49, %v5962_v57  ;;  %v5976_v48 = vrot.slane %v5975_v35, 1  ;;  %v5986_v15 = vrot.slane %v5985_v10, 4  ;;  %v5992_v40 = vsel %vm5144_vm2, %v4997_v58, -inf }
 0x3d6   :  { %v14624_v8 = vmax.f32 %v5968_v12, %v5969_v50  ;;  %v5993_v14 = vrot.slane %v5992_v40, 4  ;;  %v5999_v7 = vsel %vm5144_vm2, %v14592_v22, -inf  ;;  %v6006_v20 = vsel %vm5144_vm2, %v4998_v53, -inf }
 0x3d7   :  { %v5977_v47 = vmax.f32 %v5975_v35, %v5976_v48  ;;  %v5983_v46 = vrot.slane %v5982_v63, 1  ;;  %v5987_v6 = vmax.f32 %v5985_v10, %v5986_v15  ;;  %v6000_v9 = vrot.slane %v5999_v7, 4 }
 0x3d8   :  { %v6007_v45 = vrot.slane %v6006_v20, 4  ;;  %v5994_v37 = vmax.f32 %v5992_v40, %v5993_v14  ;;  %v6013_v23 = vsel %vm5144_vm2, %v14595_v21, -inf  ;;  %v15873_v19 = vcombine.high %v14595_v21, %v14595_v21 }
 0x3d9   :  { %v6027_v31 = vsel %vm5144_vm2, %v14600_v59, -inf  ;;  %v5984_v49 = vmax.f32 %v5982_v63, %v5983_v46  ;;  %v5988_v22 = vrot.slane %v5987_v6, 2  ;;  %v6001_v38 = vmax.f32 %v5999_v7, %v6000_v9 }
 0x3da   :  { %v6020_v58 = vsel %vm5144_vm2, %v15873_v19, -inf  ;;  %v6008_v53 = vmax.f32 %v6006_v20, %v6007_v45  ;;  %v5995_v51 = vrot.slane %v5994_v37, 2  ;;  %v6014_v12 = vrot.slane %v6013_v23, 4 }
 0x3db   :  { %v6021_v55 = vrot.slane %v6020_v58, 4  ;;  %v6028_v39 = vrot.slane %v6027_v31, 4  ;;  %v5989_v57 = vmax.f32 %v5987_v6, %v5988_v22  ;;  %v6002_v35 = vrot.slane %v6001_v38, 2 }
 0x3dc   :  { %v6009_v50 = vrot.slane %v6008_v53, 2  ;;  %v15874_v44 = vcombine.high %v14600_v59, %v14600_v59  ;;  %v5996_v48 = vmax.f32 %v5994_v37, %v5995_v51  ;;  %v6015_v10 = vmax.f32 %v6013_v23, %v6014_v12 }
 0x3dd   :  { %v6022_v15 = vmax.f32 %v6020_v58, %v6021_v55  ;;  %v6029_v40 = vmax.f32 %v6027_v31, %v6028_v39  ;;  %v5990_v63 = vrot.slane %v5989_v57, 1  ;;  %v6003_v14 = vmax.f32 %v6001_v38, %v6002_v35 }
 0x3de   :  { %v6034_v21 = vsel %vm5144_vm2, %v15874_v44, -inf  ;;  %v6010_v7 = vmax.f32 %v6008_v53, %v6009_v50  ;;  %v5997_v46 = vrot.slane %v5996_v48, 1  ;;  %v6016_v9 = vrot.slane %v6015_v10, 2 }
 0x3df   :  { %v6035_v20 = vrot.slane %v6034_v21, 4  ;;  %v6023_v45 = vrot.slane %v6022_v15, 2  ;;  %v6030_v19 = vrot.slane %v6029_v40, 2  ;;  %v5991_v6 = vmax.f32 %v5989_v57, %v5990_v63 }
 0x3e0   :  { %v6004_v22 = vrot.slane %v6003_v14, 1  ;;  %v6011_v34 = vrot.slane %v6010_v7, 1  ;;  %v5998_v61 = vmax.f32 %v5996_v48, %v5997_v46  ;;  %v6017_v59 = vmax.f32 %v6015_v10, %v6016_v9 }
 0x3e1   :  { %v6036_v30 = vmax.f32 %v6034_v21, %v6035_v20  ;;  %v6024_v33 = vmax.f32 %v6022_v15, %v6023_v45  ;;  %v6031_v44 = vmax.f32 %v6029_v40, %v6030_v19  ;;  %v14644_v31 = vadd.f32 %v13514_v41, %v14616_v36 }
 0x3e2   :  { %v6005_v37 = vmax.f32 %v6003_v14, %v6004_v22  ;;  %v6012_v23 = vmax.f32 %v6010_v7, %v6011_v34  ;;  %v6018_v38 = vrot.slane %v6017_v59, 1  ;;  %v14648_v12 = vadd.f32 %v13533_v29, %v14618_v16 }
 0x3e3   :  { %v6037_v58 = vrot.slane %v6036_v30, 2  ;;  %v6025_v53 = vrot.slane %v6024_v33, 1  ;;  %v6032_v51 = vrot.slane %v6031_v44, 1  ;;  %v14652_v39 = vadd.f32 %v13520_v56, %v14620_v0 }
 0x3e4   :  { %v14655_v57 = vadd.f32 %v13535_v2, %v5956_v17  ;;  %v14658_v34 = vadd.f32 %v13514_v41, %v5963_v26  ;;  %v6019_v36 = vmax.f32 %v6017_v59, %v6018_v38  ;;  %v14662_v21 = vadd.f32 %v13533_v29, %v14624_v8 }
 0x3e5   :  { %v6038_v55 = vmax.f32 %v6036_v30, %v6037_v58  ;;  %v6026_v35 = vmax.f32 %v6024_v33, %v6025_v53  ;;  %v6033_v50 = vmax.f32 %v6031_v44, %v6032_v51  ;;  %v14665_v30 = vadd.f32 %v13520_v56, %v5977_v47 }
 0x3e6   :  { %v14668_v0 = vadd.f32 %v13535_v2, %v5984_v49  ;;  %v14671_v17 = vadd.f32 %v13514_v41, %v5991_v6  ;;  %v14674_v26 = vadd.f32 %v13533_v29, %v5998_v61  ;;  %v14677_v33 = vadd.f32 %v13520_v56, %v6005_v37 }
 0x3e7   :  { %v6039_v16 = vrot.slane %v6038_v55, 1  ;;  %v14680_v48 = vadd.f32 %v13535_v2, %v6012_v23  ;;  %v14683_v8 = vadd.f32 %v13514_v41, %v6019_v36  ;;  %v14686_v10 = vadd.f32 %v13533_v29, %v6026_v35 }
 0x3e8   :  { %v14689_v49 = vadd.f32 %v13520_v56, %v6033_v50 }
 0x3e9   :  { %v6040_v47 = vmax.f32 %v6038_v55, %v6039_v16 }
 0x3eb   :  { %v14692_v15 = vadd.f32 %v13535_v2, %v6040_v47 }
 0x3ec   :  { %12983 = dma.done.wait [#allocation10], 81920 }
 0x3ed   :  { %12984 = vsyncadd [#allocation10], 4294885376  ;;  %vm6342_vm3 = vcmask 1043459   ;;  %vm6345_vm4 = vcmask 1044484   ;;  %vm6348_vm5 = vcmask 1045509   ;;  %vm6351_vm6 = vcmask 1046534  }
 0x3ee   :  { %v15875_v61 = vmov 0.0   ;;  %vm6354_vm7 = vcmask 1047559   ;;  %v15876_v41 = vld [vmem:[#allocation57_spill] sm:$0xff]  ;;  %v6363_v20 = vrot.slane %v13788_v13, 2  ;;  %v6365_v46 = vrot.slane %v13802_v28, 1  ;;  %v15880_v19 = vld [vmem:[#allocation34_spill] sm:$0xff] }
 0x3ef   :  { %6196 = vst [vmem:[#allocation3] sm:$0x3] %v15875_v61  ;;  %6197 = vst [vmem:[#allocation3 + $0x8] sm:$0x3] %v15875_v61  ;;  %v6356_v56 = vrot.slane %v15876_v41, 6  ;;  %v15877_v29 = vld [vmem:[#allocation61_spill] sm:$0xff] }
 0x3f0   :  { %6198 = vst [vmem:[#allocation3 + $0x10] sm:$0x3] %v15875_v61  ;;  %6199 = vst [vmem:[#allocation3 + $0x18] sm:$0x3] %v15875_v61  ;;  %v6357_v2 = vrot.slane %v15877_v29, 5  ;;  %v15878_v40 = vld [vmem:[#allocation65_spill] sm:$0xff] }
 0x3f1   :  { %6200 = vst [vmem:[#allocation3 + $0x60] sm:$0x3] %v15875_v61  ;;  %6201 = vst [vmem:[#allocation3 + $0x68] sm:$0x3] %v15875_v61  ;;  %v6359_v63 = vrot.slane %v15878_v40, 4  ;;  %v15879_v14 = vld [vmem:[#allocation69_spill] sm:$0xff] }
 0x3f2   :  { %6202 = vst [vmem:[#allocation3 + $0x70] sm:$0x3] %v15875_v61  ;;  %6203 = vst [vmem:[#allocation3 + $0x78] sm:$0x3] %v15875_v61  ;;  %v6361_v7 = vrot.slane %v15879_v14, 3  ;;  %vm6390_vm8 = vcmask 1041409   ;;  %v6358_v9 = vsel %vm6342_vm3, %v6357_v2, %v6356_v56 }
 0x3f3   :  { %6204 = vst [vmem:[#allocation3 + $0x40] sm:$0xc] %v15875_v61  ;;  %6205 = vst [vmem:[#allocation3 + $0x48] sm:$0xc] %v15875_v61  ;;  %vm6393_vm9 = vcmask 1042434   ;;  %v6405_v45 = vrot.slane %v13826_v24, 7  ;;  %v6360_v22 = vsel %vm6345_vm4, %v6359_v63, %v6358_v9 }
 0x3f4   :  { %6206 = vst [vmem:[#allocation3 + $0x50] sm:$0xc] %v15875_v61  ;;  %6207 = vst [vmem:[#allocation3 + $0x58] sm:$0xc] %v15875_v61  ;;  %v6407_v6 = vrot.slane %v15880_v19, 6  ;;  %v15881_v59 = vld [vmem:[#allocation87_spill] sm:$0xff]  ;;  %v6362_v13 = vsel %vm6348_vm5, %v6361_v7, %v6360_v22 }
 0x3f5   :  { %6208 = vst [vmem:[#allocation3 + $0xa0] sm:$0xc] %v15875_v61  ;;  %6209 = vst [vmem:[#allocation3 + $0xa8] sm:$0xc] %v15875_v61  ;;  %v6409_v44 = vrot.slane %v15881_v59, 5  ;;  %v15882_v37 = vld [vmem:[#allocation91_spill] sm:$0xff]  ;;  %v6364_v24 = vsel %vm6351_vm6, %v6363_v20, %v6362_v13 }
 0x3f6   :  { %6210 = vst [vmem:[#allocation3 + $0xb0] sm:$0xc] %v15875_v61  ;;  %6211 = vst [vmem:[#allocation3 + $0xb8] sm:$0xc] %v15875_v61  ;;  %v6411_v23 = vrot.slane %v15882_v37, 4  ;;  %v15883_v58 = vld [vmem:[#allocation95_spill] sm:$0xff]  ;;  %v6366_v2 = vsel %vm6354_vm7, %v6365_v46, %v6364_v24 }
 0x3f7   :  { %v6413_v38 = vrot.slane %v15883_v58, 3  ;;  %v15884_v53 = vld [vmem:[#allocation80_spill] sm:$0xff]  ;;  %v6415_v51 = vrot.slane %v14098_v62, 2  ;;  %v6417_v55 = vrot.slane %v14112_v54, 1  ;;  %v6636_v41 = vld [vmem:[#allocation8 + $0x8] sm:$0xff]  ;;  %v6637_v54 = vld [vmem:[#allocation8 + $0x10] sm:$0xff] }
 0x3f8   :  { %v6406_v28 = vsel %vm6390_vm8, %v6405_v45, %v15884_v53  ;;  %v15885_v35 = vld [vmem:[#allocation56_spill] sm:$0xff]  ;;  %6763 = vmatprep.subr.bf16.mxu0 %v6636_v41  ;;  %v6640_v20 = vld [vmem:[#allocation8 + $0x28] sm:$0xff]  ;;  %6588 = vst [vmem:[#allocation3 + $0x8] sm:$0xfc] %v6366_v2  ;;  %v15891_v58 = vld [vmem:[#allocation83_spill] sm:$0xff]  ;;  %vm7039_vm10 = vcmask 1046528  }
 0x3f9   :  { %v6408_v36 = vsel %vm6393_vm9, %v6407_v6, %v6406_v28  ;;  %v6340_v50 = vrot.slane %v15885_v35, 6  ;;  %v15886_v16 = vld [vmem:[#allocation60_spill] sm:$0xff]  ;;  %v15889_v6 = vld [vmem:[#allocation73_spill] sm:$0xff]  ;;  %v6389_v13 = vrot.slane %v15891_v58, 7  ;;  %v6641_v24 = vld [vmem:[#allocation8 + $0x30] sm:$0xff]  ;;  %vm7541_vm11 = vcmask 1045504  }
 0x3fa   :  { %v6341_v47 = vrot.slane %v15886_v16, 5  ;;  %v6638_v56 = vld [vmem:[#allocation8 + $0x18] sm:$0xff]  ;;  %v6635_v29 = vld [vmem:[#allocation8] sm:$0xff]  ;;  %v6410_v40 = vsel %vm6342_vm3, %v6409_v44, %v6408_v36  ;;  %v6350_v22 = vrot.slane %v15889_v6, 2  ;;  %v6648_v58 = vld [vmem:[#allocation8 + $0x68] sm:$0xff]  ;;  %vm8043_vm12 = vcmask 1044480  }
 0x3fb   :  { %v15887_v63 = vld [vmem:[#allocation64_spill] sm:$0xff]  ;;  %6869 = vmatprep.subr.bf16.mxu1 %v6638_v56  ;;  %v6412_v45 = vsel %vm6345_vm4, %v6411_v23, %v6410_v40  ;;  %6764 = vmatpush1.bf16.msra.mxu0 %v6635_v29  ;;  %v15892_v53 = vld [vmem:[#allocation53_spill] sm:$0xff]  ;;  %v15895_v40 = vld [vmem:[#allocation79_spill] sm:$0xff]  ;;  %vm8545_vm13 = vcmask 1043456  }
 0x3fc   :  { %v6344_v14 = vrot.slane %v15887_v63, 4  ;;  %v15888_v62 = vld [vmem:[#allocation68_spill] sm:$0xff]  ;;  %v6343_v19 = vsel %vm6342_vm3, %v6341_v47, %v6340_v50  ;;  %6870 = vmatpush1.bf16.msra.mxu1 %v6637_v54  ;;  %v6414_v44 = vsel %vm6348_vm5, %v6413_v38, %v6412_v45  ;;  %v6392_v28 = vrot.slane %v15892_v53, 6  ;;  %6765 = vmatprep.subr.bf16.mxu0 %v6640_v20  ;;  %v15893_v50 = vld [vmem:[#allocation86_spill] sm:$0xff] }
 0x3fd   :  { %v6347_v7 = vrot.slane %v15888_v62, 3  ;;  %v6642_v9 = vld [vmem:[#allocation8 + $0x38] sm:$0xff]  ;;  %v6639_v23 = vld [vmem:[#allocation8 + $0x20] sm:$0xff]  ;;  %v6416_v36 = vsel %vm6351_vm6, %v6415_v51, %v6414_v44  ;;  %v6395_v16 = vrot.slane %v15893_v50, 5  ;;  %v15894_v47 = vld [vmem:[#allocation90_spill] sm:$0xff]  ;;  %v6391_v63 = vsel %vm6390_vm8, %v6389_v13, %v15895_v40 }
 0x3fe   :  { %v15890_v59 = vld [vmem:[#allocation76_spill] sm:$0xff]  ;;  %v6346_v37 = vsel %vm6345_vm4, %v6344_v14, %v6343_v19  ;;  %6871 = vmatprep.subr.bf16.mxu1 %v6642_v9  ;;  %v6397_v41 = vrot.slane %v15894_v47, 4  ;;  %v6644_v56 = vld [vmem:[#allocation8 + $0x48] sm:$0xff]  ;;  %v14749_v29 = vsel %vm6354_vm7, %v6417_v55, %v6416_v36  ;;  %v6401_v54 = vrot.slane %v14094_v5, 2  ;;  %v15898_v5 = vld [vmem:[#allocation111_spill] sm:$0xff] }
 0x3ff   :  { %v6353_v46 = vrot.slane %v15890_v59, 1  ;;  %v6349_v35 = vsel %vm6348_vm5, %v6347_v7, %v6346_v37  ;;  %v6646_v38 = vld [vmem:[#allocation8 + $0x58] sm:$0xff]  ;;  %v15896_v14 = vld [vmem:[#allocation94_spill] sm:$0xff]  ;;  %6592 = vst [vmem:[#allocation3 + $0x28] sm:$0xff] %v14749_v29  ;;  %v6394_v7 = vsel %vm6393_vm9, %v6392_v28, %v6391_v63  ;;  %v6403_v20 = vrot.slane %v14108_v42, 1  ;;  %6766 = vmatpush1.bf16.msra.mxu0 %v6639_v23  ;;  %v6647_v50 = vld [vmem:[#allocation8 + $0x60] sm:$0xff] }
 0x400   :  { %v6352_v2 = vsel %vm6351_vm6, %v6350_v22, %v6349_v35  ;;  %v6399_v62 = vrot.slane %v15896_v14, 3  ;;  %6872 = vmatpush1.bf16.msra.mxu1 %v6641_v24  ;;  %v6396_v55 = vsel %vm6342_vm3, %v6395_v16, %v6394_v7  ;;  %v6466_v9 = vrot.slane %v14249_v60, 6  ;;  %v15897_v19 = vld [vmem:[#allocation42_spill] sm:$0xff]  ;;  %6767 = vmatprep.subr.bf16.mxu0 %v6644_v56  ;;  %v6643_v22 = vld [vmem:[#allocation8 + $0x40] sm:$0xff]  ;;  %v6650_v13 = vld [vmem:[#allocation8 + $0x78] sm:$0xff] }
 0x401   :  { %v6355_v51 = vsel %vm6354_vm7, %v6353_v46, %v6352_v2  ;;  %v6467_v45 = vrot.slane %v14265_v1, 5  ;;  %v6469_v6 = vrot.slane %v15897_v19, 4  ;;  %6873 = vmatprep.subr.bf16.mxu1 %v6646_v38  ;;  %v6645_v59 = vld [vmem:[#allocation8 + $0x50] sm:$0xff]  ;;  %v6398_v46 = vsel %vm6345_vm4, %v6397_v41, %v6396_v55  ;;  %v6652_v56 = vld [vmem:[#allocation8 + $0x88] sm:$0xff]  ;;  %v6654_v38 = vld [vmem:[#allocation8 + $0x98] sm:$0xff] }
 0x402   :  { %6587 = vst [vmem:[#allocation3] sm:$0xfc] %v6355_v51  ;;  %v6471_v44 = vrot.slane %v15898_v5, 3  ;;  %v6473_v42 = vrot.slane %v14377_v18, 2  ;;  %v6475_v37 = vrot.slane %v14391_v25, 1  ;;  %v6400_v60 = vsel %vm6348_vm5, %v6399_v62, %v6398_v46  ;;  %v6649_v16 = vld [vmem:[#allocation8 + $0x70] sm:$0xff] }
 0x403   :  { %v6468_v1 = vsel %vm6342_vm3, %v6467_v45, %v6466_v9  ;;  %v6513_v53 = vrot.slane %v14415_v27, 7  ;;  %v6515_v28 = vrot.slane %v14520_v4, 6  ;;  %v6402_v23 = vsel %vm6351_vm6, %v6401_v54, %v6400_v60  ;;  %6768 = vmatpush1.bf16.msra.mxu0 %v6643_v22  ;;  %v15899_v2 = vld [vmem:[#allocation36_spill] sm:$0xff]  ;;  %v15900_v63 = vld [vmem:[#allocation39_spill] sm:$0xff]  ;;  %v15901_v51 = vld [vmem:[#allocation41_spill] sm:$0xff] }
 0x404   :  { %v6470_v24 = vsel %vm6345_vm4, %v6469_v6, %v6468_v1  ;;  %v6517_v36 = vrot.slane %v14536_v52, 5  ;;  %v6519_v18 = vrot.slane %v14548_v3, 4  ;;  %6874 = vmatpush1.bf16.msra.mxu1 %v6645_v59  ;;  %v14777_v25 = vsel %vm6354_vm7, %v6403_v20, %v6402_v23  ;;  %6769 = vmatprep.subr.bf16.mxu0 %v6648_v58  ;;  %v15902_v54 = vld [vmem:[#allocation110_spill] sm:$0xff]  ;;  %v15903_v9 = vld [vmem:[#allocation116_spill] sm:$0xff]  ;;  %v15908_v23 = vld [vmem:[#allocation125_spill] sm:$0xff] }
 0x405   :  { %v6472_v35 = vsel %vm6348_vm5, %v6471_v44, %v6470_v24  ;;  %v6514_v27 = vsel %vm6390_vm8, %v6513_v53, %v14403_v43  ;;  %v6521_v4 = vrot.slane %v14560_v11, 3  ;;  %6875 = vmatprep.subr.bf16.mxu1 %v6650_v13  ;;  %6591 = vst [vmem:[#allocation3 + $0x20] sm:$0xff] %v14777_v25  ;;  %v6523_v47 = vrot.slane %v14648_v12, 2  ;;  %v15904_v19 = vld [vmem:[#allocation122_spill] sm:$0xff]  ;;  %v6651_v22 = vld [vmem:[#allocation8 + $0x80] sm:$0xff]  ;;  %v6658_v13 = vld [vmem:[#allocation8 + $0xb8] sm:$0xff] }
 0x406   :  { %v6474_v52 = vsel %vm6351_vm6, %v6473_v42, %v6472_v35  ;;  %v6516_v3 = vsel %vm6393_vm9, %v6515_v28, %v6514_v27  ;;  %v6525_v41 = vrot.slane %v14662_v21, 1  ;;  %v6455_v40 = vrot.slane %v15899_v2, 6  ;;  %v6653_v59 = vld [vmem:[#allocation8 + $0x90] sm:$0xff]  ;;  %v15905_v44 = vld [vmem:[#allocation45_spill] sm:$0xff]  ;;  %v15906_v42 = vld [vmem:[#allocation48_spill] sm:$0xff] }
 0x407   :  { %v6476_v43 = vsel %vm6354_vm7, %v6475_v37, %v6474_v52  ;;  %v6518_v11 = vsel %vm6342_vm3, %v6517_v36, %v6516_v3  ;;  %v6456_v14 = vrot.slane %v15900_v63, 5  ;;  %v6458_v7 = vrot.slane %v15901_v51, 4  ;;  %6770 = vmatpush1.bf16.msra.mxu0 %v6647_v50  ;;  %v6656_v58 = vld [vmem:[#allocation8 + $0xa8] sm:$0xff]  ;;  %v15907_v53 = vld [vmem:[#allocation119_spill] sm:$0xff]  ;;  %v15909_v35 = vld [vmem:[#allocation128_spill] sm:$0xff] }
 0x408   :  { %v6520_v62 = vsel %vm6345_vm4, %v6519_v18, %v6518_v11  ;;  %6600 = vst [vmem:[#allocation3 + $0x68] sm:$0xfc] %v6476_v43  ;;  %v6460_v20 = vrot.slane %v15902_v54, 3  ;;  %v6462_v12 = vrot.slane %v14373_v32, 2  ;;  %6876 = vmatpush1.bf16.msra.mxu1 %v6649_v16  ;;  %v6464_v45 = vrot.slane %v15903_v9, 1  ;;  %6771 = vmatprep.subr.bf16.mxu0 %v6652_v56  ;;  %v15910_v3 = vld [vmem:[#allocation59_spill] sm:$0xff] }
 0x409   :  { %v6522_v21 = vsel %vm6348_vm5, %v6521_v4, %v6520_v62  ;;  %v6457_v55 = vsel %vm6342_vm3, %v6456_v14, %v6455_v40  ;;  %v6499_v6 = vrot.slane %v15904_v19, 7  ;;  %6877 = vmatprep.subr.bf16.mxu1 %v6654_v38  ;;  %v6501_v32 = vrot.slane %v15905_v44, 6  ;;  %v6657_v56 = vld [vmem:[#allocation8 + $0xb0] sm:$0xff]  ;;  %v6660_v14 = vld [vmem:[#allocation8 + $0xc8] sm:$0xff]  ;;  %v6662_v62 = vld [vmem:[#allocation8 + $0xd8] sm:$0xff] }
 0x40a   :  { %v6524_v46 = vsel %vm6351_vm6, %v6523_v47, %v6522_v21  ;;  %v6459_v5 = vsel %vm6345_vm4, %v6458_v7, %v6457_v55  ;;  %v6503_v37 = vrot.slane %v15906_v42, 5  ;;  %v6505_v24 = vrot.slane %v15908_v23, 4  ;;  %v15911_v43 = vld [vmem:[#allocation63_spill] sm:$0xff]  ;;  %v15915_v54 = vld [vmem:[#allocation78_spill] sm:$0xff] }
 0x40b   :  { %v14805_v60 = vsel %vm6354_vm7, %v6525_v41, %v6524_v46  ;;  %v6461_v1 = vsel %vm6348_vm5, %v6460_v20, %v6459_v5  ;;  %v6500_v28 = vsel %vm6390_vm8, %v6499_v6, %v15907_v53  ;;  %v6507_v27 = vrot.slane %v15909_v35, 3  ;;  %6772 = vmatpush1.bf16.msra.mxu0 %v6651_v22  ;;  %v6655_v41 = vld [vmem:[#allocation8 + $0xa0] sm:$0xff]  ;;  %v15913_v40 = vld [vmem:[#allocation71_spill] sm:$0xff]  ;;  %v6612_v55 = vld [vmem:[#allocation3 + $0x8] sm:$0xff] }
 0x40c   :  { %6604 = vst [vmem:[#allocation3 + $0x88] sm:$0xff] %v14805_v60  ;;  %v6463_v36 = vsel %vm6351_vm6, %v6462_v12, %v6461_v1  ;;  %v6502_v18 = vsel %vm6393_vm9, %v6501_v32, %v6500_v28  ;;  %v6509_v4 = vrot.slane %v14644_v31, 2  ;;  %6878 = vmatpush1.bf16.msra.mxu1 %v6653_v59  ;;  %v6511_v52 = vrot.slane %v14658_v34, 1  ;;  %6773 = vmatprep.subr.bf16.mxu0 %v6656_v58  ;;  %v15912_v31 = vld [vmem:[#allocation67_spill] sm:$0xff]  ;;  %v15916_v12 = vld [vmem:[#allocation85_spill] sm:$0xff]  ;;  %v15920_v1 = vld [vmem:[#allocation82_spill] sm:$0xff] }
 0x40d   :  { %v6465_v50 = vsel %vm6354_vm7, %v6464_v45, %v6463_v36  ;;  %v6504_v16 = vsel %vm6342_vm3, %v6503_v37, %v6502_v18  ;;  %v6378_v47 = vrot.slane %v15910_v3, 6  ;;  %6879 = vmatprep.subr.bf16.mxu1 %v6658_v13  ;;  %v6379_v11 = vrot.slane %v15911_v43, 5  ;;  %v15914_v34 = vld [vmem:[#allocation75_spill] sm:$0xff]  ;;  %v15918_v22 = vld [vmem:[#allocation89_spill] sm:$0xff] }
 0x40e   :  { %v6506_v38 = vsel %vm6345_vm4, %v6505_v24, %v6504_v16  ;;  %6599 = vst [vmem:[#allocation3 + $0x60] sm:$0xfc] %v6465_v50  ;;  %v6381_v2 = vrot.slane %v15912_v31, 4  ;;  %v6383_v63 = vrot.slane %v15913_v40, 3  ;;  %v6385_v7 = vrot.slane %v15914_v34, 2  ;;  %v15917_v19 = vld [vmem:[#allocation35_spill] sm:$0xff] }
 0x40f   :  { %v6508_v51 = vsel %vm6348_vm5, %v6507_v27, %v6506_v38  ;;  %v6387_v20 = vrot.slane %v15915_v54, 1  ;;  %v6433_v21 = vrot.slane %v15916_v12, 7  ;;  %v6380_v45 = vsel %vm6342_vm3, %v6379_v11, %v6378_v47  ;;  %6774 = vmatpush1.bf16.msra.mxu0 %v6655_v41  ;;  %v15919_v32 = vld [vmem:[#allocation93_spill] sm:$0xff]  ;;  %v6661_v58 = vld [vmem:[#allocation8 + $0xd0] sm:$0xff]  ;;  %v6666_v36 = vld [vmem:[#allocation8 + $0xf8] sm:$0xff] }
 0x410   :  { %v6510_v9 = vsel %vm6351_vm6, %v6509_v4, %v6508_v51  ;;  %v6435_v6 = vrot.slane %v15917_v19, 6  ;;  %v6437_v59 = vrot.slane %v15918_v22, 5  ;;  %6880 = vmatpush1.bf16.msra.mxu1 %v6657_v56  ;;  %v6628_v46 = vpack.c.bf16 %v14749_v29, %v6612_v55  ;;  %6775 = vmatprep.subr.bf16.mxu0 %v6660_v14  ;;  %v6659_v37 = vld [vmem:[#allocation8 + $0xc0] sm:$0xff]  ;;  %v6664_v24 = vld [vmem:[#allocation8 + $0xe8] sm:$0xff]  ;;  %v15922_v27 = vld [vmem:[#allocation99_spill] sm:$0xff] }
 0x411   :  { %v14834_v5 = vsel %vm6354_vm7, %v6511_v52, %v6510_v9  ;;  %v6382_v44 = vsel %vm6345_vm4, %v6381_v2, %v6380_v45  ;;  %v6439_v42 = vrot.slane %v15919_v32, 4  ;;  %6881 = vmatprep.subr.bf16.mxu1 %v6662_v62  ;;  %v6434_v53 = vsel %vm6390_vm8, %v6433_v21, %v15920_v1  ;;  %v15921_v28 = vld [vmem:[#allocation97_spill] sm:$0xff]  ;;  %v15924_v47 = vld [vmem:[#allocation58_spill] sm:$0xff]  ;;  %v15930_v12 = vld [vmem:[#allocation84_spill] sm:$0xff] }
 0x412   :  { %6603 = vst [vmem:[#allocation3 + $0x80] sm:$0xff] %v14834_v5  ;;  %v6384_v13 = vsel %vm6348_vm5, %v6383_v63, %v6382_v44  ;;  %v6441_v23 = vrot.slane %v15921_v28, 3  ;;  %6795 = vmatprep.mubr.bf16.mxu0 %v6628_v46  ;;  %6901 = vmatprep.mubr.bf16.mxu1 %v6628_v46  ;;  %v6436_v35 = vsel %vm6393_vm9, %v6435_v6, %v6434_v53  ;;  %v6443_v4 = vrot.slane %v15922_v27, 2  ;;  %v15923_v50 = vld [vmem:[#allocation101_spill] sm:$0xff]  ;;  %v15925_v56 = vld [vmem:[#allocation62_spill] sm:$0xff]  ;;  %v6670_v9 = vld [vmem:[#allocation8 + $0x118] sm:$0xff] }
 0x413   :  { %v6386_v18 = vsel %vm6351_vm6, %v6385_v7, %v6384_v13  ;;  %v6445_v16 = vrot.slane %v15923_v50, 1  ;;  %v6438_v3 = vsel %vm6342_vm3, %v6437_v59, %v6436_v35  ;;  %v6367_v41 = vrot.slane %v15924_v47, 6  ;;  %6776 = vmatpush1.bf16.msra.mxu0 %v6659_v37  ;;  %v15926_v11 = vld [vmem:[#allocation66_spill] sm:$0xff]  ;;  %v6663_v62 = vld [vmem:[#allocation8 + $0xe0] sm:$0xff] }
 0x414   :  { %v6388_v52 = vsel %vm6354_vm7, %v6387_v20, %v6386_v18  ;;  %v6368_v38 = vrot.slane %v15925_v56, 5  ;;  %6882 = vmatpush1.bf16.msra.mxu1 %v6661_v58  ;;  %v6440_v43 = vsel %vm6345_vm4, %v6439_v42, %v6438_v3  ;;  %v6370_v31 = vrot.slane %v15926_v11, 4  ;;  %v15927_v2 = vld [vmem:[#allocation70_spill] sm:$0xff]  ;;  %6777 = vmatprep.subr.bf16.mxu0 %v6664_v24  ;;  %v15929_v54 = vld [vmem:[#allocation77_spill] sm:$0xff]  ;;  %v15932_v59 = vld [vmem:[#allocation88_spill] sm:$0xff] }
 0x415   :  { %6590 = vst [vmem:[#allocation3 + $0x18] sm:$0xfc] %v6388_v52  ;;  %v6372_v40 = vrot.slane %v15927_v2, 3  ;;  %v15928_v63 = vld [vmem:[#allocation74_spill] sm:$0xff]  ;;  %6883 = vmatprep.subr.bf16.mxu1 %v6666_v36  ;;  %v6442_v34 = vsel %vm6348_vm5, %v6441_v23, %v6440_v43  ;;  %v6376_v20 = vrot.slane %v15929_v54, 1  ;;  %v6419_v21 = vrot.slane %v15930_v12, 7 }
 0x416   :  { %v6374_v14 = vrot.slane %v15928_v63, 2  ;;  %v6665_v51 = vld [vmem:[#allocation8 + $0xf0] sm:$0xff]  ;;  %v6369_v7 = vsel %vm6342_vm3, %v6368_v38, %v6367_v41  ;;  %v6668_v55 = vld [vmem:[#allocation8 + $0x108] sm:$0xff]  ;;  %v6444_v45 = vsel %vm6351_vm6, %v6443_v4, %v6442_v34  ;;  %v6423_v46 = vrot.slane %v15932_v59, 5  ;;  %v15934_v58 = vld [vmem:[#allocation92_spill] sm:$0xff] }
 0x417   :  { %v6371_v19 = vsel %vm6345_vm4, %v6370_v31, %v6369_v7  ;;  %v15931_v6 = vld [vmem:[#allocation54_spill] sm:$0xff]  ;;  %v14864_v44 = vsel %vm6354_vm7, %v6445_v16, %v6444_v45  ;;  %v15933_v42 = vld [vmem:[#allocation81_spill] sm:$0xff]  ;;  %v6425_v13 = vrot.slane %v15934_v58, 4  ;;  %6778 = vmatpush1.bf16.msra.mxu0 %v6663_v62  ;;  %v15935_v28 = vld [vmem:[#allocation96_spill] sm:$0xff] }
 0x418   :  { %v6421_v22 = vrot.slane %v15931_v6, 6  ;;  %v6373_v32 = vsel %vm6348_vm5, %v6372_v40, %v6371_v19  ;;  %v6420_v37 = vsel %vm6390_vm8, %v6419_v21, %v15933_v42  ;;  %6884 = vmatpush1.bf16.msra.mxu1 %v6665_v51  ;;  %6594 = vst [vmem:[#allocation3 + $0x38] sm:$0xff] %v14864_v44  ;;  %v6427_v23 = vrot.slane %v15935_v28, 3  ;;  %v15936_v24 = vld [vmem:[#allocation98_spill] sm:$0xff]  ;;  %6779 = vmatprep.subr.bf16.mxu0 %v6668_v55  ;;  %v6667_v18 = vld [vmem:[#allocation8 + $0x100] sm:$0xff]  ;;  %v6674_v3 = vld [vmem:[#allocation8 + $0x138] sm:$0xff] }
 0x419   :  { %v6375_v1 = vsel %vm6351_vm6, %v6374_v14, %v6373_v32  ;;  %v6429_v36 = vrot.slane %v15936_v24, 2  ;;  %6885 = vmatprep.subr.bf16.mxu1 %v6670_v9  ;;  %v6669_v35 = vld [vmem:[#allocation8 + $0x110] sm:$0xff]  ;;  %v15937_v50 = vld [vmem:[#allocation100_spill] sm:$0xff]  ;;  %v6672_v52 = vld [vmem:[#allocation8 + $0x128] sm:$0xff] }
 0x41a   :  { %v6422_v53 = vsel %vm6393_vm9, %v6421_v22, %v6420_v37  ;;  %v6377_v27 = vsel %vm6354_vm7, %v6376_v20, %v6375_v1  ;;  %v6431_v16 = vrot.slane %v15937_v50, 1  ;;  %v6671_v38 = vld [vmem:[#allocation8 + $0x120] sm:$0xff]  ;;  %v6673_v43 = vld [vmem:[#allocation8 + $0x130] sm:$0xff]  ;;  %v6676_v31 = vld [vmem:[#allocation8 + $0x148] sm:$0xff] }
 0x41b   :  { %v6424_v4 = vsel %vm6342_vm3, %v6423_v46, %v6422_v53  ;;  %6589 = vst [vmem:[#allocation3 + $0x10] sm:$0xfc] %v6377_v27  ;;  %6780 = vmatpush1.bf16.msra.mxu0 %v6667_v18  ;;  %v6678_v2 = vld [vmem:[#allocation8 + $0x158] sm:$0xff]  ;;  %v6675_v40 = vld [vmem:[#allocation8 + $0x140] sm:$0xff]  ;;  %v6677_v63 = vld [vmem:[#allocation8 + $0x150] sm:$0xff] }
 0x41c   :  { %v6426_v47 = vsel %vm6345_vm4, %v6425_v13, %v6424_v4  ;;  %6886 = vmatpush1.bf16.msra.mxu1 %v6669_v35  ;;  %6781 = vmatprep.subr.bf16.mxu0 %v6672_v52  ;;  %v6680_v14 = vld [vmem:[#allocation8 + $0x168] sm:$0xff]  ;;  %v6682_v62 = vld [vmem:[#allocation8 + $0x178] sm:$0xff]  ;;  %v6679_v32 = vld [vmem:[#allocation8 + $0x160] sm:$0xff] }
 0x41d   :  { %v6428_v41 = vsel %vm6348_vm5, %v6427_v23, %v6426_v47  ;;  %6887 = vmatprep.subr.bf16.mxu1 %v6674_v3  ;;  %v15938_v51 = vld [vmem:[#allocation38_spill] sm:$0xff]  ;;  %v15939_v7 = vld [vmem:[#allocation72_spill] sm:$0xff]  ;;  %v15940_v20 = vld [vmem:[#allocation109_spill] sm:$0xff] }
 0x41e   :  { %v6430_v56 = vsel %vm6351_vm6, %v6429_v36, %v6428_v41  ;;  %v6488_v34 = vrot.slane %v15938_v51, 6  ;;  %v6489_v54 = vrot.slane %v15939_v7, 5  ;;  %v6491_v12 = vrot.slane %v15940_v20, 4  ;;  %v15941_v21 = vld [vmem:[#allocation37_spill] sm:$0xff]  ;;  %v15942_v9 = vld [vmem:[#allocation40_spill] sm:$0xff]  ;;  %v15944_v59 = vld [vmem:[#allocation43_spill] sm:$0xff] }
 0x41f   :  { %v14882_v11 = vsel %vm6354_vm7, %v6431_v16, %v6430_v56  ;;  %6782 = vmatpush1.bf16.msra.mxu0 %v6671_v38  ;;  %v6477_v55 = vrot.slane %v15941_v21, 6  ;;  %v6478_v45 = vrot.slane %v15942_v9, 5  ;;  %v15943_v6 = vld [vmem:[#allocation113_spill] sm:$0xff]  ;;  %v6480_v46 = vrot.slane %v15944_v59, 4  ;;  %v6681_v42 = vld [vmem:[#allocation8 + $0x170] sm:$0xff]  ;;  %v15946_v53 = vld [vmem:[#allocation112_spill] sm:$0xff] }
 0x420   :  { %6593 = vst [vmem:[#allocation3 + $0x30] sm:$0xff] %v14882_v11  ;;  %6888 = vmatpush1.bf16.msra.mxu1 %v6673_v43  ;;  %6783 = vmatprep.subr.bf16.mxu0 %v6676_v31  ;;  %v6490_v19 = vsel %vm6342_vm3, %v6489_v54, %v6488_v34  ;;  %v6493_v22 = vrot.slane %v15943_v6, 3  ;;  %v15945_v58 = vld [vmem:[#allocation115_spill] sm:$0xff]  ;;  %v6482_v28 = vrot.slane %v15946_v53, 3  ;;  %v6684_v23 = vld [vmem:[#allocation8 + $0x188] sm:$0xff]  ;;  %v15950_v56 = vld [vmem:[#allocation44_spill] sm:$0xff] }
 0x421   :  { %6889 = vmatprep.subr.bf16.mxu1 %v6678_v2  ;;  %v6492_v37 = vsel %vm6345_vm4, %v6491_v12, %v6490_v19  ;;  %v6495_v13 = vrot.slane %v15945_v58, 2  ;;  %v6479_v1 = vsel %vm6342_vm3, %v6478_v45, %v6477_v55  ;;  %v6686_v24 = vld [vmem:[#allocation8 + $0x198] sm:$0xff]  ;;  %v15947_v18 = vld [vmem:[#allocation118_spill] sm:$0xff]  ;;  %v15949_v3 = vld [vmem:[#allocation117_spill] sm:$0xff]  ;;  %v6541_v38 = vrot.slane %v15950_v56, 7 }
 0x422   :  { %v6494_v36 = vsel %vm6348_vm5, %v6493_v22, %v6492_v37  ;;  %v6497_v35 = vrot.slane %v15947_v18, 1  ;;  %v6481_v27 = vsel %vm6345_vm4, %v6480_v46, %v6479_v1  ;;  %v15948_v4 = vld [vmem:[#allocation114_spill] sm:$0xff]  ;;  %v6486_v47 = vrot.slane %v15949_v3, 1  ;;  %v6683_v31 = vld [vmem:[#allocation8 + $0x180] sm:$0xff]  ;;  %v6690_v7 = vld [vmem:[#allocation8 + $0x1b8] sm:$0xff] }
 0x423   :  { %6784 = vmatpush1.bf16.msra.mxu0 %v6675_v40  ;;  %v6484_v50 = vrot.slane %v15948_v4, 2  ;;  %v6496_v16 = vsel %vm6351_vm6, %v6495_v13, %v6494_v36  ;;  %v6483_v52 = vsel %vm6348_vm5, %v6482_v28, %v6481_v27  ;;  %v6685_v2 = vld [vmem:[#allocation8 + $0x190] sm:$0xff]  ;;  %v6688_v34 = vld [vmem:[#allocation8 + $0x1a8] sm:$0xff]  ;;  %v15954_v12 = vld [vmem:[#allocation124_spill] sm:$0xff]  ;;  %v6551_v36 = vrot.slane %v14655_v57, 2 }
 0x424   :  { %6890 = vmatpush1.bf16.msra.mxu1 %v6677_v63  ;;  %6785 = vmatprep.subr.bf16.mxu0 %v6680_v14  ;;  %v6498_v41 = vsel %vm6354_vm7, %v6497_v35, %v6496_v16  ;;  %v15951_v40 = vld [vmem:[#allocation47_spill] sm:$0xff]  ;;  %v15953_v54 = vld [vmem:[#allocation121_spill] sm:$0xff]  ;;  %v6545_v21 = vrot.slane %v15954_v12, 5  ;;  %v15955_v55 = vld [vmem:[#allocation46_spill] sm:$0xff]  ;;  %v6539_v57 = vrot.slane %v14665_v30, 1 }
 0x425   :  { %6891 = vmatprep.subr.bf16.mxu1 %v6682_v62  ;;  %v6485_v43 = vsel %vm6351_vm6, %v6484_v50, %v6483_v52  ;;  %v6543_v63 = vrot.slane %v15951_v40, 6  ;;  %6602 = vst [vmem:[#allocation3 + $0x78] sm:$0xfc] %v6498_v41  ;;  %v15952_v62 = vld [vmem:[#allocation123_spill] sm:$0xff]  ;;  %v6542_v20 = vsel %vm6390_vm8, %v6541_v38, %v15953_v54  ;;  %v6529_v9 = vrot.slane %v15955_v55, 6  ;;  %v15957_v22 = vld [vmem:[#allocation120_spill] sm:$0xff] }
 0x426   :  { %v6487_v14 = vsel %vm6354_vm7, %v6486_v47, %v6485_v43  ;;  %v6527_v51 = vrot.slane %v15952_v62, 7  ;;  %v15956_v19 = vld [vmem:[#allocation127_spill] sm:$0xff]  ;;  %v15958_v46 = vld [vmem:[#allocation49_spill] sm:$0xff]  ;;  %v15959_v37 = vld [vmem:[#allocation130_spill] sm:$0xff]  ;;  %v6553_v52 = vrot.slane %v14668_v0, 1  ;;  %v6537_v47 = vrot.slane %v14652_v39, 2 }
 0x427   :  { %6786 = vmatpush1.bf16.msra.mxu0 %v6679_v32  ;;  %6601 = vst [vmem:[#allocation3 + $0x70] sm:$0xfc] %v6487_v14  ;;  %v6544_v45 = vsel %vm6393_vm9, %v6543_v63, %v6542_v20  ;;  %v6547_v6 = vrot.slane %v15956_v19, 4  ;;  %v6531_v32 = vrot.slane %v15958_v46, 5  ;;  %v6549_v58 = vrot.slane %v15959_v37, 3  ;;  %v15960_v1 = vld [vmem:[#allocation126_spill] sm:$0xff] }
 0x428   :  { %6892 = vmatpush1.bf16.msra.mxu1 %v6681_v42  ;;  %6787 = vmatprep.subr.bf16.mxu0 %v6684_v23  ;;  %v6528_v59 = vsel %vm6390_vm8, %v6527_v51, %v15957_v22  ;;  %v6546_v42 = vsel %vm6342_vm3, %v6545_v21, %v6544_v45  ;;  %v6533_v53 = vrot.slane %v15960_v1, 4  ;;  %v6687_v28 = vld [vmem:[#allocation8 + $0x1a0] sm:$0xff]  ;;  %v6689_v23 = vld [vmem:[#allocation8 + $0x1b0] sm:$0xff]  ;;  %v6692_v4 = vld [vmem:[#allocation8 + $0x1c8] sm:$0xff] }
 0x429   :  { %6893 = vmatprep.subr.bf16.mxu1 %v6686_v24  ;;  %v6530_v13 = vsel %vm6393_vm9, %v6529_v9, %v6528_v59  ;;  %v6548_v24 = vsel %vm6345_vm4, %v6547_v6, %v6546_v42  ;;  %v15961_v35 = vld [vmem:[#allocation129_spill] sm:$0xff]  ;;  %v6694_v50 = vld [vmem:[#allocation8 + $0x1d8] sm:$0xff]  ;;  %v15963_v0 = vld [vmem:[#allocation106_spill] sm:$0xff] }
 0x42a   :  { %v6532_v18 = vsel %vm6342_vm3, %v6531_v32, %v6530_v13  ;;  %v6535_v27 = vrot.slane %v15961_v35, 3  ;;  %v6550_v16 = vsel %vm6348_vm5, %v6549_v58, %v6548_v24  ;;  %v15962_v38 = vld [vmem:[#allocation107_spill] sm:$0xff]  ;;  %v6447_v40 = vrot.slane %v15963_v0, 7  ;;  %v6691_v39 = vld [vmem:[#allocation8 + $0x1c0] sm:$0xff]  ;;  %v6696_v51 = vld [vmem:[#allocation8 + $0x1e8] sm:$0xff] }
 0x42b   :  { %6788 = vmatpush1.bf16.msra.mxu0 %v6683_v31  ;;  %v6534_v3 = vsel %vm6345_vm4, %v6533_v53, %v6532_v18  ;;  %v6552_v41 = vsel %vm6351_vm6, %v6551_v36, %v6550_v16  ;;  %v6449_v43 = vrot.slane %v15962_v38, 7  ;;  %v6693_v63 = vld [vmem:[#allocation8 + $0x1d0] sm:$0xff]  ;;  %v6611_v20 = vld [vmem:[#allocation3] sm:$0xff]  ;;  %v6700_v55 = vld [vmem:[#allocation8 + $0x208] sm:$0xff] }
 0x42c   :  { %6894 = vmatpush1.bf16.msra.mxu1 %v6685_v2  ;;  %6789 = vmatprep.subr.bf16.mxu0 %v6688_v34  ;;  %v6536_v56 = vsel %vm6348_vm5, %v6535_v27, %v6534_v3  ;;  %v14936_v31 = vsel %vm6354_vm7, %v6553_v52, %v6552_v41  ;;  %v15964_v30 = vld [vmem:[#allocation103_spill] sm:$0xff]  ;;  %v6695_v12 = vld [vmem:[#allocation8 + $0x1e0] sm:$0xff]  ;;  %v6627_v45 = vpack.c.bf16 %v14777_v25, %v6611_v20  ;;  %v6620_v19 = vld [vmem:[#allocation3 + $0x68] sm:$0xff] }
 0x42d   :  { %6895 = vmatprep.subr.bf16.mxu1 %v6690_v7  ;;  %v6538_v2 = vsel %vm6351_vm6, %v6537_v47, %v6536_v56  ;;  %6606 = vst [vmem:[#allocation3 + $0x98] sm:$0xff] %v14936_v31  ;;  %v6450_v62 = vsel %vm6390_vm8, %v6449_v43, %v15964_v30  ;;  %v6698_v34 = vld [vmem:[#allocation8 + $0x1f8] sm:$0xff]  ;;  %v15965_v7 = vld [vmem:[#allocation102_spill] sm:$0xff]  ;;  %v6699_v6 = vld [vmem:[#allocation8 + $0x200] sm:$0xff]  ;;  %v6632_v32 = vpack.c.bf16 %v14805_v60, %v6620_v19  ;;  %v6557_v19 = vrot.slane %v14686_v10, 7 }
 0x42e   :  { %v14942_v14 = vsel %vm6354_vm7, %v6539_v57, %v6538_v2  ;;  %6596 = vst [vmem:[#allocation3 + $0x48] sm:$0x3] %v6450_v62  ;;  %v6448_v54 = vsel %vm6390_vm8, %v6447_v40, %v15965_v7  ;;  %v6697_v21 = vld [vmem:[#allocation8 + $0x1f0] sm:$0xff]  ;;  %v6702_v9 = vld [vmem:[#allocation8 + $0x218] sm:$0xff]  ;;  %v6704_v59 = vld [vmem:[#allocation8 + $0x228] sm:$0xff] }
 0x42f   :  { %6790 = vmatpush1.bf16.msra.mxu0 %v6687_v28  ;;  %6605 = vst [vmem:[#allocation3 + $0x90] sm:$0xff] %v14942_v14  ;;  %6595 = vst [vmem:[#allocation3 + $0x40] sm:$0x3] %v6448_v54  ;;  %v6701_v22 = vld [vmem:[#allocation8 + $0x210] sm:$0xff]  ;;  %v6706_v46 = vld [vmem:[#allocation8 + $0x238] sm:$0xff] }
 0x430   :  { %6896 = vmatpush1.bf16.msra.mxu1 %v6689_v23  ;;  %6791 = vmatprep.subr.bf16.mxu0 %v6692_v4  ;;  %v6619_v42 = vld [vmem:[#allocation3 + $0x60] sm:$0xff]  ;;  %v6705_v25 = vld [vmem:[#allocation8 + $0x230] sm:$0xff]  ;;  %v6708_v58 = vld [vmem:[#allocation8 + $0x248] sm:$0xff] }
 0x431   :  { %6897 = vmatprep.subr.bf16.mxu1 %v6694_v50  ;;  %v6703_v37 = vld [vmem:[#allocation8 + $0x220] sm:$0xff]  ;;  %v6710_v13 = vld [vmem:[#allocation8 + $0x258] sm:$0xff]  ;;  %v6631_v1 = vpack.c.bf16 %v14834_v5, %v6619_v42  ;;  %v6709_v28 = vld [vmem:[#allocation8 + $0x250] sm:$0xff] }
 0x432   :  { %v6614_v53 = vld [vmem:[#allocation3 + $0x18] sm:$0xff]  ;;  %v6707_v60 = vld [vmem:[#allocation8 + $0x240] sm:$0xff]  ;;  %v6712_v23 = vld [vmem:[#allocation8 + $0x268] sm:$0xff] }
 0x433   :  { %6792 = vmatpush1.bf16.msra.mxu0 %v6691_v39  ;;  %v6714_v24 = vld [vmem:[#allocation8 + $0x278] sm:$0xff]  ;;  %v6630_v36 = vpack.c.bf16 %v14864_v44, %v6614_v53  ;;  %v6711_v18 = vld [vmem:[#allocation8 + $0x260] sm:$0xff]  ;;  %v6713_v35 = vld [vmem:[#allocation8 + $0x270] sm:$0xff] }
 0x434   :  { %6898 = vmatpush1.bf16.msra.mxu1 %v6693_v63  ;;  %6793 = vmatprep.subr.bf16.mxu0 %v6696_v51  ;;  %v6716_v5 = vld [vmem:[#allocation8 + $0x288] sm:$0xff]  ;;  %v6718_v27 = vld [vmem:[#allocation8 + $0x298] sm:$0xff]  ;;  %v6715_v4 = vld [vmem:[#allocation8 + $0x280] sm:$0xff] }
 0x435   :  { %6899 = vmatprep.subr.bf16.mxu1 %v6698_v34  ;;  %v6717_v50 = vld [vmem:[#allocation8 + $0x290] sm:$0xff]  ;;  %v6720_v16 = vld [vmem:[#allocation8 + $0x2a8] sm:$0xff]  ;;  %v6722_v52 = vld [vmem:[#allocation8 + $0x2b8] sm:$0xff] }
 0x436   :  { %v6719_v3 = vld [vmem:[#allocation8 + $0x2a0] sm:$0xff]  ;;  %v6721_v47 = vld [vmem:[#allocation8 + $0x2b0] sm:$0xff]  ;;  %v6724_v41 = vld [vmem:[#allocation8 + $0x2c8] sm:$0xff] }
 0x437   :  { %6794 = vmatpush1.bf16.msra.mxu0 %v6695_v12  ;;  %v6726_v56 = vld [vmem:[#allocation8 + $0x2d8] sm:$0xff]  ;;  %v6723_v57 = vld [vmem:[#allocation8 + $0x2c0] sm:$0xff]  ;;  %v6725_v38 = vld [vmem:[#allocation8 + $0x2d0] sm:$0xff] }
 0x438   :  { %6900 = vmatpush1.bf16.msra.mxu1 %v6697_v21  ;;  %6816 = vmatprep.subr.bf16.mxu0 %v6700_v55  ;;  %v6728_v43 = vld [vmem:[#allocation8 + $0x2e8] sm:$0xff]  ;;  %v6730_v2 = vld [vmem:[#allocation8 + $0x2f8] sm:$0xff]  ;;  %v6727_v0 = vld [vmem:[#allocation8 + $0x2e0] sm:$0xff] }
 0x439   :  { %6922 = vmatprep.subr.bf16.mxu1 %v6702_v9  ;;  %v6729_v40 = vld [vmem:[#allocation8 + $0x2f0] sm:$0xff]  ;;  %v6732_v39 = vld [vmem:[#allocation8 + $0x308] sm:$0xff]  ;;  %v6734_v63 = vld [vmem:[#allocation8 + $0x318] sm:$0xff] }
 0x43a   :  { %6796 = vmatmul.mubr.bf16.vlgmr.msra.gmra.mrb[32].mxu0 %v6627_v45  ;;  %v6731_v30 = vld [vmem:[#allocation8 + $0x300] sm:$0xff]  ;;  %v6733_v62 = vld [vmem:[#allocation8 + $0x310] sm:$0xff]  ;;  %v6736_v51 = vld [vmem:[#allocation8 + $0x328] sm:$0xff] }
 0x43b   :  { %6902 = vmatmul.mubr.bf16.vlgmr.msra.gmra.mrb[32].mxu1 %v6627_v45  ;;  %6817 = vmatpush1.bf16.msra.mxu0 %v6699_v6  ;;  %v6738_v34 = vld [vmem:[#allocation8 + $0x338] sm:$0xff]  ;;  %v6735_v7 = vld [vmem:[#allocation8 + $0x320] sm:$0xff]  ;;  %v6737_v54 = vld [vmem:[#allocation8 + $0x330] sm:$0xff]  ;;  %v6555_v6 = vrot.slane %v14683_v8, 7 }
 0x43c   :  { %6923 = vmatpush1.bf16.msra.mxu1 %v6701_v22  ;;  %6818 = vmatprep.subr.bf16.mxu0 %v6704_v59  ;;  %v6740_v20 = vld [vmem:[#allocation8 + $0x348] sm:$0xff]  ;;  %v6742_v12 = vld [vmem:[#allocation8 + $0x358] sm:$0xff]  ;;  %v6739_v21 = vld [vmem:[#allocation8 + $0x340] sm:$0xff] }
 0x43d   :  { %6924 = vmatprep.subr.bf16.mxu1 %v6706_v46  ;;  %6805 = vmatprep.mubr.bf16.mxu0 %v6632_v32  ;;  %v6741_v55 = vld [vmem:[#allocation8 + $0x350] sm:$0xff]  ;;  %v6744_v9 = vld [vmem:[#allocation8 + $0x368] sm:$0xff]  ;;  %v6746_v45 = vld [vmem:[#allocation8 + $0x378] sm:$0xff]  ;;  %v6558_v46 = vsel %vm6390_vm8, %v6557_v19, %v14674_v26 }
 0x43e   :  { %6911 = vmatprep.mubr.bf16.mxu1 %v6632_v32  ;;  %v6743_v22 = vld [vmem:[#allocation8 + $0x360] sm:$0xff]  ;;  %v6745_v59 = vld [vmem:[#allocation8 + $0x370] sm:$0xff]  ;;  %v6748_v32 = vld [vmem:[#allocation8 + $0x388] sm:$0xff]  ;;  %6608 = vst [vmem:[#allocation3 + $0xa8] sm:$0x3] %v6558_v46 }
 0x43f   :  { %6819 = vmatpush1.bf16.msra.mxu0 %v6703_v37  ;;  %v6750_v42 = vld [vmem:[#allocation8 + $0x398] sm:$0xff]  ;;  %v6556_v37 = vsel %vm6390_vm8, %v6555_v6, %v14671_v17  ;;  %v6747_v10 = vld [vmem:[#allocation8 + $0x380] sm:$0xff]  ;;  %v6749_v8 = vld [vmem:[#allocation8 + $0x390] sm:$0xff] }
 0x440   :  { %6925 = vmatpush1.bf16.msra.mxu1 %v6705_v25  ;;  %6820 = vmatprep.subr.bf16.mxu0 %v6708_v58  ;;  %6607 = vst [vmem:[#allocation3 + $0xa0] sm:$0x3] %v6556_v37  ;;  %v6752_v25 = vld [vmem:[#allocation8 + $0x3a8] sm:$0xff]  ;;  %v6754_v58 = vld [vmem:[#allocation8 + $0x3b8] sm:$0xff]  ;;  %v7123_v37 = vld [vmem:[#allocation8 + $0x490] sm:$0xff] }
 0x441   :  { %6926 = vmatprep.subr.bf16.mxu1 %v6710_v13  ;;  %v15966_v13 = vld [vmem:[#allocation55_spill] sm:$0xff]  ;;  %v15967_v26 = vld [vmem:[#allocation108_spill] sm:$0xff]  ;;  %v15968_v17 = vld [vmem:[#allocation105_spill] sm:$0xff] }
 0x442   :  { %6806 = vmatmul.mubr.bf16.gmra.mrb[36].mxu0 %v6631_v1  ;;  %v6451_v53 = vrot.slane %v15967_v26, 7  ;;  %v7120_v19 = vld [vmem:[#allocation8 + $0x478] sm:$0xff]  ;;  %v7122_v46 = vld [vmem:[#allocation8 + $0x488] sm:$0xff]  ;;  %v7129_v26 = vld [vmem:[#allocation8 + $0x4c0] sm:$0xff] }
 0x443   :  { %6912 = vmatmul.mubr.bf16.gmra.mrb[36].mxu1 %v6631_v1  ;;  %6821 = vmatpush1.bf16.msra.mxu0 %v6707_v60  ;;  %v6453_v1 = vrot.slane %v15966_v13, 7  ;;  %v6751_v60 = vld [vmem:[#allocation8 + $0x3a0] sm:$0xff]  ;;  %v7130_v13 = vld [vmem:[#allocation8 + $0x4c8] sm:$0xff] }
 0x444   :  { %6927 = vmatpush1.bf16.msra.mxu1 %v6709_v28  ;;  %6822 = vmatprep.subr.bf16.mxu0 %v6712_v23  ;;  %v6753_v28 = vld [vmem:[#allocation8 + $0x3b0] sm:$0xff] }
 0x445   :  { %6928 = vmatprep.subr.bf16.mxu1 %v6714_v24  ;;  %6848 = vmatprep.mubr.bf16.mxu0 %v6630_v36  ;;  %v6454_v23 = vsel %vm6390_vm8, %v6453_v1, %v15968_v17  ;;  %v6756_v24 = vld [vmem:[#allocation8 + $0x3c8] sm:$0xff]  ;;  %v7132_v1 = vld [vmem:[#allocation8 + $0x4d8] sm:$0xff]  ;;  %v7133_v17 = vld [vmem:[#allocation8 + $0x4e0] sm:$0xff] }
 0x446   :  { %6954 = vmatprep.mubr.bf16.mxu1 %v6630_v36  ;;  %v6758_v36 = vld [vmem:[#allocation8 + $0x3d8] sm:$0xff]  ;;  %6598 = vst [vmem:[#allocation3 + $0x58] sm:$0x3] %v6454_v23  ;;  %v7135_v23 = vld [vmem:[#allocation8 + $0x4f0] sm:$0xff] }
 0x447   :  { %6823 = vmatpush1.bf16.msra.mxu0 %v6711_v18  ;;  %v15969_v18 = vld [vmem:[#allocation104_spill] sm:$0xff] }
 0x448   :  { %6929 = vmatpush1.bf16.msra.mxu1 %v6713_v35  ;;  %6824 = vmatprep.subr.bf16.mxu0 %v6716_v5  ;;  %v6452_v35 = vsel %vm6390_vm8, %v6451_v53, %v15969_v18  ;;  %v6755_v5 = vld [vmem:[#allocation8 + $0x3c0] sm:$0xff]  ;;  %v7131_v53 = vld [vmem:[#allocation8 + $0x4d0] sm:$0xff] }
 0x449   :  { %6930 = vmatprep.subr.bf16.mxu1 %v6718_v27  ;;  %6597 = vst [vmem:[#allocation3 + $0x50] sm:$0x3] %v6452_v35  ;;  %v6757_v27 = vld [vmem:[#allocation8 + $0x3d0] sm:$0xff]  ;;  %v7137_v18 = vld [vmem:[#allocation8 + $0x500] sm:$0xff] }
 0x44a   :  { %v7139_v35 = vld [vmem:[#allocation8 + $0x510] sm:$0xff] }
 0x44b   :  { %6825 = vmatpush1.bf16.msra.mxu0 %v6715_v4  ;;  %v6760_v4 = vld [vmem:[#allocation8 + $0x3e8] sm:$0xff] }
 0x44c   :  { %6931 = vmatpush1.bf16.msra.mxu1 %v6717_v50  ;;  %6826 = vmatprep.subr.bf16.mxu0 %v6720_v16  ;;  %v6762_v50 = vld [vmem:[#allocation8 + $0x3f8] sm:$0xff]  ;;  %v6613_v16 = vld [vmem:[#allocation3 + $0x10] sm:$0xff] }
 0x44d   :  { %6932 = vmatprep.subr.bf16.mxu1 %v6722_v52  ;;  %v6759_v52 = vld [vmem:[#allocation8 + $0x3e0] sm:$0xff] }
 0x44f   :  { %6827 = vmatpush1.bf16.msra.mxu0 %v6719_v3  ;;  %v6761_v3 = vld [vmem:[#allocation8 + $0x3f0] sm:$0xff] }
 0x450   :  { %6933 = vmatpush1.bf16.msra.mxu1 %v6721_v47  ;;  %6828 = vmatprep.subr.bf16.mxu0 %v6724_v41  ;;  %v7106_v47 = vld [vmem:[#allocation8 + $0x408] sm:$0xff]  ;;  %v7108_v41 = vld [vmem:[#allocation8 + $0x418] sm:$0xff] }
 0x451   :  { %6934 = vmatprep.subr.bf16.mxu1 %v6726_v56  ;;  %v6629_v56 = vpack.c.bf16 %v14882_v11, %v6613_v16  ;;  %v6621_v11 = vld [vmem:[#allocation3 + $0x70] sm:$0xff]  ;;  %v7146_v16 = vld [vmem:[#allocation8 + $0x548] sm:$0xff] }
 0x453   :  { %6829 = vmatpush1.bf16.msra.mxu0 %v6723_v57  ;;  %v6622_v57 = vld [vmem:[#allocation3 + $0x78] sm:$0xff] }
 0x454   :  { %6935 = vmatpush1.bf16.msra.mxu1 %v6725_v38  ;;  %6830 = vmatprep.subr.bf16.mxu0 %v6728_v43  ;;  %v6992_v38 = vld [vmem:[#allocation3 + $0x8] sm:$0xfe]  ;;  %v7000_v43 = vld [vmem:[#allocation3 + $0x48] sm:$0x1] }
 0x455   :  { %6936 = vmatprep.subr.bf16.mxu1 %v6730_v2  ;;  %v7105_v2 = vld [vmem:[#allocation8 + $0x400] sm:$0xff] }
 0x457   :  { %6831 = vmatpush1.bf16.msra.mxu0 %v6727_v0  ;;  %v7107_v0 = vld [vmem:[#allocation8 + $0x410] sm:$0xff] }
 0x458   :  { %6937 = vmatpush1.bf16.msra.mxu1 %v6729_v40  ;;  %6832 = vmatprep.subr.bf16.mxu0 %v6732_v39  ;;  %v7110_v40 = vld [vmem:[#allocation8 + $0x428] sm:$0xff]  ;;  %v7112_v39 = vld [vmem:[#allocation8 + $0x438] sm:$0xff] }
 0x459   :  { %6938 = vmatprep.subr.bf16.mxu1 %v6734_v63  ;;  %v6634_v63 = vpack.c.bf16 %v14936_v31, %v6622_v57  ;;  %v6561_v57 = vrot.slane %v14692_v15, 7  ;;  %v7153_v15 = vld [vmem:[#allocation8 + $0x580] sm:$0xff] }
 0x45b   :  { %6833 = vmatpush1.bf16.msra.mxu0 %v6731_v30  ;;  %v7043_v30 = vrot.slane %v6992_v38, 1  ;;  %v6559_v38 = vrot.slane %v14689_v49, 7  ;;  %v7155_v49 = vld [vmem:[#allocation8 + $0x590] sm:$0xff] }
 0x45c   :  { %6939 = vmatpush1.bf16.msra.mxu1 %v6733_v62  ;;  %6834 = vmatprep.subr.bf16.mxu0 %v6736_v51  ;;  %v7044_v62 = vrot.slane %v14749_v29, 1  ;;  %v7054_v51 = vrot.slane %v7000_v43, 1  ;;  %v7113_v29 = vld [vmem:[#allocation8 + $0x440] sm:$0xff] }
 0x45d   :  { %6940 = vmatprep.subr.bf16.mxu1 %v6738_v34  ;;  %v7109_v34 = vld [vmem:[#allocation8 + $0x420] sm:$0xff] }
 0x45e   :  { %v7149_v43 = vld [vmem:[#allocation8 + $0x560] sm:$0xff] }
 0x45f   :  { %6835 = vmatpush1.bf16.msra.mxu0 %v6735_v7  ;;  %v7111_v7 = vld [vmem:[#allocation8 + $0x430] sm:$0xff] }
 0x460   :  { %6941 = vmatpush1.bf16.msra.mxu1 %v6737_v54  ;;  %6836 = vmatprep.subr.bf16.mxu0 %v6740_v20  ;;  %v7114_v54 = vld [vmem:[#allocation8 + $0x448] sm:$0xff]  ;;  %v7116_v20 = vld [vmem:[#allocation8 + $0x458] sm:$0xff] }
 0x461   :  { %6942 = vmatprep.subr.bf16.mxu1 %v6742_v12  ;;  %v6633_v12 = vpack.c.bf16 %v14942_v14, %v6621_v11  ;;  %v6991_v11 = vld [vmem:[#allocation3] sm:$0xfe] }
 0x463   :  { %6837 = vmatpush1.bf16.msra.mxu0 %v6739_v21  ;;  %v7045_v21 = vsel %vm7039_vm10, %v7043_v30, %v7044_v62  ;;  %v7158_v30 = vld [vmem:[#allocation8 + $0x5a8] sm:$0xff] }
 0x464   :  { %6943 = vmatpush1.bf16.msra.mxu1 %v6741_v55  ;;  %6838 = vmatprep.subr.bf16.mxu0 %v6744_v9  ;;  %v7055_v55 = vsel %vm7039_vm10, %v7044_v62, %v7054_v51  ;;  %v7115_v9 = vld [vmem:[#allocation8 + $0x450] sm:$0xff]  ;;  %v7160_v62 = vld [vmem:[#allocation8 + $0x5b8] sm:$0xff]  ;;  %v7157_v51 = vld [vmem:[#allocation8 + $0x5a0] sm:$0xff] }
 0x465   :  { %6944 = vmatprep.subr.bf16.mxu1 %v6746_v45  ;;  %v7118_v45 = vld [vmem:[#allocation8 + $0x468] sm:$0xff]  ;;  %v7097_v6 = vpack.c.bf16 %v7055_v55, %v7045_v21 }
 0x466   :  { %v7004_v55 = vld [vmem:[#allocation3 + $0x68] sm:$0xfe] }
 0x467   :  { %6839 = vmatpush1.bf16.msra.mxu0 %v6743_v22  ;;  %v7117_v22 = vld [vmem:[#allocation8 + $0x460] sm:$0xff] }
 0x468   :  { %6945 = vmatpush1.bf16.msra.mxu1 %v6745_v59  ;;  %6840 = vmatprep.subr.bf16.mxu0 %v6748_v32  ;;  %v7119_v59 = vld [vmem:[#allocation8 + $0x470] sm:$0xff]  ;;  %v7124_v32 = vld [vmem:[#allocation8 + $0x498] sm:$0xff] }
 0x469   :  { %6946 = vmatprep.subr.bf16.mxu1 %v6750_v42  ;;  %v7121_v42 = vld [vmem:[#allocation8 + $0x480] sm:$0xff] }
 0x46b   :  { %6841 = vmatpush1.bf16.msra.mxu0 %v6747_v10  ;;  %v7126_v10 = vld [vmem:[#allocation8 + $0x4a8] sm:$0xff] }
 0x46c   :  { %6947 = vmatpush1.bf16.msra.mxu1 %v6749_v8  ;;  %6842 = vmatprep.subr.bf16.mxu0 %v6752_v25  ;;  %v7128_v8 = vld [vmem:[#allocation8 + $0x4b8] sm:$0xff]  ;;  %v7125_v25 = vld [vmem:[#allocation8 + $0x4a0] sm:$0xff] }
 0x46d   :  { %6948 = vmatprep.subr.bf16.mxu1 %v6754_v58  ;;  %v7127_v58 = vld [vmem:[#allocation8 + $0x4b0] sm:$0xff] }
 0x46f   :  { %6843 = vmatpush1.bf16.msra.mxu0 %v6751_v60  ;;  %v7134_v60 = vld [vmem:[#allocation8 + $0x4e8] sm:$0xff] }
 0x470   :  { %6949 = vmatpush1.bf16.msra.mxu1 %v6753_v28  ;;  %6844 = vmatprep.subr.bf16.mxu0 %v6756_v24  ;;  %v7136_v28 = vld [vmem:[#allocation8 + $0x4f8] sm:$0xff]  ;;  %v7138_v24 = vld [vmem:[#allocation8 + $0x508] sm:$0xff] }
 0x471   :  { %6950 = vmatprep.subr.bf16.mxu1 %v6758_v36  ;;  %v7140_v36 = vld [vmem:[#allocation8 + $0x518] sm:$0xff] }
 0x473   :  { %6845 = vmatpush1.bf16.msra.mxu0 %v6755_v5  ;;  %v7142_v5 = vld [vmem:[#allocation8 + $0x528] sm:$0xff] }
 0x474   :  { %6951 = vmatpush1.bf16.msra.mxu1 %v6757_v27  ;;  %6846 = vmatprep.subr.bf16.mxu0 %v6760_v4  ;;  %v7144_v27 = vld [vmem:[#allocation8 + $0x538] sm:$0xff]  ;;  %v7141_v4 = vld [vmem:[#allocation8 + $0x520] sm:$0xff] }
 0x475   :  { %6952 = vmatprep.subr.bf16.mxu1 %v6762_v50  ;;  %v7143_v50 = vld [vmem:[#allocation8 + $0x530] sm:$0xff] }
 0x477   :  { %6847 = vmatpush1.bf16.msra.mxu0 %v6759_v52  ;;  %v7148_v52 = vld [vmem:[#allocation8 + $0x558] sm:$0xff] }
 0x478   :  { %6953 = vmatpush1.bf16.msra.mxu1 %v6761_v3  ;;  %7233 = vmatprep.subr.bf16.mxu0 %v7106_v47  ;;  %v7145_v3 = vld [vmem:[#allocation8 + $0x540] sm:$0xff]  ;;  %v7147_v47 = vld [vmem:[#allocation8 + $0x550] sm:$0xff] }
 0x479   :  { %7339 = vmatprep.subr.bf16.mxu1 %v7108_v41  ;;  %v7150_v41 = vld [vmem:[#allocation8 + $0x568] sm:$0xff] }
 0x47a   :  { %6849 = vmatmul.mubr.bf16.vlgmr.msra.gmra.mrb[32].mxu0 %v6629_v56 }
 0x47b   :  { %6955 = vmatmul.mubr.bf16.vlgmr.msra.gmra.mrb[32].mxu1 %v6629_v56  ;;  %7234 = vmatpush1.bf16.msra.mxu0 %v7105_v2  ;;  %v7152_v56 = vld [vmem:[#allocation8 + $0x578] sm:$0xff]  ;;  %v7151_v2 = vld [vmem:[#allocation8 + $0x570] sm:$0xff] }
 0x47c   :  { %7340 = vmatpush1.bf16.msra.mxu1 %v7107_v0  ;;  %7235 = vmatprep.subr.bf16.mxu0 %v7110_v40  ;;  %v6562_v0 = vsel %vm6390_vm8, %v6561_v57, %v14680_v48  ;;  %v7154_v40 = vld [vmem:[#allocation8 + $0x588] sm:$0xff]  ;;  %v7159_v48 = vld [vmem:[#allocation8 + $0x5b0] sm:$0xff] }
 0x47d   :  { %7341 = vmatprep.subr.bf16.mxu1 %v7112_v39  ;;  %6858 = vmatprep.mubr.bf16.mxu0 %v6634_v63  ;;  %v7156_v39 = vld [vmem:[#allocation8 + $0x598] sm:$0xff]  ;;  %6610 = vst [vmem:[#allocation3 + $0xb8] sm:$0x3] %v6562_v0  ;;  %v7175_v57 = vld [vmem:[#allocation8 + $0x630] sm:$0xff] }
 0x47e   :  { %6964 = vmatprep.mubr.bf16.mxu1 %v6634_v63  ;;  %v6560_v63 = vsel %vm6390_vm8, %v6559_v38, %v14677_v33  ;;  %v12749_v33 = vld [vmem:[#allocation3 + $0x20] sm:$0xff]  ;;  %v7178_v38 = vld [vmem:[#allocation8 + $0x648] sm:$0xff] }
 0x47f   :  { %7236 = vmatpush1.bf16.msra.mxu0 %v7109_v34  ;;  %6609 = vst [vmem:[#allocation3 + $0xb0] sm:$0x3] %v6560_v63  ;;  %v6999_v34 = vld [vmem:[#allocation3 + $0x40] sm:$0x1]  ;;  %v7182_v63 = vld [vmem:[#allocation8 + $0x668] sm:$0xff] }
 0x480   :  { %7342 = vmatpush1.bf16.msra.mxu1 %v7111_v7  ;;  %7237 = vmatprep.subr.bf16.mxu0 %v7114_v54  ;;  %v7162_v7 = vld [vmem:[#allocation8 + $0x5c8] sm:$0xff]  ;;  %v7164_v54 = vld [vmem:[#allocation8 + $0x5d8] sm:$0xff]  ;;  %v7052_v21 = vrot.slane %v6999_v34, 1  ;;  %v7187_v34 = vld [vmem:[#allocation8 + $0x690] sm:$0xff] }
 0x481   :  { %7343 = vmatprep.subr.bf16.mxu1 %v7116_v20  ;;  %v7041_v20 = vrot.slane %v12749_v33, 1  ;;  %v7189_v33 = vld [vmem:[#allocation8 + $0x6a0] sm:$0xff] }
 0x482   :  { %6859 = vmatmul.mubr.bf16.gmra.mrb[36].mxu0 %v6633_v12 }
 0x483   :  { %6965 = vmatmul.mubr.bf16.gmra.mrb[36].mxu1 %v6633_v12  ;;  %7238 = vmatpush1.bf16.msra.mxu0 %v7113_v29  ;;  %v7040_v12 = vrot.slane %v6991_v11, 1  ;;  %v7012_v29 = vld [vmem:[#allocation3 + $0xa8] sm:$0x1]  ;;  %v7185_v11 = vld [vmem:[#allocation8 + $0x680] sm:$0xff] }
 0x484   :  { %7344 = vmatpush1.bf16.msra.mxu1 %v7115_v9  ;;  %7239 = vmatprep.subr.bf16.mxu0 %v7118_v45  ;;  %v7161_v9 = vld [vmem:[#allocation8 + $0x5c0] sm:$0xff]  ;;  %v7163_v45 = vld [vmem:[#allocation8 + $0x5d0] sm:$0xff] }
 0x485   :  { %7345 = vmatprep.subr.bf16.mxu1 %v7120_v19  ;;  %7265 = vmatprep.mubr.bf16.mxu0 %v7097_v6  ;;  %v7166_v19 = vld [vmem:[#allocation8 + $0x5e8] sm:$0xff] }
 0x486   :  { %7371 = vmatprep.mubr.bf16.mxu1 %v7097_v6  ;;  %v7168_v6 = vld [vmem:[#allocation8 + $0x5f8] sm:$0xff] }
 0x487   :  { %7240 = vmatpush1.bf16.msra.mxu0 %v7117_v22  ;;  %v7063_v22 = vrot.slane %v7004_v55, 1  ;;  %v7193_v55 = vld [vmem:[#allocation8 + $0x6c0] sm:$0xff] }
 0x488   :  { %7346 = vmatpush1.bf16.msra.mxu1 %v7119_v59  ;;  %7241 = vmatprep.subr.bf16.mxu0 %v7122_v46  ;;  %v12750_v59 = vld [vmem:[#allocation3 + $0x88] sm:$0xff] }
 0x489   :  { %7347 = vmatprep.subr.bf16.mxu1 %v7124_v32  ;;  %v7064_v46 = vrot.slane %v12750_v59, 1  ;;  %v7074_v32 = vrot.slane %v7012_v29, 1  ;;  %v7195_v29 = vld [vmem:[#allocation8 + $0x6d0] sm:$0xff]  ;;  %v7204_v59 = vld [vmem:[#allocation8 + $0x718] sm:$0xff] }
 0x48b   :  { %7242 = vmatpush1.bf16.msra.mxu0 %v7121_v42  ;;  %v7042_v42 = vsel %vm7039_vm10, %v7040_v12, %v7041_v20  ;;  %v7194_v12 = vld [vmem:[#allocation8 + $0x6c8] sm:$0xff] }
 0x48c   :  { %7348 = vmatpush1.bf16.msra.mxu1 %v7123_v37  ;;  %7243 = vmatprep.subr.bf16.mxu0 %v7126_v10  ;;  %v7053_v37 = vsel %vm7039_vm10, %v7041_v20, %v7052_v21  ;;  %v7003_v10 = vld [vmem:[#allocation3 + $0x60] sm:$0xfe]  ;;  %v7191_v20 = vld [vmem:[#allocation8 + $0x6b0] sm:$0xff]  ;;  %v7196_v21 = vld [vmem:[#allocation8 + $0x6d8] sm:$0xff] }
 0x48d   :  { %7349 = vmatprep.subr.bf16.mxu1 %v7128_v8  ;;  %v7165_v8 = vld [vmem:[#allocation8 + $0x5e0] sm:$0xff] }
 0x48f   :  { %7244 = vmatpush1.bf16.msra.mxu0 %v7125_v25  ;;  %v7167_v25 = vld [vmem:[#allocation8 + $0x5f0] sm:$0xff] }
 0x490   :  { %7350 = vmatpush1.bf16.msra.mxu1 %v7127_v58  ;;  %7245 = vmatprep.subr.bf16.mxu0 %v7130_v13  ;;  %v7011_v58 = vld [vmem:[#allocation3 + $0xa0] sm:$0x1]  ;;  %v7170_v13 = vld [vmem:[#allocation8 + $0x608] sm:$0xff] }
 0x491   :  { %7351 = vmatprep.subr.bf16.mxu1 %v7132_v1  ;;  %v7172_v1 = vld [vmem:[#allocation8 + $0x618] sm:$0xff] }
 0x493   :  { %7246 = vmatpush1.bf16.msra.mxu0 %v7129_v26  ;;  %v7096_v26 = vpack.c.bf16 %v7053_v37, %v7042_v42  ;;  %v7206_v42 = vld [vmem:[#allocation8 + $0x728] sm:$0xff]  ;;  %v7208_v37 = vld [vmem:[#allocation8 + $0x738] sm:$0xff] }
 0x494   :  { %7352 = vmatpush1.bf16.msra.mxu1 %v7131_v53  ;;  %7247 = vmatprep.subr.bf16.mxu0 %v7134_v60  ;;  %v7065_v53 = vsel %vm7039_vm10, %v7063_v22, %v7064_v46  ;;  %v7075_v60 = vsel %vm7039_vm10, %v7064_v46, %v7074_v32  ;;  %v7202_v22 = vld [vmem:[#allocation8 + $0x708] sm:$0xff]  ;;  %v7201_v46 = vld [vmem:[#allocation8 + $0x700] sm:$0xff]  ;;  %v7203_v32 = vld [vmem:[#allocation8 + $0x710] sm:$0xff] }
 0x495   :  { %7353 = vmatprep.subr.bf16.mxu1 %v7136_v28  ;;  %v7060_v28 = vrot.slane %v7003_v10, 1  ;;  %v7205_v10 = vld [vmem:[#allocation8 + $0x720] sm:$0xff] }
 0x497   :  { %7248 = vmatpush1.bf16.msra.mxu0 %v7133_v17  ;;  %v12751_v17 = vld [vmem:[#allocation3 + $0x80] sm:$0xff] }
 0x498   :  { %7354 = vmatpush1.bf16.msra.mxu1 %v7135_v23  ;;  %7249 = vmatprep.subr.bf16.mxu0 %v7138_v24  ;;  %v7061_v23 = vrot.slane %v12751_v17, 1  ;;  %v7072_v24 = vrot.slane %v7011_v58, 1  ;;  %v7212_v58 = vld [vmem:[#allocation8 + $0x758] sm:$0xff]  ;;  %v7218_v17 = vld [vmem:[#allocation8 + $0x788] sm:$0xff] }
 0x499   :  { %7355 = vmatprep.subr.bf16.mxu1 %v7140_v36  ;;  %v6994_v36 = vld [vmem:[#allocation3 + $0x18] sm:$0xfe] }
 0x49b   :  { %7250 = vmatpush1.bf16.msra.mxu0 %v7137_v18  ;;  %v7002_v18 = vld [vmem:[#allocation3 + $0x58] sm:$0x1] }
 0x49c   :  { %7356 = vmatpush1.bf16.msra.mxu1 %v7139_v35  ;;  %7251 = vmatprep.subr.bf16.mxu0 %v7142_v5  ;;  %v7169_v35 = vld [vmem:[#allocation8 + $0x600] sm:$0xff]  ;;  %v7171_v5 = vld [vmem:[#allocation8 + $0x610] sm:$0xff] }
 0x49d   :  { %7357 = vmatprep.subr.bf16.mxu1 %v7144_v27  ;;  %v7174_v27 = vld [vmem:[#allocation8 + $0x628] sm:$0xff] }
 0x49f   :  { %7252 = vmatpush1.bf16.msra.mxu0 %v7141_v4  ;;  %v7176_v4 = vld [vmem:[#allocation8 + $0x638] sm:$0xff] }
 0x4a0   :  { %7358 = vmatpush1.bf16.msra.mxu1 %v7143_v50  ;;  %7253 = vmatprep.subr.bf16.mxu0 %v7146_v16  ;;  %v7101_v50 = vpack.c.bf16 %v7075_v60, %v7065_v53  ;;  %v7049_v16 = vrot.slane %v6994_v36, 1  ;;  %v7216_v53 = vld [vmem:[#allocation8 + $0x778] sm:$0xff]  ;;  %v7213_v60 = vld [vmem:[#allocation8 + $0x760] sm:$0xff]  ;;  %v7219_v36 = vld [vmem:[#allocation8 + $0x790] sm:$0xff] }
 0x4a1   :  { %7359 = vmatprep.subr.bf16.mxu1 %v7148_v52  ;;  %v7050_v52 = vrot.slane %v14864_v44, 1 }
 0x4a3   :  { %7254 = vmatpush1.bf16.msra.mxu0 %v7145_v3  ;;  %v7058_v3 = vrot.slane %v7002_v18, 1  ;;  %v7051_v0 = vsel %vm7039_vm10, %v7049_v16, %v7050_v52  ;;  %v7222_v18 = vld [vmem:[#allocation8 + $0x7a8] sm:$0xff] }
 0x4a4   :  { %7360 = vmatpush1.bf16.msra.mxu1 %v7147_v47  ;;  %7255 = vmatprep.subr.bf16.mxu0 %v7150_v41  ;;  %v7062_v47 = vsel %vm7039_vm10, %v7060_v28, %v7061_v23  ;;  %v7073_v41 = vsel %vm7039_vm10, %v7061_v23, %v7072_v24  ;;  %v7215_v28 = vld [vmem:[#allocation8 + $0x770] sm:$0xff]  ;;  %v7220_v23 = vld [vmem:[#allocation8 + $0x798] sm:$0xff]  ;;  %v7217_v24 = vld [vmem:[#allocation8 + $0x780] sm:$0xff] }
 0x4a5   :  { %7361 = vmatprep.subr.bf16.mxu1 %v7152_v56  ;;  %v7173_v56 = vld [vmem:[#allocation8 + $0x620] sm:$0xff]  ;;  %v7059_v44 = vsel %vm7039_vm10, %v7050_v52, %v7058_v3  ;;  %v7226_v16 = vld [vmem:[#allocation8 + $0x7c8] sm:$0xff]  ;;  %v7228_v52 = vld [vmem:[#allocation8 + $0x7d8] sm:$0xff] }
 0x4a7   :  { %7256 = vmatpush1.bf16.msra.mxu0 %v7149_v43  ;;  %v7180_v43 = vld [vmem:[#allocation8 + $0x658] sm:$0xff] }
 0x4a8   :  { %7362 = vmatpush1.bf16.msra.mxu1 %v7151_v2  ;;  %7257 = vmatprep.subr.bf16.mxu0 %v7154_v40  ;;  %v7100_v2 = vpack.c.bf16 %v7073_v41, %v7062_v47  ;;  %v7177_v40 = vld [vmem:[#allocation8 + $0x640] sm:$0xff]  ;;  %v12752_v47 = vld [vmem:[#allocation3 + $0x30] sm:$0xff] }
 0x4a9   :  { %7363 = vmatprep.subr.bf16.mxu1 %v7156_v39  ;;  %v7179_v39 = vld [vmem:[#allocation8 + $0x650] sm:$0xff]  ;;  %v7047_v41 = vrot.slane %v12752_v47, 1  ;;  %v7631_v47 = vld [vmem:[#allocation8 + $0x8c0] sm:$0xff] }
 0x4ab   :  { %7258 = vmatpush1.bf16.msra.mxu0 %v7153_v15  ;;  %v7184_v15 = vld [vmem:[#allocation8 + $0x678] sm:$0xff] }
 0x4ac   :  { %7364 = vmatpush1.bf16.msra.mxu1 %v7155_v49  ;;  %7259 = vmatprep.subr.bf16.mxu0 %v7158_v30  ;;  %v7099_v49 = vpack.c.bf16 %v7059_v44, %v7051_v0  ;;  %v7181_v30 = vld [vmem:[#allocation8 + $0x660] sm:$0xff]  ;;  %v7230_v0 = vld [vmem:[#allocation8 + $0x7e8] sm:$0xff]  ;;  %v7232_v44 = vld [vmem:[#allocation8 + $0x7f8] sm:$0xff] }
 0x4ad   :  { %7365 = vmatprep.subr.bf16.mxu1 %v7160_v62  ;;  %v7183_v62 = vld [vmem:[#allocation8 + $0x670] sm:$0xff] }
 0x4af   :  { %7260 = vmatpush1.bf16.msra.mxu0 %v7157_v51  ;;  %v7186_v51 = vld [vmem:[#allocation8 + $0x688] sm:$0xff] }
 0x4b0   :  { %7366 = vmatpush1.bf16.msra.mxu1 %v7159_v48  ;;  %7261 = vmatprep.subr.bf16.mxu0 %v7162_v7  ;;  %v7188_v48 = vld [vmem:[#allocation8 + $0x698] sm:$0xff]  ;;  %v7190_v7 = vld [vmem:[#allocation8 + $0x6a8] sm:$0xff] }
 0x4b1   :  { %7367 = vmatprep.subr.bf16.mxu1 %v7164_v54  ;;  %v7192_v54 = vld [vmem:[#allocation8 + $0x6b8] sm:$0xff] }
 0x4b3   :  { %7262 = vmatpush1.bf16.msra.mxu0 %v7161_v9  ;;  %v7198_v9 = vld [vmem:[#allocation8 + $0x6e8] sm:$0xff] }
 0x4b4   :  { %7368 = vmatpush1.bf16.msra.mxu1 %v7163_v45  ;;  %7263 = vmatprep.subr.bf16.mxu0 %v7166_v19  ;;  %v7200_v45 = vld [vmem:[#allocation8 + $0x6f8] sm:$0xff]  ;;  %v7197_v19 = vld [vmem:[#allocation8 + $0x6e0] sm:$0xff] }
 0x4b5   :  { %7369 = vmatprep.subr.bf16.mxu1 %v7168_v6  ;;  %v7199_v6 = vld [vmem:[#allocation8 + $0x6f0] sm:$0xff] }
 0x4b7   :  { %7264 = vmatpush1.bf16.msra.mxu0 %v7165_v8  ;;  %v7207_v8 = vld [vmem:[#allocation8 + $0x730] sm:$0xff] }
 0x4b8   :  { %7370 = vmatpush1.bf16.msra.mxu1 %v7167_v25  ;;  %7286 = vmatprep.subr.bf16.mxu0 %v7170_v13  ;;  %v7210_v25 = vld [vmem:[#allocation8 + $0x748] sm:$0xff]  ;;  %v7209_v13 = vld [vmem:[#allocation8 + $0x740] sm:$0xff] }
 0x4b9   :  { %7392 = vmatprep.subr.bf16.mxu1 %v7172_v1  ;;  %v7211_v1 = vld [vmem:[#allocation8 + $0x750] sm:$0xff] }
 0x4ba   :  { %7266 = vmatmul.mubr.bf16.vlgmr.msra.gmra.mrb[32].mxu0 %v7096_v26 }
 0x4bb   :  { %7372 = vmatmul.mubr.bf16.vlgmr.msra.gmra.mrb[32].mxu1 %v7096_v26  ;;  %7287 = vmatpush1.bf16.msra.mxu0 %v7169_v35  ;;  %v7214_v26 = vld [vmem:[#allocation8 + $0x768] sm:$0xff]  ;;  %v7224_v35 = vld [vmem:[#allocation8 + $0x7b8] sm:$0xff] }
 0x4bc   :  { %7393 = vmatpush1.bf16.msra.mxu1 %v7171_v5  ;;  %7288 = vmatprep.subr.bf16.mxu0 %v7174_v27  ;;  %v6993_v5 = vld [vmem:[#allocation3 + $0x10] sm:$0xfe]  ;;  %v7001_v27 = vld [vmem:[#allocation3 + $0x50] sm:$0x1] }
 0x4bd   :  { %7394 = vmatprep.subr.bf16.mxu1 %v7176_v4  ;;  %7275 = vmatprep.mubr.bf16.mxu0 %v7101_v50  ;;  %v7221_v4 = vld [vmem:[#allocation8 + $0x7a0] sm:$0xff]  ;;  %v7046_v3 = vrot.slane %v6993_v5, 1  ;;  %v7625_v5 = vld [vmem:[#allocation8 + $0x890] sm:$0xff] }
 0x4be   :  { %7381 = vmatprep.mubr.bf16.mxu1 %v7101_v50  ;;  %v7223_v50 = vld [vmem:[#allocation8 + $0x7b0] sm:$0xff] }
 0x4bf   :  { %7289 = vmatpush1.bf16.msra.mxu0 %v7173_v56  ;;  %v7056_v56 = vrot.slane %v7001_v27, 1  ;;  %v7628_v27 = vld [vmem:[#allocation8 + $0x8a8] sm:$0xff] }
 0x4c0   :  { %7395 = vmatpush1.bf16.msra.mxu1 %v7175_v57  ;;  %7290 = vmatprep.subr.bf16.mxu0 %v7178_v38  ;;  %v7006_v57 = vld [vmem:[#allocation3 + $0x78] sm:$0xfe]  ;;  %v7014_v38 = vld [vmem:[#allocation3 + $0xb8] sm:$0x1] }
 0x4c1   :  { %7396 = vmatprep.subr.bf16.mxu1 %v7180_v43  ;;  %v7225_v43 = vld [vmem:[#allocation8 + $0x7c0] sm:$0xff] }
 0x4c2   :  { %7276 = vmatmul.mubr.bf16.gmra.mrb[36].mxu0 %v7100_v2 }
 0x4c3   :  { %7382 = vmatmul.mubr.bf16.gmra.mrb[36].mxu1 %v7100_v2  ;;  %7291 = vmatpush1.bf16.msra.mxu0 %v7177_v40  ;;  %v7227_v2 = vld [vmem:[#allocation8 + $0x7d0] sm:$0xff]  ;;  %v7048_v40 = vsel %vm7039_vm10, %v7046_v3, %v7047_v41  ;;  %v7634_v3 = vld [vmem:[#allocation8 + $0x8d8] sm:$0xff] }
 0x4c4   :  { %7397 = vmatpush1.bf16.msra.mxu1 %v7179_v39  ;;  %7292 = vmatprep.subr.bf16.mxu0 %v7182_v63  ;;  %v7057_v39 = vsel %vm7039_vm10, %v7047_v41, %v7056_v56  ;;  %v7069_v63 = vrot.slane %v7006_v57, 1  ;;  %v7633_v41 = vld [vmem:[#allocation8 + $0x8d0] sm:$0xff]  ;;  %v7636_v56 = vld [vmem:[#allocation8 + $0x8e8] sm:$0xff]  ;;  %v7638_v57 = vld [vmem:[#allocation8 + $0x8f8] sm:$0xff] }
 0x4c5   :  { %7398 = vmatprep.subr.bf16.mxu1 %v7184_v15  ;;  %7318 = vmatprep.mubr.bf16.mxu0 %v7099_v49  ;;  %v7070_v15 = vrot.slane %v14936_v31, 1 }
 0x4c6   :  { %7424 = vmatprep.mubr.bf16.mxu1 %v7099_v49  ;;  %v7078_v49 = vrot.slane %v7014_v38, 1  ;;  %v7635_v38 = vld [vmem:[#allocation8 + $0x8e0] sm:$0xff] }
 0x4c7   :  { %7293 = vmatpush1.bf16.msra.mxu0 %v7181_v30  ;;  %v7005_v30 = vld [vmem:[#allocation3 + $0x70] sm:$0xfe] }
 0x4c8   :  { %7399 = vmatpush1.bf16.msra.mxu1 %v7183_v62  ;;  %7294 = vmatprep.subr.bf16.mxu0 %v7186_v51  ;;  %v7229_v62 = vld [vmem:[#allocation8 + $0x7e0] sm:$0xff]  ;;  %v7231_v51 = vld [vmem:[#allocation8 + $0x7f0] sm:$0xff] }
 0x4c9   :  { %7400 = vmatprep.subr.bf16.mxu1 %v7188_v48  ;;  %v7013_v48 = vld [vmem:[#allocation3 + $0xb0] sm:$0x1] }
 0x4ca   :  { %v7076_v31 = vrot.slane %v7013_v48, 1  ;;  %v7649_v48 = vld [vmem:[#allocation8 + $0x950] sm:$0xff] }
 0x4cb   :  { %7295 = vmatpush1.bf16.msra.mxu0 %v7185_v11  ;;  %v7608_v11 = vld [vmem:[#allocation8 + $0x808] sm:$0xff] }
 0x4cc   :  { %7401 = vmatpush1.bf16.msra.mxu1 %v7187_v34  ;;  %7296 = vmatprep.subr.bf16.mxu0 %v7190_v7  ;;  %v7610_v34 = vld [vmem:[#allocation8 + $0x818] sm:$0xff]  ;;  %v7098_v7 = vpack.c.bf16 %v7057_v39, %v7048_v40  ;;  %v7641_v40 = vld [vmem:[#allocation8 + $0x910] sm:$0xff]  ;;  %v7644_v39 = vld [vmem:[#allocation8 + $0x928] sm:$0xff] }
 0x4cd   :  { %7402 = vmatprep.subr.bf16.mxu1 %v7192_v54  ;;  %v7071_v54 = vsel %vm7039_vm10, %v7069_v63, %v7070_v15  ;;  %v7646_v63 = vld [vmem:[#allocation8 + $0x938] sm:$0xff] }
 0x4cf   :  { %7297 = vmatpush1.bf16.msra.mxu0 %v7189_v33  ;;  %v7079_v33 = vsel %vm7039_vm10, %v7070_v15, %v7078_v49  ;;  %v7643_v15 = vld [vmem:[#allocation8 + $0x920] sm:$0xff]  ;;  %v7645_v49 = vld [vmem:[#allocation8 + $0x930] sm:$0xff] }
 0x4d0   :  { %7403 = vmatpush1.bf16.msra.mxu1 %v7191_v20  ;;  %7298 = vmatprep.subr.bf16.mxu0 %v7194_v12  ;;  %v7066_v20 = vrot.slane %v7005_v30, 1  ;;  %v7067_v12 = vrot.slane %v14942_v14, 1  ;;  %v7648_v30 = vld [vmem:[#allocation8 + $0x948] sm:$0xff] }
 0x4d1   :  { %7404 = vmatprep.subr.bf16.mxu1 %v7196_v21  ;;  %v7494_v21 = vld [vmem:[#allocation3 + $0x8] sm:$0xfc] }
 0x4d3   :  { %7299 = vmatpush1.bf16.msra.mxu0 %v7193_v55  ;;  %v14992_v55 = vld [vmem:[#allocation3 + $0x28] sm:$0xff] }
 0x4d4   :  { %7405 = vmatpush1.bf16.msra.mxu1 %v7195_v29  ;;  %7300 = vmatprep.subr.bf16.mxu0 %v7198_v9  ;;  %v7502_v29 = vld [vmem:[#allocation3 + $0x48] sm:$0x3]  ;;  %v7607_v9 = vld [vmem:[#allocation8 + $0x800] sm:$0xff] }
 0x4d5   :  { %7406 = vmatprep.subr.bf16.mxu1 %v7200_v45  ;;  %v7609_v45 = vld [vmem:[#allocation8 + $0x810] sm:$0xff]  ;;  %v7556_v14 = vrot.slane %v7502_v29, 2  ;;  %v7662_v29 = vld [vmem:[#allocation8 + $0x9b8] sm:$0xff] }
 0x4d7   :  { %7301 = vmatpush1.bf16.msra.mxu0 %v7197_v19  ;;  %v7612_v19 = vld [vmem:[#allocation8 + $0x828] sm:$0xff] }
 0x4d8   :  { %7407 = vmatpush1.bf16.msra.mxu1 %v7199_v6  ;;  %7302 = vmatprep.subr.bf16.mxu0 %v7202_v22  ;;  %v7614_v6 = vld [vmem:[#allocation8 + $0x838] sm:$0xff]  ;;  %v7103_v22 = vpack.c.bf16 %v7079_v33, %v7071_v54  ;;  %v7653_v54 = vld [vmem:[#allocation8 + $0x970] sm:$0xff]  ;;  %v7656_v33 = vld [vmem:[#allocation8 + $0x988] sm:$0xff] }
 0x4d9   :  { %7408 = vmatprep.subr.bf16.mxu1 %v7204_v59  ;;  %v7545_v59 = vrot.slane %v7494_v21, 2  ;;  %v7660_v21 = vld [vmem:[#allocation8 + $0x9a8] sm:$0xff] }
 0x4db   :  { %7303 = vmatpush1.bf16.msra.mxu0 %v7201_v46  ;;  %v7546_v46 = vrot.slane %v14992_v55, 2 }
 0x4dc   :  { %7409 = vmatpush1.bf16.msra.mxu1 %v7203_v32  ;;  %7304 = vmatprep.subr.bf16.mxu0 %v7206_v42  ;;  %v7068_v32 = vsel %vm7039_vm10, %v7066_v20, %v7067_v12  ;;  %v7077_v42 = vsel %vm7039_vm10, %v7067_v12, %v7076_v31  ;;  %v7658_v20 = vld [vmem:[#allocation8 + $0x998] sm:$0xff]  ;;  %v7655_v12 = vld [vmem:[#allocation8 + $0x980] sm:$0xff]  ;;  %v7657_v31 = vld [vmem:[#allocation8 + $0x990] sm:$0xff] }
 0x4dd   :  { %7410 = vmatprep.subr.bf16.mxu1 %v7208_v37  ;;  %v7611_v37 = vld [vmem:[#allocation8 + $0x820] sm:$0xff] }
 0x4df   :  { %7305 = vmatpush1.bf16.msra.mxu0 %v7205_v10  ;;  %v7613_v10 = vld [vmem:[#allocation8 + $0x830] sm:$0xff] }
 0x4e0   :  { %7411 = vmatpush1.bf16.msra.mxu1 %v7207_v8  ;;  %7306 = vmatprep.subr.bf16.mxu0 %v7210_v25  ;;  %v7616_v8 = vld [vmem:[#allocation8 + $0x848] sm:$0xff]  ;;  %v7618_v25 = vld [vmem:[#allocation8 + $0x858] sm:$0xff] }
 0x4e1   :  { %7412 = vmatprep.subr.bf16.mxu1 %v7212_v58  ;;  %v7102_v58 = vpack.c.bf16 %v7077_v42, %v7068_v32 }
 0x4e3   :  { %7307 = vmatpush1.bf16.msra.mxu0 %v7209_v13  ;;  %v7547_v13 = vsel %vm7541_vm11, %v7545_v59, %v7546_v46  ;;  %v7664_v59 = vld [vmem:[#allocation8 + $0x9c8] sm:$0xff] }
 0x4e4   :  { %7413 = vmatpush1.bf16.msra.mxu1 %v7211_v1  ;;  %7308 = vmatprep.subr.bf16.mxu0 %v7214_v26  ;;  %v7557_v1 = vsel %vm7541_vm11, %v7546_v46, %v7556_v14  ;;  %v7615_v26 = vld [vmem:[#allocation8 + $0x840] sm:$0xff]  ;;  %v7666_v46 = vld [vmem:[#allocation8 + $0x9d8] sm:$0xff] }
 0x4e5   :  { %7414 = vmatprep.subr.bf16.mxu1 %v7216_v53  ;;  %v7617_v53 = vld [vmem:[#allocation8 + $0x850] sm:$0xff] }
 0x4e7   :  { %7309 = vmatpush1.bf16.msra.mxu0 %v7213_v60  ;;  %v7620_v60 = vld [vmem:[#allocation8 + $0x868] sm:$0xff] }
 0x4e8   :  { %7415 = vmatpush1.bf16.msra.mxu1 %v7215_v28  ;;  %7310 = vmatprep.subr.bf16.mxu0 %v7218_v17  ;;  %v7622_v28 = vld [vmem:[#allocation8 + $0x878] sm:$0xff]  ;;  %v7599_v17 = vpack.c.bf16 %v7557_v1, %v7547_v13  ;;  %v7668_v13 = vld [vmem:[#allocation8 + $0x9e8] sm:$0xff] }
 0x4e9   :  { %7416 = vmatprep.subr.bf16.mxu1 %v7220_v23  ;;  %v7619_v23 = vld [vmem:[#allocation8 + $0x860] sm:$0xff]  ;;  %v7670_v1 = vld [vmem:[#allocation8 + $0x9f8] sm:$0xff] }
 0x4eb   :  { %7311 = vmatpush1.bf16.msra.mxu0 %v7217_v24  ;;  %v7621_v24 = vld [vmem:[#allocation8 + $0x870] sm:$0xff] }
 0x4ec   :  { %7417 = vmatpush1.bf16.msra.mxu1 %v7219_v36  ;;  %7312 = vmatprep.subr.bf16.mxu0 %v7222_v18  ;;  %v7624_v36 = vld [vmem:[#allocation8 + $0x888] sm:$0xff]  ;;  %v7626_v18 = vld [vmem:[#allocation8 + $0x898] sm:$0xff] }
 0x4ed   :  { %7418 = vmatprep.subr.bf16.mxu1 %v7224_v35  ;;  %v7623_v35 = vld [vmem:[#allocation8 + $0x880] sm:$0xff] }
 0x4ef   :  { %7313 = vmatpush1.bf16.msra.mxu0 %v7221_v4  ;;  %v7630_v4 = vld [vmem:[#allocation8 + $0x8b8] sm:$0xff] }
 0x4f0   :  { %7419 = vmatpush1.bf16.msra.mxu1 %v7223_v50  ;;  %7314 = vmatprep.subr.bf16.mxu0 %v7226_v16  ;;  %v7627_v50 = vld [vmem:[#allocation8 + $0x8a0] sm:$0xff]  ;;  %v7629_v16 = vld [vmem:[#allocation8 + $0x8b0] sm:$0xff] }
 0x4f1   :  { %7420 = vmatprep.subr.bf16.mxu1 %v7228_v52  ;;  %v7632_v52 = vld [vmem:[#allocation8 + $0x8c8] sm:$0xff] }
 0x4f3   :  { %7315 = vmatpush1.bf16.msra.mxu0 %v7225_v43  ;;  %v7637_v43 = vld [vmem:[#allocation8 + $0x8f0] sm:$0xff] }
 0x4f4   :  { %7421 = vmatpush1.bf16.msra.mxu1 %v7227_v2  ;;  %7316 = vmatprep.subr.bf16.mxu0 %v7230_v0  ;;  %v7640_v2 = vld [vmem:[#allocation8 + $0x908] sm:$0xff]  ;;  %v7642_v0 = vld [vmem:[#allocation8 + $0x918] sm:$0xff] }
 0x4f5   :  { %7422 = vmatprep.subr.bf16.mxu1 %v7232_v44  ;;  %v7639_v44 = vld [vmem:[#allocation8 + $0x900] sm:$0xff] }
 0x4f7   :  { %7317 = vmatpush1.bf16.msra.mxu0 %v7229_v62  ;;  %v7650_v62 = vld [vmem:[#allocation8 + $0x958] sm:$0xff] }
 0x4f8   :  { %7423 = vmatpush1.bf16.msra.mxu1 %v7231_v51  ;;  %7735 = vmatprep.subr.bf16.mxu0 %v7608_v11  ;;  %v7647_v51 = vld [vmem:[#allocation8 + $0x940] sm:$0xff]  ;;  %v7652_v11 = vld [vmem:[#allocation8 + $0x968] sm:$0xff] }
 0x4f9   :  { %7841 = vmatprep.subr.bf16.mxu1 %v7610_v34  ;;  %v7654_v34 = vld [vmem:[#allocation8 + $0x978] sm:$0xff] }
 0x4fa   :  { %7319 = vmatmul.mubr.bf16.vlgmr.msra.gmra.mrb[32].mxu0 %v7098_v7 }
 0x4fb   :  { %7425 = vmatmul.mubr.bf16.vlgmr.msra.gmra.mrb[32].mxu1 %v7098_v7  ;;  %7736 = vmatpush1.bf16.msra.mxu0 %v7607_v9  ;;  %v7651_v7 = vld [vmem:[#allocation8 + $0x960] sm:$0xff] }
 0x4fc   :  { %7842 = vmatpush1.bf16.msra.mxu1 %v7609_v45  ;;  %7737 = vmatprep.subr.bf16.mxu0 %v7612_v19  ;;  %v7493_v9 = vld [vmem:[#allocation3] sm:$0xfc]  ;;  %v7501_v19 = vld [vmem:[#allocation3 + $0x40] sm:$0x3] }
 0x4fd   :  { %7843 = vmatprep.subr.bf16.mxu1 %v7614_v6  ;;  %7328 = vmatprep.mubr.bf16.mxu0 %v7103_v22  ;;  %v14999_v45 = vld [vmem:[#allocation3 + $0x20] sm:$0xff]  ;;  %v7542_v14 = vrot.slane %v7493_v9, 2  ;;  %v7554_v42 = vrot.slane %v7501_v19, 2  ;;  %v7688_v9 = vld [vmem:[#allocation8 + $0xa88] sm:$0xff]  ;;  %v7690_v19 = vld [vmem:[#allocation8 + $0xa98] sm:$0xff] }
 0x4fe   :  { %7434 = vmatprep.mubr.bf16.mxu1 %v7103_v22  ;;  %v7659_v6 = vld [vmem:[#allocation8 + $0x9a0] sm:$0xff]  ;;  %v7661_v22 = vld [vmem:[#allocation8 + $0x9b0] sm:$0xff]  ;;  %v7543_v32 = vrot.slane %v14999_v45, 2 }
 0x4ff   :  { %7738 = vmatpush1.bf16.msra.mxu0 %v7611_v37  ;;  %v7506_v37 = vld [vmem:[#allocation3 + $0x68] sm:$0xfc] }
 0x500   :  { %7844 = vmatpush1.bf16.msra.mxu1 %v7613_v10  ;;  %7739 = vmatprep.subr.bf16.mxu0 %v7616_v8  ;;  %v15002_v10 = vld [vmem:[#allocation3 + $0x88] sm:$0xff] }
 0x501   :  { %7845 = vmatprep.subr.bf16.mxu1 %v7618_v25  ;;  %v7514_v8 = vld [vmem:[#allocation3 + $0xa8] sm:$0x3]  ;;  %v7663_v25 = vld [vmem:[#allocation8 + $0x9c0] sm:$0xff] }
 0x502   :  { %7329 = vmatmul.mubr.bf16.gmra.mrb[36].mxu0 %v7102_v58 }
 0x503   :  { %7435 = vmatmul.mubr.bf16.gmra.mrb[36].mxu1 %v7102_v58  ;;  %7740 = vmatpush1.bf16.msra.mxu0 %v7615_v26  ;;  %v7665_v58 = vld [vmem:[#allocation8 + $0x9d0] sm:$0xff]  ;;  %v7544_v26 = vsel %vm7541_vm11, %v7542_v14, %v7543_v32  ;;  %v7691_v14 = vld [vmem:[#allocation8 + $0xaa0] sm:$0xff] }
 0x504   :  { %7846 = vmatpush1.bf16.msra.mxu1 %v7617_v53  ;;  %7741 = vmatprep.subr.bf16.mxu0 %v7620_v60  ;;  %v7555_v53 = vsel %vm7541_vm11, %v7543_v32, %v7554_v42  ;;  %v7565_v60 = vrot.slane %v7506_v37, 2  ;;  %v7693_v32 = vld [vmem:[#allocation8 + $0xab0] sm:$0xff]  ;;  %v7696_v42 = vld [vmem:[#allocation8 + $0xac8] sm:$0xff]  ;;  %v7698_v37 = vld [vmem:[#allocation8 + $0xad8] sm:$0xff] }
 0x505   :  { %7847 = vmatprep.subr.bf16.mxu1 %v7622_v28  ;;  %7767 = vmatprep.mubr.bf16.mxu0 %v7599_v17  ;;  %v7566_v28 = vrot.slane %v15002_v10, 2 }
 0x506   :  { %7873 = vmatprep.mubr.bf16.mxu1 %v7599_v17  ;;  %v7576_v17 = vrot.slane %v7514_v8, 2  ;;  %v7695_v8 = vld [vmem:[#allocation8 + $0xac0] sm:$0xff] }
 0x507   :  { %7742 = vmatpush1.bf16.msra.mxu0 %v7619_v23  ;;  %v7505_v23 = vld [vmem:[#allocation3 + $0x60] sm:$0xfc] }
 0x508   :  { %7848 = vmatpush1.bf16.msra.mxu1 %v7621_v24  ;;  %7743 = vmatprep.subr.bf16.mxu0 %v7624_v36  ;;  %v15007_v24 = vld [vmem:[#allocation3 + $0x80] sm:$0xff] }
 0x509   :  { %7849 = vmatprep.subr.bf16.mxu1 %v7626_v18  ;;  %v7667_v36 = vld [vmem:[#allocation8 + $0x9e0] sm:$0xff]  ;;  %v7669_v18 = vld [vmem:[#allocation8 + $0x9f0] sm:$0xff] }
 0x50b   :  { %7744 = vmatpush1.bf16.msra.mxu0 %v7623_v35  ;;  %v7513_v35 = vld [vmem:[#allocation3 + $0xa0] sm:$0x3] }
 0x50c   :  { %7850 = vmatpush1.bf16.msra.mxu1 %v7625_v5  ;;  %7745 = vmatprep.subr.bf16.mxu0 %v7628_v27  ;;  %v7672_v5 = vld [vmem:[#allocation8 + $0xa08] sm:$0xff]  ;;  %v7674_v27 = vld [vmem:[#allocation8 + $0xa18] sm:$0xff] }
 0x50d   :  { %7851 = vmatprep.subr.bf16.mxu1 %v7630_v4  ;;  %v7598_v4 = vpack.c.bf16 %v7555_v53, %v7544_v26  ;;  %v7701_v26 = vld [vmem:[#allocation8 + $0xaf0] sm:$0xff]  ;;  %v7704_v53 = vld [vmem:[#allocation8 + $0xb08] sm:$0xff] }
 0x50f   :  { %7746 = vmatpush1.bf16.msra.mxu0 %v7627_v50  ;;  %v7567_v50 = vsel %vm7541_vm11, %v7565_v60, %v7566_v28  ;;  %v7706_v60 = vld [vmem:[#allocation8 + $0xb18] sm:$0xff] }
 0x510   :  { %7852 = vmatpush1.bf16.msra.mxu1 %v7629_v16  ;;  %7747 = vmatprep.subr.bf16.mxu0 %v7632_v52  ;;  %v7577_v16 = vsel %vm7541_vm11, %v7566_v28, %v7576_v17  ;;  %v7562_v52 = vrot.slane %v7505_v23, 2  ;;  %v7703_v28 = vld [vmem:[#allocation8 + $0xb00] sm:$0xff]  ;;  %v7705_v17 = vld [vmem:[#allocation8 + $0xb10] sm:$0xff]  ;;  %v7708_v23 = vld [vmem:[#allocation8 + $0xb28] sm:$0xff] }
 0x511   :  { %7853 = vmatprep.subr.bf16.mxu1 %v7634_v3  ;;  %v7563_v3 = vrot.slane %v15007_v24, 2 }
 0x513   :  { %7748 = vmatpush1.bf16.msra.mxu0 %v7631_v47  ;;  %v7574_v47 = vrot.slane %v7513_v35, 2  ;;  %v7709_v35 = vld [vmem:[#allocation8 + $0xb30] sm:$0xff] }
 0x514   :  { %7854 = vmatpush1.bf16.msra.mxu1 %v7633_v41  ;;  %7749 = vmatprep.subr.bf16.mxu0 %v7636_v56  ;;  %v7496_v41 = vld [vmem:[#allocation3 + $0x18] sm:$0xfc] }
 0x515   :  { %7855 = vmatprep.subr.bf16.mxu1 %v7638_v57  ;;  %v15012_v56 = vld [vmem:[#allocation3 + $0x38] sm:$0xff] }
 0x516   :  { %v7504_v57 = vld [vmem:[#allocation3 + $0x58] sm:$0x3] }
 0x517   :  { %7750 = vmatpush1.bf16.msra.mxu0 %v7635_v38  ;;  %v7671_v38 = vld [vmem:[#allocation8 + $0xa00] sm:$0xff] }
 0x518   :  { %7856 = vmatpush1.bf16.msra.mxu1 %v7637_v43  ;;  %7751 = vmatprep.subr.bf16.mxu0 %v7640_v2  ;;  %v7673_v43 = vld [vmem:[#allocation8 + $0xa10] sm:$0xff]  ;;  %v7676_v2 = vld [vmem:[#allocation8 + $0xa28] sm:$0xff] }
 0x519   :  { %7857 = vmatprep.subr.bf16.mxu1 %v7642_v0  ;;  %v7678_v0 = vld [vmem:[#allocation8 + $0xa38] sm:$0xff] }
 0x51b   :  { %7752 = vmatpush1.bf16.msra.mxu0 %v7639_v44  ;;  %v7603_v44 = vpack.c.bf16 %v7577_v16, %v7567_v50  ;;  %v7713_v50 = vld [vmem:[#allocation8 + $0xb50] sm:$0xff]  ;;  %v7716_v16 = vld [vmem:[#allocation8 + $0xb68] sm:$0xff] }
 0x51c   :  { %7858 = vmatpush1.bf16.msra.mxu1 %v7641_v40  ;;  %7753 = vmatprep.subr.bf16.mxu0 %v7644_v39  ;;  %v7551_v40 = vrot.slane %v7496_v41, 2  ;;  %v7552_v39 = vrot.slane %v15012_v56, 2  ;;  %v7720_v41 = vld [vmem:[#allocation8 + $0xb88] sm:$0xff] }
 0x51d   :  { %7859 = vmatprep.subr.bf16.mxu1 %v7646_v63  ;;  %v7560_v63 = vrot.slane %v7504_v57, 2  ;;  %v7722_v57 = vld [vmem:[#allocation8 + $0xb98] sm:$0xff] }
 0x51f   :  { %7754 = vmatpush1.bf16.msra.mxu0 %v7643_v15  ;;  %v7564_v15 = vsel %vm7541_vm11, %v7562_v52, %v7563_v3  ;;  %v7718_v52 = vld [vmem:[#allocation8 + $0xb78] sm:$0xff] }
 0x520   :  { %7860 = vmatpush1.bf16.msra.mxu1 %v7645_v49  ;;  %7755 = vmatprep.subr.bf16.mxu0 %v7648_v30  ;;  %v7575_v49 = vsel %vm7541_vm11, %v7563_v3, %v7574_v47  ;;  %v7675_v30 = vld [vmem:[#allocation8 + $0xa20] sm:$0xff]  ;;  %v7717_v47 = vld [vmem:[#allocation8 + $0xb70] sm:$0xff] }
 0x521   :  { %7861 = vmatprep.subr.bf16.mxu1 %v7650_v62  ;;  %v7677_v62 = vld [vmem:[#allocation8 + $0xa30] sm:$0xff]  ;;  %v7715_v3 = vld [vmem:[#allocation8 + $0xb60] sm:$0xff] }
 0x523   :  { %7756 = vmatpush1.bf16.msra.mxu0 %v7647_v51  ;;  %v7680_v51 = vld [vmem:[#allocation8 + $0xa48] sm:$0xff] }
 0x524   :  { %7862 = vmatpush1.bf16.msra.mxu1 %v7649_v48  ;;  %7757 = vmatprep.subr.bf16.mxu0 %v7652_v11  ;;  %v7682_v48 = vld [vmem:[#allocation8 + $0xa58] sm:$0xff]  ;;  %v7602_v11 = vpack.c.bf16 %v7575_v49, %v7564_v15  ;;  %v7503_v15 = vld [vmem:[#allocation3 + $0x50] sm:$0x3]  ;;  %v7728_v49 = vld [vmem:[#allocation8 + $0xbc8] sm:$0xff] }
 0x525   :  { %7863 = vmatprep.subr.bf16.mxu1 %v7654_v34  ;;  %v7553_v34 = vsel %vm7541_vm11, %v7551_v40, %v7552_v39  ;;  %v15019_v40 = vld [vmem:[#allocation3 + $0x30] sm:$0xff] }
 0x527   :  { %7758 = vmatpush1.bf16.msra.mxu0 %v7651_v7  ;;  %v7561_v7 = vsel %vm7541_vm11, %v7552_v39, %v7560_v63  ;;  %v7723_v39 = vld [vmem:[#allocation8 + $0xba0] sm:$0xff]  ;;  %v7725_v63 = vld [vmem:[#allocation8 + $0xbb0] sm:$0xff] }
 0x528   :  { %7864 = vmatpush1.bf16.msra.mxu1 %v7653_v54  ;;  %7759 = vmatprep.subr.bf16.mxu0 %v7656_v33  ;;  %v7679_v54 = vld [vmem:[#allocation8 + $0xa40] sm:$0xff]  ;;  %v7681_v33 = vld [vmem:[#allocation8 + $0xa50] sm:$0xff] }
 0x529   :  { %7865 = vmatprep.subr.bf16.mxu1 %v7658_v20  ;;  %v7684_v20 = vld [vmem:[#allocation8 + $0xa68] sm:$0xff] }
 0x52b   :  { %7760 = vmatpush1.bf16.msra.mxu0 %v7655_v12  ;;  %v7686_v12 = vld [vmem:[#allocation8 + $0xa78] sm:$0xff] }
 0x52c   :  { %7866 = vmatpush1.bf16.msra.mxu1 %v7657_v31  ;;  %7761 = vmatprep.subr.bf16.mxu0 %v7660_v21  ;;  %v7601_v31 = vpack.c.bf16 %v7561_v7, %v7553_v34  ;;  %v7683_v21 = vld [vmem:[#allocation8 + $0xa60] sm:$0xff]  ;;  %v15022_v34 = vld [vmem:[#allocation3 + $0x98] sm:$0xff] }
 0x52d   :  { %7867 = vmatprep.subr.bf16.mxu1 %v7662_v29  ;;  %v7685_v29 = vld [vmem:[#allocation8 + $0xa70] sm:$0xff]  ;;  %v7516_v7 = vld [vmem:[#allocation3 + $0xb8] sm:$0x3] }
 0x52f   :  { %7762 = vmatpush1.bf16.msra.mxu0 %v7659_v6  ;;  %v7687_v6 = vld [vmem:[#allocation8 + $0xa80] sm:$0xff] }
 0x530   :  { %7868 = vmatpush1.bf16.msra.mxu1 %v7661_v22  ;;  %7763 = vmatprep.subr.bf16.mxu0 %v7664_v59  ;;  %v7689_v22 = vld [vmem:[#allocation8 + $0xa90] sm:$0xff]  ;;  %v7692_v59 = vld [vmem:[#allocation8 + $0xaa8] sm:$0xff] }
 0x531   :  { %7869 = vmatprep.subr.bf16.mxu1 %v7666_v46  ;;  %v7694_v46 = vld [vmem:[#allocation8 + $0xab8] sm:$0xff] }
 0x533   :  { %7764 = vmatpush1.bf16.msra.mxu0 %v7663_v25  ;;  %v7697_v25 = vld [vmem:[#allocation8 + $0xad0] sm:$0xff] }
 0x534   :  { %7870 = vmatpush1.bf16.msra.mxu1 %v7665_v58  ;;  %7765 = vmatprep.subr.bf16.mxu0 %v7668_v13  ;;  %v7700_v58 = vld [vmem:[#allocation8 + $0xae8] sm:$0xff]  ;;  %v7702_v13 = vld [vmem:[#allocation8 + $0xaf8] sm:$0xff] }
 0x535   :  { %7871 = vmatprep.subr.bf16.mxu1 %v7670_v1  ;;  %v7699_v1 = vld [vmem:[#allocation8 + $0xae0] sm:$0xff] }
 0x537   :  { %7766 = vmatpush1.bf16.msra.mxu0 %v7667_v36  ;;  %v7710_v36 = vld [vmem:[#allocation8 + $0xb38] sm:$0xff] }
 0x538   :  { %7872 = vmatpush1.bf16.msra.mxu1 %v7669_v18  ;;  %7788 = vmatprep.subr.bf16.mxu0 %v7672_v5  ;;  %v7707_v18 = vld [vmem:[#allocation8 + $0xb20] sm:$0xff]  ;;  %v7712_v5 = vld [vmem:[#allocation8 + $0xb48] sm:$0xff] }
 0x539   :  { %7894 = vmatprep.subr.bf16.mxu1 %v7674_v27  ;;  %v7714_v27 = vld [vmem:[#allocation8 + $0xb58] sm:$0xff] }
 0x53a   :  { %7768 = vmatmul.mubr.bf16.vlgmr.msra.gmra.mrb[32].mxu0 %v7598_v4 }
 0x53b   :  { %7874 = vmatmul.mubr.bf16.vlgmr.msra.gmra.mrb[32].mxu1 %v7598_v4  ;;  %7789 = vmatpush1.bf16.msra.mxu0 %v7671_v38  ;;  %v7711_v4 = vld [vmem:[#allocation8 + $0xb40] sm:$0xff] }
 0x53c   :  { %7895 = vmatpush1.bf16.msra.mxu1 %v7673_v43  ;;  %7790 = vmatprep.subr.bf16.mxu0 %v7676_v2  ;;  %v7719_v38 = vld [vmem:[#allocation8 + $0xb80] sm:$0xff]  ;;  %v7721_v43 = vld [vmem:[#allocation8 + $0xb90] sm:$0xff]  ;;  %v7724_v2 = vld [vmem:[#allocation8 + $0xba8] sm:$0xff] }
 0x53d   :  { %7896 = vmatprep.subr.bf16.mxu1 %v7678_v0  ;;  %7777 = vmatprep.mubr.bf16.mxu0 %v7603_v44  ;;  %v7726_v0 = vld [vmem:[#allocation8 + $0xbb8] sm:$0xff] }
 0x53e   :  { %7883 = vmatprep.mubr.bf16.mxu1 %v7603_v44  ;;  %v7495_v44 = vld [vmem:[#allocation3 + $0x10] sm:$0xfc] }
 0x53f   :  { %7791 = vmatpush1.bf16.msra.mxu0 %v7675_v30  ;;  %v7730_v30 = vld [vmem:[#allocation8 + $0xbd8] sm:$0xff] }
 0x540   :  { %7897 = vmatpush1.bf16.msra.mxu1 %v7677_v62  ;;  %7792 = vmatprep.subr.bf16.mxu0 %v7680_v51  ;;  %v7548_v62 = vrot.slane %v7495_v44, 2  ;;  %v7549_v51 = vrot.slane %v15019_v40, 2  ;;  %v8121_v44 = vld [vmem:[#allocation8 + $0xc60] sm:$0xff] }
 0x541   :  { %7898 = vmatprep.subr.bf16.mxu1 %v7682_v48  ;;  %v7558_v48 = vrot.slane %v7503_v15, 2  ;;  %v8128_v15 = vld [vmem:[#allocation8 + $0xc98] sm:$0xff] }
 0x542   :  { %7778 = vmatmul.mubr.bf16.gmra.mrb[36].mxu0 %v7602_v11 }
 0x543   :  { %7884 = vmatmul.mubr.bf16.gmra.mrb[36].mxu1 %v7602_v11  ;;  %7793 = vmatpush1.bf16.msra.mxu0 %v7679_v54  ;;  %v7508_v11 = vld [vmem:[#allocation3 + $0x78] sm:$0xfc]  ;;  %v7727_v54 = vld [vmem:[#allocation8 + $0xbc0] sm:$0xff] }
 0x544   :  { %7899 = vmatpush1.bf16.msra.mxu1 %v7681_v33  ;;  %7794 = vmatprep.subr.bf16.mxu0 %v7684_v20  ;;  %v7729_v33 = vld [vmem:[#allocation8 + $0xbd0] sm:$0xff]  ;;  %v7732_v20 = vld [vmem:[#allocation8 + $0xbe8] sm:$0xff] }
 0x545   :  { %7900 = vmatprep.subr.bf16.mxu1 %v7686_v12  ;;  %7820 = vmatprep.mubr.bf16.mxu0 %v7601_v31  ;;  %v7734_v12 = vld [vmem:[#allocation8 + $0xbf8] sm:$0xff] }
 0x546   :  { %7926 = vmatprep.mubr.bf16.mxu1 %v7601_v31  ;;  %v7571_v31 = vrot.slane %v7508_v11, 2  ;;  %v8131_v11 = vld [vmem:[#allocation8 + $0xcb0] sm:$0xff] }
 0x547   :  { %7795 = vmatpush1.bf16.msra.mxu0 %v7683_v21  ;;  %v7572_v21 = vrot.slane %v15022_v34, 2 }
 0x548   :  { %7901 = vmatpush1.bf16.msra.mxu1 %v7685_v29  ;;  %7796 = vmatprep.subr.bf16.mxu0 %v7688_v9  ;;  %v7580_v29 = vrot.slane %v7516_v7, 2  ;;  %v7731_v9 = vld [vmem:[#allocation8 + $0xbe0] sm:$0xff]  ;;  %v8134_v7 = vld [vmem:[#allocation8 + $0xcc8] sm:$0xff] }
 0x549   :  { %7902 = vmatprep.subr.bf16.mxu1 %v7690_v19  ;;  %v7550_v19 = vsel %vm7541_vm11, %v7548_v62, %v7549_v51  ;;  %v8130_v62 = vld [vmem:[#allocation8 + $0xca8] sm:$0xff] }
 0x54b   :  { %7797 = vmatpush1.bf16.msra.mxu0 %v7687_v6  ;;  %v7559_v6 = vsel %vm7541_vm11, %v7549_v51, %v7558_v48  ;;  %v8132_v51 = vld [vmem:[#allocation8 + $0xcb8] sm:$0xff]  ;;  %v8129_v48 = vld [vmem:[#allocation8 + $0xca0] sm:$0xff] }
 0x54c   :  { %7903 = vmatpush1.bf16.msra.mxu1 %v7689_v22  ;;  %7798 = vmatprep.subr.bf16.mxu0 %v7692_v59  ;;  %v7507_v22 = vld [vmem:[#allocation3 + $0x70] sm:$0xfc] }
 0x54d   :  { %7904 = vmatprep.subr.bf16.mxu1 %v7694_v46  ;;  %v7733_v59 = vld [vmem:[#allocation8 + $0xbf0] sm:$0xff] }
 0x54e   :  { %v15027_v46 = vld [vmem:[#allocation3 + $0x90] sm:$0xff] }
 0x54f   :  { %7799 = vmatpush1.bf16.msra.mxu0 %v7691_v14  ;;  %v7515_v14 = vld [vmem:[#allocation3 + $0xb0] sm:$0x3] }
 0x550   :  { %7905 = vmatpush1.bf16.msra.mxu1 %v7693_v32  ;;  %7800 = vmatprep.subr.bf16.mxu0 %v7696_v42  ;;  %v8110_v32 = vld [vmem:[#allocation8 + $0xc08] sm:$0xff]  ;;  %v8112_v42 = vld [vmem:[#allocation8 + $0xc18] sm:$0xff] }
 0x551   :  { %7906 = vmatprep.subr.bf16.mxu1 %v7698_v37  ;;  %v7600_v37 = vpack.c.bf16 %v7559_v6, %v7550_v19  ;;  %v8144_v19 = vld [vmem:[#allocation8 + $0xd18] sm:$0xff]  ;;  %v8141_v6 = vld [vmem:[#allocation8 + $0xd00] sm:$0xff] }
 0x553   :  { %7801 = vmatpush1.bf16.msra.mxu0 %v7695_v8  ;;  %v7573_v8 = vsel %vm7541_vm11, %v7571_v31, %v7572_v21  ;;  %v8140_v31 = vld [vmem:[#allocation8 + $0xcf8] sm:$0xff] }
 0x554   :  { %7907 = vmatpush1.bf16.msra.mxu1 %v7697_v25  ;;  %7802 = vmatprep.subr.bf16.mxu0 %v7700_v58  ;;  %v7581_v25 = vsel %vm7541_vm11, %v7572_v21, %v7580_v29  ;;  %v7568_v58 = vrot.slane %v7507_v22, 2  ;;  %v8137_v21 = vld [vmem:[#allocation8 + $0xce0] sm:$0xff]  ;;  %v8139_v29 = vld [vmem:[#allocation8 + $0xcf0] sm:$0xff] }
 0x555   :  { %7908 = vmatprep.subr.bf16.mxu1 %v7702_v13  ;;  %v7569_v13 = vrot.slane %v15027_v46, 2  ;;  %v8143_v22 = vld [vmem:[#allocation8 + $0xd10] sm:$0xff] }
 0x557   :  { %7803 = vmatpush1.bf16.msra.mxu0 %v7699_v1  ;;  %v7578_v1 = vrot.slane %v7515_v14, 2  ;;  %v8148_v14 = vld [vmem:[#allocation8 + $0xd38] sm:$0xff] }
 0x558   :  { %7909 = vmatpush1.bf16.msra.mxu1 %v7701_v26  ;;  %7804 = vmatprep.subr.bf16.mxu0 %v7704_v53  ;;  %v7996_v26 = vld [vmem:[#allocation3 + $0x8] sm:$0xf8]  ;;  %v8004_v53 = vld [vmem:[#allocation3 + $0x48] sm:$0x7] }
 0x559   :  { %7910 = vmatprep.subr.bf16.mxu1 %v7706_v60  ;;  %v8109_v60 = vld [vmem:[#allocation8 + $0xc00] sm:$0xff] }
 0x55b   :  { %7805 = vmatpush1.bf16.msra.mxu0 %v7703_v28  ;;  %v8111_v28 = vld [vmem:[#allocation8 + $0xc10] sm:$0xff] }
 0x55c   :  { %7911 = vmatpush1.bf16.msra.mxu1 %v7705_v17  ;;  %7806 = vmatprep.subr.bf16.mxu0 %v7708_v23  ;;  %v8114_v17 = vld [vmem:[#allocation8 + $0xc28] sm:$0xff]  ;;  %v8116_v23 = vld [vmem:[#allocation8 + $0xc38] sm:$0xff] }
 0x55d   :  { %7912 = vmatprep.subr.bf16.mxu1 %v7710_v36  ;;  %v7605_v36 = vpack.c.bf16 %v7581_v25, %v7573_v8  ;;  %v8152_v8 = vld [vmem:[#allocation8 + $0xd58] sm:$0xff]  ;;  %v8149_v25 = vld [vmem:[#allocation8 + $0xd40] sm:$0xff] }
 0x55f   :  { %7807 = vmatpush1.bf16.msra.mxu0 %v7707_v18  ;;  %v8047_v18 = vrot.slane %v7996_v26, 3  ;;  %v8153_v26 = vld [vmem:[#allocation8 + $0xd60] sm:$0xff] }
 0x560   :  { %7913 = vmatpush1.bf16.msra.mxu1 %v7709_v35  ;;  %7808 = vmatprep.subr.bf16.mxu0 %v7712_v5  ;;  %v8048_v35 = vrot.slane %v14992_v55, 3  ;;  %v8058_v5 = vrot.slane %v8004_v53, 3  ;;  %v8155_v53 = vld [vmem:[#allocation8 + $0xd70] sm:$0xff] }
 0x561   :  { %7914 = vmatprep.subr.bf16.mxu1 %v7714_v27  ;;  %v7570_v27 = vsel %vm7541_vm11, %v7568_v58, %v7569_v13  ;;  %v8151_v58 = vld [vmem:[#allocation8 + $0xd50] sm:$0xff] }
 0x562   :  { %v8059_v55 = vsel %vm8043_vm12, %v8048_v35, %v8058_v5  ;;  %v8161_v5 = vld [vmem:[#allocation8 + $0xda0] sm:$0xff] }
 0x563   :  { %7809 = vmatpush1.bf16.msra.mxu0 %v7711_v4  ;;  %v7579_v4 = vsel %vm7541_vm11, %v7569_v13, %v7578_v1  ;;  %v8154_v13 = vld [vmem:[#allocation8 + $0xd68] sm:$0xff]  ;;  %v8156_v1 = vld [vmem:[#allocation8 + $0xd78] sm:$0xff] }
 0x564   :  { %7915 = vmatpush1.bf16.msra.mxu1 %v7713_v50  ;;  %7810 = vmatprep.subr.bf16.mxu0 %v7716_v16  ;;  %v8113_v50 = vld [vmem:[#allocation8 + $0xc20] sm:$0xff]  ;;  %v8115_v16 = vld [vmem:[#allocation8 + $0xc30] sm:$0xff] }
 0x565   :  { %7916 = vmatprep.subr.bf16.mxu1 %v7718_v52  ;;  %v8118_v52 = vld [vmem:[#allocation8 + $0xc48] sm:$0xff] }
 0x567   :  { %7811 = vmatpush1.bf16.msra.mxu0 %v7715_v3  ;;  %v8120_v3 = vld [vmem:[#allocation8 + $0xc58] sm:$0xff] }
 0x568   :  { %7917 = vmatpush1.bf16.msra.mxu1 %v7717_v47  ;;  %7812 = vmatprep.subr.bf16.mxu0 %v7720_v41  ;;  %v7604_v47 = vpack.c.bf16 %v7579_v4, %v7570_v27  ;;  %v8049_v41 = vsel %vm8043_vm12, %v8047_v18, %v8048_v35  ;;  %v8164_v18 = vld [vmem:[#allocation8 + $0xdb8] sm:$0xff]  ;;  %v7995_v35 = vld [vmem:[#allocation3] sm:$0xf8]  ;;  %v8163_v27 = vld [vmem:[#allocation8 + $0xdb0] sm:$0xff] }
 0x569   :  { %7918 = vmatprep.subr.bf16.mxu1 %v7722_v57  ;;  %v8117_v57 = vld [vmem:[#allocation8 + $0xc40] sm:$0xff] }
 0x56a   :  { %v8003_v4 = vld [vmem:[#allocation3 + $0x40] sm:$0x7] }
 0x56b   :  { %7813 = vmatpush1.bf16.msra.mxu0 %v7719_v38  ;;  %v8119_v38 = vld [vmem:[#allocation8 + $0xc50] sm:$0xff] }
 0x56c   :  { %7919 = vmatpush1.bf16.msra.mxu1 %v7721_v43  ;;  %7814 = vmatprep.subr.bf16.mxu0 %v7724_v2  ;;  %v8122_v43 = vld [vmem:[#allocation8 + $0xc68] sm:$0xff]  ;;  %v8124_v2 = vld [vmem:[#allocation8 + $0xc78] sm:$0xff] }
 0x56d   :  { %7920 = vmatprep.subr.bf16.mxu1 %v7726_v0  ;;  %v8101_v0 = vpack.c.bf16 %v8059_v55, %v8049_v41  ;;  %v8008_v41 = vld [vmem:[#allocation3 + $0x68] sm:$0xf8]  ;;  %v8016_v55 = vld [vmem:[#allocation3 + $0xa8] sm:$0x7] }
 0x56f   :  { %7815 = vmatpush1.bf16.msra.mxu0 %v7723_v39  ;;  %v8123_v39 = vld [vmem:[#allocation8 + $0xc70] sm:$0xff] }
 0x570   :  { %7921 = vmatpush1.bf16.msra.mxu1 %v7725_v63  ;;  %7816 = vmatprep.subr.bf16.mxu0 %v7728_v49  ;;  %v8126_v63 = vld [vmem:[#allocation8 + $0xc88] sm:$0xff]  ;;  %v8125_v49 = vld [vmem:[#allocation8 + $0xc80] sm:$0xff] }
 0x571   :  { %7922 = vmatprep.subr.bf16.mxu1 %v7730_v30  ;;  %v8127_v30 = vld [vmem:[#allocation8 + $0xc90] sm:$0xff] }
 0x573   :  { %7817 = vmatpush1.bf16.msra.mxu0 %v7727_v54  ;;  %v8136_v54 = vld [vmem:[#allocation8 + $0xcd8] sm:$0xff] }
 0x574   :  { %7923 = vmatpush1.bf16.msra.mxu1 %v7729_v33  ;;  %7818 = vmatprep.subr.bf16.mxu0 %v7732_v20  ;;  %v8133_v33 = vld [vmem:[#allocation8 + $0xcc0] sm:$0xff]  ;;  %v8135_v20 = vld [vmem:[#allocation8 + $0xcd0] sm:$0xff] }
 0x575   :  { %7924 = vmatprep.subr.bf16.mxu1 %v7734_v12  ;;  %v8138_v12 = vld [vmem:[#allocation8 + $0xce8] sm:$0xff] }
 0x577   :  { %7819 = vmatpush1.bf16.msra.mxu0 %v7731_v9  ;;  %v8142_v9 = vld [vmem:[#allocation8 + $0xd08] sm:$0xff] }
 0x578   :  { %7925 = vmatpush1.bf16.msra.mxu1 %v7733_v59  ;;  %8237 = vmatprep.subr.bf16.mxu0 %v8110_v32  ;;  %v8146_v59 = vld [vmem:[#allocation8 + $0xd28] sm:$0xff]  ;;  %v8145_v32 = vld [vmem:[#allocation8 + $0xd20] sm:$0xff] }
 0x579   :  { %8343 = vmatprep.subr.bf16.mxu1 %v8112_v42  ;;  %v8147_v42 = vld [vmem:[#allocation8 + $0xd30] sm:$0xff] }
 0x57a   :  { %7821 = vmatmul.mubr.bf16.vlgmr.msra.gmra.mrb[32].mxu0 %v7600_v37 }
 0x57b   :  { %7927 = vmatmul.mubr.bf16.vlgmr.msra.gmra.mrb[32].mxu1 %v7600_v37  ;;  %8238 = vmatpush1.bf16.msra.mxu0 %v8109_v60  ;;  %v8150_v37 = vld [vmem:[#allocation8 + $0xd48] sm:$0xff] }
 0x57c   :  { %8344 = vmatpush1.bf16.msra.mxu1 %v8111_v28  ;;  %8239 = vmatprep.subr.bf16.mxu0 %v8114_v17  ;;  %v8158_v60 = vld [vmem:[#allocation8 + $0xd88] sm:$0xff]  ;;  %v8160_v28 = vld [vmem:[#allocation8 + $0xd98] sm:$0xff]  ;;  %v8157_v17 = vld [vmem:[#allocation8 + $0xd80] sm:$0xff] }
 0x57d   :  { %8345 = vmatprep.subr.bf16.mxu1 %v8116_v23  ;;  %7830 = vmatprep.mubr.bf16.mxu0 %v7605_v36  ;;  %v8159_v23 = vld [vmem:[#allocation8 + $0xd90] sm:$0xff] }
 0x57e   :  { %7936 = vmatprep.mubr.bf16.mxu1 %v7605_v36  ;;  %v8162_v36 = vld [vmem:[#allocation8 + $0xda8] sm:$0xff] }
 0x57f   :  { %8240 = vmatpush1.bf16.msra.mxu0 %v8113_v50  ;;  %v8166_v50 = vld [vmem:[#allocation8 + $0xdc8] sm:$0xff] }
 0x580   :  { %8346 = vmatpush1.bf16.msra.mxu1 %v8115_v16  ;;  %8241 = vmatprep.subr.bf16.mxu0 %v8118_v52  ;;  %v8168_v16 = vld [vmem:[#allocation8 + $0xdd8] sm:$0xff]  ;;  %v8044_v52 = vrot.slane %v7995_v35, 3  ;;  %v8189_v35 = vld [vmem:[#allocation8 + $0xe80] sm:$0xff] }
 0x581   :  { %8347 = vmatprep.subr.bf16.mxu1 %v8120_v3  ;;  %v8045_v3 = vrot.slane %v14999_v45, 3  ;;  %v8007_v45 = vld [vmem:[#allocation3 + $0x60] sm:$0xf8] }
 0x582   :  { %7831 = vmatmul.mubr.bf16.gmra.mrb[36].mxu0 %v7604_v47 }
 0x583   :  { %7937 = vmatmul.mubr.bf16.gmra.mrb[36].mxu1 %v7604_v47  ;;  %8242 = vmatpush1.bf16.msra.mxu0 %v8117_v57  ;;  %v8056_v47 = vrot.slane %v8003_v4, 3  ;;  %v8165_v57 = vld [vmem:[#allocation8 + $0xdc0] sm:$0xff]  ;;  %v8196_v4 = vld [vmem:[#allocation8 + $0xeb8] sm:$0xff] }
 0x584   :  { %8348 = vmatpush1.bf16.msra.mxu1 %v8119_v38  ;;  %8243 = vmatprep.subr.bf16.mxu0 %v8122_v43  ;;  %v8167_v38 = vld [vmem:[#allocation8 + $0xdd0] sm:$0xff]  ;;  %v8170_v43 = vld [vmem:[#allocation8 + $0xde8] sm:$0xff] }
 0x585   :  { %8349 = vmatprep.subr.bf16.mxu1 %v8124_v2  ;;  %8269 = vmatprep.mubr.bf16.mxu0 %v8101_v0  ;;  %v8172_v2 = vld [vmem:[#allocation8 + $0xdf8] sm:$0xff] }
 0x586   :  { %8375 = vmatprep.mubr.bf16.mxu1 %v8101_v0  ;;  %v8067_v0 = vrot.slane %v8008_v41, 3  ;;  %v8199_v41 = vld [vmem:[#allocation8 + $0xed0] sm:$0xff] }
 0x587   :  { %8244 = vmatpush1.bf16.msra.mxu0 %v8121_v44  ;;  %v8068_v44 = vrot.slane %v15002_v10, 3 }
 0x588   :  { %8350 = vmatpush1.bf16.msra.mxu1 %v8123_v39  ;;  %8245 = vmatprep.subr.bf16.mxu0 %v8126_v63  ;;  %v8078_v39 = vrot.slane %v8016_v55, 3  ;;  %v8046_v63 = vsel %vm8043_vm12, %v8044_v52, %v8045_v3  ;;  %v8198_v52 = vld [vmem:[#allocation8 + $0xec8] sm:$0xff] }
 0x589   :  { %8351 = vmatprep.subr.bf16.mxu1 %v8128_v15  ;;  %v8057_v15 = vsel %vm8043_vm12, %v8045_v3, %v8056_v47  ;;  %v8200_v3 = vld [vmem:[#allocation8 + $0xed8] sm:$0xff]  ;;  %v8197_v47 = vld [vmem:[#allocation8 + $0xec0] sm:$0xff]  ;;  %v8202_v55 = vld [vmem:[#allocation8 + $0xee8] sm:$0xff] }
 0x58a   :  { %v8079_v10 = vsel %vm8043_vm12, %v8068_v44, %v8078_v39  ;;  %v8207_v39 = vld [vmem:[#allocation8 + $0xf10] sm:$0xff] }
 0x58b   :  { %8246 = vmatpush1.bf16.msra.mxu0 %v8125_v49  ;;  %v8169_v49 = vld [vmem:[#allocation8 + $0xde0] sm:$0xff] }
 0x58c   :  { %8352 = vmatpush1.bf16.msra.mxu1 %v8127_v30  ;;  %8247 = vmatprep.subr.bf16.mxu0 %v8130_v62  ;;  %v8171_v30 = vld [vmem:[#allocation8 + $0xdf0] sm:$0xff]  ;;  %v8015_v62 = vld [vmem:[#allocation3 + $0xa0] sm:$0x7] }
 0x58d   :  { %8353 = vmatprep.subr.bf16.mxu1 %v8132_v51  ;;  %v8174_v51 = vld [vmem:[#allocation8 + $0xe08] sm:$0xff] }
 0x58f   :  { %8248 = vmatpush1.bf16.msra.mxu0 %v8129_v48  ;;  %v8176_v48 = vld [vmem:[#allocation8 + $0xe18] sm:$0xff] }
 0x590   :  { %8354 = vmatpush1.bf16.msra.mxu1 %v8131_v11  ;;  %8249 = vmatprep.subr.bf16.mxu0 %v8134_v7  ;;  %v8100_v11 = vpack.c.bf16 %v8057_v15, %v8046_v63  ;;  %v8069_v7 = vsel %vm8043_vm12, %v8067_v0, %v8068_v44  ;;  %v8208_v0 = vld [vmem:[#allocation8 + $0xf18] sm:$0xff]  ;;  %v8205_v44 = vld [vmem:[#allocation8 + $0xf00] sm:$0xff]  ;;  %v8210_v63 = vld [vmem:[#allocation8 + $0xf28] sm:$0xff] }
 0x591   :  { %8355 = vmatprep.subr.bf16.mxu1 %v8136_v54  ;;  %v8064_v54 = vrot.slane %v8007_v45, 3  ;;  %v8212_v15 = vld [vmem:[#allocation8 + $0xf38] sm:$0xff]  ;;  %v8209_v45 = vld [vmem:[#allocation8 + $0xf20] sm:$0xff] }
 0x593   :  { %8250 = vmatpush1.bf16.msra.mxu0 %v8133_v33  ;;  %v8065_v33 = vrot.slane %v15007_v24, 3 }
 0x594   :  { %8356 = vmatpush1.bf16.msra.mxu1 %v8135_v20  ;;  %8251 = vmatprep.subr.bf16.mxu0 %v8138_v12  ;;  %v8076_v20 = vrot.slane %v8015_v62, 3  ;;  %v7998_v12 = vld [vmem:[#allocation3 + $0x18] sm:$0xf8] }
 0x595   :  { %8357 = vmatprep.subr.bf16.mxu1 %v8140_v31  ;;  %v8006_v31 = vld [vmem:[#allocation3 + $0x58] sm:$0x7]  ;;  %v8066_v24 = vsel %vm8043_vm12, %v8064_v54, %v8065_v33  ;;  %v8219_v54 = vld [vmem:[#allocation8 + $0xf70] sm:$0xff] }
 0x596   :  { %v8216_v62 = vld [vmem:[#allocation8 + $0xf58] sm:$0xff] }
 0x597   :  { %8252 = vmatpush1.bf16.msra.mxu0 %v8137_v21  ;;  %v8173_v21 = vld [vmem:[#allocation8 + $0xe00] sm:$0xff] }
 0x598   :  { %8358 = vmatpush1.bf16.msra.mxu1 %v8139_v29  ;;  %8253 = vmatprep.subr.bf16.mxu0 %v8142_v9  ;;  %v8175_v29 = vld [vmem:[#allocation8 + $0xe10] sm:$0xff]  ;;  %v8178_v9 = vld [vmem:[#allocation8 + $0xe28] sm:$0xff] }
 0x599   :  { %8359 = vmatprep.subr.bf16.mxu1 %v8144_v19  ;;  %v8180_v19 = vld [vmem:[#allocation8 + $0xe38] sm:$0xff] }
 0x59b   :  { %8254 = vmatpush1.bf16.msra.mxu0 %v8141_v6  ;;  %v8105_v6 = vpack.c.bf16 %v8079_v10, %v8069_v7  ;;  %v8220_v7 = vld [vmem:[#allocation8 + $0xf78] sm:$0xff]  ;;  %v8217_v10 = vld [vmem:[#allocation8 + $0xf60] sm:$0xff] }
 0x59c   :  { %8360 = vmatpush1.bf16.msra.mxu1 %v8143_v22  ;;  %8255 = vmatprep.subr.bf16.mxu0 %v8146_v59  ;;  %v8053_v22 = vrot.slane %v7998_v12, 3  ;;  %v8054_v59 = vrot.slane %v15012_v56, 3  ;;  %v8221_v12 = vld [vmem:[#allocation8 + $0xf80] sm:$0xff] }
 0x59d   :  { %8361 = vmatprep.subr.bf16.mxu1 %v8148_v14  ;;  %v8062_v14 = vrot.slane %v8006_v31, 3  ;;  %v8223_v31 = vld [vmem:[#allocation8 + $0xf90] sm:$0xff] }
 0x59f   :  { %8256 = vmatpush1.bf16.msra.mxu0 %v8145_v32  ;;  %v8077_v32 = vsel %vm8043_vm12, %v8065_v33, %v8076_v20  ;;  %v8063_v56 = vsel %vm8043_vm12, %v8054_v59, %v8062_v14  ;;  %v8222_v33 = vld [vmem:[#allocation8 + $0xf88] sm:$0xff]  ;;  %v8224_v20 = vld [vmem:[#allocation8 + $0xf98] sm:$0xff] }
 0x5a0   :  { %8362 = vmatpush1.bf16.msra.mxu1 %v8147_v42  ;;  %8257 = vmatprep.subr.bf16.mxu0 %v8150_v37  ;;  %v8177_v42 = vld [vmem:[#allocation8 + $0xe20] sm:$0xff]  ;;  %v8179_v37 = vld [vmem:[#allocation8 + $0xe30] sm:$0xff]  ;;  %v8232_v14 = vld [vmem:[#allocation8 + $0xfd8] sm:$0xff] }
 0x5a1   :  { %8363 = vmatprep.subr.bf16.mxu1 %v8152_v8  ;;  %v8182_v8 = vld [vmem:[#allocation8 + $0xe48] sm:$0xff] }
 0x5a3   :  { %8258 = vmatpush1.bf16.msra.mxu0 %v8149_v25  ;;  %v8184_v25 = vld [vmem:[#allocation8 + $0xe58] sm:$0xff] }
 0x5a4   :  { %8364 = vmatpush1.bf16.msra.mxu1 %v8151_v58  ;;  %8259 = vmatprep.subr.bf16.mxu0 %v8154_v13  ;;  %v8104_v58 = vpack.c.bf16 %v8077_v32, %v8066_v24  ;;  %v8055_v13 = vsel %vm8043_vm12, %v8053_v22, %v8054_v59  ;;  %v8227_v22 = vld [vmem:[#allocation8 + $0xfb0] sm:$0xff]  ;;  %v8230_v59 = vld [vmem:[#allocation8 + $0xfc8] sm:$0xff]  ;;  %v8051_v32 = vrot.slane %v15019_v40, 3 }
 0x5a5   :  { %8365 = vmatprep.subr.bf16.mxu1 %v8156_v1  ;;  %v8181_v1 = vld [vmem:[#allocation8 + $0xe40] sm:$0xff]  ;;  %v8009_v40 = vld [vmem:[#allocation3 + $0x70] sm:$0xf8] }
 0x5a7   :  { %8260 = vmatpush1.bf16.msra.mxu0 %v8153_v26  ;;  %v8183_v26 = vld [vmem:[#allocation8 + $0xe50] sm:$0xff] }
 0x5a8   :  { %8366 = vmatpush1.bf16.msra.mxu1 %v8155_v53  ;;  %8261 = vmatprep.subr.bf16.mxu0 %v8158_v60  ;;  %v8186_v53 = vld [vmem:[#allocation8 + $0xe68] sm:$0xff]  ;;  %v8188_v60 = vld [vmem:[#allocation8 + $0xe78] sm:$0xff] }
 0x5a9   :  { %8367 = vmatprep.subr.bf16.mxu1 %v8160_v28  ;;  %v8103_v28 = vpack.c.bf16 %v8063_v56, %v8055_v13  ;;  %v8234_v13 = vld [vmem:[#allocation8 + $0xfe8] sm:$0xff]  ;;  %v8236_v56 = vld [vmem:[#allocation8 + $0xff8] sm:$0xff] }
 0x5ab   :  { %8262 = vmatpush1.bf16.msra.mxu0 %v8157_v17  ;;  %v8185_v17 = vld [vmem:[#allocation8 + $0xe60] sm:$0xff] }
 0x5ac   :  { %8368 = vmatpush1.bf16.msra.mxu1 %v8159_v23  ;;  %8263 = vmatprep.subr.bf16.mxu0 %v8162_v36  ;;  %v8187_v23 = vld [vmem:[#allocation8 + $0xe70] sm:$0xff]  ;;  %v8190_v36 = vld [vmem:[#allocation8 + $0xe88] sm:$0xff] }
 0x5ad   :  { %8369 = vmatprep.subr.bf16.mxu1 %v8164_v18  ;;  %v8192_v18 = vld [vmem:[#allocation8 + $0xe98] sm:$0xff] }
 0x5af   :  { %8264 = vmatpush1.bf16.msra.mxu0 %v8161_v5  ;;  %v8191_v5 = vld [vmem:[#allocation8 + $0xe90] sm:$0xff] }
 0x5b0   :  { %8370 = vmatpush1.bf16.msra.mxu1 %v8163_v27  ;;  %8265 = vmatprep.subr.bf16.mxu0 %v8166_v50  ;;  %v8194_v27 = vld [vmem:[#allocation8 + $0xea8] sm:$0xff]  ;;  %v8193_v50 = vld [vmem:[#allocation8 + $0xea0] sm:$0xff] }
 0x5b1   :  { %8371 = vmatprep.subr.bf16.mxu1 %v8168_v16  ;;  %v8195_v16 = vld [vmem:[#allocation8 + $0xeb0] sm:$0xff] }
 0x5b3   :  { %8266 = vmatpush1.bf16.msra.mxu0 %v8165_v57  ;;  %v8204_v57 = vld [vmem:[#allocation8 + $0xef8] sm:$0xff] }
 0x5b4   :  { %8372 = vmatpush1.bf16.msra.mxu1 %v8167_v38  ;;  %8267 = vmatprep.subr.bf16.mxu0 %v8170_v43  ;;  %v8201_v38 = vld [vmem:[#allocation8 + $0xee0] sm:$0xff]  ;;  %v8203_v43 = vld [vmem:[#allocation8 + $0xef0] sm:$0xff] }
 0x5b5   :  { %8373 = vmatprep.subr.bf16.mxu1 %v8172_v2  ;;  %v8206_v2 = vld [vmem:[#allocation8 + $0xf08] sm:$0xff] }
 0x5b7   :  { %8268 = vmatpush1.bf16.msra.mxu0 %v8169_v49  ;;  %v8211_v49 = vld [vmem:[#allocation8 + $0xf30] sm:$0xff] }
 0x5b8   :  { %8374 = vmatpush1.bf16.msra.mxu1 %v8171_v30  ;;  %8290 = vmatprep.subr.bf16.mxu0 %v8174_v51  ;;  %v8214_v30 = vld [vmem:[#allocation8 + $0xf48] sm:$0xff]  ;;  %v8213_v51 = vld [vmem:[#allocation8 + $0xf40] sm:$0xff] }
 0x5b9   :  { %8396 = vmatprep.subr.bf16.mxu1 %v8176_v48  ;;  %v8215_v48 = vld [vmem:[#allocation8 + $0xf50] sm:$0xff] }
 0x5ba   :  { %8270 = vmatmul.mubr.bf16.vlgmr.msra.gmra.mrb[32].mxu0 %v8100_v11 }
 0x5bb   :  { %8376 = vmatmul.mubr.bf16.vlgmr.msra.gmra.mrb[32].mxu1 %v8100_v11  ;;  %8291 = vmatpush1.bf16.msra.mxu0 %v8173_v21  ;;  %v8218_v11 = vld [vmem:[#allocation8 + $0xf68] sm:$0xff] }
 0x5bc   :  { %8397 = vmatpush1.bf16.msra.mxu1 %v8175_v29  ;;  %8292 = vmatprep.subr.bf16.mxu0 %v8178_v9  ;;  %v8226_v21 = vld [vmem:[#allocation8 + $0xfa8] sm:$0xff]  ;;  %v8228_v29 = vld [vmem:[#allocation8 + $0xfb8] sm:$0xff]  ;;  %v7997_v9 = vld [vmem:[#allocation3 + $0x10] sm:$0xf8] }
 0x5bd   :  { %8398 = vmatprep.subr.bf16.mxu1 %v8180_v19  ;;  %8279 = vmatprep.mubr.bf16.mxu0 %v8105_v6  ;;  %v8005_v19 = vld [vmem:[#allocation3 + $0x50] sm:$0x7]  ;;  %v8050_v24 = vrot.slane %v7997_v9, 3  ;;  %v8632_v9 = vld [vmem:[#allocation8 + $0x10a8] sm:$0xff] }
 0x5be   :  { %8385 = vmatprep.mubr.bf16.mxu1 %v8105_v6  ;;  %v8225_v6 = vld [vmem:[#allocation8 + $0xfa0] sm:$0xff] }
 0x5bf   :  { %8293 = vmatpush1.bf16.msra.mxu0 %v8177_v42  ;;  %v8060_v42 = vrot.slane %v8005_v19, 3  ;;  %v8634_v19 = vld [vmem:[#allocation8 + $0x10b8] sm:$0xff] }
 0x5c0   :  { %8399 = vmatpush1.bf16.msra.mxu1 %v8179_v37  ;;  %8294 = vmatprep.subr.bf16.mxu0 %v8182_v8  ;;  %v8010_v37 = vld [vmem:[#allocation3 + $0x78] sm:$0xf8]  ;;  %v8018_v8 = vld [vmem:[#allocation3 + $0xb8] sm:$0x7] }
 0x5c1   :  { %8400 = vmatprep.subr.bf16.mxu1 %v8184_v25  ;;  %v8229_v25 = vld [vmem:[#allocation8 + $0xfc0] sm:$0xff] }
 0x5c2   :  { %8280 = vmatmul.mubr.bf16.gmra.mrb[36].mxu0 %v8104_v58 }
 0x5c3   :  { %8386 = vmatmul.mubr.bf16.gmra.mrb[36].mxu1 %v8104_v58  ;;  %8295 = vmatpush1.bf16.msra.mxu0 %v8181_v1  ;;  %v8231_v58 = vld [vmem:[#allocation8 + $0xfd0] sm:$0xff]  ;;  %v8052_v1 = vsel %vm8043_vm12, %v8050_v24, %v8051_v32  ;;  %v8635_v24 = vld [vmem:[#allocation8 + $0x10c0] sm:$0xff] }
 0x5c4   :  { %8401 = vmatpush1.bf16.msra.mxu1 %v8183_v26  ;;  %8296 = vmatprep.subr.bf16.mxu0 %v8186_v53  ;;  %v8061_v26 = vsel %vm8043_vm12, %v8051_v32, %v8060_v42  ;;  %v8073_v53 = vrot.slane %v8010_v37, 3  ;;  %v8637_v32 = vld [vmem:[#allocation8 + $0x10d0] sm:$0xff]  ;;  %v8640_v42 = vld [vmem:[#allocation8 + $0x10e8] sm:$0xff]  ;;  %v8642_v37 = vld [vmem:[#allocation8 + $0x10f8] sm:$0xff] }
 0x5c5   :  { %8402 = vmatprep.subr.bf16.mxu1 %v8188_v60  ;;  %8322 = vmatprep.mubr.bf16.mxu0 %v8103_v28  ;;  %v8074_v60 = vrot.slane %v15022_v34, 3 }
 0x5c6   :  { %8428 = vmatprep.mubr.bf16.mxu1 %v8103_v28  ;;  %v8082_v28 = vrot.slane %v8018_v8, 3  ;;  %v8639_v8 = vld [vmem:[#allocation8 + $0x10e0] sm:$0xff] }
 0x5c7   :  { %8297 = vmatpush1.bf16.msra.mxu0 %v8185_v17  ;;  %v8233_v17 = vld [vmem:[#allocation8 + $0xfe0] sm:$0xff] }
 0x5c8   :  { %8403 = vmatpush1.bf16.msra.mxu1 %v8187_v23  ;;  %8298 = vmatprep.subr.bf16.mxu0 %v8190_v36  ;;  %v8235_v23 = vld [vmem:[#allocation8 + $0xff0] sm:$0xff] }
 0x5c9   :  { %8404 = vmatprep.subr.bf16.mxu1 %v8192_v18  ;;  %v8017_v36 = vld [vmem:[#allocation3 + $0xb0] sm:$0x7]  ;;  %v8612_v18 = vld [vmem:[#allocation8 + $0x1008] sm:$0xff] }
 0x5ca   :  { %v8080_v34 = vrot.slane %v8017_v36, 3  ;;  %v8653_v36 = vld [vmem:[#allocation8 + $0x1150] sm:$0xff] }
 0x5cb   :  { %8299 = vmatpush1.bf16.msra.mxu0 %v8189_v35  ;;  %v8614_v35 = vld [vmem:[#allocation8 + $0x1018] sm:$0xff] }
 0x5cc   :  { %8405 = vmatpush1.bf16.msra.mxu1 %v8191_v5  ;;  %8300 = vmatprep.subr.bf16.mxu0 %v8194_v27  ;;  %v8102_v5 = vpack.c.bf16 %v8061_v26, %v8052_v1  ;;  %v8075_v27 = vsel %vm8043_vm12, %v8073_v53, %v8074_v60  ;;  %v8645_v1 = vld [vmem:[#allocation8 + $0x1110] sm:$0xff]  ;;  %v8648_v26 = vld [vmem:[#allocation8 + $0x1128] sm:$0xff]  ;;  %v8650_v53 = vld [vmem:[#allocation8 + $0x1138] sm:$0xff] }
 0x5cd   :  { %8406 = vmatprep.subr.bf16.mxu1 %v8196_v4  ;;  %v8083_v4 = vsel %vm8043_vm12, %v8074_v60, %v8082_v28  ;;  %v8647_v60 = vld [vmem:[#allocation8 + $0x1120] sm:$0xff]  ;;  %v8649_v28 = vld [vmem:[#allocation8 + $0x1130] sm:$0xff] }
 0x5cf   :  { %8301 = vmatpush1.bf16.msra.mxu0 %v8193_v50  ;;  %v8070_v50 = vrot.slane %v8009_v40, 3  ;;  %v8652_v40 = vld [vmem:[#allocation8 + $0x1148] sm:$0xff] }
 0x5d0   :  { %8407 = vmatpush1.bf16.msra.mxu1 %v8195_v16  ;;  %8302 = vmatprep.subr.bf16.mxu0 %v8198_v52  ;;  %v8071_v16 = vrot.slane %v15027_v46, 3  ;;  %v8498_v52 = vld [vmem:[#allocation3 + $0x8] sm:$0xf0] }
 0x5d1   :  { %8408 = vmatprep.subr.bf16.mxu1 %v8200_v3  ;;  %v8502_v3 = vld [vmem:[#allocation3 + $0x28] sm:$0xff] }
 0x5d2   :  { %v8072_v46 = vsel %vm8043_vm12, %v8070_v50, %v8071_v16  ;;  %v8662_v50 = vld [vmem:[#allocation8 + $0x1198] sm:$0xff] }
 0x5d3   :  { %8303 = vmatpush1.bf16.msra.mxu0 %v8197_v47  ;;  %v8506_v47 = vld [vmem:[#allocation3 + $0x48] sm:$0xf] }
 0x5d4   :  { %8409 = vmatpush1.bf16.msra.mxu1 %v8199_v41  ;;  %8304 = vmatprep.subr.bf16.mxu0 %v8202_v55  ;;  %v8611_v41 = vld [vmem:[#allocation8 + $0x1000] sm:$0xff]  ;;  %v8613_v55 = vld [vmem:[#allocation8 + $0x1010] sm:$0xff] }
 0x5d5   :  { %8410 = vmatprep.subr.bf16.mxu1 %v8204_v57  ;;  %v8616_v57 = vld [vmem:[#allocation8 + $0x1028] sm:$0xff] }
 0x5d7   :  { %8305 = vmatpush1.bf16.msra.mxu0 %v8201_v38  ;;  %v8618_v38 = vld [vmem:[#allocation8 + $0x1038] sm:$0xff] }
 0x5d8   :  { %8411 = vmatpush1.bf16.msra.mxu1 %v8203_v43  ;;  %8306 = vmatprep.subr.bf16.mxu0 %v8206_v2  ;;  %v8107_v43 = vpack.c.bf16 %v8083_v4, %v8075_v27  ;;  %v8549_v2 = vrot.slane %v8498_v52, 4  ;;  %v8657_v27 = vld [vmem:[#allocation8 + $0x1170] sm:$0xff]  ;;  %v8660_v4 = vld [vmem:[#allocation8 + $0x1188] sm:$0xff] }
 0x5d9   :  { %8412 = vmatprep.subr.bf16.mxu1 %v8208_v0  ;;  %v8550_v0 = vrot.slane %v8502_v3, 4  ;;  %v8664_v52 = vld [vmem:[#allocation8 + $0x11a8] sm:$0xff]  ;;  %v8666_v3 = vld [vmem:[#allocation8 + $0x11b8] sm:$0xff] }
 0x5db   :  { %8307 = vmatpush1.bf16.msra.mxu0 %v8205_v44  ;;  %v8560_v44 = vrot.slane %v8506_v47, 4  ;;  %v8497_v47 = vld [vmem:[#allocation3] sm:$0xf0] }
 0x5dc   :  { %8413 = vmatpush1.bf16.msra.mxu1 %v8207_v39  ;;  %8308 = vmatprep.subr.bf16.mxu0 %v8210_v63  ;;  %v8081_v39 = vsel %vm8043_vm12, %v8071_v16, %v8080_v34  ;;  %v8615_v63 = vld [vmem:[#allocation8 + $0x1020] sm:$0xff]  ;;  %v8661_v34 = vld [vmem:[#allocation8 + $0x1190] sm:$0xff] }
 0x5dd   :  { %8414 = vmatprep.subr.bf16.mxu1 %v8212_v15  ;;  %v8617_v15 = vld [vmem:[#allocation8 + $0x1030] sm:$0xff]  ;;  %v8659_v16 = vld [vmem:[#allocation8 + $0x1180] sm:$0xff] }
 0x5df   :  { %8309 = vmatpush1.bf16.msra.mxu0 %v8209_v45  ;;  %v8620_v45 = vld [vmem:[#allocation8 + $0x1048] sm:$0xff] }
 0x5e0   :  { %8415 = vmatpush1.bf16.msra.mxu1 %v8211_v49  ;;  %8310 = vmatprep.subr.bf16.mxu0 %v8214_v30  ;;  %v8622_v49 = vld [vmem:[#allocation8 + $0x1058] sm:$0xff]  ;;  %v8106_v30 = vpack.c.bf16 %v8081_v39, %v8072_v46  ;;  %v8510_v39 = vld [vmem:[#allocation3 + $0x68] sm:$0xf0] }
 0x5e1   :  { %8416 = vmatprep.subr.bf16.mxu1 %v8216_v62  ;;  %v8551_v62 = vsel %vm8545_vm13, %v8549_v2, %v8550_v0  ;;  %v8670_v2 = vld [vmem:[#allocation8 + $0x11d8] sm:$0xff] }
 0x5e3   :  { %8311 = vmatpush1.bf16.msra.mxu0 %v8213_v51  ;;  %v8561_v51 = vsel %vm8545_vm13, %v8550_v0, %v8560_v44  ;;  %v8546_v0 = vrot.slane %v8497_v47, 4  ;;  %v8694_v47 = vld [vmem:[#allocation8 + $0x1298] sm:$0xff] }
 0x5e4   :  { %8417 = vmatpush1.bf16.msra.mxu1 %v8215_v48  ;;  %8312 = vmatprep.subr.bf16.mxu0 %v8218_v11  ;;  %v8619_v48 = vld [vmem:[#allocation8 + $0x1040] sm:$0xff]  ;;  %v8621_v11 = vld [vmem:[#allocation8 + $0x1050] sm:$0xff] }
 0x5e5   :  { %8418 = vmatprep.subr.bf16.mxu1 %v8220_v7  ;;  %v8624_v7 = vld [vmem:[#allocation8 + $0x1068] sm:$0xff] }
 0x5e7   :  { %8313 = vmatpush1.bf16.msra.mxu0 %v8217_v10  ;;  %v8626_v10 = vld [vmem:[#allocation8 + $0x1078] sm:$0xff] }
 0x5e8   :  { %8419 = vmatpush1.bf16.msra.mxu1 %v8219_v54  ;;  %8314 = vmatprep.subr.bf16.mxu0 %v8222_v33  ;;  %v8603_v54 = vpack.c.bf16 %v8561_v51, %v8551_v62  ;;  %v8623_v33 = vld [vmem:[#allocation8 + $0x1060] sm:$0xff]  ;;  %v8674_v62 = vld [vmem:[#allocation8 + $0x11f8] sm:$0xff] }
 0x5e9   :  { %8420 = vmatprep.subr.bf16.mxu1 %v8224_v20  ;;  %v8625_v20 = vld [vmem:[#allocation8 + $0x1070] sm:$0xff] }
 0x5eb   :  { %8315 = vmatpush1.bf16.msra.mxu0 %v8221_v12  ;;  %v8628_v12 = vld [vmem:[#allocation8 + $0x1088] sm:$0xff] }
 0x5ec   :  { %8421 = vmatpush1.bf16.msra.mxu1 %v8223_v31  ;;  %8316 = vmatprep.subr.bf16.mxu0 %v8226_v21  ;;  %v8630_v31 = vld [vmem:[#allocation8 + $0x1098] sm:$0xff]  ;;  %v8627_v21 = vld [vmem:[#allocation8 + $0x1080] sm:$0xff] }
 0x5ed   :  { %8422 = vmatprep.subr.bf16.mxu1 %v8228_v29  ;;  %v8629_v29 = vld [vmem:[#allocation8 + $0x1090] sm:$0xff] }
 0x5ef   :  { %8317 = vmatpush1.bf16.msra.mxu0 %v8225_v6  ;;  %v8631_v6 = vld [vmem:[#allocation8 + $0x10a0] sm:$0xff] }
 0x5f0   :  { %8423 = vmatpush1.bf16.msra.mxu1 %v8227_v22  ;;  %8318 = vmatprep.subr.bf16.mxu0 %v8230_v59  ;;  %v8633_v22 = vld [vmem:[#allocation8 + $0x10b0] sm:$0xff]  ;;  %v8636_v59 = vld [vmem:[#allocation8 + $0x10c8] sm:$0xff] }
 0x5f1   :  { %8424 = vmatprep.subr.bf16.mxu1 %v8232_v14  ;;  %v8638_v14 = vld [vmem:[#allocation8 + $0x10d8] sm:$0xff] }
 0x5f3   :  { %8319 = vmatpush1.bf16.msra.mxu0 %v8229_v25  ;;  %v8641_v25 = vld [vmem:[#allocation8 + $0x10f0] sm:$0xff] }
 0x5f4   :  { %8425 = vmatpush1.bf16.msra.mxu1 %v8231_v58  ;;  %8320 = vmatprep.subr.bf16.mxu0 %v8234_v13  ;;  %v8644_v58 = vld [vmem:[#allocation8 + $0x1108] sm:$0xff]  ;;  %v8646_v13 = vld [vmem:[#allocation8 + $0x1118] sm:$0xff] }
 0x5f5   :  { %8426 = vmatprep.subr.bf16.mxu1 %v8236_v56  ;;  %v8643_v56 = vld [vmem:[#allocation8 + $0x1100] sm:$0xff] }
 0x5f7   :  { %8321 = vmatpush1.bf16.msra.mxu0 %v8233_v17  ;;  %v8654_v17 = vld [vmem:[#allocation8 + $0x1158] sm:$0xff] }
 0x5f8   :  { %8427 = vmatpush1.bf16.msra.mxu1 %v8235_v23  ;;  %8739 = vmatprep.subr.bf16.mxu0 %v8612_v18  ;;  %v8651_v23 = vld [vmem:[#allocation8 + $0x1140] sm:$0xff]  ;;  %v8656_v18 = vld [vmem:[#allocation8 + $0x1168] sm:$0xff] }
 0x5f9   :  { %8845 = vmatprep.subr.bf16.mxu1 %v8614_v35  ;;  %v8658_v35 = vld [vmem:[#allocation8 + $0x1178] sm:$0xff] }
 0x5fa   :  { %8323 = vmatmul.mubr.bf16.vlgmr.msra.gmra.mrb[32].mxu0 %v8102_v5 }
 0x5fb   :  { %8429 = vmatmul.mubr.bf16.vlgmr.msra.gmra.mrb[32].mxu1 %v8102_v5  ;;  %8740 = vmatpush1.bf16.msra.mxu0 %v8611_v41  ;;  %v8655_v5 = vld [vmem:[#allocation8 + $0x1160] sm:$0xff] }
 0x5fc   :  { %8846 = vmatpush1.bf16.msra.mxu1 %v8613_v55  ;;  %8741 = vmatprep.subr.bf16.mxu0 %v8616_v57  ;;  %v8501_v41 = vld [vmem:[#allocation3 + $0x20] sm:$0xff] }
 0x5fd   :  { %8847 = vmatprep.subr.bf16.mxu1 %v8618_v38  ;;  %8332 = vmatprep.mubr.bf16.mxu0 %v8107_v43  ;;  %v8505_v55 = vld [vmem:[#allocation3 + $0x40] sm:$0xf]  ;;  %v8665_v38 = vld [vmem:[#allocation8 + $0x11b0] sm:$0xff]  ;;  %v8547_v44 = vrot.slane %v8501_v41, 4 }
 0x5fe   :  { %8438 = vmatprep.mubr.bf16.mxu1 %v8107_v43  ;;  %v8663_v57 = vld [vmem:[#allocation8 + $0x11a0] sm:$0xff]  ;;  %v8668_v43 = vld [vmem:[#allocation8 + $0x11c8] sm:$0xff]  ;;  %v8558_v46 = vrot.slane %v8505_v55, 4  ;;  %v8693_v55 = vld [vmem:[#allocation8 + $0x1290] sm:$0xff] }
 0x5ff   :  { %8742 = vmatpush1.bf16.msra.mxu0 %v8615_v63  ;;  %v8514_v63 = vld [vmem:[#allocation3 + $0x88] sm:$0xff]  ;;  %v8548_v51 = vsel %vm8545_vm13, %v8546_v0, %v8547_v44  ;;  %v8691_v41 = vld [vmem:[#allocation8 + $0x1280] sm:$0xff] }
 0x600   :  { %8848 = vmatpush1.bf16.msra.mxu1 %v8617_v15  ;;  %8743 = vmatprep.subr.bf16.mxu0 %v8620_v45  ;;  %v8518_v15 = vld [vmem:[#allocation3 + $0xa8] sm:$0xf]  ;;  %v8667_v45 = vld [vmem:[#allocation8 + $0x11c0] sm:$0xff] }
 0x601   :  { %8849 = vmatprep.subr.bf16.mxu1 %v8622_v49  ;;  %v8669_v49 = vld [vmem:[#allocation8 + $0x11d0] sm:$0xff]  ;;  %v8700_v0 = vld [vmem:[#allocation8 + $0x12c8] sm:$0xff] }
 0x602   :  { %8333 = vmatmul.mubr.bf16.gmra.mrb[36].mxu0 %v8106_v30 }
 0x603   :  { %8439 = vmatmul.mubr.bf16.gmra.mrb[36].mxu1 %v8106_v30  ;;  %8744 = vmatpush1.bf16.msra.mxu0 %v8619_v48  ;;  %v8672_v30 = vld [vmem:[#allocation8 + $0x11e8] sm:$0xff]  ;;  %v8559_v48 = vsel %vm8545_vm13, %v8547_v44, %v8558_v46  ;;  %v8702_v44 = vld [vmem:[#allocation8 + $0x12d8] sm:$0xff]  ;;  %v8699_v46 = vld [vmem:[#allocation8 + $0x12c0] sm:$0xff] }
 0x604   :  { %8850 = vmatpush1.bf16.msra.mxu1 %v8621_v11  ;;  %8745 = vmatprep.subr.bf16.mxu0 %v8624_v7  ;;  %v8569_v11 = vrot.slane %v8510_v39, 4  ;;  %v8570_v7 = vrot.slane %v8514_v63, 4  ;;  %v8701_v39 = vld [vmem:[#allocation8 + $0x12d0] sm:$0xff]  ;;  %v8704_v63 = vld [vmem:[#allocation8 + $0x12e8] sm:$0xff] }
 0x605   :  { %8851 = vmatprep.subr.bf16.mxu1 %v8626_v10  ;;  %8771 = vmatprep.mubr.bf16.mxu0 %v8603_v54  ;;  %v8580_v10 = vrot.slane %v8518_v15, 4  ;;  %v8706_v15 = vld [vmem:[#allocation8 + $0x12f8] sm:$0xff] }
 0x606   :  { %8877 = vmatprep.mubr.bf16.mxu1 %v8603_v54  ;;  %v8509_v54 = vld [vmem:[#allocation3 + $0x60] sm:$0xf0] }
 0x607   :  { %8746 = vmatpush1.bf16.msra.mxu0 %v8623_v33  ;;  %v8513_v33 = vld [vmem:[#allocation3 + $0x80] sm:$0xff] }
 0x608   :  { %8852 = vmatpush1.bf16.msra.mxu1 %v8625_v20  ;;  %8747 = vmatprep.subr.bf16.mxu0 %v8628_v12  ;;  %v8671_v20 = vld [vmem:[#allocation8 + $0x11e0] sm:$0xff]  ;;  %v8673_v12 = vld [vmem:[#allocation8 + $0x11f0] sm:$0xff] }
 0x609   :  { %8853 = vmatprep.subr.bf16.mxu1 %v8630_v31  ;;  %v8517_v31 = vld [vmem:[#allocation3 + $0xa0] sm:$0xf] }
 0x60b   :  { %8748 = vmatpush1.bf16.msra.mxu0 %v8627_v21  ;;  %v8676_v21 = vld [vmem:[#allocation8 + $0x1208] sm:$0xff] }
 0x60c   :  { %8854 = vmatpush1.bf16.msra.mxu1 %v8629_v29  ;;  %8749 = vmatprep.subr.bf16.mxu0 %v8632_v9  ;;  %v8678_v29 = vld [vmem:[#allocation8 + $0x1218] sm:$0xff]  ;;  %v8602_v9 = vpack.c.bf16 %v8559_v48, %v8548_v51  ;;  %v8707_v51 = vld [vmem:[#allocation8 + $0x1300] sm:$0xff]  ;;  %v8709_v48 = vld [vmem:[#allocation8 + $0x1310] sm:$0xff] }
 0x60d   :  { %8855 = vmatprep.subr.bf16.mxu1 %v8634_v19  ;;  %v8571_v19 = vsel %vm8545_vm13, %v8569_v11, %v8570_v7  ;;  %v8712_v11 = vld [vmem:[#allocation8 + $0x1328] sm:$0xff] }
 0x60f   :  { %8750 = vmatpush1.bf16.msra.mxu0 %v8631_v6  ;;  %v8581_v6 = vsel %vm8545_vm13, %v8570_v7, %v8580_v10  ;;  %v8714_v7 = vld [vmem:[#allocation8 + $0x1338] sm:$0xff]  ;;  %v8711_v10 = vld [vmem:[#allocation8 + $0x1320] sm:$0xff] }
 0x610   :  { %8856 = vmatpush1.bf16.msra.mxu1 %v8633_v22  ;;  %8751 = vmatprep.subr.bf16.mxu0 %v8636_v59  ;;  %v8566_v22 = vrot.slane %v8509_v54, 4  ;;  %v8567_v59 = vrot.slane %v8513_v33, 4  ;;  %v8713_v54 = vld [vmem:[#allocation8 + $0x1330] sm:$0xff]  ;;  %v8716_v33 = vld [vmem:[#allocation8 + $0x1348] sm:$0xff] }
 0x611   :  { %8857 = vmatprep.subr.bf16.mxu1 %v8638_v14  ;;  %v8578_v14 = vrot.slane %v8517_v31, 4  ;;  %v8717_v31 = vld [vmem:[#allocation8 + $0x1350] sm:$0xff] }
 0x613   :  { %8752 = vmatpush1.bf16.msra.mxu0 %v8635_v24  ;;  %v8500_v24 = vld [vmem:[#allocation3 + $0x18] sm:$0xf0] }
 0x614   :  { %8858 = vmatpush1.bf16.msra.mxu1 %v8637_v32  ;;  %8753 = vmatprep.subr.bf16.mxu0 %v8640_v42  ;;  %v8504_v32 = vld [vmem:[#allocation3 + $0x38] sm:$0xff] }
 0x615   :  { %8859 = vmatprep.subr.bf16.mxu1 %v8642_v37  ;;  %v8508_v42 = vld [vmem:[#allocation3 + $0x58] sm:$0xf]  ;;  %v8675_v37 = vld [vmem:[#allocation8 + $0x1200] sm:$0xff] }
 0x617   :  { %8754 = vmatpush1.bf16.msra.mxu0 %v8639_v8  ;;  %v8677_v8 = vld [vmem:[#allocation8 + $0x1210] sm:$0xff] }
 0x618   :  { %8860 = vmatpush1.bf16.msra.mxu1 %v8641_v25  ;;  %8755 = vmatprep.subr.bf16.mxu0 %v8644_v58  ;;  %v8680_v25 = vld [vmem:[#allocation8 + $0x1228] sm:$0xff]  ;;  %v8682_v58 = vld [vmem:[#allocation8 + $0x1238] sm:$0xff] }
 0x619   :  { %8861 = vmatprep.subr.bf16.mxu1 %v8646_v13  ;;  %v8607_v13 = vpack.c.bf16 %v8581_v6, %v8571_v19  ;;  %v8721_v19 = vld [vmem:[#allocation8 + $0x1370] sm:$0xff]  ;;  %v8724_v6 = vld [vmem:[#allocation8 + $0x1388] sm:$0xff] }
 0x61b   :  { %8756 = vmatpush1.bf16.msra.mxu0 %v8643_v56  ;;  %v8555_v56 = vrot.slane %v8500_v24, 4  ;;  %v8728_v24 = vld [vmem:[#allocation8 + $0x13a8] sm:$0xff] }
 0x61c   :  { %8862 = vmatpush1.bf16.msra.mxu1 %v8645_v1  ;;  %8757 = vmatprep.subr.bf16.mxu0 %v8648_v26  ;;  %v8556_v1 = vrot.slane %v8504_v32, 4  ;;  %v8564_v26 = vrot.slane %v8508_v42, 4  ;;  %v8730_v32 = vld [vmem:[#allocation8 + $0x13b8] sm:$0xff]  ;;  %v8727_v42 = vld [vmem:[#allocation8 + $0x13a0] sm:$0xff] }
 0x61d   :  { %8863 = vmatprep.subr.bf16.mxu1 %v8650_v53  ;;  %v8568_v53 = vsel %vm8545_vm13, %v8566_v22, %v8567_v59  ;;  %v8726_v22 = vld [vmem:[#allocation8 + $0x1398] sm:$0xff] }
 0x61f   :  { %8758 = vmatpush1.bf16.msra.mxu0 %v8647_v60  ;;  %v8579_v60 = vsel %vm8545_vm13, %v8567_v59, %v8578_v14  ;;  %v8723_v59 = vld [vmem:[#allocation8 + $0x1380] sm:$0xff]  ;;  %v8725_v14 = vld [vmem:[#allocation8 + $0x1390] sm:$0xff] }
 0x620   :  { %8864 = vmatpush1.bf16.msra.mxu1 %v8649_v28  ;;  %8759 = vmatprep.subr.bf16.mxu0 %v8652_v40  ;;  %v8679_v28 = vld [vmem:[#allocation8 + $0x1220] sm:$0xff]  ;;  %v8681_v40 = vld [vmem:[#allocation8 + $0x1230] sm:$0xff] }
 0x621   :  { %8865 = vmatprep.subr.bf16.mxu1 %v8654_v17  ;;  %v8684_v17 = vld [vmem:[#allocation8 + $0x1248] sm:$0xff] }
 0x623   :  { %8760 = vmatpush1.bf16.msra.mxu0 %v8651_v23  ;;  %v8686_v23 = vld [vmem:[#allocation8 + $0x1258] sm:$0xff] }
 0x624   :  { %8866 = vmatpush1.bf16.msra.mxu1 %v8653_v36  ;;  %8761 = vmatprep.subr.bf16.mxu0 %v8656_v18  ;;  %v8606_v36 = vpack.c.bf16 %v8579_v60, %v8568_v53  ;;  %v8557_v18 = vsel %vm8545_vm13, %v8555_v56, %v8556_v1  ;;  %v8507_v56 = vld [vmem:[#allocation3 + $0x50] sm:$0xf]  ;;  %v8520_v53 = vld [vmem:[#allocation3 + $0xb8] sm:$0xf] }
 0x625   :  { %8867 = vmatprep.subr.bf16.mxu1 %v8658_v35  ;;  %v8565_v35 = vsel %vm8545_vm13, %v8556_v1, %v8564_v26  ;;  %v8512_v1 = vld [vmem:[#allocation3 + $0x78] sm:$0xf0] }
 0x626   :  { %v8516_v26 = vld [vmem:[#allocation3 + $0x98] sm:$0xff] }
 0x627   :  { %8762 = vmatpush1.bf16.msra.mxu0 %v8655_v5  ;;  %v8683_v5 = vld [vmem:[#allocation8 + $0x1240] sm:$0xff] }
 0x628   :  { %8868 = vmatpush1.bf16.msra.mxu1 %v8657_v27  ;;  %8763 = vmatprep.subr.bf16.mxu0 %v8660_v4  ;;  %v8685_v27 = vld [vmem:[#allocation8 + $0x1250] sm:$0xff]  ;;  %v8688_v4 = vld [vmem:[#allocation8 + $0x1268] sm:$0xff] }
 0x629   :  { %8869 = vmatprep.subr.bf16.mxu1 %v8662_v50  ;;  %v8690_v50 = vld [vmem:[#allocation8 + $0x1278] sm:$0xff] }
 0x62b   :  { %8764 = vmatpush1.bf16.msra.mxu0 %v8659_v16  ;;  %v8605_v16 = vpack.c.bf16 %v8565_v35, %v8557_v18  ;;  %v8576_v18 = vrot.slane %v8516_v26, 4  ;;  %v8584_v35 = vrot.slane %v8520_v53, 4 }
 0x62c   :  { %8870 = vmatpush1.bf16.msra.mxu1 %v8661_v34  ;;  %8765 = vmatprep.subr.bf16.mxu0 %v8664_v52  ;;  %v8687_v34 = vld [vmem:[#allocation8 + $0x1260] sm:$0xff]  ;;  %v8689_v52 = vld [vmem:[#allocation8 + $0x1270] sm:$0xff] }
 0x62d   :  { %8871 = vmatprep.subr.bf16.mxu1 %v8666_v3  ;;  %v8692_v3 = vld [vmem:[#allocation8 + $0x1288] sm:$0xff] }
 0x62f   :  { %8766 = vmatpush1.bf16.msra.mxu0 %v8663_v57  ;;  %v8696_v57 = vld [vmem:[#allocation8 + $0x12a8] sm:$0xff] }
 0x630   :  { %8872 = vmatpush1.bf16.msra.mxu1 %v8665_v38  ;;  %8767 = vmatprep.subr.bf16.mxu0 %v8668_v43  ;;  %v8698_v38 = vld [vmem:[#allocation8 + $0x12b8] sm:$0xff]  ;;  %v8695_v43 = vld [vmem:[#allocation8 + $0x12a0] sm:$0xff] }
 0x631   :  { %8873 = vmatprep.subr.bf16.mxu1 %v8670_v2  ;;  %v8697_v2 = vld [vmem:[#allocation8 + $0x12b0] sm:$0xff] }
 0x633   :  { %8768 = vmatpush1.bf16.msra.mxu0 %v8667_v45  ;;  %v8703_v45 = vld [vmem:[#allocation8 + $0x12e0] sm:$0xff] }
 0x634   :  { %8874 = vmatpush1.bf16.msra.mxu1 %v8669_v49  ;;  %8769 = vmatprep.subr.bf16.mxu0 %v8672_v30  ;;  %v8705_v49 = vld [vmem:[#allocation8 + $0x12f0] sm:$0xff]  ;;  %v8708_v30 = vld [vmem:[#allocation8 + $0x1308] sm:$0xff] }
 0x635   :  { %8875 = vmatprep.subr.bf16.mxu1 %v8674_v62  ;;  %v8710_v62 = vld [vmem:[#allocation8 + $0x1318] sm:$0xff] }
 0x637   :  { %8770 = vmatpush1.bf16.msra.mxu0 %v8671_v20  ;;  %v8718_v20 = vld [vmem:[#allocation8 + $0x1358] sm:$0xff] }
 0x638   :  { %8876 = vmatpush1.bf16.msra.mxu1 %v8673_v12  ;;  %8792 = vmatprep.subr.bf16.mxu0 %v8676_v21  ;;  %v8715_v12 = vld [vmem:[#allocation8 + $0x1340] sm:$0xff]  ;;  %v8720_v21 = vld [vmem:[#allocation8 + $0x1368] sm:$0xff] }
 0x639   :  { %8898 = vmatprep.subr.bf16.mxu1 %v8678_v29  ;;  %v8722_v29 = vld [vmem:[#allocation8 + $0x1378] sm:$0xff] }
 0x63a   :  { %8772 = vmatmul.mubr.bf16.vlgmr.msra.gmra.mrb[32].mxu0 %v8602_v9 }
 0x63b   :  { %8878 = vmatmul.mubr.bf16.vlgmr.msra.gmra.mrb[32].mxu1 %v8602_v9  ;;  %8793 = vmatpush1.bf16.msra.mxu0 %v8675_v37  ;;  %v8719_v9 = vld [vmem:[#allocation8 + $0x1360] sm:$0xff]  ;;  %v8729_v37 = vld [vmem:[#allocation8 + $0x13b0] sm:$0xff] }
 0x63c   :  { %8899 = vmatpush1.bf16.msra.mxu1 %v8677_v8  ;;  %8794 = vmatprep.subr.bf16.mxu0 %v8680_v25  ;;  %v8732_v8 = vld [vmem:[#allocation8 + $0x13c8] sm:$0xff]  ;;  %v8734_v25 = vld [vmem:[#allocation8 + $0x13d8] sm:$0xff] }
 0x63d   :  { %8900 = vmatprep.subr.bf16.mxu1 %v8682_v58  ;;  %8781 = vmatprep.mubr.bf16.mxu0 %v8607_v13  ;;  %v8499_v58 = vld [vmem:[#allocation3 + $0x10] sm:$0xf0] }
 0x63e   :  { %8887 = vmatprep.mubr.bf16.mxu1 %v8607_v13  ;;  %v8503_v13 = vld [vmem:[#allocation3 + $0x30] sm:$0xff]  ;;  %v8552_v60 = vrot.slane %v8499_v58, 4 }
 0x63f   :  { %8795 = vmatpush1.bf16.msra.mxu0 %v8679_v28  ;;  %v8553_v28 = vrot.slane %v8503_v13, 4 }
 0x640   :  { %8901 = vmatpush1.bf16.msra.mxu1 %v8681_v40  ;;  %8796 = vmatprep.subr.bf16.mxu0 %v8684_v17  ;;  %v8562_v40 = vrot.slane %v8507_v56, 4  ;;  %v8731_v17 = vld [vmem:[#allocation8 + $0x13c0] sm:$0xff] }
 0x641   :  { %8902 = vmatprep.subr.bf16.mxu1 %v8686_v23  ;;  %v8733_v23 = vld [vmem:[#allocation8 + $0x13d0] sm:$0xff] }
 0x642   :  { %8782 = vmatmul.mubr.bf16.gmra.mrb[36].mxu0 %v8606_v36 }
 0x643   :  { %8888 = vmatmul.mubr.bf16.gmra.mrb[36].mxu1 %v8606_v36  ;;  %8797 = vmatpush1.bf16.msra.mxu0 %v8683_v5  ;;  %v8575_v36 = vrot.slane %v8512_v1, 4  ;;  %v8736_v5 = vld [vmem:[#allocation8 + $0x13e8] sm:$0xff] }
 0x644   :  { %8903 = vmatpush1.bf16.msra.mxu1 %v8685_v27  ;;  %8798 = vmatprep.subr.bf16.mxu0 %v8688_v4  ;;  %v8738_v27 = vld [vmem:[#allocation8 + $0x13f8] sm:$0xff]  ;;  %v8735_v4 = vld [vmem:[#allocation8 + $0x13e0] sm:$0xff] }
 0x645   :  { %8904 = vmatprep.subr.bf16.mxu1 %v8690_v50  ;;  %8824 = vmatprep.mubr.bf16.mxu0 %v8605_v16  ;;  %v8737_v50 = vld [vmem:[#allocation8 + $0x13f0] sm:$0xff] }
 0x646   :  { %8930 = vmatprep.mubr.bf16.mxu1 %v8605_v16  ;;  %v8554_v16 = vsel %vm8545_vm13, %v8552_v60, %v8553_v28 }
 0x647   :  { %8799 = vmatpush1.bf16.msra.mxu0 %v8687_v34  ;;  %v8563_v34 = vsel %vm8545_vm13, %v8553_v28, %v8562_v40 }
 0x648   :  { %8905 = vmatpush1.bf16.msra.mxu1 %v8689_v52  ;;  %8800 = vmatprep.subr.bf16.mxu0 %v8692_v3  ;;  %v8577_v52 = vsel %vm8545_vm13, %v8575_v36, %v8576_v18  ;;  %v8585_v3 = vsel %vm8545_vm13, %v8576_v18, %v8584_v35 }
 0x649   :  { %8906 = vmatprep.subr.bf16.mxu1 %v8694_v47  ;;  %v8511_v47 = vld [vmem:[#allocation3 + $0x70] sm:$0xf0] }
 0x64b   :  { %8801 = vmatpush1.bf16.msra.mxu0 %v8691_v41  ;;  %v8515_v41 = vld [vmem:[#allocation3 + $0x90] sm:$0xff] }
 0x64c   :  { %8907 = vmatpush1.bf16.msra.mxu1 %v8693_v55  ;;  %8802 = vmatprep.subr.bf16.mxu0 %v8696_v57  ;;  %v8519_v55 = vld [vmem:[#allocation3 + $0xb0] sm:$0xf]  ;;  %v8604_v57 = vpack.c.bf16 %v8563_v34, %v8554_v16 }
 0x64d   :  { %8908 = vmatprep.subr.bf16.mxu1 %v8698_v38  ;;  %v8609_v38 = vpack.c.bf16 %v8585_v3, %v8577_v52 }
 0x64f   :  { %8803 = vmatpush1.bf16.msra.mxu0 %v8695_v43  ;;  %v8572_v43 = vrot.slane %v8511_v47, 4 }
 0x650   :  { %8909 = vmatpush1.bf16.msra.mxu1 %v8697_v2  ;;  %8804 = vmatprep.subr.bf16.mxu0 %v8700_v0  ;;  %v8573_v2 = vrot.slane %v8515_v41, 4  ;;  %v8582_v0 = vrot.slane %v8519_v55, 4 }
 0x651   :  { %8910 = vmatprep.subr.bf16.mxu1 %v8702_v44 }
 0x652   :  { %v8574_v44 = vsel %vm8545_vm13, %v8572_v43, %v8573_v2 }
 0x653   :  { %8805 = vmatpush1.bf16.msra.mxu0 %v8699_v46  ;;  %v8583_v46 = vsel %vm8545_vm13, %v8573_v2, %v8582_v0 }
 0x654   :  { %8911 = vmatpush1.bf16.msra.mxu1 %v8701_v39  ;;  %8806 = vmatprep.subr.bf16.mxu0 %v8704_v63  ;;  %v8608_v39 = vpack.c.bf16 %v8583_v46, %v8574_v44 }
 0x655   :  { %8912 = vmatprep.subr.bf16.mxu1 %v8706_v15 }
 0x657   :  { %8807 = vmatpush1.bf16.msra.mxu0 %v8703_v45 }
 0x658   :  { %8913 = vmatpush1.bf16.msra.mxu1 %v8705_v49  ;;  %8808 = vmatprep.subr.bf16.mxu0 %v8708_v30 }
 0x659   :  { %8914 = vmatprep.subr.bf16.mxu1 %v8710_v62 }
 0x65b   :  { %8809 = vmatpush1.bf16.msra.mxu0 %v8707_v51 }
 0x65c   :  { %8915 = vmatpush1.bf16.msra.mxu1 %v8709_v48  ;;  %8810 = vmatprep.subr.bf16.mxu0 %v8712_v11 }
 0x65d   :  { %8916 = vmatprep.subr.bf16.mxu1 %v8714_v7 }
 0x65f   :  { %8811 = vmatpush1.bf16.msra.mxu0 %v8711_v10 }
 0x660   :  { %8917 = vmatpush1.bf16.msra.mxu1 %v8713_v54  ;;  %8812 = vmatprep.subr.bf16.mxu0 %v8716_v33 }
 0x661   :  { %8918 = vmatprep.subr.bf16.mxu1 %v8718_v20  ;;  %v9487_v20 = vld [vmem:[#allocation16] sm:$0x3] }
 0x663   :  { %8813 = vmatpush1.bf16.msra.mxu0 %v8715_v12 }
 0x664   :  { %8919 = vmatpush1.bf16.msra.mxu1 %v8717_v31  ;;  %8814 = vmatprep.subr.bf16.mxu0 %v8720_v21  ;;  %v15970_v31 = vld [vmem:[#allocation51_spill] sm:$0xff] }
 0x665   :  { %8920 = vmatprep.subr.bf16.mxu1 %v8722_v29 }
 0x667   :  { %8815 = vmatpush1.bf16.msra.mxu0 %v8719_v9 }
 0x668   :  { %8921 = vmatpush1.bf16.msra.mxu1 %v8721_v19  ;;  %8816 = vmatprep.subr.bf16.mxu0 %v8724_v6  ;;  %v15971_v6 = vld [vmem:[#allocation50_spill] sm:$0xff] }
 0x669   :  { %8922 = vmatprep.subr.bf16.mxu1 %v8726_v22  ;;  %v15077_v22 = vrot.slane %v9487_v20, %v15971_v6 }
 0x66b   :  { %8817 = vmatpush1.bf16.msra.mxu0 %v8723_v59 }
 0x66c   :  { %8923 = vmatpush1.bf16.msra.mxu1 %v8725_v14  ;;  %8818 = vmatprep.subr.bf16.mxu0 %v8728_v24 }
 0x66d   :  { %8924 = vmatprep.subr.bf16.mxu1 %v8730_v32 }
 0x66f   :  { %8819 = vmatpush1.bf16.msra.mxu0 %v8727_v42 }
 0x670   :  { %8925 = vmatpush1.bf16.msra.mxu1 %v8729_v37  ;;  %8820 = vmatprep.subr.bf16.mxu0 %v8732_v8  ;;  %v15972_v8 = vld [vmem:[#allocation52_spill] sm:$0xff] }
 0x671   :  { %8926 = vmatprep.subr.bf16.mxu1 %v8734_v25  ;;  %v15082_v25 = vrot.slane %v9487_v20, %v15972_v8 }
 0x673   :  { %8821 = vmatpush1.bf16.msra.mxu0 %v8731_v17 }
 0x674   :  { %8927 = vmatpush1.bf16.msra.mxu1 %v8733_v23  ;;  %8822 = vmatprep.subr.bf16.mxu0 %v8736_v5 }
 0x675   :  { %8928 = vmatprep.subr.bf16.mxu1 %v8738_v27 }
 0x677   :  { %8823 = vmatpush1.bf16.msra.mxu0 %v8735_v4 }
 0x678   :  { %8929 = vmatpush1.bf16.msra.mxu1 %v8737_v50 }
 0x67a   :  { %8825 = vmatmul.mubr.bf16.vlgmr.msra.gmra.mrb[32].mxu0 %v8604_v57 }
 0x67b   :  { %8931 = vmatmul.mubr.bf16.vlgmr.msra.gmra.mrb[32].mxu1 %v8604_v57  ;;  %8834 = vmatprep.mubr.bf16.mxu0 %v8609_v38 }
 0x67c   :  { %8940 = vmatprep.mubr.bf16.mxu1 %v8609_v38 }
 0x682   :  { %8835 = vmatmul.mubr.bf16.gmra.mrb[36].mxu0 %v8608_v39 }
 0x683   :  { %8941 = vmatmul.mubr.bf16.gmra.mrb[36].mxu1 %v8608_v39 }
 0x74d   :  { %v8826_v63 = vpop.f32.mrb[32].mxu0 }
 0x74e   :  { %v8932_v15 = vpop.f32.mrb[32].mxu1  ;;  %v8828_v49 = vpop.f32.mrb[33].mxu0 }
 0x74f   :  { %v9015_v45 = vmax.f32 %v8826_v63, %v8932_v15  ;;  %v8934_v30 = vpop.f32.mrb[33].mxu1  ;;  %v8830_v51 = vpop.f32.mrb[34].mxu0 }
 0x750   :  { %v9016_v62 = vmax.f32 %v8828_v49, %v8934_v30  ;;  %v8936_v48 = vpop.f32.mrb[34].mxu1  ;;  %v8832_v7 = vpop.f32.mrb[35].mxu0 }
 0x751   :  { %v9017_v11 = vmax.f32 %v8830_v51, %v8936_v48  ;;  %v8938_v10 = vpop.f32.mrb[35].mxu1 }
 0x752   :  { %v9031_v54 = vcombine.low %v9015_v45, %v9016_v62  ;;  %v9032_v33 = vcombine.high %v9015_v45, %v9016_v62  ;;  %v9018_v12 = vmax.f32 %v8832_v7, %v8938_v10 }
 0x754   :  { %v9039_v21 = vrot.slane %v9031_v54, %v15970_v31  ;;  %v9046_v29 = vrot.slane %v9032_v33, %v15970_v31  ;;  %v9049_v9 = vcombine.low %v9017_v11, %v9018_v12  ;;  %v9050_v19 = vcombine.high %v9017_v11, %v9018_v12 }
 0x755   :  { %v8836_v42 = vpop.f32.mrb[36].mxu0 }
 0x756   :  { %v9047_v59 = vcombine.high %v9039_v21, %v9039_v21  ;;  %v9048_v14 = vcombine.high %v9046_v29, %v9046_v29  ;;  %v9109_v24 = vrot.slane %v9039_v21, %v15970_v31  ;;  %v9125_v32 = vrot.slane %v9046_v29, %v15970_v31  ;;  %v8942_v37 = vpop.f32.mrb[36].mxu1  ;;  %v15092_v1 = vpop.f32.mrb[37].mxu0 }
 0x757   :  { %v15085_v58 = vrot.slane %v9049_v9, %v15970_v31  ;;  %v15088_v13 = vrot.slane %v9050_v19, %v15970_v31  ;;  %v15090_v56 = vmax.f32 %v8836_v42, %v8942_v37  ;;  %v15094_v26 = vpop.f32.mrb[37].mxu1  ;;  %v15098_v17 = vpop.f32.mrb[38].mxu0 }
 0x758   :  { %v9110_v53 = vcombine.high %v9109_v24, %v9109_v24  ;;  %v9117_v60 = vrot.slane %v9047_v59, %v15970_v31  ;;  %v9126_v28 = vcombine.high %v9125_v32, %v9125_v32  ;;  %v9133_v40 = vrot.slane %v9048_v14, %v15970_v31  ;;  %v15100_v23 = vpop.f32.mrb[38].mxu1  ;;  %v15108_v27 = vpop.f32.mrb[39].mxu0 }
 0x759   :  { %v9263_v36 = vsel %vm5144_vm2, %v9109_v24, -inf  ;;  %v9291_v18 = vsel %vm5144_vm2, %v9125_v32, -inf  ;;  %v9065_v35 = vcombine.high %v15085_v58, %v15085_v58  ;;  %v9066_v5 = vcombine.high %v15088_v13, %v15088_v13  ;;  %v15110_v4 = vpop.f32.mrb[39].mxu1 }
 0x75a   :  { %v9118_v50 = vcombine.high %v9117_v60, %v9117_v60  ;;  %v9134_v16 = vcombine.high %v9133_v40, %v9133_v40  ;;  %v9264_v34 = vrot.slane %v9263_v36, 4  ;;  %v9270_v52 = vsel %vm5144_vm2, %v9110_v53, -inf }
 0x75b   :  { %v9271_v3 = vrot.slane %v9270_v52, 4  ;;  %v9277_v47 = vsel %vm5144_vm2, %v9117_v60, -inf  ;;  %v9292_v41 = vrot.slane %v9291_v18, 4  ;;  %v9298_v55 = vsel %vm5144_vm2, %v9126_v28, -inf }
 0x75c   :  { %v9265_v57 = vmax.f32 %v9263_v36, %v9264_v34  ;;  %v9278_v38 = vrot.slane %v9277_v47, 4  ;;  %v9284_v43 = vsel %vm5144_vm2, %v9118_v50, -inf  ;;  %v9299_v2 = vrot.slane %v9298_v55, 4 }
 0x75d   :  { %v9272_v0 = vmax.f32 %v9270_v52, %v9271_v3  ;;  %v9285_v44 = vrot.slane %v9284_v43, 4  ;;  %v9293_v46 = vmax.f32 %v9291_v18, %v9292_v41  ;;  %v9305_v39 = vsel %vm5144_vm2, %v9133_v40, -inf }
 0x75e   :  { %v9266_v63 = vrot.slane %v9265_v57, 2  ;;  %v9279_v15 = vmax.f32 %v9277_v47, %v9278_v38  ;;  %v9300_v45 = vmax.f32 %v9298_v55, %v9299_v2  ;;  %v9306_v49 = vrot.slane %v9305_v39, 4 }
 0x75f   :  { %v9273_v30 = vrot.slane %v9272_v0, 2  ;;  %v9286_v62 = vmax.f32 %v9284_v43, %v9285_v44  ;;  %v9294_v51 = vrot.slane %v9293_v46, 2  ;;  %v9312_v48 = vsel %vm5144_vm2, %v9134_v16, -inf }
 0x760   :  { %v9267_v11 = vmax.f32 %v9265_v57, %v9266_v63  ;;  %v9280_v7 = vrot.slane %v9279_v15, 2  ;;  %v9301_v10 = vrot.slane %v9300_v45, 2  ;;  %v9307_v54 = vmax.f32 %v9305_v39, %v9306_v49 }
 0x761   :  { %v9274_v33 = vmax.f32 %v9272_v0, %v9273_v30  ;;  %v9287_v20 = vrot.slane %v9286_v62, 2  ;;  %v9295_v12 = vmax.f32 %v9293_v46, %v9294_v51  ;;  %v9313_v21 = vrot.slane %v9312_v48, 4 }
 0x762   :  { %v9268_v29 = vrot.slane %v9267_v11, 1  ;;  %v9281_v9 = vmax.f32 %v9279_v15, %v9280_v7  ;;  %v9302_v19 = vmax.f32 %v9300_v45, %v9301_v10  ;;  %v9308_v59 = vrot.slane %v9307_v54, 2 }
 0x763   :  { %v9275_v14 = vrot.slane %v9274_v33, 1  ;;  %v9288_v24 = vmax.f32 %v9286_v62, %v9287_v20  ;;  %v9296_v32 = vrot.slane %v9295_v12, 1  ;;  %v9314_v42 = vmax.f32 %v9312_v48, %v9313_v21 }
 0x764   :  { %v9269_v37 = vmax.f32 %v9267_v11, %v9268_v29  ;;  %v9282_v53 = vrot.slane %v9281_v9, 1  ;;  %v9303_v60 = vrot.slane %v9302_v19, 1  ;;  %v9309_v28 = vmax.f32 %v9307_v54, %v9308_v59 }
 0x765   :  { %v9276_v40 = vmax.f32 %v9274_v33, %v9275_v14  ;;  %v9289_v36 = vrot.slane %v9288_v24, 1  ;;  %v9297_v18 = vmax.f32 %v9295_v12, %v9296_v32  ;;  %v9315_v50 = vrot.slane %v9314_v42, 2 }
 0x766   :  { %v9283_v16 = vmax.f32 %v9281_v9, %v9282_v53  ;;  %v9304_v34 = vmax.f32 %v9302_v19, %v9303_v60  ;;  %v9310_v52 = vrot.slane %v9309_v28, 1  ;;  %v15119_v3 = vadd.f32 %v15077_v22, %v9269_v37 }
 0x767   :  { %v9290_v47 = vmax.f32 %v9288_v24, %v9289_v36  ;;  %v9316_v41 = vmax.f32 %v9314_v42, %v9315_v50  ;;  %v15122_v55 = vadd.f32 %v15082_v25, %v9276_v40  ;;  %v15125_v57 = vadd.f32 %v15077_v22, %v9297_v18 }
 0x768   :  { %v9311_v38 = vmax.f32 %v9309_v28, %v9310_v52  ;;  %v15128_v43 = vadd.f32 %v15077_v22, %v9283_v16  ;;  %v15131_v2 = vadd.f32 %v15082_v25, %v9304_v34  ;;  %v9141_v0 = vrot.slane %v15085_v58, %v15970_v31 }
 0x769   :  { %v9317_v44 = vrot.slane %v9316_v41, 1  ;;  %v15136_v46 = vadd.f32 %v15082_v25, %v9290_v47  ;;  %v9149_v39 = vrot.slane %v9065_v35, %v15970_v31  ;;  %v9157_v63 = vrot.slane %v15088_v13, %v15970_v31 }
 0x76a   :  { %v15145_v15 = vadd.f32 %v15077_v22, %v9311_v38  ;;  %v9142_v45 = vcombine.high %v9141_v0, %v9141_v0  ;;  %v9165_v49 = vrot.slane %v9066_v5, %v15970_v31  ;;  %v9319_v30 = vsel %vm5144_vm2, %v9141_v0, -inf }
 0x76b   :  { %v9318_v62 = vmax.f32 %v9316_v41, %v9317_v44  ;;  %v9150_v51 = vcombine.high %v9149_v39, %v9149_v39  ;;  %v9158_v48 = vcombine.high %v9157_v63, %v9157_v63  ;;  %v9320_v11 = vrot.slane %v9319_v30, 4 }
 0x76c   :  { %v9166_v58 = vcombine.high %v9165_v49, %v9165_v49  ;;  %v9326_v35 = vsel %vm5144_vm2, %v9142_v45, -inf  ;;  %v9333_v7 = vsel %vm5144_vm2, %v9149_v39, -inf  ;;  %v9347_v10 = vsel %vm5144_vm2, %v9157_v63, -inf }
 0x76d   :  { %v15156_v54 = vadd.f32 %v15082_v25, %v9318_v62  ;;  %v9321_v33 = vmax.f32 %v9319_v30, %v9320_v11  ;;  %v9327_v20 = vrot.slane %v9326_v35, 4  ;;  %v9334_v13 = vrot.slane %v9333_v7, 4 }
 0x76e   :  { %v9340_v5 = vsel %vm5144_vm2, %v9150_v51, -inf  ;;  %v9348_v12 = vrot.slane %v9347_v10, 4  ;;  %v9354_v21 = vsel %vm5144_vm2, %v9158_v48, -inf  ;;  %v9361_v29 = vsel %vm5144_vm2, %v9165_v49, -inf }
 0x76f   :  { %v9322_v9 = vrot.slane %v9321_v33, 2  ;;  %v9328_v19 = vmax.f32 %v9326_v35, %v9327_v20  ;;  %v9335_v59 = vmax.f32 %v9333_v7, %v9334_v13  ;;  %v9341_v14 = vrot.slane %v9340_v5, 4 }
 0x770   :  { %v9349_v24 = vmax.f32 %v9347_v10, %v9348_v12  ;;  %v9355_v32 = vrot.slane %v9354_v21, 4  ;;  %v9362_v42 = vrot.slane %v9361_v29, 4  ;;  %v9368_v37 = vsel %vm5144_vm2, %v9166_v58, -inf }
 0x771   :  { %v9323_v53 = vmax.f32 %v9321_v33, %v9322_v9  ;;  %v9329_v60 = vrot.slane %v9328_v19, 2  ;;  %v9336_v28 = vrot.slane %v9335_v59, 2  ;;  %v9342_v40 = vmax.f32 %v9340_v5, %v9341_v14 }
 0x772   :  { %v9350_v36 = vrot.slane %v9349_v24, 2  ;;  %v9356_v18 = vmax.f32 %v9354_v21, %v9355_v32  ;;  %v9363_v50 = vmax.f32 %v9361_v29, %v9362_v42  ;;  %v9369_v16 = vrot.slane %v9368_v37, 4 }
 0x773   :  { %v9324_v34 = vrot.slane %v9323_v53, 1  ;;  %v9330_v52 = vmax.f32 %v9328_v19, %v9329_v60  ;;  %v9337_v47 = vmax.f32 %v9335_v59, %v9336_v28  ;;  %v9343_v41 = vrot.slane %v9342_v40, 2 }
 0x774   :  { %v9351_v38 = vmax.f32 %v9349_v24, %v9350_v36  ;;  %v9357_v0 = vrot.slane %v9356_v18, 2  ;;  %v9364_v44 = vrot.slane %v9363_v50, 2  ;;  %v9370_v39 = vmax.f32 %v9368_v37, %v9369_v16 }
 0x775   :  { %v9325_v63 = vmax.f32 %v9323_v53, %v9324_v34  ;;  %v9331_v45 = vrot.slane %v9330_v52, 1  ;;  %v9338_v49 = vrot.slane %v9337_v47, 1  ;;  %v9344_v30 = vmax.f32 %v9342_v40, %v9343_v41 }
 0x776   :  { %v9352_v62 = vrot.slane %v9351_v38, 1  ;;  %v9358_v51 = vmax.f32 %v9356_v18, %v9357_v0  ;;  %v9365_v48 = vmax.f32 %v9363_v50, %v9364_v44  ;;  %v9371_v11 = vrot.slane %v9370_v39, 2 }
 0x777   :  { %v9332_v58 = vmax.f32 %v9330_v52, %v9331_v45  ;;  %v9339_v35 = vmax.f32 %v9337_v47, %v9338_v49  ;;  %v9345_v7 = vrot.slane %v9344_v30, 1  ;;  %v15163_v10 = vadd.f32 %v15077_v22, %v9325_v63 }
 0x778   :  { %v9353_v33 = vmax.f32 %v9351_v38, %v9352_v62  ;;  %v9359_v20 = vrot.slane %v9358_v51, 1  ;;  %v9366_v13 = vrot.slane %v9365_v48, 1  ;;  %v9372_v5 = vmax.f32 %v9370_v39, %v9371_v11 }
 0x779   :  { %v9346_v12 = vmax.f32 %v9344_v30, %v9345_v7  ;;  %v15166_v21 = vadd.f32 %v15082_v25, %v9332_v58  ;;  %v15169_v29 = vadd.f32 %v15077_v22, %v9339_v35  ;;  %v9020_v9 = vmax.f32 %v15092_v1, %v15094_v26 }
 0x77a   :  { %v9360_v19 = vmax.f32 %v9358_v51, %v9359_v20  ;;  %v9367_v59 = vmax.f32 %v9365_v48, %v9366_v13  ;;  %v9373_v14 = vrot.slane %v9372_v5, 1  ;;  %v15174_v24 = vadd.f32 %v15077_v22, %v9353_v33 }
 0x77b   :  { %v15177_v32 = vadd.f32 %v15082_v25, %v9346_v12  ;;  %v9067_v42 = vcombine.low %v15090_v56, %v9020_v9  ;;  %v9068_v37 = vcombine.high %v15090_v56, %v9020_v9  ;;  %v9021_v53 = vmax.f32 %v15098_v17, %v15100_v23 }
 0x77c   :  { %v9374_v60 = vmax.f32 %v9372_v5, %v9373_v14  ;;  %v15184_v28 = vadd.f32 %v15082_v25, %v9360_v19  ;;  %v15187_v1 = vadd.f32 %v15077_v22, %v9367_v59  ;;  %v9022_v26 = vmax.f32 %v15108_v27, %v15110_v4 }
 0x77d   :  { %v9075_v40 = vrot.slane %v9067_v42, %v15970_v31  ;;  %v9082_v36 = vrot.slane %v9068_v37, %v15970_v31 }
 0x77e   :  { %v15194_v18 = vadd.f32 %v15082_v25, %v9374_v60  ;;  %v9085_v56 = vcombine.low %v9021_v53, %v9022_v26  ;;  %v9086_v50 = vcombine.high %v9021_v53, %v9022_v26 }
 0x77f   :  { %v9083_v17 = vcombine.high %v9075_v40, %v9075_v40  ;;  %v9084_v23 = vcombine.high %v9082_v36, %v9082_v36  ;;  %v9173_v16 = vrot.slane %v9075_v40, %v15970_v31  ;;  %v9189_v34 = vrot.slane %v9082_v36, %v15970_v31 }
 0x780   :  { %v15199_v52 = vrot.slane %v9085_v56, %v15970_v31  ;;  %v15202_v27 = vrot.slane %v9086_v50, %v15970_v31 }
 0x781   :  { %v9174_v4 = vcombine.high %v9173_v16, %v9173_v16  ;;  %v9181_v47 = vrot.slane %v9083_v17, %v15970_v31  ;;  %v9190_v41 = vcombine.high %v9189_v34, %v9189_v34  ;;  %v9197_v38 = vrot.slane %v9084_v23, %v15970_v31 }
 0x782   :  { %v9375_v0 = vsel %vm5144_vm2, %v9173_v16, -inf  ;;  %v9403_v44 = vsel %vm5144_vm2, %v9189_v34, -inf  ;;  %v9101_v39 = vcombine.high %v15199_v52, %v15199_v52  ;;  %v9102_v63 = vcombine.high %v15202_v27, %v15202_v27 }
 0x783   :  { %v9182_v45 = vcombine.high %v9181_v47, %v9181_v47  ;;  %v9198_v49 = vcombine.high %v9197_v38, %v9197_v38  ;;  %v9376_v30 = vrot.slane %v9375_v0, 4  ;;  %v9382_v62 = vsel %vm5144_vm2, %v9174_v4, -inf }
 0x784   :  { %v9383_v51 = vrot.slane %v9382_v62, 4  ;;  %v9389_v48 = vsel %vm5144_vm2, %v9181_v47, -inf  ;;  %v9404_v11 = vrot.slane %v9403_v44, 4  ;;  %v9410_v58 = vsel %vm5144_vm2, %v9190_v41, -inf }
 0x785   :  { %v9377_v35 = vmax.f32 %v9375_v0, %v9376_v30  ;;  %v9390_v7 = vrot.slane %v9389_v48, 4  ;;  %v9396_v33 = vsel %vm5144_vm2, %v9182_v45, -inf  ;;  %v9411_v20 = vrot.slane %v9410_v58, 4 }
 0x786   :  { %v9384_v13 = vmax.f32 %v9382_v62, %v9383_v51  ;;  %v9397_v5 = vrot.slane %v9396_v33, 4  ;;  %v9405_v12 = vmax.f32 %v9403_v44, %v9404_v11  ;;  %v9417_v9 = vsel %vm5144_vm2, %v9197_v38, -inf }
 0x787   :  { %v9378_v19 = vrot.slane %v9377_v35, 2  ;;  %v9391_v59 = vmax.f32 %v9389_v48, %v9390_v7  ;;  %v9412_v14 = vmax.f32 %v9410_v58, %v9411_v20  ;;  %v9418_v42 = vrot.slane %v9417_v9, 4 }
 0x788   :  { %v9385_v37 = vrot.slane %v9384_v13, 2  ;;  %v9398_v53 = vmax.f32 %v9396_v33, %v9397_v5  ;;  %v9406_v60 = vrot.slane %v9405_v12, 2  ;;  %v9424_v26 = vsel %vm5144_vm2, %v9198_v49, -inf }
 0x789   :  { %v9379_v40 = vmax.f32 %v9377_v35, %v9378_v19  ;;  %v9392_v36 = vrot.slane %v9391_v59, 2  ;;  %v9413_v56 = vrot.slane %v9412_v14, 2  ;;  %v9419_v50 = vmax.f32 %v9417_v9, %v9418_v42 }
 0x78a   :  { %v9386_v17 = vmax.f32 %v9384_v13, %v9385_v37  ;;  %v9399_v23 = vrot.slane %v9398_v53, 2  ;;  %v9407_v16 = vmax.f32 %v9405_v12, %v9406_v60  ;;  %v9425_v34 = vrot.slane %v9424_v26, 4 }
 0x78b   :  { %v9380_v4 = vrot.slane %v9379_v40, 1  ;;  %v9393_v47 = vmax.f32 %v9391_v59, %v9392_v36  ;;  %v9414_v41 = vmax.f32 %v9412_v14, %v9413_v56  ;;  %v9420_v38 = vrot.slane %v9419_v50, 2 }
 0x78c   :  { %v9387_v0 = vrot.slane %v9386_v17, 1  ;;  %v9400_v44 = vmax.f32 %v9398_v53, %v9399_v23  ;;  %v9408_v45 = vrot.slane %v9407_v16, 1  ;;  %v9426_v30 = vmax.f32 %v9424_v26, %v9425_v34 }
 0x78d   :  { %v9381_v62 = vmax.f32 %v9379_v40, %v9380_v4  ;;  %v9394_v51 = vrot.slane %v9393_v47, 1  ;;  %v9415_v48 = vrot.slane %v9414_v41, 1  ;;  %v9421_v49 = vmax.f32 %v9419_v50, %v9420_v38 }
 0x78e   :  { %v9388_v11 = vmax.f32 %v9386_v17, %v9387_v0  ;;  %v9401_v58 = vrot.slane %v9400_v44, 1  ;;  %v9409_v35 = vmax.f32 %v9407_v16, %v9408_v45  ;;  %v9427_v7 = vrot.slane %v9426_v30, 2 }
 0x78f   :  { %v9395_v33 = vmax.f32 %v9393_v47, %v9394_v51  ;;  %v9416_v20 = vmax.f32 %v9414_v41, %v9415_v48  ;;  %v9422_v13 = vrot.slane %v9421_v49, 1  ;;  %v15219_v5 = vadd.f32 %v15077_v22, %v9381_v62 }
 0x790   :  { %v9402_v12 = vmax.f32 %v9400_v44, %v9401_v58  ;;  %v9428_v9 = vmax.f32 %v9426_v30, %v9427_v7  ;;  %v15222_v19 = vadd.f32 %v15082_v25, %v9388_v11  ;;  %v15225_v59 = vadd.f32 %v15077_v22, %v9409_v35 }
 0x791   :  { %v9423_v14 = vmax.f32 %v9421_v49, %v9422_v13  ;;  %v15228_v42 = vadd.f32 %v15077_v22, %v9395_v33  ;;  %v15231_v37 = vadd.f32 %v15082_v25, %v9416_v20  ;;  %v9205_v53 = vrot.slane %v15199_v52, %v15970_v31 }
 0x792   :  { %v9429_v60 = vrot.slane %v9428_v9, 1  ;;  %v15236_v26 = vadd.f32 %v15082_v25, %v9402_v12  ;;  %v9213_v40 = vrot.slane %v9101_v39, %v15970_v31  ;;  %v9221_v36 = vrot.slane %v15202_v27, %v15970_v31 }
 0x793   :  { %v15245_v56 = vadd.f32 %v15077_v22, %v9423_v14  ;;  %v9206_v50 = vcombine.high %v9205_v53, %v9205_v53  ;;  %v9229_v17 = vrot.slane %v9102_v63, %v15970_v31  ;;  %v9431_v23 = vsel %vm5144_vm2, %v9205_v53, -inf }
 0x794   :  { %v9430_v16 = vmax.f32 %v9428_v9, %v9429_v60  ;;  %v9214_v34 = vcombine.high %v9213_v40, %v9213_v40  ;;  %v9222_v4 = vcombine.high %v9221_v36, %v9221_v36  ;;  %v9432_v47 = vrot.slane %v9431_v23, 4 }
 0x795   :  { %v9230_v52 = vcombine.high %v9229_v17, %v9229_v17  ;;  %v9438_v39 = vsel %vm5144_vm2, %v9206_v50, -inf  ;;  %v9445_v41 = vsel %vm5144_vm2, %v9213_v40, -inf  ;;  %v9459_v38 = vsel %vm5144_vm2, %v9221_v36, -inf }
 0x796   :  { %v15256_v0 = vadd.f32 %v15082_v25, %v9430_v16  ;;  %v9433_v44 = vmax.f32 %v9431_v23, %v9432_v47  ;;  %v9439_v45 = vrot.slane %v9438_v39, 4  ;;  %v9446_v27 = vrot.slane %v9445_v41, 4 }
 0x797   :  { %v9452_v63 = vsel %vm5144_vm2, %v9214_v34, -inf  ;;  %v9460_v30 = vrot.slane %v9459_v38, 4  ;;  %v9466_v62 = vsel %vm5144_vm2, %v9222_v4, -inf  ;;  %v9473_v51 = vsel %vm5144_vm2, %v9229_v17, -inf }
 0x798   :  { %v9434_v48 = vrot.slane %v9433_v44, 2  ;;  %v9440_v49 = vmax.f32 %v9438_v39, %v9439_v45  ;;  %v9447_v11 = vmax.f32 %v9445_v41, %v9446_v27  ;;  %v9453_v58 = vrot.slane %v9452_v63, 4 }
 0x799   :  { %v9461_v35 = vmax.f32 %v9459_v38, %v9460_v30  ;;  %v9467_v7 = vrot.slane %v9466_v62, 4  ;;  %v9474_v33 = vrot.slane %v9473_v51, 4  ;;  %v9480_v20 = vsel %vm5144_vm2, %v9230_v52, -inf }
 0x79a   :  { %v9435_v13 = vmax.f32 %v9433_v44, %v9434_v48  ;;  %v9441_v12 = vrot.slane %v9440_v49, 2  ;;  %v9448_v9 = vrot.slane %v9447_v11, 2  ;;  %v9454_v14 = vmax.f32 %v9452_v63, %v9453_v58 }
 0x79b   :  { %v9462_v53 = vrot.slane %v9461_v35, 2  ;;  %v9468_v60 = vmax.f32 %v9466_v62, %v9467_v7  ;;  %v9475_v40 = vmax.f32 %v9473_v51, %v9474_v33  ;;  %v9481_v36 = vrot.slane %v9480_v20, 4 }
 0x79c   :  { %v9436_v50 = vrot.slane %v9435_v13, 1  ;;  %v9442_v23 = vmax.f32 %v9440_v49, %v9441_v12  ;;  %v9449_v17 = vmax.f32 %v9447_v11, %v9448_v9  ;;  %v9455_v16 = vrot.slane %v9454_v14, 2 }
 0x79d   :  { %v9463_v34 = vmax.f32 %v9461_v35, %v9462_v53  ;;  %v9469_v4 = vrot.slane %v9468_v60, 2  ;;  %v9476_v47 = vrot.slane %v9475_v40, 2  ;;  %v9482_v39 = vmax.f32 %v9480_v20, %v9481_v36 }
 0x79e   :  { %v9437_v41 = vmax.f32 %v9435_v13, %v9436_v50  ;;  %v9443_v38 = vrot.slane %v9442_v23, 1  ;;  %v9450_v45 = vrot.slane %v9449_v17, 1  ;;  %v9456_v52 = vmax.f32 %v9454_v14, %v9455_v16 }
 0x79f   :  { %v9464_v44 = vrot.slane %v9463_v34, 1  ;;  %v9470_v27 = vmax.f32 %v9468_v60, %v9469_v4  ;;  %v9477_v30 = vmax.f32 %v9475_v40, %v9476_v47  ;;  %v9483_v63 = vrot.slane %v9482_v39, 2 }
 0x7a0   :  { %v9444_v48 = vmax.f32 %v9442_v23, %v9443_v38  ;;  %v9451_v62 = vmax.f32 %v9449_v17, %v9450_v45  ;;  %v9457_v51 = vrot.slane %v9456_v52, 1  ;;  %v15263_v58 = vadd.f32 %v15077_v22, %v9437_v41 }
 0x7a1   :  { %v9465_v49 = vmax.f32 %v9463_v34, %v9464_v44  ;;  %v9471_v11 = vrot.slane %v9470_v27, 1  ;;  %v9478_v35 = vrot.slane %v9477_v30, 1  ;;  %v9484_v7 = vmax.f32 %v9482_v39, %v9483_v63 }
 0x7a2   :  { %v9458_v33 = vmax.f32 %v9456_v52, %v9457_v51  ;;  %v9524_v20 = vadd.f32 %v15082_v25, %v9444_v48  ;;  %v15267_v13 = vadd.f32 %v15077_v22, %v9451_v62 }
 0x7a3   :  { %v9472_v12 = vmax.f32 %v9470_v27, %v9471_v11  ;;  %v9479_v9 = vmax.f32 %v9477_v30, %v9478_v35  ;;  %v9485_v14 = vrot.slane %v9484_v7, 1  ;;  %v15270_v53 = vadd.f32 %v15077_v22, %v9465_v49 }
 0x7a4   :  { %v9526_v60 = vadd.f32 %v15082_v25, %v9458_v33 }
 0x7a5   :  { %v9486_v40 = vmax.f32 %v9484_v7, %v9485_v14  ;;  %v15274_v36 = vadd.f32 %v15082_v25, %v9472_v12  ;;  %v15277_v50 = vadd.f32 %v15077_v22, %v9479_v9 }
 0x7a7   :  { %v15280_v23 = vadd.f32 %v15082_v25, %v9486_v40 }
 0x7a8   :  { %12985 = dma.done.wait [#allocation10 + $0x1], 40960 }
 0x7a9   :  { %12986 = vsyncadd [#allocation10 + $0x1], 4294926336  ;;  %v9586_v17 = vrot.slane %v15122_v55, 6  ;;  %v9587_v16 = vrot.slane %v15136_v46, 5  ;;  %v9589_v34 = vrot.slane %v15131_v2, 4  ;;  %v9591_v4 = vrot.slane %v15156_v54, 3 }
 0x7aa   :  { %9535 = vst [vmem:[#allocation4] sm:$0x3] %v15875_v61  ;;  %9536 = vst [vmem:[#allocation4 + $0x8] sm:$0x3] %v15875_v61  ;;  %v9593_v22 = vrot.slane %v15166_v21, 2  ;;  %v9595_v25 = vrot.slane %v15177_v32, 1 }
 0x7ab   :  { %9537 = vst [vmem:[#allocation4 + $0x20] sm:$0x3] %v15875_v61  ;;  %9538 = vst [vmem:[#allocation4 + $0x28] sm:$0x3] %v15875_v61  ;;  %v9612_v55 = vrot.slane %v15222_v19, 6  ;;  %v9613_v2 = vrot.slane %v15236_v26, 5  ;;  %v9588_v46 = vsel %vm6342_vm3, %v9587_v16, %v9586_v17 }
 0x7ac   :  { %9539 = vst [vmem:[#allocation4 + $0x10] sm:$0xc] %v15875_v61  ;;  %9540 = vst [vmem:[#allocation4 + $0x18] sm:$0xc] %v15875_v61  ;;  %v9615_v54 = vrot.slane %v15231_v37, 4  ;;  %v9617_v47 = vrot.slane %v15256_v0, 3  ;;  %v9590_v41 = vsel %vm6345_vm4, %v9589_v34, %v9588_v46 }
 0x7ad   :  { %9541 = vst [vmem:[#allocation4 + $0x30] sm:$0xc] %v15875_v61  ;;  %9542 = vst [vmem:[#allocation4 + $0x38] sm:$0xc] %v15875_v61  ;;  %v9619_v39 = vrot.slane %v9524_v20, 2  ;;  %v9614_v38 = vsel %vm6342_vm3, %v9613_v2, %v9612_v55  ;;  %v9621_v45 = vrot.slane %v9526_v60, 1  ;;  %v9592_v32 = vsel %vm6348_vm5, %v9591_v4, %v9590_v41 }
 0x7ae   :  { %v9575_v21 = vrot.slane %v15119_v3, 6  ;;  %v9616_v19 = vsel %vm6345_vm4, %v9615_v54, %v9614_v38  ;;  %v9576_v26 = vrot.slane %v15128_v43, 5  ;;  %v9578_v52 = vrot.slane %v15125_v57, 4  ;;  %v9650_v62 = vld [vmem:[#allocation9 + $0x8] sm:$0xff]  ;;  %v9652_v43 = vld [vmem:[#allocation9 + $0x18] sm:$0xff]  ;;  %v9649_v51 = vld [vmem:[#allocation9] sm:$0xff] }
 0x7af   :  { %v9594_v37 = vsel %vm6351_vm6, %v9593_v22, %v9592_v32  ;;  %v9618_v0 = vsel %vm6348_vm5, %v9617_v47, %v9616_v19  ;;  %v9580_v44 = vrot.slane %v15145_v15, 3  ;;  %v9582_v27 = vrot.slane %v15163_v10, 2  ;;  %9713 = vmatprep.subr.bf16.mxu0 %v9650_v62  ;;  %9756 = vmatprep.subr.bf16.mxu1 %v9652_v43  ;;  %v9651_v11 = vld [vmem:[#allocation9 + $0x10] sm:$0xff]  ;;  %v9654_v35 = vld [vmem:[#allocation9 + $0x28] sm:$0xff]  ;;  %v9656_v7 = vld [vmem:[#allocation9 + $0x38] sm:$0xff] }
 0x7b0   :  { %v9596_v30 = vsel %vm6354_vm7, %v9595_v25, %v9594_v37  ;;  %v9620_v3 = vsel %vm6351_vm6, %v9619_v39, %v9618_v0  ;;  %v9577_v63 = vsel %vm6342_vm3, %v9576_v26, %v9575_v21  ;;  %v9584_v48 = vrot.slane %v15169_v29, 1  ;;  %9714 = vmatpush1.bf16.msra.mxu0 %v9649_v51  ;;  %9757 = vmatpush1.bf16.msra.mxu1 %v9651_v11  ;;  %v9653_v60 = vld [vmem:[#allocation9 + $0x20] sm:$0xff]  ;;  %v9655_v40 = vld [vmem:[#allocation9 + $0x30] sm:$0xff]  ;;  %v9658_v16 = vld [vmem:[#allocation9 + $0x48] sm:$0xff] }
 0x7b1   :  { %v9622_v57 = vsel %vm6354_vm7, %v9621_v45, %v9620_v3  ;;  %9636 = vst [vmem:[#allocation4 + $0x8] sm:$0xfc] %v9596_v30  ;;  %v9579_v49 = vsel %vm6345_vm4, %v9578_v52, %v9577_v63  ;;  %v9601_v15 = vrot.slane %v15219_v5, 6  ;;  %v9602_v10 = vrot.slane %v15228_v42, 5  ;;  %9715 = vmatprep.subr.bf16.mxu0 %v9654_v35  ;;  %9758 = vmatprep.subr.bf16.mxu1 %v9656_v7  ;;  %v9660_v34 = vld [vmem:[#allocation9 + $0x58] sm:$0xff]  ;;  %v9663_v46 = vld [vmem:[#allocation9 + $0x70] sm:$0xff] }
 0x7b2   :  { %9640 = vst [vmem:[#allocation4 + $0x28] sm:$0xfc] %v9622_v57  ;;  %v9581_v29 = vsel %vm6348_vm5, %v9580_v44, %v9579_v49  ;;  %v9604_v33 = vrot.slane %v15225_v59, 4  ;;  %v9606_v20 = vrot.slane %v15245_v56, 3  ;;  %v9608_v12 = vrot.slane %v15263_v58, 2  ;;  %v9664_v2 = vld [vmem:[#allocation9 + $0x78] sm:$0xff] }
 0x7b3   :  { %v9583_v5 = vsel %vm6351_vm6, %v9582_v27, %v9581_v29  ;;  %v9603_v42 = vsel %vm6342_vm3, %v9602_v10, %v9601_v15  ;;  %v9610_v9 = vrot.slane %v15267_v13, 1  ;;  %v9599_v14 = vrot.slane %v15194_v18, 7  ;;  %v9666_v54 = vld [vmem:[#allocation9 + $0x88] sm:$0xff]  ;;  %v9668_v47 = vld [vmem:[#allocation9 + $0x98] sm:$0xff]  ;;  %v9667_v39 = vld [vmem:[#allocation9 + $0x90] sm:$0xff] }
 0x7b4   :  { %v9585_v59 = vsel %vm6354_vm7, %v9584_v48, %v9583_v5  ;;  %v9605_v56 = vsel %vm6345_vm4, %v9604_v33, %v9603_v42  ;;  %v9625_v58 = vrot.slane %v15280_v23, 7  ;;  %v9597_v17 = vrot.slane %v15187_v1, 7  ;;  %9716 = vmatpush1.bf16.msra.mxu0 %v9653_v60  ;;  %9759 = vmatpush1.bf16.msra.mxu1 %v9655_v40  ;;  %v9670_v41 = vld [vmem:[#allocation9 + $0xa8] sm:$0xff]  ;;  %v9672_v38 = vld [vmem:[#allocation9 + $0xb8] sm:$0xff]  ;;  %v9669_v45 = vld [vmem:[#allocation9 + $0xa0] sm:$0xff] }
 0x7b5   :  { %v9607_v4 = vsel %vm6348_vm5, %v9606_v20, %v9605_v56  ;;  %9635 = vst [vmem:[#allocation4] sm:$0xfc] %v9585_v59  ;;  %v9600_v18 = vsel %vm6390_vm8, %v9599_v14, %v15184_v28  ;;  %v9623_v13 = vrot.slane %v15277_v50, 7  ;;  %9717 = vmatprep.subr.bf16.mxu0 %v9658_v16  ;;  %9760 = vmatprep.subr.bf16.mxu1 %v9660_v34  ;;  %v9657_v28 = vld [vmem:[#allocation9 + $0x40] sm:$0xff]  ;;  %v9659_v50 = vld [vmem:[#allocation9 + $0x50] sm:$0xff]  ;;  %v9674_v32 = vld [vmem:[#allocation9 + $0xc8] sm:$0xff] }
 0x7b6   :  { %v9609_v22 = vsel %vm6351_vm6, %v9608_v12, %v9607_v4  ;;  %v9626_v25 = vsel %vm6390_vm8, %v9625_v58, %v15274_v36  ;;  %9638 = vst [vmem:[#allocation4 + $0x18] sm:$0x3] %v9600_v18  ;;  %v9598_v23 = vsel %vm6390_vm8, %v9597_v17, %v15174_v24  ;;  %v9662_v36 = vld [vmem:[#allocation9 + $0x68] sm:$0xff]  ;;  %v9661_v24 = vld [vmem:[#allocation9 + $0x60] sm:$0xff]  ;;  %v9671_v21 = vld [vmem:[#allocation9 + $0xb0] sm:$0xff]  ;;  %vm13011_vm14 = vmmov 0  }
 0x7b7   :  { %v9611_v1 = vsel %vm6354_vm7, %v9610_v9, %v9609_v22  ;;  %9642 = vst [vmem:[#allocation4 + $0x38] sm:$0x3] %v9626_v25  ;;  %v9624_v55 = vsel %vm6390_vm8, %v9623_v13, %v15270_v53  ;;  %9637 = vst [vmem:[#allocation4 + $0x10] sm:$0x3] %v9598_v23  ;;  %v9665_v53 = vld [vmem:[#allocation9 + $0x80] sm:$0xff]  ;;  %v9676_v19 = vld [vmem:[#allocation9 + $0xd8] sm:$0xff] }
 0x7b8   :  { %9639 = vst [vmem:[#allocation4 + $0x20] sm:$0xfc] %v9611_v1  ;;  %9641 = vst [vmem:[#allocation4 + $0x30] sm:$0x3] %v9624_v55  ;;  %9718 = vmatpush1.bf16.msra.mxu0 %v9657_v28  ;;  %9761 = vmatpush1.bf16.msra.mxu1 %v9659_v50  ;;  %v9644_v26 = vld [vmem:[#allocation4 + $0x8] sm:$0xff]  ;;  %v9673_v0 = vld [vmem:[#allocation9 + $0xc0] sm:$0xff] }
 0x7b9   :  { %9719 = vmatprep.subr.bf16.mxu0 %v9662_v36  ;;  %9762 = vmatprep.subr.bf16.mxu1 %v9664_v2  ;;  %v9646_v52 = vld [vmem:[#allocation4 + $0x28] sm:$0xff]  ;;  %v9675_v44 = vld [vmem:[#allocation9 + $0xd0] sm:$0xff]  ;;  %v9680_v30 = vld [vmem:[#allocation9 + $0xf8] sm:$0xff]  ;;  %vm11682_vm15 = vcmask 523264   ;;  %vm11726_vm0 = vcmask 74752  }
 0x7ba   :  { %v9648_v37 = vpack.c.bf16 %v9646_v52, %v9644_v26  ;;  %v9678_v27 = vld [vmem:[#allocation9 + $0xe8] sm:$0xff]  ;;  %v9677_v3 = vld [vmem:[#allocation9 + $0xe0] sm:$0xff]  ;;  %v9679_v63 = vld [vmem:[#allocation9 + $0xf0] sm:$0xff] }
 0x7bb   :  { %v9682_v48 = vld [vmem:[#allocation9 + $0x108] sm:$0xff]  ;;  %v9684_v62 = vld [vmem:[#allocation9 + $0x118] sm:$0xff]  ;;  %v9681_v43 = vld [vmem:[#allocation9 + $0x100] sm:$0xff] }
 0x7bc   :  { %9720 = vmatpush1.bf16.msra.mxu0 %v9661_v24  ;;  %9763 = vmatpush1.bf16.msra.mxu1 %v9663_v46  ;;  %v9683_v51 = vld [vmem:[#allocation9 + $0x110] sm:$0xff]  ;;  %v9686_v57 = vld [vmem:[#allocation9 + $0x128] sm:$0xff]  ;;  %v9688_v49 = vld [vmem:[#allocation9 + $0x138] sm:$0xff] }
 0x7bd   :  { %9721 = vmatprep.subr.bf16.mxu0 %v9666_v54  ;;  %9764 = vmatprep.subr.bf16.mxu1 %v9668_v47  ;;  %v9685_v15 = vld [vmem:[#allocation9 + $0x120] sm:$0xff]  ;;  %v9687_v10 = vld [vmem:[#allocation9 + $0x130] sm:$0xff]  ;;  %v9690_v11 = vld [vmem:[#allocation9 + $0x148] sm:$0xff] }
 0x7be   :  { %9745 = vmatprep.mubr.bf16.mxu0 %v9648_v37  ;;  %9788 = vmatprep.mubr.bf16.mxu1 %v9648_v37  ;;  %v9692_v35 = vld [vmem:[#allocation9 + $0x158] sm:$0xff]  ;;  %v9689_v7 = vld [vmem:[#allocation9 + $0x140] sm:$0xff]  ;;  %v9691_v29 = vld [vmem:[#allocation9 + $0x150] sm:$0xff] }
 0x7bf   :  { %v9694_v33 = vld [vmem:[#allocation9 + $0x168] sm:$0xff]  ;;  %v9696_v20 = vld [vmem:[#allocation9 + $0x178] sm:$0xff]  ;;  %v9693_v12 = vld [vmem:[#allocation9 + $0x160] sm:$0xff] }
 0x7c0   :  { %9722 = vmatpush1.bf16.msra.mxu0 %v9665_v53  ;;  %9765 = vmatpush1.bf16.msra.mxu1 %v9667_v39  ;;  %v9695_v5 = vld [vmem:[#allocation9 + $0x170] sm:$0xff]  ;;  %v9698_v42 = vld [vmem:[#allocation9 + $0x188] sm:$0xff]  ;;  %v9700_v9 = vld [vmem:[#allocation9 + $0x198] sm:$0xff] }
 0x7c1   :  { %9723 = vmatprep.subr.bf16.mxu0 %v9670_v41  ;;  %9766 = vmatprep.subr.bf16.mxu1 %v9672_v38  ;;  %v9697_v14 = vld [vmem:[#allocation9 + $0x180] sm:$0xff]  ;;  %v9699_v60 = vld [vmem:[#allocation9 + $0x190] sm:$0xff]  ;;  %v9702_v40 = vld [vmem:[#allocation9 + $0x1a8] sm:$0xff] }
 0x7c2   :  { %v9704_v59 = vld [vmem:[#allocation9 + $0x1b8] sm:$0xff]  ;;  %v9701_v56 = vld [vmem:[#allocation9 + $0x1a0] sm:$0xff]  ;;  %v9703_v58 = vld [vmem:[#allocation9 + $0x1b0] sm:$0xff] }
 0x7c3   :  { %v9706_v17 = vld [vmem:[#allocation9 + $0x1c8] sm:$0xff]  ;;  %v9708_v16 = vld [vmem:[#allocation9 + $0x1d8] sm:$0xff]  ;;  %v9705_v22 = vld [vmem:[#allocation9 + $0x1c0] sm:$0xff] }
 0x7c4   :  { %9724 = vmatpush1.bf16.msra.mxu0 %v9669_v45  ;;  %9767 = vmatpush1.bf16.msra.mxu1 %v9671_v21  ;;  %v9808_v34 = vld [vmem:[#allocation4 + $0x8] sm:$0xfe]  ;;  %v9810_v4 = vld [vmem:[#allocation4 + $0x18] sm:$0x1]  ;;  %v9707_v25 = vld [vmem:[#allocation9 + $0x1d0] sm:$0xff] }
 0x7c5   :  { %9725 = vmatprep.subr.bf16.mxu0 %v9674_v32  ;;  %9768 = vmatprep.subr.bf16.mxu1 %v9676_v19  ;;  %v9812_v18 = vld [vmem:[#allocation4 + $0x28] sm:$0xfe]  ;;  %v9814_v13 = vld [vmem:[#allocation4 + $0x38] sm:$0x1]  ;;  %v9826_v55 = vrot.slane %v9808_v34, 1  ;;  %v9827_v28 = vrot.slane %v9810_v4, 1 }
 0x7c6   :  { %v9710_v23 = vld [vmem:[#allocation9 + $0x1e8] sm:$0xff]  ;;  %v9712_v1 = vld [vmem:[#allocation9 + $0x1f8] sm:$0xff]  ;;  %v9832_v50 = vrot.slane %v9812_v18, 1  ;;  %v9833_v36 = vrot.slane %v9814_v13, 1  ;;  %v9643_v2 = vld [vmem:[#allocation4] sm:$0xff] }
 0x7c7   :  { %v9645_v24 = vld [vmem:[#allocation4 + $0x20] sm:$0xff]  ;;  %v9711_v54 = vld [vmem:[#allocation9 + $0x1f0] sm:$0xff]  ;;  %v9843_v47 = vld [vmem:[#allocation9 + $0x208] sm:$0xff]  ;;  %v9828_v41 = vsel %vm7039_vm10, %v9826_v55, %v9827_v28 }
 0x7c8   :  { %9726 = vmatpush1.bf16.msra.mxu0 %v9673_v0  ;;  %9769 = vmatpush1.bf16.msra.mxu1 %v9675_v44  ;;  %v9709_v46 = vld [vmem:[#allocation9 + $0x1e0] sm:$0xff]  ;;  %v9845_v53 = vld [vmem:[#allocation9 + $0x218] sm:$0xff]  ;;  %v9647_v39 = vpack.c.bf16 %v9645_v24, %v9643_v2  ;;  %v9834_v38 = vsel %vm7039_vm10, %v9832_v50, %v9833_v36  ;;  %v9844_v21 = vld [vmem:[#allocation9 + $0x210] sm:$0xff] }
 0x7c9   :  { %9727 = vmatprep.subr.bf16.mxu0 %v9678_v27  ;;  %9770 = vmatprep.subr.bf16.mxu1 %v9680_v30  ;;  %v9842_v45 = vld [vmem:[#allocation9 + $0x200] sm:$0xff]  ;;  %v9847_v32 = vld [vmem:[#allocation9 + $0x228] sm:$0xff]  ;;  %v9849_v19 = vld [vmem:[#allocation9 + $0x238] sm:$0xff]  ;;  %v9840_v26 = vpack.c.bf16 %v9834_v38, %v9828_v41 }
 0x7ca   :  { %v9846_v52 = vld [vmem:[#allocation9 + $0x220] sm:$0xff]  ;;  %v9848_v37 = vld [vmem:[#allocation9 + $0x230] sm:$0xff]  ;;  %v9851_v0 = vld [vmem:[#allocation9 + $0x248] sm:$0xff] }
 0x7cb   :  { %v9853_v44 = vld [vmem:[#allocation9 + $0x258] sm:$0xff]  ;;  %v9850_v27 = vld [vmem:[#allocation9 + $0x240] sm:$0xff]  ;;  %v9852_v30 = vld [vmem:[#allocation9 + $0x250] sm:$0xff] }
 0x7cc   :  { %9728 = vmatpush1.bf16.msra.mxu0 %v9677_v3  ;;  %9771 = vmatpush1.bf16.msra.mxu1 %v9679_v63  ;;  %v9855_v3 = vld [vmem:[#allocation9 + $0x268] sm:$0xff]  ;;  %v9857_v63 = vld [vmem:[#allocation9 + $0x278] sm:$0xff]  ;;  %v9882_v18 = vld [vmem:[#allocation9 + $0x340] sm:$0xff] }
 0x7cd   :  { %9729 = vmatprep.subr.bf16.mxu0 %v9682_v48  ;;  %9772 = vmatprep.subr.bf16.mxu1 %v9684_v62  ;;  %v9854_v48 = vld [vmem:[#allocation9 + $0x260] sm:$0xff]  ;;  %v9856_v62 = vld [vmem:[#allocation9 + $0x270] sm:$0xff]  ;;  %v9883_v34 = vld [vmem:[#allocation9 + $0x348] sm:$0xff] }
 0x7ce   :  { %v9885_v4 = vld [vmem:[#allocation9 + $0x358] sm:$0xff]  ;;  %v9884_v13 = vld [vmem:[#allocation9 + $0x350] sm:$0xff]  ;;  %v9891_v55 = vld [vmem:[#allocation9 + $0x388] sm:$0xff] }
 0x7cf   :  { %v9893_v28 = vld [vmem:[#allocation9 + $0x398] sm:$0xff]  ;;  %v9890_v50 = vld [vmem:[#allocation9 + $0x380] sm:$0xff]  ;;  %v9892_v36 = vld [vmem:[#allocation9 + $0x390] sm:$0xff] }
 0x7d0   :  { %9730 = vmatpush1.bf16.msra.mxu0 %v9681_v43  ;;  %9773 = vmatpush1.bf16.msra.mxu1 %v9683_v51  ;;  %v9859_v43 = vld [vmem:[#allocation9 + $0x288] sm:$0xff]  ;;  %v9861_v51 = vld [vmem:[#allocation9 + $0x298] sm:$0xff]  ;;  %v9807_v2 = vld [vmem:[#allocation4] sm:$0xfe] }
 0x7d1   :  { %9731 = vmatprep.subr.bf16.mxu0 %v9686_v57  ;;  %9774 = vmatprep.subr.bf16.mxu1 %v9688_v49  ;;  %v9858_v57 = vld [vmem:[#allocation9 + $0x280] sm:$0xff]  ;;  %v9860_v49 = vld [vmem:[#allocation9 + $0x290] sm:$0xff]  ;;  %v9895_v24 = vld [vmem:[#allocation9 + $0x3a8] sm:$0xff]  ;;  %v9823_v38 = vrot.slane %v9807_v2, 1 }
 0x7d2   :  { %v9896_v41 = vld [vmem:[#allocation9 + $0x3b0] sm:$0xff]  ;;  %v10075_v2 = vld [vmem:[#allocation9 + $0x4c0] sm:$0xff] }
 0x7d4   :  { %9732 = vmatpush1.bf16.msra.mxu0 %v9685_v15  ;;  %9775 = vmatpush1.bf16.msra.mxu1 %v9687_v10  ;;  %v9863_v15 = vld [vmem:[#allocation9 + $0x2a8] sm:$0xff]  ;;  %v9865_v10 = vld [vmem:[#allocation9 + $0x2b8] sm:$0xff] }
 0x7d5   :  { %9733 = vmatprep.subr.bf16.mxu0 %v9690_v11  ;;  %9776 = vmatprep.subr.bf16.mxu1 %v9692_v35  ;;  %v9862_v11 = vld [vmem:[#allocation9 + $0x2a0] sm:$0xff]  ;;  %v9864_v35 = vld [vmem:[#allocation9 + $0x2b0] sm:$0xff] }
 0x7d8   :  { %9734 = vmatpush1.bf16.msra.mxu0 %v9689_v7  ;;  %9777 = vmatpush1.bf16.msra.mxu1 %v9691_v29  ;;  %v9867_v7 = vld [vmem:[#allocation9 + $0x2c8] sm:$0xff]  ;;  %v9869_v29 = vld [vmem:[#allocation9 + $0x2d8] sm:$0xff] }
 0x7d9   :  { %9735 = vmatprep.subr.bf16.mxu0 %v9694_v33  ;;  %9778 = vmatprep.subr.bf16.mxu1 %v9696_v20  ;;  %v9866_v33 = vld [vmem:[#allocation9 + $0x2c0] sm:$0xff]  ;;  %v9868_v20 = vld [vmem:[#allocation9 + $0x2d0] sm:$0xff] }
 0x7dc   :  { %9736 = vmatpush1.bf16.msra.mxu0 %v9693_v12  ;;  %9779 = vmatpush1.bf16.msra.mxu1 %v9695_v5  ;;  %v9871_v12 = vld [vmem:[#allocation9 + $0x2e8] sm:$0xff]  ;;  %v9873_v5 = vld [vmem:[#allocation9 + $0x2f8] sm:$0xff] }
 0x7dd   :  { %9737 = vmatprep.subr.bf16.mxu0 %v9698_v42  ;;  %9780 = vmatprep.subr.bf16.mxu1 %v9700_v9  ;;  %v9870_v42 = vld [vmem:[#allocation9 + $0x2e0] sm:$0xff]  ;;  %v9872_v9 = vld [vmem:[#allocation9 + $0x2f0] sm:$0xff] }
 0x7e0   :  { %9738 = vmatpush1.bf16.msra.mxu0 %v9697_v14  ;;  %9781 = vmatpush1.bf16.msra.mxu1 %v9699_v60  ;;  %v9875_v14 = vld [vmem:[#allocation9 + $0x308] sm:$0xff]  ;;  %v9877_v60 = vld [vmem:[#allocation9 + $0x318] sm:$0xff] }
 0x7e1   :  { %9739 = vmatprep.subr.bf16.mxu0 %v9702_v40  ;;  %9782 = vmatprep.subr.bf16.mxu1 %v9704_v59  ;;  %v9874_v40 = vld [vmem:[#allocation9 + $0x300] sm:$0xff]  ;;  %v9876_v59 = vld [vmem:[#allocation9 + $0x310] sm:$0xff] }
 0x7e4   :  { %9740 = vmatpush1.bf16.msra.mxu0 %v9701_v56  ;;  %9783 = vmatpush1.bf16.msra.mxu1 %v9703_v58  ;;  %v9879_v56 = vld [vmem:[#allocation9 + $0x328] sm:$0xff]  ;;  %v9881_v58 = vld [vmem:[#allocation9 + $0x338] sm:$0xff] }
 0x7e5   :  { %9741 = vmatprep.subr.bf16.mxu0 %v9706_v17  ;;  %9784 = vmatprep.subr.bf16.mxu1 %v9708_v16  ;;  %v9878_v17 = vld [vmem:[#allocation9 + $0x320] sm:$0xff]  ;;  %v9880_v16 = vld [vmem:[#allocation9 + $0x330] sm:$0xff] }
 0x7e8   :  { %9742 = vmatpush1.bf16.msra.mxu0 %v9705_v22  ;;  %9785 = vmatpush1.bf16.msra.mxu1 %v9707_v25  ;;  %v9887_v22 = vld [vmem:[#allocation9 + $0x368] sm:$0xff]  ;;  %v9889_v25 = vld [vmem:[#allocation9 + $0x378] sm:$0xff] }
 0x7e9   :  { %9743 = vmatprep.subr.bf16.mxu0 %v9710_v23  ;;  %9786 = vmatprep.subr.bf16.mxu1 %v9712_v1  ;;  %v9886_v23 = vld [vmem:[#allocation9 + $0x360] sm:$0xff]  ;;  %v9888_v1 = vld [vmem:[#allocation9 + $0x370] sm:$0xff] }
 0x7ec   :  { %9744 = vmatpush1.bf16.msra.mxu0 %v9709_v46  ;;  %9787 = vmatpush1.bf16.msra.mxu1 %v9711_v54  ;;  %v9897_v46 = vld [vmem:[#allocation9 + $0x3b8] sm:$0xff]  ;;  %v9809_v54 = vld [vmem:[#allocation4 + $0x10] sm:$0x1] }
 0x7ed   :  { %9906 = vmatprep.subr.bf16.mxu0 %v9843_v47  ;;  %9949 = vmatprep.subr.bf16.mxu1 %v9845_v53  ;;  %v9811_v47 = vld [vmem:[#allocation4 + $0x20] sm:$0xfe]  ;;  %v9813_v53 = vld [vmem:[#allocation4 + $0x30] sm:$0x1] }
 0x7ef   :  { %9746 = vmatmul.mubr.bf16.vlgmr.msra.gmra.mrb[40].mxu0 %v9647_v39  ;;  %9789 = vmatmul.mubr.bf16.vlgmr.msra.gmra.mrb[40].mxu1 %v9647_v39  ;;  %v9894_v39 = vld [vmem:[#allocation9 + $0x3a0] sm:$0xff] }
 0x7f0   :  { %9907 = vmatpush1.bf16.msra.mxu0 %v9842_v45  ;;  %9950 = vmatpush1.bf16.msra.mxu1 %v9844_v21  ;;  %v9824_v45 = vrot.slane %v9809_v54, 1  ;;  %v9899_v21 = vld [vmem:[#allocation9 + $0x3c8] sm:$0xff]  ;;  %v10082_v54 = vld [vmem:[#allocation9 + $0x4f8] sm:$0xff] }
 0x7f1   :  { %9908 = vmatprep.subr.bf16.mxu0 %v9847_v32  ;;  %9951 = vmatprep.subr.bf16.mxu1 %v9849_v19  ;;  %v9901_v32 = vld [vmem:[#allocation9 + $0x3d8] sm:$0xff]  ;;  %v9829_v19 = vrot.slane %v9811_v47, 1  ;;  %v10079_v47 = vld [vmem:[#allocation9 + $0x4e0] sm:$0xff] }
 0x7f2   :  { %9938 = vmatprep.mubr.bf16.mxu0 %v9840_v26  ;;  %9981 = vmatprep.mubr.bf16.mxu1 %v9840_v26  ;;  %v9830_v26 = vrot.slane %v9813_v53, 1  ;;  %v10081_v53 = vld [vmem:[#allocation9 + $0x4f0] sm:$0xff] }
 0x7f4   :  { %9909 = vmatpush1.bf16.msra.mxu0 %v9846_v52  ;;  %9952 = vmatpush1.bf16.msra.mxu1 %v9848_v37  ;;  %v10017_v52 = vld [vmem:[#allocation4 + $0x8] sm:$0xfc]  ;;  %v10019_v37 = vld [vmem:[#allocation4 + $0x18] sm:$0x3] }
 0x7f5   :  { %9910 = vmatprep.subr.bf16.mxu0 %v9851_v0  ;;  %9953 = vmatprep.subr.bf16.mxu1 %v9853_v44  ;;  %v9898_v0 = vld [vmem:[#allocation9 + $0x3c0] sm:$0xff]  ;;  %v9900_v44 = vld [vmem:[#allocation9 + $0x3d0] sm:$0xff] }
 0x7f8   :  { %9911 = vmatpush1.bf16.msra.mxu0 %v9850_v27  ;;  %9954 = vmatpush1.bf16.msra.mxu1 %v9852_v30  ;;  %v10021_v27 = vld [vmem:[#allocation4 + $0x28] sm:$0xfc]  ;;  %v10023_v30 = vld [vmem:[#allocation4 + $0x38] sm:$0x3] }
 0x7f9   :  { %9912 = vmatprep.subr.bf16.mxu0 %v9855_v3  ;;  %9955 = vmatprep.subr.bf16.mxu1 %v9857_v63  ;;  %v9903_v3 = vld [vmem:[#allocation9 + $0x3e8] sm:$0xff]  ;;  %v9905_v63 = vld [vmem:[#allocation9 + $0x3f8] sm:$0xff] }
 0x7fc   :  { %9913 = vmatpush1.bf16.msra.mxu0 %v9854_v48  ;;  %9956 = vmatpush1.bf16.msra.mxu1 %v9856_v62  ;;  %v10035_v48 = vrot.slane %v10017_v52, 2  ;;  %v10036_v62 = vrot.slane %v10019_v37, 2  ;;  %v10092_v52 = vld [vmem:[#allocation9 + $0x548] sm:$0xff]  ;;  %v10094_v37 = vld [vmem:[#allocation9 + $0x558] sm:$0xff] }
 0x7fd   :  { %9914 = vmatprep.subr.bf16.mxu0 %v9859_v43  ;;  %9957 = vmatprep.subr.bf16.mxu1 %v9861_v51  ;;  %v10041_v43 = vrot.slane %v10021_v27, 2  ;;  %v10042_v51 = vrot.slane %v10023_v30, 2  ;;  %v10096_v27 = vld [vmem:[#allocation9 + $0x568] sm:$0xff]  ;;  %v10098_v30 = vld [vmem:[#allocation9 + $0x578] sm:$0xff] }
 0x800   :  { %9915 = vmatpush1.bf16.msra.mxu0 %v9858_v57  ;;  %9958 = vmatpush1.bf16.msra.mxu1 %v9860_v49  ;;  %v9825_v57 = vsel %vm7039_vm10, %v9823_v38, %v9824_v45  ;;  %v9831_v49 = vsel %vm7039_vm10, %v9829_v19, %v9830_v26  ;;  %v10083_v38 = vld [vmem:[#allocation9 + $0x500] sm:$0xff]  ;;  %v10085_v45 = vld [vmem:[#allocation9 + $0x510] sm:$0xff] }
 0x801   :  { %9916 = vmatprep.subr.bf16.mxu0 %v9863_v15  ;;  %9959 = vmatprep.subr.bf16.mxu1 %v9865_v10  ;;  %v9902_v15 = vld [vmem:[#allocation9 + $0x3e0] sm:$0xff]  ;;  %v9904_v10 = vld [vmem:[#allocation9 + $0x3f0] sm:$0xff] }
 0x802   :  { %v10087_v19 = vld [vmem:[#allocation9 + $0x520] sm:$0xff]  ;;  %v10089_v26 = vld [vmem:[#allocation9 + $0x530] sm:$0xff] }
 0x804   :  { %9917 = vmatpush1.bf16.msra.mxu0 %v9862_v11  ;;  %9960 = vmatpush1.bf16.msra.mxu1 %v9864_v35  ;;  %v10052_v11 = vld [vmem:[#allocation9 + $0x408] sm:$0xff]  ;;  %v10054_v35 = vld [vmem:[#allocation9 + $0x418] sm:$0xff] }
 0x805   :  { %9918 = vmatprep.subr.bf16.mxu0 %v9867_v7  ;;  %9961 = vmatprep.subr.bf16.mxu1 %v9869_v29  ;;  %v9839_v7 = vpack.c.bf16 %v9831_v49, %v9825_v57  ;;  %v10037_v29 = vsel %vm7541_vm11, %v10035_v48, %v10036_v62  ;;  %v10100_v48 = vld [vmem:[#allocation9 + $0x588] sm:$0xff]  ;;  %v10102_v62 = vld [vmem:[#allocation9 + $0x598] sm:$0xff] }
 0x806   :  { %v10104_v57 = vld [vmem:[#allocation9 + $0x5a8] sm:$0xff]  ;;  %v10106_v49 = vld [vmem:[#allocation9 + $0x5b8] sm:$0xff] }
 0x808   :  { %9919 = vmatpush1.bf16.msra.mxu0 %v9866_v33  ;;  %9962 = vmatpush1.bf16.msra.mxu1 %v9868_v20  ;;  %v10043_v33 = vsel %vm7541_vm11, %v10041_v43, %v10042_v51  ;;  %v10051_v20 = vld [vmem:[#allocation9 + $0x400] sm:$0xff]  ;;  %v10101_v51 = vld [vmem:[#allocation9 + $0x590] sm:$0xff] }
 0x809   :  { %9920 = vmatprep.subr.bf16.mxu0 %v9871_v12  ;;  %9963 = vmatprep.subr.bf16.mxu1 %v9873_v5  ;;  %v10053_v12 = vld [vmem:[#allocation9 + $0x410] sm:$0xff]  ;;  %v10056_v5 = vld [vmem:[#allocation9 + $0x428] sm:$0xff]  ;;  %v10099_v43 = vld [vmem:[#allocation9 + $0x580] sm:$0xff] }
 0x80c   :  { %9921 = vmatpush1.bf16.msra.mxu0 %v9870_v42  ;;  %9964 = vmatpush1.bf16.msra.mxu1 %v9872_v9  ;;  %v10058_v42 = vld [vmem:[#allocation9 + $0x438] sm:$0xff]  ;;  %v10049_v9 = vpack.c.bf16 %v10043_v33, %v10037_v29  ;;  %v10105_v29 = vld [vmem:[#allocation9 + $0x5b0] sm:$0xff]  ;;  %v10108_v33 = vld [vmem:[#allocation9 + $0x5c8] sm:$0xff] }
 0x80d   :  { %9922 = vmatprep.subr.bf16.mxu0 %v9875_v14  ;;  %9965 = vmatprep.subr.bf16.mxu1 %v9877_v60  ;;  %v10055_v14 = vld [vmem:[#allocation9 + $0x420] sm:$0xff]  ;;  %v10057_v60 = vld [vmem:[#allocation9 + $0x430] sm:$0xff] }
 0x810   :  { %9923 = vmatpush1.bf16.msra.mxu0 %v9874_v40  ;;  %9966 = vmatpush1.bf16.msra.mxu1 %v9876_v59  ;;  %v10060_v40 = vld [vmem:[#allocation9 + $0x448] sm:$0xff]  ;;  %v10062_v59 = vld [vmem:[#allocation9 + $0x458] sm:$0xff] }
 0x811   :  { %9924 = vmatprep.subr.bf16.mxu0 %v9879_v56  ;;  %9967 = vmatprep.subr.bf16.mxu1 %v9881_v58  ;;  %v10059_v56 = vld [vmem:[#allocation9 + $0x440] sm:$0xff]  ;;  %v10061_v58 = vld [vmem:[#allocation9 + $0x450] sm:$0xff] }
 0x814   :  { %9925 = vmatpush1.bf16.msra.mxu0 %v9878_v17  ;;  %9968 = vmatpush1.bf16.msra.mxu1 %v9880_v16  ;;  %v10064_v17 = vld [vmem:[#allocation9 + $0x468] sm:$0xff]  ;;  %v10066_v16 = vld [vmem:[#allocation9 + $0x478] sm:$0xff] }
 0x815   :  { %9926 = vmatprep.subr.bf16.mxu0 %v9883_v34  ;;  %9969 = vmatprep.subr.bf16.mxu1 %v9885_v4  ;;  %v10063_v34 = vld [vmem:[#allocation9 + $0x460] sm:$0xff]  ;;  %v10065_v4 = vld [vmem:[#allocation9 + $0x470] sm:$0xff] }
 0x818   :  { %9927 = vmatpush1.bf16.msra.mxu0 %v9882_v18  ;;  %9970 = vmatpush1.bf16.msra.mxu1 %v9884_v13  ;;  %v10068_v18 = vld [vmem:[#allocation9 + $0x488] sm:$0xff]  ;;  %v10070_v13 = vld [vmem:[#allocation9 + $0x498] sm:$0xff] }
 0x819   :  { %9928 = vmatprep.subr.bf16.mxu0 %v9887_v22  ;;  %9971 = vmatprep.subr.bf16.mxu1 %v9889_v25  ;;  %v10067_v22 = vld [vmem:[#allocation9 + $0x480] sm:$0xff]  ;;  %v10069_v25 = vld [vmem:[#allocation9 + $0x490] sm:$0xff] }
 0x81c   :  { %9929 = vmatpush1.bf16.msra.mxu0 %v9886_v23  ;;  %9972 = vmatpush1.bf16.msra.mxu1 %v9888_v1  ;;  %v10072_v23 = vld [vmem:[#allocation9 + $0x4a8] sm:$0xff]  ;;  %v10074_v1 = vld [vmem:[#allocation9 + $0x4b8] sm:$0xff] }
 0x81d   :  { %9930 = vmatprep.subr.bf16.mxu0 %v9891_v55  ;;  %9973 = vmatprep.subr.bf16.mxu1 %v9893_v28  ;;  %v10071_v55 = vld [vmem:[#allocation9 + $0x4a0] sm:$0xff]  ;;  %v10073_v28 = vld [vmem:[#allocation9 + $0x4b0] sm:$0xff] }
 0x820   :  { %9931 = vmatpush1.bf16.msra.mxu0 %v9890_v50  ;;  %9974 = vmatpush1.bf16.msra.mxu1 %v9892_v36  ;;  %v10076_v50 = vld [vmem:[#allocation9 + $0x4c8] sm:$0xff]  ;;  %v10078_v36 = vld [vmem:[#allocation9 + $0x4d8] sm:$0xff] }
 0x821   :  { %9932 = vmatprep.subr.bf16.mxu0 %v9895_v24  ;;  %9975 = vmatprep.subr.bf16.mxu1 %v9897_v46  ;;  %v10077_v24 = vld [vmem:[#allocation9 + $0x4d0] sm:$0xff]  ;;  %v10080_v46 = vld [vmem:[#allocation9 + $0x4e8] sm:$0xff] }
 0x824   :  { %9933 = vmatpush1.bf16.msra.mxu0 %v9894_v39  ;;  %9976 = vmatpush1.bf16.msra.mxu1 %v9896_v41  ;;  %v10084_v39 = vld [vmem:[#allocation9 + $0x508] sm:$0xff]  ;;  %v10086_v41 = vld [vmem:[#allocation9 + $0x518] sm:$0xff] }
 0x825   :  { %9934 = vmatprep.subr.bf16.mxu0 %v9899_v21  ;;  %9977 = vmatprep.subr.bf16.mxu1 %v9901_v32  ;;  %v10088_v21 = vld [vmem:[#allocation9 + $0x528] sm:$0xff]  ;;  %v10090_v32 = vld [vmem:[#allocation9 + $0x538] sm:$0xff] }
 0x828   :  { %9935 = vmatpush1.bf16.msra.mxu0 %v9898_v0  ;;  %9978 = vmatpush1.bf16.msra.mxu1 %v9900_v44  ;;  %v10091_v0 = vld [vmem:[#allocation9 + $0x540] sm:$0xff]  ;;  %v10093_v44 = vld [vmem:[#allocation9 + $0x550] sm:$0xff] }
 0x829   :  { %9936 = vmatprep.subr.bf16.mxu0 %v9903_v3  ;;  %9979 = vmatprep.subr.bf16.mxu1 %v9905_v63  ;;  %v10095_v3 = vld [vmem:[#allocation9 + $0x560] sm:$0xff]  ;;  %v10097_v63 = vld [vmem:[#allocation9 + $0x570] sm:$0xff] }
 0x82c   :  { %9937 = vmatpush1.bf16.msra.mxu0 %v9902_v15  ;;  %9980 = vmatpush1.bf16.msra.mxu1 %v9904_v10  ;;  %v10016_v15 = vld [vmem:[#allocation4] sm:$0xfc]  ;;  %v10018_v10 = vld [vmem:[#allocation4 + $0x10] sm:$0x3] }
 0x82d   :  { %10115 = vmatprep.subr.bf16.mxu0 %v10052_v11  ;;  %10158 = vmatprep.subr.bf16.mxu1 %v10054_v35  ;;  %v10020_v11 = vld [vmem:[#allocation4 + $0x20] sm:$0xfc]  ;;  %v10022_v35 = vld [vmem:[#allocation4 + $0x30] sm:$0x3] }
 0x82f   :  { %9939 = vmatmul.mubr.bf16.vlgmr.msra.gmra.mrb[40].mxu0 %v9839_v7  ;;  %9982 = vmatmul.mubr.bf16.vlgmr.msra.gmra.mrb[40].mxu1 %v9839_v7  ;;  %v10103_v7 = vld [vmem:[#allocation9 + $0x5a0] sm:$0xff] }
 0x830   :  { %10116 = vmatpush1.bf16.msra.mxu0 %v10051_v20  ;;  %10159 = vmatpush1.bf16.msra.mxu1 %v10053_v12  ;;  %v10110_v20 = vld [vmem:[#allocation9 + $0x5d8] sm:$0xff]  ;;  %v10032_v12 = vrot.slane %v10016_v15, 2  ;;  %v10289_v15 = vld [vmem:[#allocation9 + $0x6e8] sm:$0xff] }
 0x831   :  { %10117 = vmatprep.subr.bf16.mxu0 %v10056_v5  ;;  %10160 = vmatprep.subr.bf16.mxu1 %v10058_v42  ;;  %v10033_v5 = vrot.slane %v10018_v10, 2  ;;  %v10038_v42 = vrot.slane %v10020_v11, 2  ;;  %v10291_v10 = vld [vmem:[#allocation9 + $0x6f8] sm:$0xff]  ;;  %v10288_v11 = vld [vmem:[#allocation9 + $0x6e0] sm:$0xff] }
 0x832   :  { %10147 = vmatprep.mubr.bf16.mxu0 %v10049_v9  ;;  %10190 = vmatprep.mubr.bf16.mxu1 %v10049_v9  ;;  %v10039_v9 = vrot.slane %v10022_v35, 2  ;;  %v10290_v35 = vld [vmem:[#allocation9 + $0x6f0] sm:$0xff] }
 0x834   :  { %10118 = vmatpush1.bf16.msra.mxu0 %v10055_v14  ;;  %10161 = vmatpush1.bf16.msra.mxu1 %v10057_v60  ;;  %v10226_v14 = vld [vmem:[#allocation4 + $0x8] sm:$0xf8]  ;;  %v10228_v60 = vld [vmem:[#allocation4 + $0x18] sm:$0x7] }
 0x835   :  { %10119 = vmatprep.subr.bf16.mxu0 %v10060_v40  ;;  %10162 = vmatprep.subr.bf16.mxu1 %v10062_v59  ;;  %v10230_v40 = vld [vmem:[#allocation4 + $0x28] sm:$0xf8]  ;;  %v10232_v59 = vld [vmem:[#allocation4 + $0x38] sm:$0x7] }
 0x838   :  { %10120 = vmatpush1.bf16.msra.mxu0 %v10059_v56  ;;  %10163 = vmatpush1.bf16.msra.mxu1 %v10061_v58  ;;  %v10107_v56 = vld [vmem:[#allocation9 + $0x5c0] sm:$0xff]  ;;  %v10109_v58 = vld [vmem:[#allocation9 + $0x5d0] sm:$0xff] }
 0x839   :  { %10121 = vmatprep.subr.bf16.mxu0 %v10064_v17  ;;  %10164 = vmatprep.subr.bf16.mxu1 %v10066_v16  ;;  %v10112_v17 = vld [vmem:[#allocation9 + $0x5e8] sm:$0xff]  ;;  %v10114_v16 = vld [vmem:[#allocation9 + $0x5f8] sm:$0xff] }
 0x83c   :  { %10122 = vmatpush1.bf16.msra.mxu0 %v10063_v34  ;;  %10165 = vmatpush1.bf16.msra.mxu1 %v10065_v4  ;;  %v10244_v34 = vrot.slane %v10226_v14, 3  ;;  %v10245_v4 = vrot.slane %v10228_v60, 3  ;;  %v10301_v14 = vld [vmem:[#allocation9 + $0x748] sm:$0xff]  ;;  %v10303_v60 = vld [vmem:[#allocation9 + $0x758] sm:$0xff] }
 0x83d   :  { %10123 = vmatprep.subr.bf16.mxu0 %v10068_v18  ;;  %10166 = vmatprep.subr.bf16.mxu1 %v10070_v13  ;;  %v10250_v18 = vrot.slane %v10230_v40, 3  ;;  %v10251_v13 = vrot.slane %v10232_v59, 3  ;;  %v10300_v40 = vld [vmem:[#allocation9 + $0x740] sm:$0xff]  ;;  %v10302_v59 = vld [vmem:[#allocation9 + $0x750] sm:$0xff] }
 0x840   :  { %10124 = vmatpush1.bf16.msra.mxu0 %v10067_v22  ;;  %10167 = vmatpush1.bf16.msra.mxu1 %v10069_v25  ;;  %v10034_v22 = vsel %vm7541_vm11, %v10032_v12, %v10033_v5  ;;  %v10040_v25 = vsel %vm7541_vm11, %v10038_v42, %v10039_v9  ;;  %v10297_v12 = vld [vmem:[#allocation9 + $0x728] sm:$0xff]  ;;  %v10299_v5 = vld [vmem:[#allocation9 + $0x738] sm:$0xff]  ;;  %v10296_v42 = vld [vmem:[#allocation9 + $0x720] sm:$0xff] }
 0x841   :  { %10125 = vmatprep.subr.bf16.mxu0 %v10072_v23  ;;  %10168 = vmatprep.subr.bf16.mxu1 %v10074_v1  ;;  %v10111_v23 = vld [vmem:[#allocation9 + $0x5e0] sm:$0xff]  ;;  %v10113_v1 = vld [vmem:[#allocation9 + $0x5f0] sm:$0xff] }
 0x842   :  { %v10298_v9 = vld [vmem:[#allocation9 + $0x730] sm:$0xff] }
 0x844   :  { %10126 = vmatpush1.bf16.msra.mxu0 %v10071_v55  ;;  %10169 = vmatpush1.bf16.msra.mxu1 %v10073_v28  ;;  %v10261_v55 = vld [vmem:[#allocation9 + $0x608] sm:$0xff]  ;;  %v10263_v28 = vld [vmem:[#allocation9 + $0x618] sm:$0xff] }
 0x845   :  { %10127 = vmatprep.subr.bf16.mxu0 %v10076_v50  ;;  %10170 = vmatprep.subr.bf16.mxu1 %v10078_v36  ;;  %v10048_v50 = vpack.c.bf16 %v10040_v25, %v10034_v22  ;;  %v10246_v36 = vsel %vm8043_vm12, %v10244_v34, %v10245_v4  ;;  %v10309_v34 = vld [vmem:[#allocation9 + $0x788] sm:$0xff]  ;;  %v10311_v4 = vld [vmem:[#allocation9 + $0x798] sm:$0xff] }
 0x846   :  { %v10313_v22 = vld [vmem:[#allocation9 + $0x7a8] sm:$0xff]  ;;  %v10315_v25 = vld [vmem:[#allocation9 + $0x7b8] sm:$0xff] }
 0x848   :  { %10128 = vmatpush1.bf16.msra.mxu0 %v10075_v2  ;;  %10171 = vmatpush1.bf16.msra.mxu1 %v10077_v24  ;;  %v10252_v2 = vsel %vm8043_vm12, %v10250_v18, %v10251_v13  ;;  %v10260_v24 = vld [vmem:[#allocation9 + $0x600] sm:$0xff]  ;;  %v10310_v13 = vld [vmem:[#allocation9 + $0x790] sm:$0xff] }
 0x849   :  { %10129 = vmatprep.subr.bf16.mxu0 %v10080_v46  ;;  %10172 = vmatprep.subr.bf16.mxu1 %v10082_v54  ;;  %v10262_v46 = vld [vmem:[#allocation9 + $0x610] sm:$0xff]  ;;  %v10265_v54 = vld [vmem:[#allocation9 + $0x628] sm:$0xff]  ;;  %v10308_v18 = vld [vmem:[#allocation9 + $0x780] sm:$0xff] }
 0x84c   :  { %10130 = vmatpush1.bf16.msra.mxu0 %v10079_v47  ;;  %10173 = vmatpush1.bf16.msra.mxu1 %v10081_v53  ;;  %v10267_v47 = vld [vmem:[#allocation9 + $0x638] sm:$0xff]  ;;  %v10258_v53 = vpack.c.bf16 %v10252_v2, %v10246_v36  ;;  %v10314_v36 = vld [vmem:[#allocation9 + $0x7b0] sm:$0xff]  ;;  %v10317_v2 = vld [vmem:[#allocation9 + $0x7c8] sm:$0xff] }
 0x84d   :  { %10131 = vmatprep.subr.bf16.mxu0 %v10084_v39  ;;  %10174 = vmatprep.subr.bf16.mxu1 %v10086_v41  ;;  %v10264_v39 = vld [vmem:[#allocation9 + $0x620] sm:$0xff]  ;;  %v10266_v41 = vld [vmem:[#allocation9 + $0x630] sm:$0xff] }
 0x850   :  { %10132 = vmatpush1.bf16.msra.mxu0 %v10083_v38  ;;  %10175 = vmatpush1.bf16.msra.mxu1 %v10085_v45  ;;  %v10269_v38 = vld [vmem:[#allocation9 + $0x648] sm:$0xff]  ;;  %v10271_v45 = vld [vmem:[#allocation9 + $0x658] sm:$0xff] }
 0x851   :  { %10133 = vmatprep.subr.bf16.mxu0 %v10088_v21  ;;  %10176 = vmatprep.subr.bf16.mxu1 %v10090_v32  ;;  %v10268_v21 = vld [vmem:[#allocation9 + $0x640] sm:$0xff]  ;;  %v10270_v32 = vld [vmem:[#allocation9 + $0x650] sm:$0xff] }
 0x854   :  { %10134 = vmatpush1.bf16.msra.mxu0 %v10087_v19  ;;  %10177 = vmatpush1.bf16.msra.mxu1 %v10089_v26  ;;  %v10273_v19 = vld [vmem:[#allocation9 + $0x668] sm:$0xff]  ;;  %v10275_v26 = vld [vmem:[#allocation9 + $0x678] sm:$0xff] }
 0x855   :  { %10135 = vmatprep.subr.bf16.mxu0 %v10092_v52  ;;  %10178 = vmatprep.subr.bf16.mxu1 %v10094_v37  ;;  %v10272_v52 = vld [vmem:[#allocation9 + $0x660] sm:$0xff]  ;;  %v10274_v37 = vld [vmem:[#allocation9 + $0x670] sm:$0xff] }
 0x858   :  { %10136 = vmatpush1.bf16.msra.mxu0 %v10091_v0  ;;  %10179 = vmatpush1.bf16.msra.mxu1 %v10093_v44  ;;  %v10277_v0 = vld [vmem:[#allocation9 + $0x688] sm:$0xff]  ;;  %v10279_v44 = vld [vmem:[#allocation9 + $0x698] sm:$0xff] }
 0x859   :  { %10137 = vmatprep.subr.bf16.mxu0 %v10096_v27  ;;  %10180 = vmatprep.subr.bf16.mxu1 %v10098_v30  ;;  %v10276_v27 = vld [vmem:[#allocation9 + $0x680] sm:$0xff]  ;;  %v10278_v30 = vld [vmem:[#allocation9 + $0x690] sm:$0xff] }
 0x85c   :  { %10138 = vmatpush1.bf16.msra.mxu0 %v10095_v3  ;;  %10181 = vmatpush1.bf16.msra.mxu1 %v10097_v63  ;;  %v10281_v3 = vld [vmem:[#allocation9 + $0x6a8] sm:$0xff]  ;;  %v10283_v63 = vld [vmem:[#allocation9 + $0x6b8] sm:$0xff] }
 0x85d   :  { %10139 = vmatprep.subr.bf16.mxu0 %v10100_v48  ;;  %10182 = vmatprep.subr.bf16.mxu1 %v10102_v62  ;;  %v10280_v48 = vld [vmem:[#allocation9 + $0x6a0] sm:$0xff]  ;;  %v10282_v62 = vld [vmem:[#allocation9 + $0x6b0] sm:$0xff] }
 0x860   :  { %10140 = vmatpush1.bf16.msra.mxu0 %v10099_v43  ;;  %10183 = vmatpush1.bf16.msra.mxu1 %v10101_v51  ;;  %v10285_v43 = vld [vmem:[#allocation9 + $0x6c8] sm:$0xff]  ;;  %v10287_v51 = vld [vmem:[#allocation9 + $0x6d8] sm:$0xff] }
 0x861   :  { %10141 = vmatprep.subr.bf16.mxu0 %v10104_v57  ;;  %10184 = vmatprep.subr.bf16.mxu1 %v10106_v49  ;;  %v10284_v57 = vld [vmem:[#allocation9 + $0x6c0] sm:$0xff]  ;;  %v10286_v49 = vld [vmem:[#allocation9 + $0x6d0] sm:$0xff] }
 0x864   :  { %10142 = vmatpush1.bf16.msra.mxu0 %v10103_v7  ;;  %10185 = vmatpush1.bf16.msra.mxu1 %v10105_v29  ;;  %v10293_v7 = vld [vmem:[#allocation9 + $0x708] sm:$0xff]  ;;  %v10295_v29 = vld [vmem:[#allocation9 + $0x718] sm:$0xff] }
 0x865   :  { %10143 = vmatprep.subr.bf16.mxu0 %v10108_v33  ;;  %10186 = vmatprep.subr.bf16.mxu1 %v10110_v20  ;;  %v10292_v33 = vld [vmem:[#allocation9 + $0x700] sm:$0xff]  ;;  %v10294_v20 = vld [vmem:[#allocation9 + $0x710] sm:$0xff] }
 0x868   :  { %10144 = vmatpush1.bf16.msra.mxu0 %v10107_v56  ;;  %10187 = vmatpush1.bf16.msra.mxu1 %v10109_v58  ;;  %v10305_v56 = vld [vmem:[#allocation9 + $0x768] sm:$0xff]  ;;  %v10307_v58 = vld [vmem:[#allocation9 + $0x778] sm:$0xff] }
 0x869   :  { %10145 = vmatprep.subr.bf16.mxu0 %v10112_v17  ;;  %10188 = vmatprep.subr.bf16.mxu1 %v10114_v16  ;;  %v10304_v17 = vld [vmem:[#allocation9 + $0x760] sm:$0xff]  ;;  %v10306_v16 = vld [vmem:[#allocation9 + $0x770] sm:$0xff] }
 0x86c   :  { %10146 = vmatpush1.bf16.msra.mxu0 %v10111_v23  ;;  %10189 = vmatpush1.bf16.msra.mxu1 %v10113_v1  ;;  %v10225_v23 = vld [vmem:[#allocation4] sm:$0xf8]  ;;  %v10227_v1 = vld [vmem:[#allocation4 + $0x10] sm:$0x7] }
 0x86d   :  { %10324 = vmatprep.subr.bf16.mxu0 %v10261_v55  ;;  %10367 = vmatprep.subr.bf16.mxu1 %v10263_v28  ;;  %v10229_v55 = vld [vmem:[#allocation4 + $0x20] sm:$0xf8]  ;;  %v10231_v28 = vld [vmem:[#allocation4 + $0x30] sm:$0x7] }
 0x86f   :  { %10148 = vmatmul.mubr.bf16.vlgmr.msra.gmra.mrb[40].mxu0 %v10048_v50  ;;  %10191 = vmatmul.mubr.bf16.vlgmr.msra.gmra.mrb[40].mxu1 %v10048_v50  ;;  %v10312_v50 = vld [vmem:[#allocation9 + $0x7a0] sm:$0xff] }
 0x870   :  { %10325 = vmatpush1.bf16.msra.mxu0 %v10260_v24  ;;  %10368 = vmatpush1.bf16.msra.mxu1 %v10262_v46  ;;  %v10319_v24 = vld [vmem:[#allocation9 + $0x7d8] sm:$0xff]  ;;  %v10241_v46 = vrot.slane %v10225_v23, 3  ;;  %v10498_v23 = vld [vmem:[#allocation9 + $0x8e8] sm:$0xff] }
 0x871   :  { %10326 = vmatprep.subr.bf16.mxu0 %v10265_v54  ;;  %10369 = vmatprep.subr.bf16.mxu1 %v10267_v47  ;;  %v10242_v54 = vrot.slane %v10227_v1, 3  ;;  %v10247_v47 = vrot.slane %v10229_v55, 3  ;;  %v10500_v1 = vld [vmem:[#allocation9 + $0x8f8] sm:$0xff]  ;;  %v10497_v55 = vld [vmem:[#allocation9 + $0x8e0] sm:$0xff] }
 0x872   :  { %10356 = vmatprep.mubr.bf16.mxu0 %v10258_v53  ;;  %10399 = vmatprep.mubr.bf16.mxu1 %v10258_v53  ;;  %v10248_v53 = vrot.slane %v10231_v28, 3  ;;  %v10499_v28 = vld [vmem:[#allocation9 + $0x8f0] sm:$0xff] }
 0x874   :  { %10327 = vmatpush1.bf16.msra.mxu0 %v10264_v39  ;;  %10370 = vmatpush1.bf16.msra.mxu1 %v10266_v41  ;;  %v10435_v39 = vld [vmem:[#allocation4 + $0x8] sm:$0xf0]  ;;  %v10437_v41 = vld [vmem:[#allocation4 + $0x18] sm:$0xf] }
 0x875   :  { %10328 = vmatprep.subr.bf16.mxu0 %v10269_v38  ;;  %10371 = vmatprep.subr.bf16.mxu1 %v10271_v45  ;;  %v10439_v38 = vld [vmem:[#allocation4 + $0x28] sm:$0xf0]  ;;  %v10441_v45 = vld [vmem:[#allocation4 + $0x38] sm:$0xf] }
 0x878   :  { %10329 = vmatpush1.bf16.msra.mxu0 %v10268_v21  ;;  %10372 = vmatpush1.bf16.msra.mxu1 %v10270_v32  ;;  %v10316_v21 = vld [vmem:[#allocation9 + $0x7c0] sm:$0xff]  ;;  %v10318_v32 = vld [vmem:[#allocation9 + $0x7d0] sm:$0xff] }
 0x879   :  { %10330 = vmatprep.subr.bf16.mxu0 %v10273_v19  ;;  %10373 = vmatprep.subr.bf16.mxu1 %v10275_v26  ;;  %v10321_v19 = vld [vmem:[#allocation9 + $0x7e8] sm:$0xff]  ;;  %v10323_v26 = vld [vmem:[#allocation9 + $0x7f8] sm:$0xff] }
 0x87c   :  { %10331 = vmatpush1.bf16.msra.mxu0 %v10272_v52  ;;  %10374 = vmatpush1.bf16.msra.mxu1 %v10274_v37  ;;  %v10453_v52 = vrot.slane %v10435_v39, 4  ;;  %v10454_v37 = vrot.slane %v10437_v41, 4  ;;  %v10510_v39 = vld [vmem:[#allocation9 + $0x948] sm:$0xff]  ;;  %v10512_v41 = vld [vmem:[#allocation9 + $0x958] sm:$0xff] }
 0x87d   :  { %10332 = vmatprep.subr.bf16.mxu0 %v10277_v0  ;;  %10375 = vmatprep.subr.bf16.mxu1 %v10279_v44  ;;  %v10459_v0 = vrot.slane %v10439_v38, 4  ;;  %v10460_v44 = vrot.slane %v10441_v45, 4  ;;  %v10509_v38 = vld [vmem:[#allocation9 + $0x940] sm:$0xff]  ;;  %v10511_v45 = vld [vmem:[#allocation9 + $0x950] sm:$0xff] }
 0x880   :  { %10333 = vmatpush1.bf16.msra.mxu0 %v10276_v27  ;;  %10376 = vmatpush1.bf16.msra.mxu1 %v10278_v30  ;;  %v10243_v27 = vsel %vm8043_vm12, %v10241_v46, %v10242_v54  ;;  %v10249_v30 = vsel %vm8043_vm12, %v10247_v47, %v10248_v53  ;;  %v10506_v46 = vld [vmem:[#allocation9 + $0x928] sm:$0xff]  ;;  %v10508_v54 = vld [vmem:[#allocation9 + $0x938] sm:$0xff]  ;;  %v10505_v47 = vld [vmem:[#allocation9 + $0x920] sm:$0xff] }
 0x881   :  { %10334 = vmatprep.subr.bf16.mxu0 %v10281_v3  ;;  %10377 = vmatprep.subr.bf16.mxu1 %v10283_v63  ;;  %v10320_v3 = vld [vmem:[#allocation9 + $0x7e0] sm:$0xff]  ;;  %v10322_v63 = vld [vmem:[#allocation9 + $0x7f0] sm:$0xff] }
 0x882   :  { %v10507_v53 = vld [vmem:[#allocation9 + $0x930] sm:$0xff] }
 0x884   :  { %10335 = vmatpush1.bf16.msra.mxu0 %v10280_v48  ;;  %10378 = vmatpush1.bf16.msra.mxu1 %v10282_v62  ;;  %v10470_v48 = vld [vmem:[#allocation9 + $0x808] sm:$0xff]  ;;  %v10472_v62 = vld [vmem:[#allocation9 + $0x818] sm:$0xff] }
 0x885   :  { %10336 = vmatprep.subr.bf16.mxu0 %v10285_v43  ;;  %10379 = vmatprep.subr.bf16.mxu1 %v10287_v51  ;;  %v10257_v43 = vpack.c.bf16 %v10249_v30, %v10243_v27  ;;  %v10455_v51 = vsel %vm8545_vm13, %v10453_v52, %v10454_v37  ;;  %v10518_v52 = vld [vmem:[#allocation9 + $0x988] sm:$0xff]  ;;  %v10520_v37 = vld [vmem:[#allocation9 + $0x998] sm:$0xff] }
 0x886   :  { %v10522_v27 = vld [vmem:[#allocation9 + $0x9a8] sm:$0xff]  ;;  %v10524_v30 = vld [vmem:[#allocation9 + $0x9b8] sm:$0xff] }
 0x888   :  { %10337 = vmatpush1.bf16.msra.mxu0 %v10284_v57  ;;  %10380 = vmatpush1.bf16.msra.mxu1 %v10286_v49  ;;  %v10461_v57 = vsel %vm8545_vm13, %v10459_v0, %v10460_v44  ;;  %v10469_v49 = vld [vmem:[#allocation9 + $0x800] sm:$0xff]  ;;  %v10519_v44 = vld [vmem:[#allocation9 + $0x990] sm:$0xff] }
 0x889   :  { %10338 = vmatprep.subr.bf16.mxu0 %v10289_v15  ;;  %10381 = vmatprep.subr.bf16.mxu1 %v10291_v10  ;;  %v10471_v15 = vld [vmem:[#allocation9 + $0x810] sm:$0xff]  ;;  %v10474_v10 = vld [vmem:[#allocation9 + $0x828] sm:$0xff]  ;;  %v10517_v0 = vld [vmem:[#allocation9 + $0x980] sm:$0xff] }
 0x88c   :  { %10339 = vmatpush1.bf16.msra.mxu0 %v10288_v11  ;;  %10382 = vmatpush1.bf16.msra.mxu1 %v10290_v35  ;;  %v10476_v11 = vld [vmem:[#allocation9 + $0x838] sm:$0xff]  ;;  %v10467_v35 = vpack.c.bf16 %v10461_v57, %v10455_v51  ;;  %v10440_v51 = vld [vmem:[#allocation4 + $0x30] sm:$0xf]  ;;  %v10526_v57 = vld [vmem:[#allocation9 + $0x9c8] sm:$0xff] }
 0x88d   :  { %10340 = vmatprep.subr.bf16.mxu0 %v10293_v7  ;;  %10383 = vmatprep.subr.bf16.mxu1 %v10295_v29  ;;  %v10473_v7 = vld [vmem:[#allocation9 + $0x820] sm:$0xff]  ;;  %v10475_v29 = vld [vmem:[#allocation9 + $0x830] sm:$0xff] }
 0x890   :  { %10341 = vmatpush1.bf16.msra.mxu0 %v10292_v33  ;;  %10384 = vmatpush1.bf16.msra.mxu1 %v10294_v20  ;;  %v10478_v33 = vld [vmem:[#allocation9 + $0x848] sm:$0xff]  ;;  %v10480_v20 = vld [vmem:[#allocation9 + $0x858] sm:$0xff] }
 0x891   :  { %10342 = vmatprep.subr.bf16.mxu0 %v10297_v12  ;;  %10385 = vmatprep.subr.bf16.mxu1 %v10299_v5  ;;  %v10477_v12 = vld [vmem:[#allocation9 + $0x840] sm:$0xff]  ;;  %v10479_v5 = vld [vmem:[#allocation9 + $0x850] sm:$0xff] }
 0x894   :  { %10343 = vmatpush1.bf16.msra.mxu0 %v10296_v42  ;;  %10386 = vmatpush1.bf16.msra.mxu1 %v10298_v9  ;;  %v10482_v42 = vld [vmem:[#allocation9 + $0x868] sm:$0xff]  ;;  %v10484_v9 = vld [vmem:[#allocation9 + $0x878] sm:$0xff] }
 0x895   :  { %10344 = vmatprep.subr.bf16.mxu0 %v10301_v14  ;;  %10387 = vmatprep.subr.bf16.mxu1 %v10303_v60  ;;  %v10481_v14 = vld [vmem:[#allocation9 + $0x860] sm:$0xff]  ;;  %v10483_v60 = vld [vmem:[#allocation9 + $0x870] sm:$0xff] }
 0x898   :  { %10345 = vmatpush1.bf16.msra.mxu0 %v10300_v40  ;;  %10388 = vmatpush1.bf16.msra.mxu1 %v10302_v59  ;;  %v10486_v40 = vld [vmem:[#allocation9 + $0x888] sm:$0xff]  ;;  %v10488_v59 = vld [vmem:[#allocation9 + $0x898] sm:$0xff] }
 0x899   :  { %10346 = vmatprep.subr.bf16.mxu0 %v10305_v56  ;;  %10389 = vmatprep.subr.bf16.mxu1 %v10307_v58  ;;  %v10485_v56 = vld [vmem:[#allocation9 + $0x880] sm:$0xff]  ;;  %v10487_v58 = vld [vmem:[#allocation9 + $0x890] sm:$0xff] }
 0x89c   :  { %10347 = vmatpush1.bf16.msra.mxu0 %v10304_v17  ;;  %10390 = vmatpush1.bf16.msra.mxu1 %v10306_v16  ;;  %v10490_v17 = vld [vmem:[#allocation9 + $0x8a8] sm:$0xff]  ;;  %v10492_v16 = vld [vmem:[#allocation9 + $0x8b8] sm:$0xff] }
 0x89d   :  { %10348 = vmatprep.subr.bf16.mxu0 %v10309_v34  ;;  %10391 = vmatprep.subr.bf16.mxu1 %v10311_v4  ;;  %v10489_v34 = vld [vmem:[#allocation9 + $0x8a0] sm:$0xff]  ;;  %v10491_v4 = vld [vmem:[#allocation9 + $0x8b0] sm:$0xff] }
 0x8a0   :  { %10349 = vmatpush1.bf16.msra.mxu0 %v10308_v18  ;;  %10392 = vmatpush1.bf16.msra.mxu1 %v10310_v13  ;;  %v10494_v18 = vld [vmem:[#allocation9 + $0x8c8] sm:$0xff]  ;;  %v10496_v13 = vld [vmem:[#allocation9 + $0x8d8] sm:$0xff] }
 0x8a1   :  { %10350 = vmatprep.subr.bf16.mxu0 %v10313_v22  ;;  %10393 = vmatprep.subr.bf16.mxu1 %v10315_v25  ;;  %v10493_v22 = vld [vmem:[#allocation9 + $0x8c0] sm:$0xff]  ;;  %v10495_v25 = vld [vmem:[#allocation9 + $0x8d0] sm:$0xff] }
 0x8a4   :  { %10351 = vmatpush1.bf16.msra.mxu0 %v10312_v50  ;;  %10394 = vmatpush1.bf16.msra.mxu1 %v10314_v36  ;;  %v10502_v50 = vld [vmem:[#allocation9 + $0x908] sm:$0xff]  ;;  %v10504_v36 = vld [vmem:[#allocation9 + $0x918] sm:$0xff] }
 0x8a5   :  { %10352 = vmatprep.subr.bf16.mxu0 %v10317_v2  ;;  %10395 = vmatprep.subr.bf16.mxu1 %v10319_v24  ;;  %v10501_v2 = vld [vmem:[#allocation9 + $0x900] sm:$0xff]  ;;  %v10503_v24 = vld [vmem:[#allocation9 + $0x910] sm:$0xff] }
 0x8a8   :  { %10353 = vmatpush1.bf16.msra.mxu0 %v10316_v21  ;;  %10396 = vmatpush1.bf16.msra.mxu1 %v10318_v32  ;;  %v10514_v21 = vld [vmem:[#allocation9 + $0x968] sm:$0xff]  ;;  %v10516_v32 = vld [vmem:[#allocation9 + $0x978] sm:$0xff] }
 0x8a9   :  { %10354 = vmatprep.subr.bf16.mxu0 %v10321_v19  ;;  %10397 = vmatprep.subr.bf16.mxu1 %v10323_v26  ;;  %v10513_v19 = vld [vmem:[#allocation9 + $0x960] sm:$0xff]  ;;  %v10515_v26 = vld [vmem:[#allocation9 + $0x970] sm:$0xff] }
 0x8ac   :  { %10355 = vmatpush1.bf16.msra.mxu0 %v10320_v3  ;;  %10398 = vmatpush1.bf16.msra.mxu1 %v10322_v63  ;;  %v10521_v3 = vld [vmem:[#allocation9 + $0x9a0] sm:$0xff]  ;;  %v10523_v63 = vld [vmem:[#allocation9 + $0x9b0] sm:$0xff] }
 0x8ad   :  { %10533 = vmatprep.subr.bf16.mxu0 %v10470_v48  ;;  %10576 = vmatprep.subr.bf16.mxu1 %v10472_v62  ;;  %v10434_v48 = vld [vmem:[#allocation4] sm:$0xf0]  ;;  %v10436_v62 = vld [vmem:[#allocation4 + $0x10] sm:$0xf] }
 0x8af   :  { %10357 = vmatmul.mubr.bf16.vlgmr.msra.gmra.mrb[40].mxu0 %v10257_v43  ;;  %10400 = vmatmul.mubr.bf16.vlgmr.msra.gmra.mrb[40].mxu1 %v10257_v43  ;;  %v10438_v43 = vld [vmem:[#allocation4 + $0x20] sm:$0xf0] }
 0x8b0   :  { %10534 = vmatpush1.bf16.msra.mxu0 %v10469_v49  ;;  %10577 = vmatpush1.bf16.msra.mxu1 %v10471_v15  ;;  %v10528_v49 = vld [vmem:[#allocation9 + $0x9d8] sm:$0xff]  ;;  %v10450_v15 = vrot.slane %v10434_v48, 4 }
 0x8b1   :  { %10535 = vmatprep.subr.bf16.mxu0 %v10474_v10  ;;  %10578 = vmatprep.subr.bf16.mxu1 %v10476_v11  ;;  %v10451_v10 = vrot.slane %v10436_v62, 4  ;;  %v10456_v11 = vrot.slane %v10438_v43, 4 }
 0x8b2   :  { %10565 = vmatprep.mubr.bf16.mxu0 %v10467_v35  ;;  %10608 = vmatprep.mubr.bf16.mxu1 %v10467_v35  ;;  %v10457_v35 = vrot.slane %v10440_v51, 4 }
 0x8b4   :  { %10536 = vmatpush1.bf16.msra.mxu0 %v10473_v7  ;;  %10579 = vmatpush1.bf16.msra.mxu1 %v10475_v29  ;;  %v10525_v7 = vld [vmem:[#allocation9 + $0x9c0] sm:$0xff]  ;;  %v10527_v29 = vld [vmem:[#allocation9 + $0x9d0] sm:$0xff] }
 0x8b5   :  { %10537 = vmatprep.subr.bf16.mxu0 %v10478_v33  ;;  %10580 = vmatprep.subr.bf16.mxu1 %v10480_v20  ;;  %v10530_v33 = vld [vmem:[#allocation9 + $0x9e8] sm:$0xff]  ;;  %v10532_v20 = vld [vmem:[#allocation9 + $0x9f8] sm:$0xff] }
 0x8b8   :  { %10538 = vmatpush1.bf16.msra.mxu0 %v10477_v12  ;;  %10581 = vmatpush1.bf16.msra.mxu1 %v10479_v5  ;;  %v10452_v12 = vsel %vm8545_vm13, %v10450_v15, %v10451_v10  ;;  %v10458_v5 = vsel %vm8545_vm13, %v10456_v11, %v10457_v35 }
 0x8b9   :  { %10539 = vmatprep.subr.bf16.mxu0 %v10482_v42  ;;  %10582 = vmatprep.subr.bf16.mxu1 %v10484_v9  ;;  %v10529_v42 = vld [vmem:[#allocation9 + $0x9e0] sm:$0xff]  ;;  %v10531_v9 = vld [vmem:[#allocation9 + $0x9f0] sm:$0xff] }
 0x8bc   :  { %10540 = vmatpush1.bf16.msra.mxu0 %v10481_v14  ;;  %10583 = vmatpush1.bf16.msra.mxu1 %v10483_v60  ;;  %v10466_v14 = vpack.c.bf16 %v10458_v5, %v10452_v12  ;;  %v12753_v60 = vld [vmem:[%s15698_s7 + $0x40] sm:$0xff]  }
 0x8bd   :  { %10541 = vmatprep.subr.bf16.mxu0 %v10486_v40  ;;  %10584 = vmatprep.subr.bf16.mxu1 %v10488_v59  ;;  %v12754_v40 = vld [vmem:[%s15698_s7] sm:$0xff]  }
 0x8be   :  { %v12755_v59 = vld [vmem:[%s15698_s7 + $0xc0] sm:$0xff]  }
 0x8c0   :  { %10542 = vmatpush1.bf16.msra.mxu0 %v10485_v56  ;;  %10585 = vmatpush1.bf16.msra.mxu1 %v10487_v58  ;;  %v12756_v56 = vld [vmem:[%s15698_s7 + $0x80] sm:$0xff]   ;;  %v12757_v58 = vld [vmem:[%s15698_s7 + $0x48] sm:$0xff]  }
 0x8c1   :  { %10543 = vmatprep.subr.bf16.mxu0 %v10490_v17  ;;  %10586 = vmatprep.subr.bf16.mxu1 %v10492_v16  ;;  %v12758_v17 = vld [vmem:[%s15698_s7 + $0x8] sm:$0xff]  }
 0x8c2   :  { %v12759_v16 = vld [vmem:[%s15698_s7 + $0xc8] sm:$0xff]  }
 0x8c4   :  { %10544 = vmatpush1.bf16.msra.mxu0 %v10489_v34  ;;  %10587 = vmatpush1.bf16.msra.mxu1 %v10491_v4  ;;  %v12760_v34 = vld [vmem:[%s15698_s7 + $0x88] sm:$0xff]   ;;  %v12761_v4 = vld [vmem:[%s15698_s7 + $0x50] sm:$0xff]  }
 0x8c5   :  { %10545 = vmatprep.subr.bf16.mxu0 %v10494_v18  ;;  %10588 = vmatprep.subr.bf16.mxu1 %v10496_v13  ;;  %v12762_v18 = vld [vmem:[%s15698_s7 + $0x10] sm:$0xff]  }
 0x8c6   :  { %v12763_v13 = vld [vmem:[%s15698_s7 + $0xd0] sm:$0xff]  }
 0x8c8   :  { %10546 = vmatpush1.bf16.msra.mxu0 %v10493_v22  ;;  %10589 = vmatpush1.bf16.msra.mxu1 %v10495_v25  ;;  %v12764_v22 = vld [vmem:[%s15698_s7 + $0x90] sm:$0xff]   ;;  %v12765_v25 = vld [vmem:[%s15698_s7 + $0x58] sm:$0xff]  }
 0x8c9   :  { %10547 = vmatprep.subr.bf16.mxu0 %v10498_v23  ;;  %10590 = vmatprep.subr.bf16.mxu1 %v10500_v1  ;;  %v12766_v23 = vld [vmem:[%s15698_s7 + $0x18] sm:$0xff]  }
 0x8ca   :  { %v12767_v1 = vld [vmem:[%s15698_s7 + $0xd8] sm:$0xff]  }
 0x8cc   :  { %10548 = vmatpush1.bf16.msra.mxu0 %v10497_v55  ;;  %10591 = vmatpush1.bf16.msra.mxu1 %v10499_v28  ;;  %v12768_v55 = vld [vmem:[%s15698_s7 + $0x98] sm:$0xff]   ;;  %v12769_v28 = vld [vmem:[%s15698_s7 + $0x60] sm:$0xff]  }
 0x8cd   :  { %10549 = vmatprep.subr.bf16.mxu0 %v10502_v50  ;;  %10592 = vmatprep.subr.bf16.mxu1 %v10504_v36  ;;  %v12770_v50 = vld [vmem:[%s15698_s7 + $0x20] sm:$0xff]  }
 0x8ce   :  { %v12771_v36 = vld [vmem:[%s15698_s7 + $0xe0] sm:$0xff]  }
 0x8d0   :  { %10550 = vmatpush1.bf16.msra.mxu0 %v10501_v2  ;;  %10593 = vmatpush1.bf16.msra.mxu1 %v10503_v24  ;;  %v12772_v2 = vld [vmem:[%s15698_s7 + $0xa0] sm:$0xff]   ;;  %v12773_v24 = vld [vmem:[%s15698_s7 + $0x68] sm:$0xff]  }
 0x8d1   :  { %10551 = vmatprep.subr.bf16.mxu0 %v10506_v46  ;;  %10594 = vmatprep.subr.bf16.mxu1 %v10508_v54  ;;  %v12774_v46 = vld [vmem:[%s15698_s7 + $0x28] sm:$0xff]  }
 0x8d2   :  { %v12775_v54 = vld [vmem:[%s15698_s7 + $0xe8] sm:$0xff]  }
 0x8d4   :  { %10552 = vmatpush1.bf16.msra.mxu0 %v10505_v47  ;;  %10595 = vmatpush1.bf16.msra.mxu1 %v10507_v53  ;;  %v12776_v47 = vld [vmem:[%s15698_s7 + $0xa8] sm:$0xff]   ;;  %v12777_v53 = vld [vmem:[%s15698_s7 + $0x70] sm:$0xff]  }
 0x8d5   :  { %10553 = vmatprep.subr.bf16.mxu0 %v10510_v39  ;;  %10596 = vmatprep.subr.bf16.mxu1 %v10512_v41  ;;  %v12778_v39 = vld [vmem:[%s15698_s7 + $0x30] sm:$0xff]  }
 0x8d6   :  { %v12779_v41 = vld [vmem:[%s15698_s7 + $0xf0] sm:$0xff]  }
 0x8d8   :  { %10554 = vmatpush1.bf16.msra.mxu0 %v10509_v38  ;;  %10597 = vmatpush1.bf16.msra.mxu1 %v10511_v45  ;;  %v12781_v38 = vld [vmem:[%s15698_s7 + $0x78] sm:$0xff]   ;;  %v12780_v45 = vld [vmem:[%s15698_s7 + $0xb0] sm:$0xff]  }
 0x8d9   :  { %10555 = vmatprep.subr.bf16.mxu0 %v10514_v21  ;;  %10598 = vmatprep.subr.bf16.mxu1 %v10516_v32  ;;  %v12783_v21 = vld [vmem:[%s15698_s7 + $0xf8] sm:$0xff]  }
 0x8da   :  { %v12782_v32 = vld [vmem:[%s15698_s7 + $0x38] sm:$0xff]  }
 0x8dc   :  { %10556 = vmatpush1.bf16.msra.mxu0 %v10513_v19  ;;  %10599 = vmatpush1.bf16.msra.mxu1 %v10515_v26  ;;  %v12784_v19 = vld [vmem:[%s15698_s7 + $0xb8] sm:$0xff]   ;;  %v12785_v26 = vld [vmem:[%s15698_s7 + $0x140] sm:$0xff]  }
 0x8dd   :  { %10557 = vmatprep.subr.bf16.mxu0 %v10518_v52  ;;  %10600 = vmatprep.subr.bf16.mxu1 %v10520_v37  ;;  %v12787_v52 = vld [vmem:[%s15698_s7 + $0x1c0] sm:$0xff]  }
 0x8e0   :  { %10558 = vmatpush1.bf16.msra.mxu0 %v10517_v0  ;;  %10601 = vmatpush1.bf16.msra.mxu1 %v10519_v44 }
 0x8e1   :  { %10559 = vmatprep.subr.bf16.mxu0 %v10522_v27  ;;  %10602 = vmatprep.subr.bf16.mxu1 %v10524_v30 }
 0x8e4   :  { %10560 = vmatpush1.bf16.msra.mxu0 %v10521_v3  ;;  %10603 = vmatpush1.bf16.msra.mxu1 %v10523_v63 }
 0x8e5   :  { %10561 = vmatprep.subr.bf16.mxu0 %v10526_v57  ;;  %10604 = vmatprep.subr.bf16.mxu1 %v10528_v49 }
 0x8e8   :  { %10562 = vmatpush1.bf16.msra.mxu0 %v10525_v7  ;;  %10605 = vmatpush1.bf16.msra.mxu1 %v10527_v29  ;;  %v10887_v29 = vld [vmem:[#allocation17] sm:$0x3] }
 0x8e9   :  { %10563 = vmatprep.subr.bf16.mxu0 %v10530_v33  ;;  %10606 = vmatprep.subr.bf16.mxu1 %v10532_v20 }
 0x8ec   :  { %10564 = vmatpush1.bf16.msra.mxu0 %v10529_v42  ;;  %10607 = vmatpush1.bf16.msra.mxu1 %v10531_v9 }
 0x8ed   :  { %12188 = vmatprep.subr.bf16.mxu0 %v12753_v60  ;;  %12210 = vmatprep.subr.bf16.mxu1 %v12755_v59  ;;  %v15472_v60 = vrot.slane %v10887_v29, %v15972_v8 }
 0x8ef   :  { %10566 = vmatmul.mubr.bf16.vlgmr.msra.gmra.mrb[40].mxu0 %v10466_v14  ;;  %10609 = vmatmul.mubr.bf16.vlgmr.msra.gmra.mrb[40].mxu1 %v10466_v14  ;;  %v15469_v14 = vrot.slane %v10887_v29, %v15971_v6 }
 0x8f0   :  { %12189 = vmatpush3.bf16.msra.mxu0 %v12754_v40  ;;  %12211 = vmatpush3.bf16.msra.mxu1 %v12756_v56 }
 0x8f1   :  { %12190 = vmatprep.subr.bf16.mxu0 %v12757_v58  ;;  %12212 = vmatprep.subr.bf16.mxu1 %v12759_v16 }
 0x8f4   :  { %12191 = vmatpush3.bf16.msra.mxu0 %v12758_v17  ;;  %12213 = vmatpush3.bf16.msra.mxu1 %v12760_v34 }
 0x8f5   :  { %12192 = vmatprep.subr.bf16.mxu0 %v12761_v4  ;;  %12214 = vmatprep.subr.bf16.mxu1 %v12763_v13 }
 0x8f8   :  { %12193 = vmatpush3.bf16.msra.mxu0 %v12762_v18  ;;  %12215 = vmatpush3.bf16.msra.mxu1 %v12764_v22 }
 0x8f9   :  { %12194 = vmatprep.subr.bf16.mxu0 %v12765_v25  ;;  %12216 = vmatprep.subr.bf16.mxu1 %v12767_v1 }
 0x8fc   :  { %12195 = vmatpush3.bf16.msra.mxu0 %v12766_v23  ;;  %12217 = vmatpush3.bf16.msra.mxu1 %v12768_v55 }
 0x8fd   :  { %12196 = vmatprep.subr.bf16.mxu0 %v12769_v28  ;;  %12218 = vmatprep.subr.bf16.mxu1 %v12771_v36 }
 0x900   :  { %12197 = vmatpush3.bf16.msra.mxu0 %v12770_v50  ;;  %12219 = vmatpush3.bf16.msra.mxu1 %v12772_v2 }
 0x901   :  { %12198 = vmatprep.subr.bf16.mxu0 %v12773_v24  ;;  %12220 = vmatprep.subr.bf16.mxu1 %v12775_v54 }
 0x904   :  { %12199 = vmatpush3.bf16.msra.mxu0 %v12774_v46  ;;  %12221 = vmatpush3.bf16.msra.mxu1 %v12776_v47 }
 0x905   :  { %12200 = vmatprep.subr.bf16.mxu0 %v12777_v53  ;;  %12222 = vmatprep.subr.bf16.mxu1 %v12779_v41 }
 0x908   :  { %12201 = vmatpush3.bf16.msra.mxu0 %v12778_v39  ;;  %12223 = vmatpush3.bf16.msra.mxu1 %v12780_v45 }
 0x909   :  { %12202 = vmatprep.subr.bf16.mxu0 %v12781_v38  ;;  %12224 = vmatprep.subr.bf16.mxu1 %v12783_v21 }
 0x90c   :  { %12203 = vmatpush3.bf16.msra.mxu0 %v12782_v32  ;;  %12225 = vmatpush3.bf16.msra.mxu1 %v12784_v19 }
 0x90d   :  { %12232 = vmatprep.subr.bf16.mxu0 %v12785_v26  ;;  %12254 = vmatprep.subr.bf16.mxu1 %v12787_v52 }
 0x9c2   :  { %v10567_v37 = vpop.f32.mrb[40].mxu0  ;;  %v10610_v0 = vpop.f32.mrb[40].mxu1 }
 0x9c3   :  { %v10651_v44 = vmax.f32 %v10567_v37, %v10610_v0  ;;  %v10569_v27 = vpop.f32.mrb[41].mxu0  ;;  %v10612_v30 = vpop.f32.mrb[41].mxu1 }
 0x9c4   :  { %v10652_v3 = vmax.f32 %v10569_v27, %v10612_v30  ;;  %v10571_v63 = vpop.f32.mrb[42].mxu0  ;;  %v10614_v48 = vpop.f32.mrb[42].mxu1 }
 0x9c5   :  { %v10653_v62 = vmax.f32 %v10571_v63, %v10614_v48  ;;  %v10573_v43 = vpop.f32.mrb[43].mxu0  ;;  %v10616_v51 = vpop.f32.mrb[43].mxu1 }
 0x9c6   :  { %v10659_v57 = vcombine.low %v10651_v44, %v10652_v3  ;;  %v10660_v49 = vcombine.high %v10651_v44, %v10652_v3  ;;  %v10654_v15 = vmax.f32 %v10573_v43, %v10616_v51 }
 0x9c8   :  { %v10667_v10 = vrot.slane %v10659_v57, %v15970_v31  ;;  %v10674_v11 = vrot.slane %v10660_v49, %v15970_v31  ;;  %v10677_v35 = vcombine.low %v10653_v62, %v10654_v15  ;;  %v10678_v7 = vcombine.high %v10653_v62, %v10654_v15 }
 0x9ca   :  { %v10675_v33 = vcombine.high %v10667_v10, %v10667_v10  ;;  %v10676_v20 = vcombine.high %v10674_v11, %v10674_v11  ;;  %v10701_v12 = vrot.slane %v10667_v10, %v15970_v31  ;;  %v10717_v5 = vrot.slane %v10674_v11, %v15970_v31 }
 0x9cb   :  { %v10685_v42 = vrot.slane %v10677_v35, %v15970_v31  ;;  %v10692_v9 = vrot.slane %v10678_v7, %v15970_v31 }
 0x9cc   :  { %v10702_v40 = vcombine.high %v10701_v12, %v10701_v12  ;;  %v10709_v59 = vrot.slane %v10675_v33, %v15970_v31  ;;  %v10718_v56 = vcombine.high %v10717_v5, %v10717_v5  ;;  %v10725_v58 = vrot.slane %v10676_v20, %v15970_v31 }
 0x9cd   :  { %v10775_v17 = vsel %vm5144_vm2, %v10701_v12, -inf  ;;  %v10803_v16 = vsel %vm5144_vm2, %v10717_v5, -inf  ;;  %v10693_v34 = vcombine.high %v10685_v42, %v10685_v42  ;;  %v10694_v4 = vcombine.high %v10692_v9, %v10692_v9 }
 0x9ce   :  { %v10710_v18 = vcombine.high %v10709_v59, %v10709_v59  ;;  %v10726_v13 = vcombine.high %v10725_v58, %v10725_v58  ;;  %v10776_v22 = vrot.slane %v10775_v17, 4  ;;  %v10782_v6 = vsel %vm5144_vm2, %v10702_v40, -inf }
 0x9cf   :  { %v10783_v25 = vrot.slane %v10782_v6, 4  ;;  %v10789_v8 = vsel %vm5144_vm2, %v10709_v59, -inf  ;;  %v10804_v23 = vrot.slane %v10803_v16, 4  ;;  %v10810_v1 = vsel %vm5144_vm2, %v10718_v56, -inf }
 0x9d0   :  { %v10777_v55 = vmax.f32 %v10775_v17, %v10776_v22  ;;  %v10790_v28 = vrot.slane %v10789_v8, 4  ;;  %v10796_v50 = vsel %vm5144_vm2, %v10710_v18, -inf  ;;  %v10811_v36 = vrot.slane %v10810_v1, 4 }
 0x9d1   :  { %v15482_v2 = vmax.f32 %v10782_v6, %v10783_v25  ;;  %v10797_v24 = vrot.slane %v10796_v50, 4  ;;  %v10805_v46 = vmax.f32 %v10803_v16, %v10804_v23  ;;  %v10817_v54 = vsel %vm5144_vm2, %v10725_v58, -inf }
 0x9d2   :  { %v10778_v47 = vrot.slane %v10777_v55, 2  ;;  %v10791_v53 = vmax.f32 %v10789_v8, %v10790_v28  ;;  %v15485_v39 = vmax.f32 %v10810_v1, %v10811_v36  ;;  %v10818_v41 = vrot.slane %v10817_v54, 4 }
 0x9d3   :  { %v10785_v38 = vrot.slane %v15482_v2, 2  ;;  %v15488_v45 = vmax.f32 %v10796_v50, %v10797_v24  ;;  %v10806_v21 = vrot.slane %v10805_v46, 2  ;;  %v10824_v32 = vsel %vm5144_vm2, %v10726_v13, -inf }
 0x9d4   :  { %v15491_v19 = vmax.f32 %v10777_v55, %v10778_v47  ;;  %v10792_v26 = vrot.slane %v10791_v53, 2  ;;  %v10813_v52 = vrot.slane %v15485_v39, 2  ;;  %v10819_v37 = vmax.f32 %v10817_v54, %v10818_v41 }
 0x9d5   :  { %v10799_v0 = vrot.slane %v15488_v45, 2  ;;  %v15495_v44 = vmax.f32 %v10805_v46, %v10806_v21  ;;  %v10825_v27 = vrot.slane %v10824_v32, 4  ;;  %v10733_v30 = vrot.slane %v10685_v42, %v15970_v31 }
 0x9d6   :  { %v10780_v3 = vrot.slane %v15491_v19, 1  ;;  %v15499_v63 = vmax.f32 %v10791_v53, %v10792_v26  ;;  %v10820_v48 = vrot.slane %v10819_v37, 2  ;;  %v10741_v62 = vrot.slane %v10693_v34, %v15970_v31 }
 0x9d7   :  { %v10808_v43 = vrot.slane %v15495_v44, 1  ;;  %v15503_v51 = vmax.f32 %v10824_v32, %v10825_v27  ;;  %v10734_v57 = vcombine.high %v10733_v30, %v10733_v30  ;;  %v10749_v49 = vrot.slane %v10692_v9, %v15970_v31 }
 0x9d8   :  { %v10794_v15 = vrot.slane %v15499_v63, 1  ;;  %v15507_v10 = vmax.f32 %v10819_v37, %v10820_v48  ;;  %v10742_v11 = vcombine.high %v10741_v62, %v10741_v62  ;;  %v10757_v35 = vrot.slane %v10694_v4, %v15970_v31 }
 0x9d9   :  { %v10827_v7 = vrot.slane %v15503_v51, 2  ;;  %v10750_v29 = vcombine.high %v10749_v49, %v10749_v49  ;;  %v10831_v33 = vsel %vm5144_vm2, %v10733_v30, -inf  ;;  %v10838_v20 = vsel %vm5144_vm2, %v10734_v57, -inf }
 0x9da   :  { %v10822_v12 = vrot.slane %v15507_v10, 1  ;;  %v10758_v5 = vcombine.high %v10757_v35, %v10757_v35  ;;  %v10832_v42 = vrot.slane %v10831_v33, 4  ;;  %v10839_v40 = vrot.slane %v10838_v20, 4 }
 0x9db   :  { %v10845_v9 = vsel %vm5144_vm2, %v10741_v62, -inf  ;;  %v10852_v59 = vsel %vm5144_vm2, %v10742_v11, -inf  ;;  %v10859_v56 = vsel %vm5144_vm2, %v10749_v49, -inf  ;;  %v10866_v31 = vsel %vm5144_vm2, %v10750_v29, -inf }
 0x9dc   :  { %v10833_v58 = vmax.f32 %v10831_v33, %v10832_v42  ;;  %v10840_v17 = vmax.f32 %v10838_v20, %v10839_v40  ;;  %v10846_v16 = vrot.slane %v10845_v9, 4  ;;  %v10853_v34 = vrot.slane %v10852_v59, 4 }
 0x9dd   :  { %v10860_v4 = vrot.slane %v10859_v56, 4  ;;  %v10867_v18 = vrot.slane %v10866_v31, 4  ;;  %v10873_v13 = vsel %vm5144_vm2, %v10757_v35, -inf  ;;  %v10880_v22 = vsel %vm5144_vm2, %v10758_v5, -inf }
 0x9de   :  { %v10834_v6 = vrot.slane %v10833_v58, 2  ;;  %v10841_v25 = vrot.slane %v10840_v17, 2  ;;  %v10847_v8 = vmax.f32 %v10845_v9, %v10846_v16  ;;  %v10854_v23 = vmax.f32 %v10852_v59, %v10853_v34 }
 0x9df   :  { %v10861_v1 = vmax.f32 %v10859_v56, %v10860_v4  ;;  %v10868_v55 = vmax.f32 %v10866_v31, %v10867_v18  ;;  %v10874_v28 = vrot.slane %v10873_v13, 4  ;;  %v10881_v50 = vrot.slane %v10880_v22, 4 }
 0x9e0   :  { %v10835_v36 = vmax.f32 %v10833_v58, %v10834_v6  ;;  %v10842_v24 = vmax.f32 %v10840_v17, %v10841_v25  ;;  %v10848_v46 = vrot.slane %v10847_v8, 2  ;;  %v10855_v54 = vrot.slane %v10854_v23, 2 }
 0x9e1   :  { %v10862_v47 = vrot.slane %v10861_v1, 2  ;;  %v10869_v53 = vrot.slane %v10868_v55, 2  ;;  %v10875_v41 = vmax.f32 %v10873_v13, %v10874_v28  ;;  %v10882_v21 = vmax.f32 %v10880_v22, %v10881_v50  ;;  %v12789_v28 = vld [vmem:[%s15698_s7 + $0x148] sm:$0xff]  }
 0x9e2   :  { %v10836_v32 = vrot.slane %v10835_v36, 1  ;;  %v10849_v26 = vmax.f32 %v10847_v8, %v10848_v46  ;;  %v10786_v37 = vmax.f32 %v15482_v2, %v10785_v38  ;;  %v10843_v27 = vrot.slane %v10842_v24, 1 }
 0x9e3   :  { %v10863_v30 = vmax.f32 %v10861_v1, %v10862_v47  ;;  %v10870_v48 = vmax.f32 %v10868_v55, %v10869_v53  ;;  %v10876_v62 = vrot.slane %v10875_v41, 2  ;;  %v10883_v57 = vrot.slane %v10882_v21, 2 }
 0x9e4   :  { %v10837_v49 = vmax.f32 %v10835_v36, %v10836_v32  ;;  %v10850_v11 = vrot.slane %v10849_v26, 1  ;;  %v10787_v35 = vrot.slane %v10786_v37, 1  ;;  %v10844_v29 = vmax.f32 %v10842_v24, %v10843_v27  ;;  %v12793_v27 = vld [vmem:[%s15698_s7 + $0x150] sm:$0xff]  }
 0x9e5   :  { %v10864_v33 = vrot.slane %v10863_v30, 1  ;;  %v15521_v20 = vmax.f32 %v10875_v41, %v10876_v62  ;;  %v10781_v5 = vmax.f32 %v15491_v19, %v10780_v3  ;;  %v10800_v42 = vmax.f32 %v15488_v45, %v10799_v0 }
 0x9e6   :  { %v10788_v40 = vmax.f32 %v10786_v37, %v10787_v35  ;;  %v10908_v2 = vadd.f32 %v15472_v60, %v10844_v29  ;;  %v10907_v38 = vadd.f32 %v15469_v14, %v10837_v49  ;;  %v10856_v9 = vmax.f32 %v10854_v23, %v10855_v54  ;;  %v12786_v23 = vld [vmem:[%s15698_s7 + $0x100] sm:$0xff]   ;;  %v12791_v29 = vld [vmem:[%s15698_s7 + $0x1c8] sm:$0xff]  }
 0x9e7   :  { %v10865_v59 = vmax.f32 %v10863_v30, %v10864_v33  ;;  %v10878_v56 = vrot.slane %v15521_v20, 1  ;;  %v10899_v31 = vadd.f32 %v15469_v14, %v10781_v5  ;;  %v10801_v58 = vrot.slane %v10800_v42, 1 }
 0x9e8   :  { %v10900_v17 = vadd.f32 %v15472_v60, %v10788_v40  ;;  %v10921_v16 = vrot.slane %v10908_v2, 7  ;;  %v10919_v19 = vrot.slane %v10907_v38, 7  ;;  %v10857_v3 = vrot.slane %v10856_v9, 1  ;;  %v12794_v38 = vld [vmem:[%s15698_s7 + $0x110] sm:$0xff]  }
 0x9e9   :  { %v10802_v34 = vmax.f32 %v10800_v42, %v10801_v58  ;;  %v10814_v45 = vmax.f32 %v15485_v39, %v10813_v52  ;;  %v10871_v0 = vrot.slane %v10870_v48, 1  ;;  %v10795_v4 = vmax.f32 %v15499_v63, %v10794_v15 }
 0x9ea   :  { %v10922_v18 = vsel %vm6390_vm8, %v10921_v16, %v10900_v17  ;;  %v10920_v13 = vsel %vm6390_vm8, %v10919_v19, %v10899_v31  ;;  %v10858_v22 = vmax.f32 %v10856_v9, %v10857_v3  ;;  %v10851_v6 = vmax.f32 %v10849_v26, %v10850_v11  ;;  %v12797_v9 = vld [vmem:[%s15698_s7 + $0x158] sm:$0xff]   ;;  %v12801_v19 = vld [vmem:[%s15698_s7 + $0x160] sm:$0xff]  }
 0x9eb   :  { %v10956_v25 = vpack.c.bf16 %v10922_v18, %v10922_v18  ;;  %v10955_v8 = vpack.c.bf16 %v10920_v13, %v10920_v13  ;;  %v10902_v1 = vadd.f32 %v15472_v60, %v10802_v34  ;;  %v10815_v39 = vrot.slane %v10814_v45, 1  ;;  %v12799_v34 = vld [vmem:[%s15698_s7 + $0x1d8] sm:$0xff]   ;;  %v12803_v18 = vld [vmem:[%s15698_s7 + $0x1e0] sm:$0xff]   ;;  %v12806_v13 = vld [vmem:[%s15698_s7 + $0x128] sm:$0xff]  }
 0x9ec   :  { %v10910_v52 = vadd.f32 %v15472_v60, %v10858_v22  ;;  %v10872_v55 = vmax.f32 %v10870_v48, %v10871_v0  ;;  %v10901_v63 = vadd.f32 %v15469_v14, %v10795_v4  ;;  %v10909_v15 = vadd.f32 %v15469_v14, %v10851_v6  ;;  %v12805_v0 = vld [vmem:[%s15698_s7 + $0x168] sm:$0xff]   ;;  %v12800_v4 = vld [vmem:[%s15698_s7 + $0x198] sm:$0xff]   ;;  %v12809_v22 = vld [vmem:[%s15698_s7 + $0x170] sm:$0xff]  }
 0x9ed   :  { %11514 = vmatprep.mubr.bf16.mxu0 %v10956_v25  ;;  %v10816_v50 = vmax.f32 %v10814_v45, %v10815_v39  ;;  %v10828_v36 = vmax.f32 %v15503_v51, %v10827_v7  ;;  %v10884_v24 = vmax.f32 %v10882_v21, %v10883_v57  ;;  %v10809_v46 = vmax.f32 %v15495_v44, %v10808_v43  ;;  %v12790_v51 = vld [vmem:[%s15698_s7 + $0x108] sm:$0xff]   ;;  %v12788_v57 = vld [vmem:[%s15698_s7 + $0x180] sm:$0xff]   ;;  %v12811_v39 = vld [vmem:[%s15698_s7 + $0x1f0] sm:$0xff]  }
 0x9ee   :  { %11515 = vmatmul.mubr.bf16.vlgmr.msra.gmra.mrb[44].mxu0 %v10955_v8  ;;  %v10931_v54 = vrot.slane %v10910_v52, 7  ;;  %v10912_v47 = vadd.f32 %v15472_v60, %v10872_v55  ;;  %v10929_v53 = vrot.slane %v10909_v15, 7  ;;  %v10911_v41 = vadd.f32 %v15469_v14, %v10865_v59  ;;  %v12802_v45 = vld [vmem:[%s15698_s7 + $0x120] sm:$0xff]   ;;  %v12807_v25 = vld [vmem:[%s15698_s7 + $0x1e8] sm:$0xff]   ;;  %v12810_v8 = vld [vmem:[%s15698_s7 + $0x130] sm:$0xff]  }
 0x9ef   :  { %12233 = vmatpush3.bf16.msra.mxu0 %v12786_v23  ;;  %v10904_v32 = vadd.f32 %v15472_v60, %v10816_v50  ;;  %v10829_v26 = vrot.slane %v10828_v36, 1  ;;  %v10885_v37 = vrot.slane %v10884_v24, 1  ;;  %v10903_v7 = vadd.f32 %v15469_v14, %v10809_v46  ;;  %v12804_v6 = vld [vmem:[%s15698_s7 + $0x1a0] sm:$0xff]   ;;  %v12813_v23 = vld [vmem:[%s15698_s7 + $0x178] sm:$0xff]   ;;  %v12812_v55 = vld [vmem:[%s15698_s7 + $0x1b0] sm:$0xff]  }
 0x9f0   :  { %v10932_v44 = vsel %vm6390_vm8, %v10931_v54, %v10902_v1  ;;  %v10941_v43 = vrot.slane %v10912_v47, 7  ;;  %v10930_v21 = vsel %vm6390_vm8, %v10929_v53, %v10901_v63  ;;  %12234 = vmatprep.subr.bf16.mxu0 %v12789_v28  ;;  %v10939_v30 = vrot.slane %v10911_v41, 7  ;;  %v12808_v1 = vld [vmem:[%s15698_s7 + $0x1a8] sm:$0xff]   ;;  %v12814_v52 = vld [vmem:[%s15698_s7 + $0x138] sm:$0xff]   ;;  %v12819_v46 = vld [vmem:[%s15700_s9 + $0x10] sm:$0xff]  }
 0x9f1   :  { %v10958_v48 = vpack.c.bf16 %v10932_v44, %v10932_v44  ;;  %v10957_v62 = vpack.c.bf16 %v10930_v21, %v10930_v21  ;;  %v10830_v49 = vmax.f32 %v10828_v36, %v10829_v26  ;;  %v10886_v11 = vmax.f32 %v10884_v24, %v10885_v37  ;;  %v12815_v63 = vld [vmem:[%s15698_s7 + $0x1f8] sm:$0xff]   ;;  %v12817_v36 = vld [vmem:[%s15700_s9] sm:$0xff]   ;;  %v12818_v24 = vld [vmem:[%s15700_s9 + $0x8] sm:$0xff]  }
 0x9f2   :  { %v10942_v35 = vsel %vm6390_vm8, %v10941_v43, %v10904_v32  ;;  %v15576_v33 = vsel %vm6390_vm8, %v10939_v30, %v10903_v7  ;;  %v10823_v5 = vmax.f32 %v15507_v10, %v10822_v12  ;;  %v10879_v42 = vmax.f32 %v15521_v20, %v10878_v56  ;;  %v12792_v20 = vld [vmem:[%s15698_s7 + $0x188] sm:$0xff]   ;;  %v12795_v56 = vld [vmem:[%s15698_s7 + $0x1d0] sm:$0xff]   ;;  %v12816_v28 = vld [vmem:[%s15698_s7 + $0x1b8] sm:$0xff]  }
 0x9f3   :  { %11554 = vmatprep.mubr.bf16.mxu1 %v10958_v48  ;;  %v10960_v40 = vpack.c.bf16 %v10942_v35, %v10942_v35  ;;  %v10914_v2 = vadd.f32 %v15472_v60, %v10886_v11  ;;  %12235 = vmatpush3.bf16.msra.mxu0 %v12790_v51  ;;  %v10906_v10 = vadd.f32 %v15472_v60, %v10830_v49  ;;  %v12798_v60 = vld [vmem:[%s15698_s7 + $0x118] sm:$0xff]  }
 0x9f4   :  { %11555 = vmatmul.mubr.bf16.vlgmr.msra.gmra.mrb[44].mxu1 %v10957_v62  ;;  %12236 = vmatprep.subr.bf16.mxu0 %v12793_v27  ;;  %v10913_v59 = vadd.f32 %v15469_v14, %v10879_v42  ;;  %v10905_v31 = vadd.f32 %v15469_v14, %v10823_v5  ;;  %v12796_v14 = vld [vmem:[%s15698_s7 + $0x190] sm:$0xff]   ;;  %v10959_v15 = vpack.c.bf16 %v15576_v33, %v15576_v33  ;;  %v12820_v54 = vld [vmem:[%s15700_s9 + $0x18] sm:$0xff]   ;;  %s13012_s9 = smov [#allocation22]  }
 0x9f5   :  { %11594 = vmatprep.mubr.bf16.mxu0 %v10960_v40  ;;  %12255 = vmatpush3.bf16.msra.mxu1 %v12788_v57  ;;  %v10951_v12 = vrot.slane %v10914_v2, 7  ;;  %v12115_v26 = vld [vmem:[#allocation19] ss:$0 sm:$0xff]  ;;  %s11734_s20 = sshll.u32 %s13012_s9, 4  ;;  %s11735_s20 = int_to_ptr.vmem [resolvable:$true] %s11734_s20 }
 0x9f6   :  { %12256 = vmatprep.subr.bf16.mxu1 %v12791_v29  ;;  %v10949_v58 = vrot.slane %v10913_v59, 7  ;;  %s12953_s13 = scalar_lea.vmem %s11735_s20, 32  ;;  %p12958_p7 = scmp.lt.s32.totalorder %s11735_s20, %s11735_s20 }
 0x9f7   :  { %v10952_v17 = vsel %vm6390_vm8, %v10951_v12, %v10906_v10  ;;  %12237 = vmatpush3.bf16.msra.mxu0 %v12794_v38  ;;  %v12180_v38 = vld [vmem:[#allocation20] ss:$0 sm:$0xff]  ;;  %p12954_p6 = scmp.ne.s32.totalorder %s11735_s20, %s12953_s13  ;;  %p12959_p8 = scmp.lt.s32.totalorder %s12953_s13, %s12953_s13 }
 0x9f8   :  { %v10962_v16 = vpack.c.bf16 %v10952_v17, %v10952_v17  ;;  %12238 = vmatprep.subr.bf16.mxu0 %v12797_v9  ;;  %v10950_v3 = vsel %vm6390_vm8, %v10949_v58, %v10905_v31 }
 0x9f9   :  { %12257 = vmatpush3.bf16.msra.mxu1 %v12792_v20  ;;  %v10961_v50 = vpack.c.bf16 %v10950_v3, %v10950_v3  ;;  %p12960_p9 = por %p12959_p8, %p12958_p7 }
 0x9fa   :  { %11634 = vmatprep.mubr.bf16.mxu1 %v10962_v16  ;;  %12258 = vmatprep.subr.bf16.mxu1 %v12795_v56 }
 0x9fb   :  { %12239 = vmatpush3.bf16.msra.mxu0 %v12798_v60  ;;  %p12961_p10 = pnand %p12960_p9, %p12954_p6 }
 0x9fc   :  { %12240 = vmatprep.subr.bf16.mxu0 %v12801_v19 }
 0x9fd   :  { %12259 = vmatpush3.bf16.msra.mxu1 %v12796_v14 }
 0x9fe   :  { %12260 = vmatprep.subr.bf16.mxu1 %v12799_v34 }
 0x9ff   :  { %12241 = vmatpush3.bf16.msra.mxu0 %v12802_v45 }
 0xa00   :  { %12242 = vmatprep.subr.bf16.mxu0 %v12805_v0 }
 0xa01   :  { %12261 = vmatpush3.bf16.msra.mxu1 %v12800_v4 }
 0xa02   :  { %12262 = vmatprep.subr.bf16.mxu1 %v12803_v18 }
 0xa03   :  { %12243 = vmatpush3.bf16.msra.mxu0 %v12806_v13 }
 0xa04   :  { %12244 = vmatprep.subr.bf16.mxu0 %v12809_v22 }
 0xa05   :  { %12263 = vmatpush3.bf16.msra.mxu1 %v12804_v6 }
 0xa06   :  { %12264 = vmatprep.subr.bf16.mxu1 %v12807_v25 }
 0xa07   :  { %12245 = vmatpush3.bf16.msra.mxu0 %v12810_v8 }
 0xa08   :  { %12246 = vmatprep.subr.bf16.mxu0 %v12813_v23 }
 0xa09   :  { %12265 = vmatpush3.bf16.msra.mxu1 %v12808_v1 }
 0xa0a   :  { %12266 = vmatprep.subr.bf16.mxu1 %v12811_v39 }
 0xa0b   :  { %12247 = vmatpush3.bf16.msra.mxu0 %v12814_v52 }
 0xa0c   :  { %12281 = vmatprep.subr.bf16.mxu0 %v15875_v61 }
 0xa0d   :  { %12267 = vmatpush3.bf16.msra.mxu1 %v12812_v55 }
 0xa0e   :  { %12268 = vmatprep.subr.bf16.mxu1 %v12815_v63  ;;  %11595 = vmatmul.mubr.bf16.vlgmr.msra.gmra.mrb[48].mxu0 %v10959_v15 }
 0xa0f   :  { %12282 = vmatpush3.bf16.msra.mxu0 %v12817_v36  ;;  %12289 = vmatprep.mubr.msk.bf16.mxu0 %vm13011_vm14, %v15875_v61 }
 0xa10   :  { %12283 = vmatprep.subr.bf16.mxu0 %v15875_v61 }
 0xa11   :  { %12269 = vmatpush3.bf16.msra.mxu1 %v12816_v28 }
 0xa13   :  { %12284 = vmatpush3.bf16.msra.mxu0 %v12818_v24 }
 0xa14   :  { %11635 = vmatmul.mubr.bf16.vlgmr.msra.gmra.mrb[48].mxu1 %v10961_v50  ;;  %12285 = vmatprep.subr.bf16.mxu0 %v15875_v61 }
 0xa17   :  { %12286 = vmatpush3.bf16.msra.mxu0 %v12819_v46 }
 0xa18   :  { %12287 = vmatprep.subr.bf16.mxu0 %v15875_v61 }
 0xa1b   :  { %12288 = vmatpush3.bf16.msra.mxu0 %v12820_v54 }
 0xac1   :  { %v12204_v47 = vpop.f32.mrb[44].mxu0 }
 0xac2   :  { %v12205_v53 = vpop.f32.mrb[45].mxu0 }
 0xac3   :  { %v12206_v41 = vadd.f32 %v12205_v53, %v12204_v47  ;;  %v12207_v32 = vpop.f32.mrb[46].mxu0 }
 0xac4   :  { %v12208_v37 = vpop.f32.mrb[47].mxu0 }
 0xac5   :  { %v11517_v51 = vadd.f32 %v12206_v41, %v12115_v26 }
 0xac7   :  { %v12226_v7 = vpop.f32.mrb[44].mxu1 }
 0xac8   :  { %v12227_v44 = vpop.f32.mrb[45].mxu1 }
 0xac9   :  { %v12228_v43 = vadd.f32 %v12227_v44, %v12226_v7  ;;  %v12229_v21 = vpop.f32.mrb[46].mxu1 }
 0xaca   :  { %v12230_v27 = vpop.f32.mrb[47].mxu1 }
 0xacb   :  { %v11557_v30 = vadd.f32 %v12228_v43, %v11517_v51 }
 0xae1   :  { %v12248_v48 = vpop.f32.mrb[48].mxu0 }
 0xae2   :  { %v12249_v62 = vpop.f32.mrb[49].mxu0 }
 0xae3   :  { %v12250_v57 = vadd.f32 %v12249_v62, %v12248_v48  ;;  %v12251_v49 = vpop.f32.mrb[50].mxu0 }
 0xae4   :  { %v12252_v11 = vpop.f32.mrb[51].mxu0 }
 0xae5   :  { %v11597_v61 = vadd.f32 %v12250_v57, %v11557_v30 }
 0xae7   :  { %v12270_v35 = vpop.f32.mrb[48].mxu1 }
 0xae8   :  { %v12271_v29 = vpop.f32.mrb[49].mxu1 }
 0xae9   :  { %v12272_v33 = vadd.f32 %v12271_v29, %v12270_v35  ;;  %v12273_v5 = vpop.f32.mrb[50].mxu1 }
 0xaea   :  { %v12274_v42 = vpop.f32.mrb[51].mxu1 }
 0xaeb   :  { %v11637_v40 = vadd.f32 %v12272_v33, %v11597_v61 }
 0xaed   :  { %v11642_v2 = vpack.c.bf16 %v11637_v40, %v11637_v40 }
 0xaef   :  { %12290 = vmatmul.mubr.msk.bf16.vlgmr.msra.gmra.mrb[52].mxu0 %vm11682_vm15, %v11642_v2 }
 0xbc2   :  { %v11720_v9 = vpop.f32.mrb[52].mxu0 }
 0xbc3   :  { %v11721_v59 = vadd.f32 %v12180_v38, %v11720_v9  ;;  %v12291_v10 = vpop.f32.mrb[53].mxu0 }
 0xbc4   :  { %v11723_v12 = vpop.f32.mrb[54].mxu0 }
 0xbc5   :  { %v12292_v20 = vpop.f32.mrb[55].mxu0  ;;  %11727 = vst.msk [vmem:[#allocation22] sm:$0x3] %vm11726_vm0, %v11721_v59 }
 0xbc6   :  { %12964 = shalt.err (!%p12961_p10)
}
 0xbc7   :  { %s12965_s17 = scalar_lea.hbm %s15702_s11, 32 }
 0xbc8   :  { %p12966_p11 = scmp.ne.s32.totalorder %s15702_s11, %s12965_s17  ;;  %p12969_p12 = scmp.lt.u32.totalorder %s12965_s17, %s15702_s11 }
 0xbca   :  { %p12971_p13 = pnand %p12969_p12, %p12966_p11 }
 0xbcc   :  { %12974 = shalt.err (!%p12971_p13)
}
 0xbcd   :  { %11737 = dma.vmem_to_hbm [thread:$0]  %s11735_s20, 32, %s15702_s11, [#allocation13]  }
 0xbce   :  { %12987 = dma.done.wait [#allocation13], 32  }
 0xbcf   :  { %12988 = vsyncadd [#allocation13], 4294967264 }
 0xbd0   :  { %11741 = vsyncpa [#allocation12], 1 }
 0xbd1   :  { %11742 = vsyncpa [#allocation15], 1 }
 0xbd2   :  { %11743 = vsyncpa [#allocation18], 1 }
 0xbd3   :  { %11744 = vsyncpa [#allocation21], 1 }
 0xbd4   :  { %11745 = vsyncpa [#allocation13], 1 }
 0xbd5   :  { %11746 = vsyncmov [#allocation10] }
 0xbd8   :  { %s11747_s22 = vpop.sfrf %11746 }
 0xbd9   :  { %p12186_p0 = scmp.ne.s32.totalorder %s11747_s22, 0 }
 0xbdb   :  { %11751 = shalt.err (%p12186_p0)  }
 0xbdc   :  { %11753 = vsyncmov [#allocation10 + $0x1] }
 0xbdf   :  { %s11754_s24 = vpop.sfrf %11753 }
 0xbe0   :  { %p12187_p1 = scmp.ne.s32.totalorder %s11754_s24, 0 }
 0xbe2   :  { %11758 = shalt.err (%p12187_p1)  }

</bundles_post_ra>
